<compile_context>
chip_gen: v5e
topology: v5e:2x2
jax: 0.10.0
libtpu: 0.0.40
codegen_flags: <defaults>
</compile_context>

<pallas_src>
import functools

import jax
import jax.numpy as jnp
from jax.experimental import pallas as pl
from jax.experimental.pallas import tpu as pltpu

EXPANSION = 4                    # Bottleneck expansion (ResNet-50 style)
_VMEM_LIMIT = 32 * 1024 * 1024   # explicit, safe on v5e / v6e / v7x


def _round_up(v, m):
    return (v + m - 1) // m * m


# ---------------------------------------------------------------------------
# Fused tiled matmul kernel:  out = act((X @ W) + bias [+ residual])
# ---------------------------------------------------------------------------
def _fused_matmul_kernel(*refs, relu, has_residual):
    if has_residual:
        x_ref, w_ref, b_ref, r_ref, o_ref, acc_ref = refs
    else:
        x_ref, w_ref, b_ref, o_ref, acc_ref = refs
        r_ref = None

    @pl.when(pl.program_id(2) == 0)
    def _init():
        acc_ref[...] = jnp.zeros_like(acc_ref)

    acc_ref[...] += jnp.dot(x_ref[...], w_ref[...],
                            preferred_element_type=jnp.float32)

    @pl.when(pl.program_id(2) == pl.num_programs(2) - 1)
    def _finalize():
        y = acc_ref[...] + b_ref[...]                 # bias in f32
        if has_residual:
            y = y + r_ref[...].astype(jnp.float32)    # fused residual add
        if relu:
            y = jnp.maximum(y, 0.0)
        o_ref[...] = y.astype(o_ref.dtype)


def _matmul_tiles(m, k, n):
    # M: bf16 packs (16,128) per vreg -> tm multiples of 16; cap at 256 so
    # M >= 512 yields >= 2 parallel blocks (feeds v7x's second TensorCore)
    # while blocks stay fat enough to amortize per-grid-step overhead.
    if m <= 256:
        tm = _round_up(m, 16)
        mp = tm
    else:
        tm = 256
        mp = _round_up(m, tm)
    # K: prefer one full-extent block (no zero padding of the reduction);
    # otherwise the largest 128-multiple <= 1024 that divides round_up(K,128).
    if k <= 2048:
        tk, kp = k, k
    else:
        kp = _round_up(k, 128)
        tk = 128
        for cand in range(1024, 127, -128):
            if kp % cand == 0:
                tk = cand
                break
    # N: full extent up to 512 lanes; otherwise a 128-multiple tile.
    if n <= 512:
        tn, np_ = n, n
    else:
        np_ = _round_up(n, 128)
        tn = 128
        for cand in (512, 384, 256, 128):
            if np_ % cand == 0:
                tn = cand
                break
    return tm, mp, tk, kp, tn, np_


def fused_matmul(x, w, bias, residual=None, *, relu=False,
                 out_dtype=jnp.bfloat16):
    """x:(M,K)  w:(K,N)  bias:(N,)  residual:(M,N) or None."""
    m, k = x.shape
    k2, n = w.shape
    assert k == k2
    tm, mp, tk, kp, tn, np_ = _matmul_tiles(m, k, n)

    x = x.astype(jnp.bfloat16)
    w = w.astype(jnp.bfloat16)
    if mp != m or kp != k:
        x = jnp.pad(x, ((0, mp - m), (0, kp - k)))
    if kp != k or np_ != n:
        w = jnp.pad(w, ((0, kp - k), (0, np_ - n)))
    b = bias.reshape(1, n).astype(jnp.float32)
    if np_ != n:
        b = jnp.pad(b, ((0, 0), (0, np_ - n)))

    in_specs = [
        pl.BlockSpec((tm, tk), lambda i, j, kk: (i, kk)),
        pl.BlockSpec((tk, tn), lambda i, j, kk: (kk, j)),
        pl.BlockSpec((1, tn), lambda i, j, kk: (0, j)),
    ]
    args = [x, w, b]
    has_residual = residual is not None
    if has_residual:
        r = residual                       # keep caller dtype; added in f32
        if mp != m or np_ != n:
            r = jnp.pad(r, ((0, mp - m), (0, np_ - n)))
        in_specs.append(pl.BlockSpec((tm, tn), lambda i, j, kk: (i, j)))
        args.append(r)

    kern = functools.partial(_fused_matmul_kernel, relu=relu,
                             has_residual=has_residual)
    out = pl.pallas_call(
        kern,
        out_shape=jax.ShapeDtypeStruct((mp, np_), out_dtype),
        grid_spec=pltpu.PrefetchScalarGridSpec(
            num_scalar_prefetch=0,
            grid=(mp // tm, np_ // tn, kp // tk),
            in_specs=in_specs,
            out_specs=pl.BlockSpec((tm, tn), lambda i, j, kk: (i, j)),
            scratch_shapes=[pltpu.VMEM((tm, tn), jnp.float32)],
        ),
        compiler_params=pltpu.CompilerParams(
            dimension_semantics=("parallel", "parallel", "arbitrary"),
            vmem_limit_bytes=_VMEM_LIMIT,
        ),
    )(*args)
    if mp != m or np_ != n:
        out = out[:m, :n]
    return out


# ---------------------------------------------------------------------------
# Max-pool: lane-packed single-pass max over taps
# ---------------------------------------------------------------------------
def _max_taps_kernel(x_ref, o_ref):
    o_ref[...] = jnp.max(x_ref[...], axis=0).astype(o_ref.dtype)


def max_over_taps(taps):
    """taps: (T, M, C) -> elementwise max over T.

    The (M, C) plane is flattened and re-tiled to 128 lanes so the output
    stores are full-width `vst` (not masked) even when C is narrow (C=16 in
    the stem), and the whole tap axis is reduced in one grid step per tile.
    """
    t, m, c = taps.shape
    f = m * c
    rows0 = -(-f // 128)
    tr = min(512, _round_up(max(rows0, 1), 8))
    fp = _round_up(f, tr * 128)
    flat = taps.reshape(t, f)
    if fp != f:
        flat = jnp.pad(flat, ((0, 0), (0, fp - f)))
    rows = fp // 128
    x = flat.reshape(t, rows, 128)
    out = pl.pallas_call(
        _max_taps_kernel,
        out_shape=jax.ShapeDtypeStruct((rows, 128), taps.dtype),
        grid_spec=pltpu.PrefetchScalarGridSpec(
            num_scalar_prefetch=0,
            grid=(rows // tr,),
            in_specs=[pl.BlockSpec((t, tr, 128), lambda i: (0, i, 0))],
            out_specs=pl.BlockSpec((tr, 128), lambda i: (i, 0)),
        ),
        compiler_params=pltpu.CompilerParams(
            dimension_semantics=("parallel",),
            vmem_limit_bytes=_VMEM_LIMIT,
        ),
    )(x)
    out = out.reshape(fp)[:f] if fp != f else out.reshape(f)
    return out.reshape(m, c)


# ---------------------------------------------------------------------------
# Conv wrappers (1x1 bypasses im2col; KxK uses im2col glue + fused matmul)
# ---------------------------------------------------------------------------
def _im2col(x, kh, kw, stride, pad):
    # TODO(synk): avoid materializing the KH*KW-expanded patch tensor in HBM
    # (needs in-kernel shifted-window reads / manual DMA); only the 3x3/7x7
    # convs use this path.
    if pad > 0:
        x = jnp.pad(x, ((0, 0), (pad, pad), (pad, pad), (0, 0)))
    n, h, w, c = x.shape
    oh = (h - kh) // stride + 1
    ow = (w - kw) // stride + 1
    cols = []
    for i in range(kh):
        for j in range(kw):
            cols.append(x[:, i:i + stride * (oh - 1) + 1:stride,
                            j:j + stride * (ow - 1) + 1:stride, :])
    patches = jnp.stack(cols, axis=3)                 # (N, OH, OW, KH*KW, C)
    return patches.reshape(n * oh * ow, kh * kw * c), oh, ow


def conv2d(x, wm, bias, *, kh, kw, stride=1, pad=0, relu=False,
           residual=None, out_dtype=jnp.bfloat16):
    """NHWC conv with pre-fused weight matrix wm:(KH*KW*Cin, Cout) (BN folded)."""
    n = x.shape[0]
    cout = wm.shape[1]
    if kh == 1 and kw == 1 and pad == 0:
        if stride > 1:
            x = x[:, ::stride, ::stride, :]
        _, oh, ow, cin = x.shape
        xm = x.reshape(n * oh * ow, cin)
    else:
        xm, oh, ow = _im2col(x, kh, kw, stride, pad)
    res2d = None
    if residual is not None:
        res2d = residual.reshape(n * oh * ow, cout)
    y = fused_matmul(xm, wm, bias, res2d, relu=relu, out_dtype=out_dtype)
    return y.reshape(n, oh, ow, cout)


def max_pool_3x3_s2_p1(x):
    n, h, w, c = x.shape
    neg = jnp.finfo(x.dtype).min
    xp = jnp.pad(x, ((0, 0), (1, 1), (1, 1), (0, 0)), constant_values=neg)
    oh = (h + 2 - 3) // 2 + 1
    ow = (w + 2 - 3) // 2 + 1
    wins = []
    for i in range(3):
        for j in range(3):
            wins.append(xp[:, i:i + 2 * (oh - 1) + 1:2,
                              j:j + 2 * (ow - 1) + 1:2, :])
    taps = jnp.stack(wins, axis=0).reshape(9, n * oh * ow, c)
    return max_over_taps(taps).reshape(n, oh, ow, c)


def upsample2x_nearest(x):
    # TODO(synk): fold this nearest-2x read into the consumer's residual
    # BlockSpec / index_map (coarse-row gather) instead of materializing it;
    # kept as a single fused XLA broadcast+reshape (no repeat copies).
    n, h, w, c = x.shape
    y = jnp.broadcast_to(x[:, :, None, :, None, :], (n, h, 2, w, 2, c))
    return y.reshape(n, 2 * h, 2 * w, c)


# ---------------------------------------------------------------------------
# Parameter init: BN (scale) folded into the bf16 weight matrix, bias kept f32
# ---------------------------------------------------------------------------
def _conv_w(key, cout, cin, kh, kw):
    fan_in = cin * kh * kw
    return jax.random.normal(key, (cout, cin, kh, kw), jnp.float32) * (2.0 / fan_in) ** 0.5


def _bn_scale_bias(key, c, eps=1e-5):
    k1, k2, k3, k4 = jax.random.split(key, 4)
    gamma = 1.0 + 0.1 * jax.random.normal(k1, (c,), jnp.float32)
    beta = 0.1 * jax.random.normal(k2, (c,), jnp.float32)
    mean = 0.1 * jax.random.normal(k3, (c,), jnp.float32)
    var = 0.5 + jax.nn.softplus(jax.random.normal(k4, (c,), jnp.float32))
    scale = gamma / jnp.sqrt(var + eps)
    bias = beta - mean * scale
    return scale, bias


def _fuse_conv_bn(wkey, bnkey, cout, cin, kh, kw):
    w = _conv_w(wkey, cout, cin, kh, kw)
    scale, bias = _bn_scale_bias(bnkey, cout)
    wm = jnp.transpose(w, (2, 3, 1, 0)).reshape(kh * kw * cin, cout)
    wm = (wm * scale[None, :]).astype(jnp.bfloat16)   # fold BN scale into W
    return {'w': wm, 'b': bias, 'kh': kh, 'kw': kw}


def _conv_bias(wkey, bkey, cout, cin, kh, kw):
    w = _conv_w(wkey, cout, cin, kh, kw)
    bias = 0.01 * jax.random.normal(bkey, (cout,), jnp.float32)
    wm = jnp.transpose(w, (2, 3, 1, 0)).reshape(kh * kw * cin, cout)
    return {'w': wm.astype(jnp.bfloat16), 'b': bias, 'kh': kh, 'kw': kw}


def init_bottleneck(key, inplanes, planes, stride):
    ks = jax.random.split(key, 8)
    p = {
        'conv1': _fuse_conv_bn(ks[0], ks[1], planes, inplanes, 1, 1),
        'conv2': _fuse_conv_bn(ks[2], ks[3], planes, planes, 3, 3),
        'conv3': _fuse_conv_bn(ks[4], ks[5], planes * EXPANSION, planes, 1, 1),
        'stride': stride,
    }
    if stride != 1 or inplanes != planes * EXPANSION:
        p['downsample'] = _fuse_conv_bn(ks[6], ks[7], planes * EXPANSION, inplanes, 1, 1)
    return p


def init_params(key, *, base_width=16, layers=(1, 1, 1, 1), fpn_out=64):
    planes_list = (base_width, base_width * 2, base_width * 4, base_width * 8)
    keys = iter(jax.random.split(key, 64))

    backbone = {'stem_conv': _fuse_conv_bn(next(keys), next(keys), base_width, 3, 7, 7)}
    inplanes = base_width
    all_layers, in_channels_list = [], []
    for li, (planes, nblocks) in enumerate(zip(planes_list, layers)):
        stride = 1 if li == 0 else 2
        blocks = []
        for bi in range(nblocks):
            blocks.append(init_bottleneck(next(keys), inplanes, planes,
                                          stride if bi == 0 else 1))
            inplanes = planes * EXPANSION
        all_layers.append(blocks)
        in_channels_list.append(inplanes)
    backbone['layers'] = all_layers

    fpn = {'inner': [], 'layer': [], 'out_channels': fpn_out}
    for c in in_channels_list:
        k1, k2 = jax.random.split(next(keys))
        fpn['inner'].append(_conv_bias(k1, k2, fpn_out, c, 1, 1))
    for _ in in_channels_list:
        k1, k2 = jax.random.split(next(keys))
        fpn['layer'].append(_conv_bias(k1, k2, fpn_out, fpn_out, 3, 3))
    return {'backbone': backbone, 'fpn': fpn}


# ---------------------------------------------------------------------------
# Forward passes (body = IntermediateLayerGetter, then FPN)
# ---------------------------------------------------------------------------
def bottleneck_forward(p, x):
    # TODO(synk): fuse the whole conv1->conv2->conv3 chain into one pallas_call
    # per M-tile (weights fit in VMEM); kept as 3-4 fused-matmul calls for now.
    c1, c2, c3 = p['conv1'], p['conv2'], p['conv3']
    out = conv2d(x, c1['w'], c1['b'], kh=1, kw=1, relu=True)
    out = conv2d(out, c2['w'], c2['b'], kh=3, kw=3, stride=p['stride'], pad=1,
                 relu=True)
    if 'downsample' in p:
        d = p['downsample']
        identity = conv2d(x, d['w'], d['b'], kh=1, kw=1, stride=p['stride'])
    else:
        identity = x
    # conv3 + BN + residual add + ReLU fused in one Pallas matmul epilogue
    return conv2d(out, c3['w'], c3['b'], kh=1, kw=1, relu=True,
                  residual=identity)


def backbone_forward(params, x):
    st = params['stem_conv']
    x = conv2d(x, st['w'], st['b'], kh=7, kw=7, stride=2, pad=3, relu=True)
    x = max_pool_3x3_s2_p1(x)
    feats = []
    for layer in params['layers']:
        for block in layer:
            x = bottleneck_forward(block, x)
        feats.append(x)                              # return_layers: layer1..4
    return feats


def fpn_forward(params, feats):
    # Coarsest level: plain lateral 1x1 conv, then its 3x3 output conv.
    p_in = params['inner'][-1]
    last = conv2d(feats[-1], p_in['w'], p_in['b'], kh=1, kw=1)
    p_out = params['layer'][-1]
    results = [conv2d(last, p_out['w'], p_out['b'], kh=3, kw=3, pad=1)]

    for idx in range(len(feats) - 2, -1, -1):
        top_down = upsample2x_nearest(last)
        p_in = params['inner'][idx]
        # lateral 1x1 conv + top-down merge fused in one Pallas matmul epilogue
        last = conv2d(feats[idx], p_in['w'], p_in['b'], kh=1, kw=1,
                      residual=top_down)
        p_out = params['layer'][idx]
        results.insert(0, conv2d(last, p_out['w'], p_out['b'], kh=3, kw=3, pad=1))

    # TODO(synk): LastLevelMaxPool (kernel=1, stride=2) is pure subsampling —
    # no compute — so it stays as a JAX strided slice.
    results.append(results[-1][:, ::2, ::2, :])
    return results


def backbone_with_fpn_forward(params, x_nchw):
    x = jnp.transpose(x_nchw, (0, 2, 3, 1)).astype(jnp.bfloat16)  # NCHW -> NHWC
    feats = backbone_forward(params['backbone'], x)
    outs = fpn_forward(params['fpn'], feats)
    names = ['0', '1', '2', '3', 'pool']
    return {n: jnp.transpose(o.astype(jnp.float32), (0, 3, 1, 2))
            for n, o in zip(names, outs)}


# ---------------------------------------------------------------------------
if __name__ == "__main__":
    key = jax.random.PRNGKey(0)
    pkey, xkey, tkey = jax.random.split(key, 3)

    # --- unit check 1: tiled fused matmul (multi-block M grid + padding +
    #     fused bias/residual/ReLU) against a plain JAX reference ------------
    k1, k2, k3, k4 = jax.random.split(tkey, 4)
    xt = jax.random.normal(k1, (1000, 1200), jnp.float32).astype(jnp.bfloat16)
    wt = jax.random.normal(k2, (1200, 384), jnp.float32).astype(jnp.bfloat16)
    bt = jax.random.normal(k3, (384,), jnp.float32)
    rt = jax.random.normal(k4, (1000, 384), jnp.float32).astype(jnp.bfloat16)
    got = fused_matmul(xt, wt, bt, rt, relu=True, out_dtype=jnp.float32)
    ref = jnp.maximum(xt.astype(jnp.float32) @ wt.astype(jnp.float32)
                      + bt[None, :] + rt.astype(jnp.float32), 0.0)
    err = float(jnp.max(jnp.abs(got - ref))) / (float(jnp.max(jnp.abs(ref))) + 1.0)
    assert err < 1e-2, f"fused_matmul mismatch: rel err {err}"

    # --- unit check 2: lane-packed max-pool against a plain JAX reference ---
    xmp = jax.random.normal(k1, (2, 16, 16, 16), jnp.float32).astype(jnp.bfloat16)
    got_mp = max_pool_3x3_s2_p1(xmp)
    neg = jnp.finfo(xmp.dtype).min
    xpd = jnp.pad(xmp, ((0, 0), (1, 1), (1, 1), (0, 0)), constant_values=neg)
    oh = ow = 8
    ref_mp = jnp.stack([xpd[:, i:i + 2 * (oh - 1) + 1:2, j:j + 2 * (ow - 1) + 1:2, :]
                        for i in range(3) for j in range(3)], axis=0).max(axis=0)
    assert bool(jnp.all(got_mp == ref_mp)), "max_pool mismatch"

    # --- full network ------------------------------------------------------
    params = init_params(pkey, base_width=16, layers=(1, 1, 1, 1), fpn_out=64)
    x = jax.random.normal(xkey, (2, 3, 64, 64), jnp.float32)   # NCHW like PyTorch

    fwd = jax.jit(lambda inp: backbone_with_fpn_forward(params, inp))
    out = fwd(x)
    jax.block_until_ready(out)

    expected = {'0': (2, 64, 16, 16), '1': (2, 64, 8, 8), '2': (2, 64, 4, 4),
                '3': (2, 64, 2, 2), 'pool': (2, 64, 1, 1)}
    for name, shape in expected.items():
        assert out[name].shape == shape, (name, out[name].shape)
        assert out[name].dtype == jnp.float32
        assert bool(jnp.all(jnp.isfinite(out[name])))

    print("KERNEL_OK")
</pallas_src>

<mosaic_0001>
module attributes {stable_mosaic.version = 11 : i64} {
  func.func @_fused_matmul_kernel(%arg0: i32, %arg1: i32, %arg2: i32, %arg3: memref<256x1200xbf16, #tpu.memory_space<vmem>>, %arg4: memref<1200x384xbf16, #tpu.memory_space<vmem>>, %arg5: memref<1x384xf32, #tpu.memory_space<vmem>>, %arg6: memref<256x384xbf16, #tpu.memory_space<vmem>>, %arg7: memref<256x384xf32, #tpu.memory_space<vmem>>, %arg8: memref<256x384xf32, #tpu.memory_space<vmem>>) attributes {dimension_semantics = [#tpu.dimension_semantics<parallel>, #tpu.dimension_semantics<parallel>, #tpu.dimension_semantics<arbitrary>], iteration_bounds = array<i64: 4, 1, 1>, scalar_prefetch = 0 : i64, scratch_operands = 1 : i64, tpu.core_type = #tpu.core_type<tc>, window_params = [{transform_indices = @transform_0, window_bounds = array<i64: 256, 1200>}, {transform_indices = @transform_1, window_bounds = array<i64: 1200, 384>}, {transform_indices = @transform_2, window_bounds = array<i64: 1, 384>}, {transform_indices = @transform_3, window_bounds = array<i64: 256, 384>}, {transform_indices = @transform_4, window_bounds = array<i64: 256, 384>}]} {
    %c0_i32 = arith.constant 0 : i32
    %0 = arith.cmpi eq, %arg2, %c0_i32 : i32
    %1 = arith.extui %0 : i1 to i32
    %c0_i32_0 = arith.constant 0 : i32
    %2 = arith.cmpi ne, %1, %c0_i32_0 : i32
    scf.if %2 {
      %cst_10 = arith.constant 0.000000e+00 : f32
      %12 = vector.broadcast %cst_10 : f32 to vector<256x384xf32>
      %c0_11 = arith.constant 0 : index
      %c0_12 = arith.constant 0 : index
      %13 = vector.load %arg8[%c0_11, %c0_12] : memref<256x384xf32, #tpu.memory_space<vmem>>, vector<256x384xf32>
      tpu.vector_store %arg8[%c0_11, %c0_12], %12 {strides = array<i32>} : memref<256x384xf32, #tpu.memory_space<vmem>>, vector<256x384xf32>,
    } else {
    }
    %c0 = arith.constant 0 : index
    %c0_1 = arith.constant 0 : index
    %3 = vector.load %arg8[%c0, %c0_1] : memref<256x384xf32, #tpu.memory_space<vmem>>, vector<256x384xf32>
    %c0_2 = arith.constant 0 : index
    %c0_3 = arith.constant 0 : index
    %4 = vector.load %arg3[%c0_2, %c0_3] : memref<256x1200xbf16, #tpu.memory_space<vmem>>, vector<256x1200xbf16>
    %c0_4 = arith.constant 0 : index
    %c0_5 = arith.constant 0 : index
    %5 = vector.load %arg4[%c0_4, %c0_5] : memref<1200x384xbf16, #tpu.memory_space<vmem>>, vector<1200x384xbf16>
    %cst = arith.constant dense<0.000000e+00> : vector<256x384xf32>
    %6 = tpu.matmul %4, %5, %cst {dimension_numbers = #tpu.dot_dimension_numbers<[1], [0], [0], [1], [0, 0, 1, 1], [], []>} : vector<256x1200xbf16>, vector<1200x384xbf16>, vector<256x384xf32> -> vector<256x384xf32>
    %7 = arith.addf %3, %6 : vector<256x384xf32>
    %c0_6 = arith.constant 0 : index
    %c0_7 = arith.constant 0 : index
    %8 = vector.load %arg8[%c0_6, %c0_7] : memref<256x384xf32, #tpu.memory_space<vmem>>, vector<256x384xf32>
    tpu.vector_store %arg8[%c0_6, %c0_7], %7 {strides = array<i32>} : memref<256x384xf32, #tpu.memory_space<vmem>>, vector<256x384xf32>,
    %c0_i32_8 = arith.constant 0 : i32
    %9 = arith.cmpi eq, %arg2, %c0_i32_8 : i32
    %10 = arith.extui %9 : i1 to i32
    %c0_i32_9 = arith.constant 0 : i32
    %11 = arith.cmpi ne, %10, %c0_i32_9 : i32
    scf.if %11 {
      %c0_10 = arith.constant 0 : index
      %c0_11 = arith.constant 0 : index
      %12 = vector.load %arg8[%c0_10, %c0_11] : memref<256x384xf32, #tpu.memory_space<vmem>>, vector<256x384xf32>
      %c0_12 = arith.constant 0 : index
      %c0_13 = arith.constant 0 : index
      %13 = vector.load %arg5[%c0_12, %c0_13] : memref<1x384xf32, #tpu.memory_space<vmem>>, vector<1x384xf32>
      %14 = vector.broadcast %13 : vector<1x384xf32> to vector<256x384xf32>
      %15 = arith.addf %12, %14 : vector<256x384xf32>
      %c0_14 = arith.constant 0 : index
      %c0_15 = arith.constant 0 : index
      %16 = vector.load %arg6[%c0_14, %c0_15] : memref<256x384xbf16, #tpu.memory_space<vmem>>, vector<256x384xbf16>
      %17 = arith.extf %16 : vector<256x384xbf16> to vector<256x384xf32>
      %18 = arith.addf %15, %17 : vector<256x384xf32>
      %cst_16 = arith.constant 0.000000e+00 : f32
      %19 = vector.broadcast %cst_16 : f32 to vector<256x384xf32>
      %20 = arith.maximumf %18, %19 : vector<256x384xf32>
      %c0_17 = arith.constant 0 : index
      %c0_18 = arith.constant 0 : index
      %21 = vector.load %arg7[%c0_17, %c0_18] : memref<256x384xf32, #tpu.memory_space<vmem>>, vector<256x384xf32>
      tpu.vector_store %arg7[%c0_17, %c0_18], %20 {strides = array<i32>} : memref<256x384xf32, #tpu.memory_space<vmem>>, vector<256x384xf32>,
    } else {
    }
    return
  }
  func.func @transform_0(%arg0: i32, %arg1: i32, %arg2: i32) -> (i32, i32) {
    %c0_i32 = arith.constant 0 : i32
    return %arg0, %arg2 : i32, i32
  }
  func.func @transform_1(%arg0: i32, %arg1: i32, %arg2: i32) -> (i32, i32) {
    %c0_i32 = arith.constant 0 : i32
    return %arg2, %arg1 : i32, i32
  }
  func.func @transform_2(%arg0: i32, %arg1: i32, %arg2: i32) -> (i32, i32) {
    %c0_i32 = arith.constant 0 : i32
    %c0_i32_0 = arith.constant 0 : i32
    return %c0_i32, %arg1 : i32, i32
  }
  func.func @transform_3(%arg0: i32, %arg1: i32, %arg2: i32) -> (i32, i32) {
    %c0_i32 = arith.constant 0 : i32
    return %arg0, %arg1 : i32, i32
  }
  func.func @transform_4(%arg0: i32, %arg1: i32, %arg2: i32) -> (i32, i32) {
    %c0_i32 = arith.constant 0 : i32
    return %arg0, %arg1 : i32, i32
  }
}

</mosaic_0001>

<bundles_post_ra>
// kernel: tpu_custom_call.1
= control target key start
LH: loop header
LB: loop body
LE: loop exit
PB: predicated region body
PF: predicated region fallthrough
CT: control target
= control target key end

     0   :  { %9 = vsyncpa [#allocation4], 0  ;;  %s12414_s0 = inlined_call_operand.vmem [shape: bf16[1024,1200], index: 0, kind: input, shape index: {}]   ;;  %s12415_s1 = inlined_call_operand.vmem [shape: bf16[1200,384], index: 1, kind: input, shape index: {}]   ;;  %s12416_s2 = inlined_call_operand.vmem [shape: f32[1,384], index: 2, kind: input, shape index: {}]   ;;  %s12417_s3 = inlined_call_operand.vmem [shape: bf16[1024,384], index: 3, kind: input, shape index: {}]   ;;  %s12418_s4 = inlined_call_operand.hbm [shape: f32[1024,384], index: 4, kind: output, shape index: {}]  }
   0x1   :  { %11 = vsyncpa [#allocation4 + $0x1], 0  ;;  %s8903_s15 = smov 0   ;;  %s8905_s16 = smov 0  }
   0x2   :  { %s8907_s17 = smov 0   ;;  %s8909_s18 = smov 0  }
   0x3   :  { %s8911_s19 = smov 0   ;;  %s8913_s20 = smov 0  }
   0x4 LB: > { %s6696_s21 = sadd.s32 4294967295, %s8874_s20   ;;  %s6697_s22 = sadd.s32 4294967294, %s8874_s20   ;;  %s8874_s20 = sphi %s8913_s20, %s17_s20   ;;  %s8870_s19 = sphi %s8911_s19, %s13172_s19   ;;  %s8866_s18 = sphi %s8909_s18, %s13171_s18   ;;  %s8862_s17 = sphi %s8907_s17, %s13170_s17   ;;  %s8858_s16 = sphi %s8905_s16, %s13169_s16   ;;  %s8854_s15 = sphi %s8903_s15, %s13168_s15  }
   0x5   : > { %s36_s23 = sadd.s32 1, %s8870_s19  ;;  %s155_s24 = sadd.s32 1, %s8862_s17 }
   0x6   : > { %p38_p0 = scmp.ge.s32.totalorder %s36_s23, 4  ;;  %p165_p1 = scmp.ne.s32.totalorder %s8862_s17, %s8858_s16 }
   0x7   : > { %p166_p2 = scmp.eq.s32.totalorder %s6696_s21, 3  ;;  %p171_p3 = scmp.ne.s32.totalorder %s8858_s16, %s8854_s15 }
   0x8   : > { %s13174_s23 = smov (%p38_p0, %s36_s23), 0  ;;  %p172_p5 = scmp.eq.s32.totalorder %s6697_s22, 3 }
   0x9   : > { %p8943_p4 = por %p166_p2, %p165_p1  ;;  %s150_s26 = ssub.s32 %s8870_s19, %s13174_s23 }
   0xa   : > { %p6702_p6 = scmp.ge.s32.totalorder %s8874_s20, 1  ;;  %p153_p7 = scmp.eq.s32.totalorder %s150_s26, 0 }
   0xb   : > { %p8950_p8 = por %p172_p5, %p171_p3  ;;  %p243_p9 = scmp.lt.s32.totalorder %s8874_s20, 5 }
   0xc   : > { %s8956_s28 = scalar_select %p153_p7, %s8862_s17, %s155_s24  }
   0xd   : > { %p244_p10 = pnand %p6702_p6, %p243_p9 }
   0xf   : > { %247 = sbr.rel (%p244_p10) target bundleno = 2116 (0x844), region = 36 }
  0x14   : > { %v7433_v0 = vld [vmem:[%s12415_s1 + $0xa8] sm:$0xf]  ;;  %v8482_v1 = vld [vmem:[%s12415_s1 + $0xb0] sm:$0xf0]  ;;  %v7421_v5 = vld [vmem:[%s12415_s1 + $0x90] sm:$0xf] }
  0x15   : > { %v7529_v2 = vld [vmem:[%s12415_s1 + $0x168] sm:$0xf]  ;;  %v7434_v3 = vor.u32 %v8482_v1, %v7433_v0  ;;  %v8506_v4 = vld [vmem:[%s12415_s1 + $0x170] sm:$0xf0]  ;;  %v8479_v6 = vld [vmem:[%s12415_s1 + $0x98] sm:$0xf0] }
  0x16   : > { %v7530_v7 = vor.u32 %v8506_v4, %v7529_v2  ;;  %v7517_v8 = vld [vmem:[%s12415_s1 + $0x150] sm:$0xf]  ;;  %v8503_v9 = vld [vmem:[%s12415_s1 + $0x158] sm:$0xf0]  ;;  %v7422_v10 = vor.u32 %v8479_v6, %v7421_v5  ;;  %v7409_v12 = vld [vmem:[%s12415_s1 + $0x78] sm:$0xf] }
  0x17   : > { %8685 = vmatpush.bf16.msra.mxu2 %v7434_v3  ;;  %3031 = vmatpush.bf16.msra.mxu0 %v7434_v3  ;;  %v7518_v11 = vor.u32 %v8503_v9, %v7517_v8  ;;  %v8476_v13 = vld [vmem:[%s12415_s1 + $0x80] sm:$0xf0]  ;;  %v7505_v14 = vld [vmem:[%s12415_s1 + $0x138] sm:$0xf]  ;;  %v7397_v18 = vld [vmem:[%s12415_s1 + $0x60] sm:$0xf] }
  0x18   : > { %8693 = vmatpush.bf16.msra.mxu3 %v7530_v7  ;;  %3120 = vmatpush.bf16.msra.mxu1 %v7530_v7  ;;  %v8500_v15 = vld [vmem:[%s12415_s1 + $0x140] sm:$0xf0]  ;;  %v7410_v16 = vor.u32 %v8476_v13, %v7409_v12  ;;  %v8473_v19 = vld [vmem:[%s12415_s1 + $0x68] sm:$0xf0]  ;;  %v7493_v20 = vld [vmem:[%s12415_s1 + $0x120] sm:$0xf] }
  0x19   : > { %v7506_v17 = vor.u32 %v8500_v15, %v7505_v14  ;;  %v8497_v21 = vld [vmem:[%s12415_s1 + $0x128] sm:$0xf0]  ;;  %s6703_s29 = sshll.u32 %s8866_s18, 5  ;;  %v7398_v22 = vor.u32 %v8473_v19, %v7397_v18  ;;  %v7385_v24 = vld [vmem:[%s12415_s1 + $0x48] sm:$0xf]  ;;  %vm2982_vm0 = vcmask 392192  }
  0x1a   : > { %p300_p11 = scmp.lt.s32.totalorder %s6703_s29, 127  ;;  %v7494_v23 = vor.u32 %v8497_v21, %v7493_v20  ;;  %v8470_v25 = vld [vmem:[%s12415_s1 + $0x50] sm:$0xf0]  ;;  %v7481_v26 = vld [vmem:[%s12415_s1 + $0x108] sm:$0xf]  ;;  %s295_s24 = sand.u32 1, %s8858_s16  }
  0x1b   : > { %8686 = vmatpush.bf16.msra.mxu2 %v7422_v10  ;;  %3032 = vmatpush.bf16.msra.mxu0 %v7422_v10  ;;  %v8494_v27 = vld [vmem:[%s12415_s1 + $0x110] sm:$0xf0]  ;;  %v7386_v28 = vor.u32 %v8470_v25, %v7385_v24  ;;  %v7373_v30 = vld [vmem:[%s12415_s1 + $0x30] sm:$0xf]  ;;  %v8467_v31 = vld [vmem:[%s12415_s1 + $0x38] sm:$0xf0] }
  0x1c   : > { %8694 = vmatpush.bf16.msra.mxu3 %v7518_v11  ;;  %3121 = vmatpush.bf16.msra.mxu1 %v7518_v11  ;;  %s13176_s29 = smov (!%p300_p11, %s6703_s29), 127  ;;  %v7482_v29 = vor.u32 %v8494_v27, %v7481_v26  ;;  %v7469_v32 = vld [vmem:[%s12415_s1 + $0xf0] sm:$0xf]  ;;  %v8491_v33 = vld [vmem:[%s12415_s1 + $0xf8] sm:$0xf0]  ;;  %v7374_v34 = vor.u32 %v8467_v31, %v7373_v30  ;;  %s8701_s9 = smul.u32 768, %s295_s24 }
  0x1d   : > { %s8702_s5 = smul.u32 40, %s13176_s29  ;;  %v7470_v35 = vor.u32 %v8491_v33, %v7469_v32  ;;  %v7361_v36 = vld [vmem:[%s12415_s1 + $0x18] sm:$0xf]  ;;  %v8464_v37 = vld [vmem:[%s12415_s1 + $0x20] sm:$0xf0]  ;;  %s8816_s14 = scalar_lea.hbm %s12418_s4, 3072 }
  0x1e   : > { %v7457_v38 = vld [vmem:[%s12415_s1 + $0xd8] sm:$0xf]  ;;  %v8488_v39 = vld [vmem:[%s12415_s1 + $0xe0] sm:$0xf0]  ;;  %v7362_v40 = vor.u32 %v8464_v37, %v7361_v36  ;;  %v7349_v41 = vld [vmem:[%s12415_s1] sm:$0xf] }
  0x1f   : > { %8687 = vmatpush.bf16.msra.mxu2 %v7410_v16  ;;  %3033 = vmatpush.bf16.msra.mxu0 %v7410_v16  ;;  %s9052_s26 = scalar_lea.vmem %s12414_s0, %s8702_s5  ;;  %v7458_v42 = vor.u32 %v8488_v39, %v7457_v38  ;;  %v8461_v43 = vld [vmem:[%s12415_s1 + $0x8] sm:$0xf0]  ;;  %v7445_v44 = vld [vmem:[%s12415_s1 + $0xc0] sm:$0xf]  ;;  %v7625_v46 = vld [vmem:[%s12415_s1 + $0x228] sm:$0xf] }
  0x20   : > { %8695 = vmatpush.bf16.msra.mxu3 %v7506_v17  ;;  %3122 = vmatpush.bf16.msra.mxu1 %v7506_v17  ;;  %v8485_v45 = vld [vmem:[%s12415_s1 + $0xc8] sm:$0xf0]  ;;  %v8530_v47 = vld [vmem:[%s12415_s1 + $0x230] sm:$0xf0]  ;;  %v7721_v48 = vld [vmem:[%s12415_s1 + $0x2e8] sm:$0xf]  ;;  %v7350_v52 = vor.u32 %v8461_v43, %v7349_v41 }
  0x21   : > { %v7029_v49 = vld [vmem:[%s9052_s26 + $0x280] sm:$0xf]  ;;  %v8385_v50 = vld [vmem:[%s9052_s26 + $0x2a4] sm:$0xf0]  ;;  %v8554_v51 = vld [vmem:[%s12415_s1 + $0x2f0] sm:$0xf0]  ;;  %v7446_v58 = vor.u32 %v8485_v45, %v7445_v44  ;;  %v7626_v62 = vor.u32 %v8530_v47, %v7625_v46 }
  0x22   : > { %v8380_v53 = vld [vmem:[%s9052_s26 + $0x284] sm:$0xf]  ;;  %v6709_v54 = vld [vmem:[%s9052_s26] sm:$0xf]  ;;  %v8305_v55 = vld [vmem:[%s9052_s26 + $0x24] sm:$0xf0]  ;;  %v7722_v63 = vor.u32 %v8554_v51, %v7721_v48  ;;  %v9098_v3 = vor.u32 %v8385_v50, %v7029_v49 }
  0x23   : > { %8688 = vmatpush.bf16.msra.mxu2 %v7398_v22  ;;  %3034 = vmatpush.bf16.msra.mxu0 %v7398_v22  ;;  %v7817_v56 = vld [vmem:[%s12415_s1 + $0x3a8] sm:$0xf]  ;;  %v8578_v57 = vld [vmem:[%s12415_s1 + $0x3b0] sm:$0xf0]  ;;  %v7031_v59 = vld [vmem:[%s9052_s26 + $0x2a8] sm:$0xf0]  ;;  %v9100_v4 = vor.u32 %v8305_v55, %v6709_v54 }
  0x24   : > { %8696 = vmatpush.bf16.msra.mxu3 %v7494_v23  ;;  %3123 = vmatpush.bf16.msra.mxu1 %v7494_v23  ;;  %v8300_v60 = vld [vmem:[%s9052_s26 + $0x4] sm:$0xf]  ;;  %v6711_v61 = vld [vmem:[%s9052_s26 + $0x28] sm:$0xf0]  ;;  %v7913_v0 = vld [vmem:[%s12415_s1 + $0x468] sm:$0xf]  ;;  %v9111_v8 = vor.u32 %v8380_v53, %v7031_v59  ;;  %v7818_v10 = vor.u32 %v8578_v57, %v7817_v56 }
  0x25   : > { %v8602_v1 = vld [vmem:[%s12415_s1 + $0x470] sm:$0xf0]  ;;  %v7613_v2 = vld [vmem:[%s12415_s1 + $0x210] sm:$0xf]  ;;  %12717 = vst [vmem:[#allocation6_spill] sm:$0xff] %v9098_v3  ;;  %v9113_v9 = vor.u32 %v8300_v60, %v6711_v61  ;;  %s8703_s30 = smul.u32 12, %s13176_s29 }
  0x26   : > { %v8527_v5 = vld [vmem:[%s12415_s1 + $0x218] sm:$0xf0]  ;;  %v7709_v6 = vld [vmem:[%s12415_s1 + $0x2d0] sm:$0xf]  ;;  %12718 = vst [vmem:[#allocation7_spill] sm:$0xff] %v9111_v8  ;;  %v7914_v11 = vor.u32 %v8602_v1, %v7913_v0  ;;  %s10424_s29 = scalar_lea.vmem [#allocation3], %s8701_s9 }
  0x27   : > { %8689 = vmatpush.bf16.msra.mxu2 %v7386_v28  ;;  %3035 = vmatpush.bf16.msra.mxu0 %v7386_v28  ;;  %v8551_v7 = vld [vmem:[%s12415_s1 + $0x2d8] sm:$0xf0]  ;;  %v7805_v12 = vld [vmem:[%s12415_s1 + $0x390] sm:$0xf]  ;;  %v7614_v13 = vor.u32 %v8527_v5, %v7613_v2  ;;  %v7601_v18 = vld [vmem:[%s12415_s1 + $0x1f8] sm:$0xf]  ;;  %s10380_s12 = scalar_lea.vmem %s12417_s3, %s8703_s30 }
  0x28   : > { %8697 = vmatpush.bf16.msra.mxu3 %v7482_v29  ;;  %3124 = vmatpush.bf16.msra.mxu1 %v7482_v29  ;;  %v7710_v14 = vor.u32 %v8551_v7, %v7709_v6  ;;  %v8575_v15 = vld [vmem:[%s12415_s1 + $0x398] sm:$0xf0]  ;;  %v7901_v16 = vld [vmem:[%s12415_s1 + $0x450] sm:$0xf]  ;;  %v8524_v19 = vld [vmem:[%s12415_s1 + $0x200] sm:$0xf0] }
  0x29   : > { %v8599_v17 = vld [vmem:[%s12415_s1 + $0x458] sm:$0xf0]  ;;  %v7806_v20 = vor.u32 %v8575_v15, %v7805_v12  ;;  %v7697_v22 = vld [vmem:[%s12415_s1 + $0x2b8] sm:$0xf]  ;;  %v8548_v23 = vld [vmem:[%s12415_s1 + $0x2c0] sm:$0xf0]  ;;  %v7602_v25 = vor.u32 %v8524_v19, %v7601_v18 }
  0x2a   : > { %v7902_v21 = vor.u32 %v8599_v17, %v7901_v16  ;;  %v7793_v24 = vld [vmem:[%s12415_s1 + $0x378] sm:$0xf]  ;;  %v7698_v26 = vor.u32 %v8548_v23, %v7697_v22  ;;  %v8572_v27 = vld [vmem:[%s12415_s1 + $0x380] sm:$0xf0]  ;;  %v7069_v32 = vld [vmem:[%s9052_s26 + $0x2d0] sm:$0xf] }
  0x2b   : > { %8690 = vmatpush.bf16.msra.mxu2 %v7374_v34  ;;  %3036 = vmatpush.bf16.msra.mxu0 %v7374_v34  ;;  %v7889_v28 = vld [vmem:[%s12415_s1 + $0x438] sm:$0xf]  ;;  %v8596_v29 = vld [vmem:[%s12415_s1 + $0x440] sm:$0xf0]  ;;  %v7794_v30 = vor.u32 %v8572_v27, %v7793_v24  ;;  %v8390_v34 = vld [vmem:[%s9052_s26 + $0x2d4] sm:$0xf] }
  0x2c   : > { %8698 = vmatpush.bf16.msra.mxu3 %v7470_v35  ;;  %3125 = vmatpush.bf16.msra.mxu1 %v7470_v35  ;;  %v7890_v31 = vor.u32 %v8596_v29, %v7889_v28  ;;  %v8395_v33 = vld [vmem:[%s9052_s26 + $0x2f4] sm:$0xf0]  ;;  %v6749_v35 = vld [vmem:[%s9052_s26 + $0x50] sm:$0xf]  ;;  %v7071_v37 = vld [vmem:[%s9052_s26 + $0x2f8] sm:$0xf0] }
  0x2d   : > { %v8315_v36 = vld [vmem:[%s9052_s26 + $0x74] sm:$0xf0]  ;;  %v8310_v38 = vld [vmem:[%s9052_s26 + $0x54] sm:$0xf]  ;;  %v6751_v39 = vld [vmem:[%s9052_s26 + $0x78] sm:$0xf0] }
  0x2e   : > { %v9165_v41 = vor.u32 %v8315_v36, %v6749_v35  ;;  %v9169_v43 = vor.u32 %v8310_v38, %v6751_v39  ;;  %v7589_v44 = vld [vmem:[%s12415_s1 + $0x1e0] sm:$0xf]  ;;  %v8521_v45 = vld [vmem:[%s12415_s1 + $0x1e8] sm:$0xf0]  ;;  %v8405_v57 = vld [vmem:[%s9052_s26 + $0x344] sm:$0xf0] }
  0x2f   : > { %8691 = vmatpush.bf16.msra.mxu2 %v7362_v40  ;;  %3037 = vmatpush.bf16.msra.mxu0 %v7362_v40  ;;  %v9163_v40 = vor.u32 %v8395_v33, %v7069_v32  ;;  %v7590_v46 = vor.u32 %v8521_v45, %v7589_v44  ;;  %v7685_v47 = vld [vmem:[%s12415_s1 + $0x2a0] sm:$0xf]  ;;  %v8545_v48 = vld [vmem:[%s12415_s1 + $0x2a8] sm:$0xf0]  ;;  %v8325_v60 = vld [vmem:[%s9052_s26 + $0xc4] sm:$0xf0] }
  0x30   : > { %8699 = vmatpush.bf16.msra.mxu3 %v7458_v42  ;;  %3126 = vmatpush.bf16.msra.mxu1 %v7458_v42  ;;  %v9167_v42 = vor.u32 %v8390_v34, %v7071_v37  ;;  %v7781_v49 = vld [vmem:[%s12415_s1 + $0x360] sm:$0xf]  ;;  %v7686_v50 = vor.u32 %v8545_v48, %v7685_v47  ;;  %v8569_v51 = vld [vmem:[%s12415_s1 + $0x368] sm:$0xf0]  ;;  %v7577_v6 = vld [vmem:[%s12415_s1 + $0x1c8] sm:$0xf] }
  0x31   : > { %12719 = vst [vmem:[#allocation8_spill] sm:$0xff] %v9163_v40  ;;  %v8593_v53 = vld [vmem:[%s12415_s1 + $0x428] sm:$0xf0]  ;;  %v7782_v54 = vor.u32 %v8569_v51, %v7781_v49  ;;  %v7109_v56 = vld [vmem:[%s9052_s26 + $0x320] sm:$0xf]  ;;  %s8704_s6 = smul.u32 768, %s8866_s18 }
  0x32   : > { %12720 = vst [vmem:[#allocation9_spill] sm:$0xff] %v9167_v42  ;;  %v6789_v59 = vld [vmem:[%s9052_s26 + $0xa0] sm:$0xf]  ;;  %v7111_v61 = vld [vmem:[%s9052_s26 + $0x348] sm:$0xf0]  ;;  %v9207_v0 = vor.u32 %v8405_v57, %v7109_v56  ;;  %s6560_s18 = sshll.u32 %s10424_s29, 4  ;;  %s6561_s18 = int_to_ptr.vmem [resolvable:$true] %s6560_s18 }
  0x33   : > { %8692 = vmatpush.bf16.msra.mxu2 %v7350_v52  ;;  %3038 = vmatpush.bf16.msra.mxu0 %v7350_v52  ;;  %v7877_v52 = vld [vmem:[%s12415_s1 + $0x420] sm:$0xf]  ;;  %v9209_v1 = vor.u32 %v8325_v60, %v6789_v59  ;;  %v8518_v7 = vld [vmem:[%s12415_s1 + $0x1d0] sm:$0xf0]  ;;  %v7865_v16 = vld [vmem:[%s12415_s1 + $0x408] sm:$0xf]  ;;  %s6559_s9 = scalar_lea.hbm %s12418_s4, %s8704_s6 }
  0x34   : > { %8700 = vmatpush.bf16.msra.mxu3 %v7446_v58  ;;  %3127 = vmatpush.bf16.msra.mxu1 %v7446_v58  ;;  %v7878_v55 = vor.u32 %v8593_v53, %v7877_v52  ;;  %v8400_v58 = vld [vmem:[%s9052_s26 + $0x324] sm:$0xf]  ;;  %12721 = vst [vmem:[#allocation10_spill] sm:$0xff] %v9207_v0  ;;  %v8542_v12 = vld [vmem:[%s12415_s1 + $0x290] sm:$0xf0] }
  0x35   : > { %12722 = vst [vmem:[#allocation11_spill] sm:$0xff] %v9209_v1  ;;  %v9211_v2 = vor.u32 %v8400_v58, %v7111_v61  ;;  %v8566_v15 = vld [vmem:[%s12415_s1 + $0x350] sm:$0xf0]  ;;  %v6829_v23 = vld [vmem:[%s9052_s26 + $0xf0] sm:$0xf] }
  0x36   : > { %3079 = vmatmul.bf16.vlgmr.msra.gmra.mxu2 %v9098_v3  ;;  %3039 = vmatmul.bf16.vlgmr.msra.gmra.mxu0 %v9100_v4  ;;  %v8590_v17 = vld [vmem:[%s12415_s1 + $0x410] sm:$0xf0]  ;;  %v8335_v24 = vld [vmem:[%s9052_s26 + $0x114] sm:$0xf0]  ;;  %v6831_v27 = vld [vmem:[%s9052_s26 + $0x118] sm:$0xf0] }
  0x37   : > { %3209 = vmatpush.bf16.msrb.mxu2 %v7626_v62  ;;  %3168 = vmatmul.bf16.vlgmr.msra.gmra.mxu3 %v9111_v8  ;;  %v8320_v62 = vld [vmem:[%s9052_s26 + $0xa4] sm:$0xf]  ;;  %12723 = vst [vmem:[#allocation12_spill] sm:$0xff] %v9211_v2  ;;  %v7866_v19 = vor.u32 %v8590_v17, %v7865_v16  ;;  %v8410_v22 = vld [vmem:[%s9052_s26 + $0x374] sm:$0xf]  ;;  %v9253_v29 = vor.u32 %v8335_v24, %v6829_v23 }
  0x38   : > { %3298 = vmatpush.bf16.msrb.mxu3 %v7722_v63  ;;  %3128 = vmatmul.bf16.vlgmr.msra.gmra.mxu1 %v9113_v9  ;;  %v6791_v63 = vld [vmem:[%s9052_s26 + $0xc8] sm:$0xf0]  ;;  %v7565_v32 = vld [vmem:[%s12415_s1 + $0x1b0] sm:$0xf]  ;;  %v8515_v33 = vld [vmem:[%s12415_s1 + $0x1b8] sm:$0xf0] }
  0x39   : > { %3387 = vmatpush.bf16.msrb.mxu0 %v7818_v10  ;;  %3476 = vmatpush.bf16.msrb.mxu1 %v7914_v11  ;;  %v9213_v5 = vor.u32 %v8320_v62, %v6791_v63  ;;  %v7578_v10 = vor.u32 %v8518_v7, %v7577_v6  ;;  %v7673_v11 = vld [vmem:[%s12415_s1 + $0x288] sm:$0xf]  ;;  %12726 = vst [vmem:[#allocation15_spill] sm:$0xff] %v9253_v29  ;;  %v7661_v35 = vld [vmem:[%s12415_s1 + $0x270] sm:$0xf] }
  0x3a   : > { %v7566_v34 = vor.u32 %v8515_v33, %v7565_v32  ;;  %v8539_v36 = vld [vmem:[%s12415_s1 + $0x278] sm:$0xf0]  ;;  %v7757_v37 = vld [vmem:[%s12415_s1 + $0x330] sm:$0xf]  ;;  %v7189_v48 = vld [vmem:[%s9052_s26 + $0x3c0] sm:$0xf] }
  0x3b   : > { %3210 = vmatpush.bf16.msrb.mxu2 %v7614_v13  ;;  %12724 = vst [vmem:[#allocation13_spill] sm:$0xff] %v9213_v5  ;;  %v7769_v13 = vld [vmem:[%s12415_s1 + $0x348] sm:$0xf]  ;;  %v7662_v38 = vor.u32 %v8539_v36, %v7661_v35  ;;  %v8563_v39 = vld [vmem:[%s12415_s1 + $0x338] sm:$0xf0] }
  0x3c   : > { %3299 = vmatpush.bf16.msrb.mxu3 %v7710_v14  ;;  %v7674_v14 = vor.u32 %v8542_v12, %v7673_v11  ;;  %v7770_v18 = vor.u32 %v8566_v15, %v7769_v13  ;;  %v7853_v44 = vld [vmem:[%s12415_s1 + $0x3f0] sm:$0xf]  ;;  %v8587_v45 = vld [vmem:[%s12415_s1 + $0x3f8] sm:$0xf0]  ;;  %v8425_v49 = vld [vmem:[%s9052_s26 + $0x3e4] sm:$0xf0] }
  0x3d   : > { %3388 = vmatpush.bf16.msrb.mxu0 %v7806_v20  ;;  %3477 = vmatpush.bf16.msrb.mxu1 %v7902_v21  ;;  %v7149_v20 = vld [vmem:[%s9052_s26 + $0x370] sm:$0xf]  ;;  %v8415_v21 = vld [vmem:[%s9052_s26 + $0x394] sm:$0xf0]  ;;  %v7854_v47 = vor.u32 %v8587_v45, %v7853_v44  ;;  %v6869_v51 = vld [vmem:[%s9052_s26 + $0x140] sm:$0xf]  ;;  %v9295_v56 = vor.u32 %v8425_v49, %v7189_v48 }
  0x3e   : > { %v9251_v28 = vor.u32 %v8415_v21, %v7149_v20  ;;  %v8345_v52 = vld [vmem:[%s9052_s26 + $0x164] sm:$0xf0]  ;;  %v7191_v53 = vld [vmem:[%s9052_s26 + $0x3e8] sm:$0xf0]  ;;  %v7553_v60 = vld [vmem:[%s12415_s1 + $0x198] sm:$0xf] }
  0x3f   : > { %3211 = vmatpush.bf16.msrb.mxu2 %v7602_v25  ;;  %v7151_v25 = vld [vmem:[%s9052_s26 + $0x398] sm:$0xf0]  ;;  %12729 = vst [vmem:[#allocation18_spill] sm:$0xff] %v9295_v56  ;;  %v9297_v57 = vor.u32 %v8345_v52, %v6869_v51  ;;  %v8512_v61 = vld [vmem:[%s12415_s1 + $0x1a0] sm:$0xf0] }
  0x40   : > { %3300 = vmatpush.bf16.msrb.mxu3 %v7698_v26  ;;  %v8330_v26 = vld [vmem:[%s9052_s26 + $0xf4] sm:$0xf]  ;;  %12725 = vst [vmem:[#allocation14_spill] sm:$0xff] %v9251_v28  ;;  %v7554_v62 = vor.u32 %v8512_v61, %v7553_v60  ;;  %v7649_v63 = vld [vmem:[%s12415_s1 + $0x258] sm:$0xf] }
  0x41   : > { %3389 = vmatpush.bf16.msrb.mxu0 %v7794_v30  ;;  %3478 = vmatpush.bf16.msrb.mxu1 %v7890_v31  ;;  %v9255_v30 = vor.u32 %v8410_v22, %v7151_v25  ;;  %v9257_v31 = vor.u32 %v8330_v26, %v6831_v27  ;;  %12730 = vst [vmem:[#allocation19_spill] sm:$0xff] %v9297_v57  ;;  %v8536_v6 = vld [vmem:[%s12415_s1 + $0x260] sm:$0xf0]  ;;  %v7745_v7 = vld [vmem:[%s12415_s1 + $0x318] sm:$0xf] }
  0x42   : > { %v8560_v11 = vld [vmem:[%s12415_s1 + $0x320] sm:$0xf0]  ;;  %v7841_v12 = vld [vmem:[%s12415_s1 + $0x3d8] sm:$0xf]  ;;  %v7229_v16 = vld [vmem:[%s9052_s26 + $0x410] sm:$0xf] }
  0x43   : > { %3212 = vmatpush.bf16.msrb.mxu2 %v7590_v46  ;;  %12727 = vst [vmem:[#allocation16_spill] sm:$0xff] %v9255_v30  ;;  %v7758_v46 = vor.u32 %v8563_v39, %v7757_v37  ;;  %v8584_v13 = vld [vmem:[%s12415_s1 + $0x3e0] sm:$0xf0]  ;;  %v8435_v17 = vld [vmem:[%s9052_s26 + $0x434] sm:$0xf0] }
  0x44   : > { %3301 = vmatpush.bf16.msrb.mxu3 %v7686_v50  ;;  %12728 = vst [vmem:[#allocation17_spill] sm:$0xff] %v9257_v31  ;;  %v8420_v50 = vld [vmem:[%s9052_s26 + $0x3c4] sm:$0xf]  ;;  %v7842_v15 = vor.u32 %v8584_v13, %v7841_v12  ;;  %v8355_v20 = vld [vmem:[%s9052_s26 + $0x1b4] sm:$0xf0]  ;;  %v9339_v24 = vor.u32 %v8435_v17, %v7229_v16 }
  0x45   : > { %3390 = vmatpush.bf16.msrb.mxu0 %v7782_v54  ;;  %3479 = vmatpush.bf16.msrb.mxu1 %v7878_v55  ;;  %v8340_v54 = vld [vmem:[%s9052_s26 + $0x144] sm:$0xf]  ;;  %v6871_v55 = vld [vmem:[%s9052_s26 + $0x168] sm:$0xf0]  ;;  %v9299_v58 = vor.u32 %v8420_v50, %v7191_v53  ;;  %v7231_v21 = vld [vmem:[%s9052_s26 + $0x438] sm:$0xf0] }
  0x46   : > { %3084 = vmatmul.bf16.gmra.mxu2 %v9163_v40  ;;  %3044 = vmatmul.bf16.gmra.mxu0 %v9165_v41  ;;  %v9301_v59 = vor.u32 %v8340_v54, %v6871_v55  ;;  %v8350_v22 = vld [vmem:[%s9052_s26 + $0x194] sm:$0xf]  ;;  %v6911_v23 = vld [vmem:[%s9052_s26 + $0x1b8] sm:$0xf0]  ;;  %12733 = vst [vmem:[#allocation22_spill] sm:$0xff] %v9339_v24 }
  0x47   : > { %3173 = vmatmul.bf16.gmra.mxu3 %v9167_v42  ;;  %3213 = vmatpush.bf16.msrb.mxu2 %v7578_v10  ;;  %12731 = vst [vmem:[#allocation20_spill] sm:$0xff] %v9299_v58  ;;  %v7650_v10 = vor.u32 %v8536_v6, %v7649_v63  ;;  %v9345_v27 = vor.u32 %v8350_v22, %v6911_v23  ;;  %v7541_v32 = vld [vmem:[%s12415_s1 + $0x180] sm:$0xf]  ;;  %v8509_v33 = vld [vmem:[%s12415_s1 + $0x188] sm:$0xf0] }
  0x48   : > { %3133 = vmatmul.bf16.gmra.mxu1 %v9169_v43  ;;  %3302 = vmatpush.bf16.msrb.mxu3 %v7674_v14  ;;  %12732 = vst [vmem:[#allocation21_spill] sm:$0xff] %v9301_v59  ;;  %v7746_v14 = vor.u32 %v8560_v11, %v7745_v7  ;;  %v7637_v35 = vld [vmem:[%s12415_s1 + $0x240] sm:$0xf]  ;;  %v8533_v36 = vld [vmem:[%s12415_s1 + $0x248] sm:$0xf0] }
  0x49   : > { %3391 = vmatpush.bf16.msrb.mxu0 %v7770_v18  ;;  %3480 = vmatpush.bf16.msrb.mxu1 %v7866_v19  ;;  %v8430_v18 = vld [vmem:[%s9052_s26 + $0x414] sm:$0xf]  ;;  %v6909_v19 = vld [vmem:[%s9052_s26 + $0x190] sm:$0xf]  ;;  %12736 = vst [vmem:[#allocation25_spill] sm:$0xff] %v9345_v27 }
  0x4a   : > { %v9341_v25 = vor.u32 %v8355_v20, %v6909_v19  ;;  %v9343_v26 = vor.u32 %v8430_v18, %v7231_v21  ;;  %v7733_v37 = vld [vmem:[%s12415_s1 + $0x300] sm:$0xf]  ;;  %v8557_v39 = vld [vmem:[%s12415_s1 + $0x308] sm:$0xf0]  ;;  %v8445_v49 = vld [vmem:[%s9052_s26 + $0x484] sm:$0xf0] }
  0x4b   : > { %3214 = vmatpush.bf16.msrb.mxu2 %v7566_v34  ;;  %v7542_v34 = vor.u32 %v8509_v33, %v7541_v32  ;;  %v7829_v44 = vld [vmem:[%s12415_s1 + $0x3c0] sm:$0xf]  ;;  %v8581_v45 = vld [vmem:[%s12415_s1 + $0x3c8] sm:$0xf0]  ;;  %v8440_v50 = vld [vmem:[%s9052_s26 + $0x464] sm:$0xf] }
  0x4c   : > { %3303 = vmatpush.bf16.msrb.mxu3 %v7662_v38  ;;  %12734 = vst [vmem:[#allocation23_spill] sm:$0xff] %v9341_v25  ;;  %v7638_v38 = vor.u32 %v8533_v36, %v7637_v35  ;;  %v7269_v48 = vld [vmem:[%s9052_s26 + $0x460] sm:$0xf]  ;;  %v8365_v52 = vld [vmem:[%s9052_s26 + $0x204] sm:$0xf0] }
  0x4d   : > { %3392 = vmatpush.bf16.msrb.mxu0 %v7758_v46  ;;  %3481 = vmatpush.bf16.msrb.mxu1 %v7854_v47  ;;  %12735 = vst [vmem:[#allocation24_spill] sm:$0xff] %v9343_v26  ;;  %v7734_v46 = vor.u32 %v8557_v39, %v7733_v37  ;;  %v7830_v47 = vor.u32 %v8581_v45, %v7829_v44  ;;  %v6949_v51 = vld [vmem:[%s9052_s26 + $0x1e0] sm:$0xf]  ;;  %v7271_v53 = vld [vmem:[%s9052_s26 + $0x488] sm:$0xf0] }
  0x4e   : > { %v8360_v54 = vld [vmem:[%s9052_s26 + $0x1e4] sm:$0xf]  ;;  %v6951_v55 = vld [vmem:[%s9052_s26 + $0x208] sm:$0xf0]  ;;  %v9383_v60 = vor.u32 %v8445_v49, %v7269_v48  ;;  %v9385_v61 = vor.u32 %v8365_v52, %v6949_v51  ;;  %v8009_v6 = vld [vmem:[%s12415_s1 + $0x528] sm:$0xf] }
  0x4f   : > { %3215 = vmatpush.bf16.msrb.mxu2 %v7554_v62  ;;  %v9387_v62 = vor.u32 %v8440_v50, %v7271_v53  ;;  %v9389_v63 = vor.u32 %v8360_v54, %v6951_v55  ;;  %v8626_v7 = vld [vmem:[%s12415_s1 + $0x530] sm:$0xf0]  ;;  %v8105_v11 = vld [vmem:[%s12415_s1 + $0x5e8] sm:$0xf]  ;;  %v7309_v16 = vld [vmem:[%s9052_s26 + $0x4b0] sm:$0xf] }
  0x50   : > { %3304 = vmatpush.bf16.msrb.mxu3 %v7650_v10  ;;  %12737 = vst [vmem:[#allocation26_spill] sm:$0xff] %v9383_v60  ;;  %v8010_v10 = vor.u32 %v8626_v7, %v8009_v6  ;;  %v8650_v12 = vld [vmem:[%s12415_s1 + $0x5f0] sm:$0xf0]  ;;  %v8455_v17 = vld [vmem:[%s9052_s26 + $0x4d4] sm:$0xf0] }
  0x51   : > { %3393 = vmatpush.bf16.msrb.mxu0 %v7746_v14  ;;  %3482 = vmatpush.bf16.msrb.mxu1 %v7842_v15  ;;  %12738 = vst [vmem:[#allocation27_spill] sm:$0xff] %v9385_v61  ;;  %v8106_v13 = vor.u32 %v8650_v12, %v8105_v11  ;;  %v8201_v14 = vld [vmem:[%s12415_s1 + $0x6a8] sm:$0xf]  ;;  %v8674_v15 = vld [vmem:[%s12415_s1 + $0x6b0] sm:$0xf0]  ;;  %v9421_v33 = vor.u32 %v8455_v17, %v7309_v16 }
  0x52   : > { %12739 = vst [vmem:[#allocation28_spill] sm:$0xff] %v9387_v62  ;;  %v8202_v18 = vor.u32 %v8674_v15, %v8201_v14  ;;  %v8450_v19 = vld [vmem:[%s9052_s26 + $0x4b4] sm:$0xf]  ;;  %v6989_v20 = vld [vmem:[%s9052_s26 + $0x230] sm:$0xf] }
  0x53   : > { %3216 = vmatpush.bf16.msrb.mxu2 %v7542_v34  ;;  %12740 = vst [vmem:[#allocation29_spill] sm:$0xff] %v9389_v63  ;;  %v8375_v21 = vld [vmem:[%s9052_s26 + $0x254] sm:$0xf0]  ;;  %v7311_v22 = vld [vmem:[%s9052_s26 + $0x4d8] sm:$0xf0] }
  0x54   : > { %3305 = vmatpush.bf16.msrb.mxu3 %v7638_v38  ;;  %v8370_v23 = vld [vmem:[%s9052_s26 + $0x234] sm:$0xf]  ;;  %v6991_v32 = vld [vmem:[%s9052_s26 + $0x258] sm:$0xf0]  ;;  %12741 = vst [vmem:[#allocation30_spill] sm:$0xff] %v9421_v33  ;;  %v9423_v34 = vor.u32 %v8375_v21, %v6989_v20  ;;  %v9425_v35 = vor.u32 %v8450_v19, %v7311_v22 }
  0x55   : > { %3394 = vmatpush.bf16.msrb.mxu0 %v7734_v46  ;;  %3483 = vmatpush.bf16.msrb.mxu1 %v7830_v47  ;;  %v9427_v36 = vor.u32 %v8370_v23, %v6991_v32  ;;  %v8237_v37 = vld [vmem:[%s12415_s1 + $0x6f0] sm:$0xf]  ;;  %v8683_v38 = vld [vmem:[%s12415_s1 + $0x6f8] sm:$0xf0]  ;;  %v6717_v44 = vld [vmem:[%s9052_s26 + $0x8] sm:$0xf] }
  0x56   : > { %3089 = vmatmul.bf16.gmra.mxu2 %v9207_v0  ;;  %3049 = vmatmul.bf16.gmra.mxu0 %v9209_v1  ;;  %12742 = vst [vmem:[#allocation31_spill] sm:$0xff] %v9423_v34  ;;  %v8238_v39 = vor.u32 %v8683_v38, %v8237_v37  ;;  %v8306_v45 = vld [vmem:[%s9052_s26 + $0x2c] sm:$0xf0]  ;;  %v8301_v46 = vld [vmem:[%s9052_s26 + $0xc] sm:$0xf] }
  0x57   : > { %3178 = vmatmul.bf16.gmra.mxu3 %v9211_v2  ;;  %3565 = vmatpush.bf16.msra.mxu2 %v8010_v10  ;;  %12743 = vst [vmem:[#allocation32_spill] sm:$0xff] %v9425_v35  ;;  %v6725_v47 = vld [vmem:[%s9052_s26 + $0x10] sm:$0xf]  ;;  %v8307_v48 = vld [vmem:[%s9052_s26 + $0x34] sm:$0xf0]  ;;  %v9447_v52 = vor.u32 %v8306_v45, %v6717_v44 }
  0x58   : > { %3138 = vmatmul.bf16.gmra.mxu1 %v9213_v5  ;;  %3654 = vmatpush.bf16.msra.mxu3 %v8106_v13  ;;  %12744 = vst [vmem:[#allocation33_spill] sm:$0xff] %v9427_v36  ;;  %v6719_v49 = vld [vmem:[%s9052_s26 + $0x30] sm:$0xf0]  ;;  %v6727_v51 = vld [vmem:[%s9052_s26 + $0x38] sm:$0xf0]  ;;  %v9449_v53 = vor.u32 %v8307_v48, %v6725_v47 }
  0x59   : > { %3743 = vmatpush.bf16.msra.mxu0 %v8202_v18  ;;  %3837 = vmatpush.bf16.msra.mxu1 %v8238_v39  ;;  %v8302_v50 = vld [vmem:[%s9052_s26 + $0x14] sm:$0xf]  ;;  %12745 = vst [vmem:[#allocation34_spill] sm:$0xff] %v9447_v52  ;;  %v9451_v55 = vor.u32 %v8301_v46, %v6719_v49  ;;  %v7997_v11 = vld [vmem:[%s12415_s1 + $0x510] sm:$0xf] }
  0x5a   : > { %12746 = vst [vmem:[#allocation35_spill] sm:$0xff] %v9449_v53  ;;  %v9453_v6 = vor.u32 %v8302_v50, %v6727_v51  ;;  %v8623_v12 = vld [vmem:[%s12415_s1 + $0x518] sm:$0xf0]  ;;  %v8093_v14 = vld [vmem:[%s12415_s1 + $0x5d0] sm:$0xf] }
  0x5b   : > { %12747 = vst [vmem:[#allocation36_spill] sm:$0xff] %v9451_v55  ;;  %v7998_v13 = vor.u32 %v8623_v12, %v7997_v11  ;;  %v8647_v15 = vld [vmem:[%s12415_s1 + $0x5d8] sm:$0xf0]  ;;  %v8189_v23 = vld [vmem:[%s12415_s1 + $0x690] sm:$0xf] }
  0x5c   : > { %12748 = vst [vmem:[#allocation37_spill] sm:$0xff] %v9453_v6  ;;  %v8094_v17 = vor.u32 %v8647_v15, %v8093_v14  ;;  %v8671_v32 = vld [vmem:[%s12415_s1 + $0x698] sm:$0xf0]  ;;  %v6757_v37 = vld [vmem:[%s9052_s26 + $0x58] sm:$0xf] }
  0x5d   : > { %3566 = vmatpush.bf16.msra.mxu2 %v7998_v13  ;;  %v8316_v38 = vld [vmem:[%s9052_s26 + $0x7c] sm:$0xf0]  ;;  %v8190_v39 = vor.u32 %v8671_v32, %v8189_v23  ;;  %v8311_v44 = vld [vmem:[%s9052_s26 + $0x5c] sm:$0xf]  ;;  %v8317_v46 = vld [vmem:[%s9052_s26 + $0x84] sm:$0xf0] }
  0x5e   : > { %3655 = vmatpush.bf16.msra.mxu3 %v8094_v17  ;;  %v6765_v45 = vld [vmem:[%s9052_s26 + $0x60] sm:$0xf]  ;;  %v6759_v47 = vld [vmem:[%s9052_s26 + $0x80] sm:$0xf0]  ;;  %v6767_v49 = vld [vmem:[%s9052_s26 + $0x88] sm:$0xf0] }
  0x5f   : > { %v8312_v48 = vld [vmem:[%s9052_s26 + $0x64] sm:$0xf]  ;;  %3744 = vmatpush.bf16.msra.mxu0 %v8190_v39  ;;  %v9497_v13 = vor.u32 %v8311_v44, %v6759_v47  ;;  %v8321_v39 = vld [vmem:[%s9052_s26 + $0xac] sm:$0xf]  ;;  %v6805_v44 = vld [vmem:[%s9052_s26 + $0xb0] sm:$0xf] }
  0x60   : > { %v9499_v14 = vor.u32 %v8312_v48, %v6767_v49  ;;  %v8322_v47 = vld [vmem:[%s9052_s26 + $0xb4] sm:$0xf]  ;;  %v6807_v48 = vld [vmem:[%s9052_s26 + $0xd8] sm:$0xf0]  ;;  %v6927_v2 = vld [vmem:[%s9052_s26 + $0x1c8] sm:$0xf0] }
  0x61   : > { %12751 = vst [vmem:[#allocation40_spill] sm:$0xff] %v9497_v13  ;;  %v6967_v3 = vld [vmem:[%s9052_s26 + $0x218] sm:$0xf0] }
  0x62   : > { %12752 = vst [vmem:[#allocation41_spill] sm:$0xff] %v9499_v14 }
  0x66   : > { %3094 = vmatmul.bf16.gmra.mxu2 %v9251_v28  ;;  %3054 = vmatmul.bf16.gmra.mxu0 %v9253_v29  ;;  %v6919_v28 = vld [vmem:[%s9052_s26 + $0x1c0] sm:$0xf0] }
  0x67   : > { %3183 = vmatmul.bf16.gmra.mxu3 %v9255_v30 }
  0x68   : > { %3143 = vmatmul.bf16.gmra.mxu1 %v9257_v31  ;;  %v8392_v31 = vld [vmem:[%s9052_s26 + $0x2e4] sm:$0xf] }
  0x76   : > { %3099 = vmatmul.bf16.gmra.mxu2 %v9295_v56  ;;  %3059 = vmatmul.bf16.gmra.mxu0 %v9297_v57 }
  0x77   : > { %3188 = vmatmul.bf16.gmra.mxu3 %v9299_v58 }
  0x78   : > { %3148 = vmatmul.bf16.gmra.mxu1 %v9301_v59 }
  0x86   : > { %3104 = vmatmul.bf16.gmra.mxu2 %v9339_v24  ;;  %3064 = vmatmul.bf16.gmra.mxu0 %v9341_v25 }
  0x87   : > { %3193 = vmatmul.bf16.gmra.mxu3 %v9343_v26 }
  0x88   : > { %3153 = vmatmul.bf16.gmra.mxu1 %v9345_v27 }
  0x96   : > { %3109 = vmatmul.bf16.gmra.mxu2 %v9383_v60  ;;  %3069 = vmatmul.bf16.gmra.mxu0 %v9385_v61  ;;  %v6887_v60 = vld [vmem:[%s9052_s26 + $0x178] sm:$0xf0] }
  0x97   : > { %3198 = vmatmul.bf16.gmra.mxu3 %v9387_v62 }
  0x98   : > { %3158 = vmatmul.bf16.gmra.mxu1 %v9389_v63 }
  0xa6   : > { %3114 = vmatmul.bf16.gmra.mxu2 %v9421_v33  ;;  %3074 = vmatmul.bf16.gmra.mxu0 %v9423_v34 }
  0xa7   : > { %3203 = vmatmul.bf16.gmra.mxu3 %v9425_v35 }
  0xa8   : > { %3163 = vmatmul.bf16.gmra.mxu1 %v9427_v36 }
  0xb3   : > { %v3040_v54 = vpop.f32.mrf.mxu0 }
  0xb5   : > { %v3129_v7 = vpop.f32.mrf.mxu1 }
  0xb6   : > { %v9455_v10 = vadd.f32 %v3129_v7, %v3040_v54  ;;  %3217 = vmatmul.bf16.vlgmr.msrb.gmra.mxu2 %v9447_v52  ;;  %3395 = vmatmul.bf16.vlgmr.msrb.gmra.mxu0 %v9449_v53  ;;  %v9491_v54 = vor.u32 %v8316_v38, %v6757_v37  ;;  %v9493_v7 = vor.u32 %v8317_v46, %v6765_v45  ;;  %v6797_v37 = vld [vmem:[%s9052_s26 + $0xa8] sm:$0xf]  ;;  %v8326_v38 = vld [vmem:[%s9052_s26 + $0xcc] sm:$0xf0]  ;;  %v8327_v45 = vld [vmem:[%s9052_s26 + $0xd4] sm:$0xf0] }
  0xb7   : > { %3306 = vmatmul.bf16.vlgmr.msrb.gmra.mxu3 %v9451_v55  ;;  %v6799_v46 = vld [vmem:[%s9052_s26 + $0xd0] sm:$0xf0] }
  0xb8   : > { %3484 = vmatmul.bf16.vlgmr.msrb.gmra.mxu1 %v9453_v6  ;;  %12749 = vst [vmem:[#allocation38_spill] sm:$0xff] %v9491_v54 }
  0xb9   : > { %v3080_v16 = vpop.f32.mrf.mxu2  ;;  %12750 = vst [vmem:[#allocation39_spill] sm:$0xff] %v9493_v7 }
  0xba   : > { %v3169_v18 = vpop.f32.mrf.mxu3 }
  0xbb   : > { %v9473_v19 = vadd.f32 %v3169_v18, %v3080_v16  ;;  %v3042_v20 = vpop.f32.mrf.mxu0 }
  0xbd   : > { %v3131_v21 = vpop.f32.mrf.mxu1 }
  0xbe   : > { %v9475_v22 = vadd.f32 %v3131_v21, %v3042_v20 }
  0xc1   : > { %v3082_v50 = vpop.f32.mrf.mxu2 }
  0xc2   : > { %v3171_v51 = vpop.f32.mrf.mxu3 }
  0xc3   : > { %v9495_v11 = vadd.f32 %v3171_v51, %v3082_v50  ;;  %v3045_v12 = vpop.f32.mrf.mxu0  ;;  %v9519_v51 = vor.u32 %v8326_v38, %v6797_v37  ;;  %v7985_v37 = vld [vmem:[%s12415_s1 + $0x4f8] sm:$0xf]  ;;  %v8620_v38 = vld [vmem:[%s12415_s1 + $0x500] sm:$0xf0] }
  0xc5   : > { %v3134_v15 = vpop.f32.mrf.mxu1  ;;  %12753 = vst [vmem:[#allocation42_spill] sm:$0xff] %v9519_v51 }
  0xc6   : > { %v9501_v16 = vadd.f32 %v3134_v15, %v3045_v12  ;;  %3222 = vmatmul.bf16.gmra.mxu2 %v9491_v54  ;;  %3400 = vmatmul.bf16.gmra.mxu0 %v9493_v7  ;;  %v9521_v12 = vor.u32 %v8327_v45, %v6805_v44  ;;  %v8081_v44 = vld [vmem:[%s12415_s1 + $0x5b8] sm:$0xf]  ;;  %v8644_v45 = vld [vmem:[%s12415_s1 + $0x5c0] sm:$0xf0] }
  0xc7   : > { %3311 = vmatmul.bf16.gmra.mxu3 %v9497_v13  ;;  %v8332_v7 = vld [vmem:[%s9052_s26 + $0x104] sm:$0xf] }
  0xc8   : > { %3489 = vmatmul.bf16.gmra.mxu1 %v9499_v14  ;;  %12754 = vst [vmem:[#allocation43_spill] sm:$0xff] %v9521_v12 }
  0xc9   : > { %v3085_v17 = vpop.f32.mrf.mxu2 }
  0xca   : > { %v3174_v18 = vpop.f32.mrf.mxu3 }
  0xcb   : > { %v9507_v20 = vadd.f32 %v3174_v18, %v3085_v17  ;;  %v3047_v21 = vpop.f32.mrf.mxu0  ;;  %v9525_v18 = vor.u32 %v8321_v39, %v6799_v46  ;;  %v7986_v39 = vor.u32 %v8620_v38, %v7985_v37  ;;  %v8177_v37 = vld [vmem:[%s12415_s1 + $0x678] sm:$0xf]  ;;  %v8668_v38 = vld [vmem:[%s12415_s1 + $0x680] sm:$0xf0] }
  0xcd   : > { %v3136_v23 = vpop.f32.mrf.mxu1  ;;  %12755 = vst [vmem:[#allocation44_spill] sm:$0xff] %v9525_v18  ;;  %3567 = vmatpush.bf16.msra.mxu2 %v7986_v39  ;;  %v8331_v39 = vld [vmem:[%s9052_s26 + $0xfc] sm:$0xf] }
  0xce   : > { %v9509_v32 = vadd.f32 %v3136_v23, %v3047_v21  ;;  %v9527_v21 = vor.u32 %v8322_v47, %v6807_v48  ;;  %v8082_v47 = vor.u32 %v8644_v45, %v8081_v44  ;;  %v6837_v44 = vld [vmem:[%s9052_s26 + $0xf8] sm:$0xf]  ;;  %v8336_v45 = vld [vmem:[%s9052_s26 + $0x11c] sm:$0xf0] }
  0xcf   : > { %v9565_v6 = vor.u32 %v8336_v45, %v6837_v44 }
  0xd0   : > { %12756 = vst [vmem:[#allocation45_spill] sm:$0xff] %v9527_v21  ;;  %3656 = vmatpush.bf16.msra.mxu3 %v8082_v47  ;;  %v6847_v47 = vld [vmem:[%s9052_s26 + $0x128] sm:$0xf0] }
  0xd1   : > { %v3087_v49 = vpop.f32.mrf.mxu2  ;;  %12757 = vst [vmem:[#allocation46_spill] sm:$0xff] %v9565_v6 }
  0xd2   : > { %v3176_v50 = vpop.f32.mrf.mxu3 }
  0xd3   : > { %v9523_v15 = vadd.f32 %v3176_v50, %v3087_v49  ;;  %v3050_v17 = vpop.f32.mrf.mxu0 }
  0xd5   : > { %v3139_v23 = vpop.f32.mrf.mxu1 }
  0xd6   : > { %v9529_v14 = vadd.f32 %v3139_v23, %v3050_v17  ;;  %3227 = vmatmul.bf16.gmra.mxu2 %v9519_v51  ;;  %3405 = vmatmul.bf16.gmra.mxu0 %v9521_v12  ;;  %v6845_v12 = vld [vmem:[%s9052_s26 + $0x100] sm:$0xf] }
  0xd7   : > { %3316 = vmatmul.bf16.gmra.mxu3 %v9525_v18 }
  0xd8   : > { %3494 = vmatmul.bf16.gmra.mxu1 %v9527_v21  ;;  %v8178_v21 = vor.u32 %v8668_v38, %v8177_v37  ;;  %v9573_v37 = vor.u32 %v8332_v7, %v6847_v47  ;;  %v8341_v47 = vld [vmem:[%s9052_s26 + $0x14c] sm:$0xf] }
  0xd9   : > { %v3090_v46 = vpop.f32.mrf.mxu2 }
  0xda   : > { %v3179_v48 = vpop.f32.mrf.mxu3  ;;  %3745 = vmatpush.bf16.msra.mxu0 %v8178_v21  ;;  %12760 = vst [vmem:[#allocation49_spill] sm:$0xff] %v9573_v37 }
  0xdb   : > { %v9547_v49 = vadd.f32 %v3179_v48, %v3090_v46  ;;  %v3052_v50 = vpop.f32.mrf.mxu0  ;;  %v8337_v46 = vld [vmem:[%s9052_s26 + $0x124] sm:$0xf0]  ;;  %v6839_v48 = vld [vmem:[%s9052_s26 + $0x120] sm:$0xf0] }
  0xdc   : > { %v9567_v53 = vor.u32 %v8337_v46, %v6845_v12  ;;  %v9571_v62 = vor.u32 %v8331_v39, %v6839_v48  ;;  %v8346_v48 = vld [vmem:[%s9052_s26 + $0x16c] sm:$0xf0] }
  0xdd   : > { %v3141_v17 = vpop.f32.mrf.mxu1 }
  0xde   : > { %v9549_v23 = vadd.f32 %v3141_v17, %v3052_v50  ;;  %12758 = vst [vmem:[#allocation47_spill] sm:$0xff] %v9567_v53 }
  0xdf   : > { %12759 = vst [vmem:[#allocation48_spill] sm:$0xff] %v9571_v62 }
  0xe1   : > { %v3092_v50 = vpop.f32.mrf.mxu2 }
  0xe2   : > { %v3181_v17 = vpop.f32.mrf.mxu3 }
  0xe3   : > { %v9569_v35 = vadd.f32 %v3181_v17, %v3092_v50  ;;  %v3055_v33 = vpop.f32.mrf.mxu0  ;;  %v6885_v50 = vld [vmem:[%s9052_s26 + $0x150] sm:$0xf]  ;;  %v8347_v17 = vld [vmem:[%s9052_s26 + $0x174] sm:$0xf0] }
  0xe5   : > { %v3144_v38 = vpop.f32.mrf.mxu1 }
  0xe6   : > { %v9575_v21 = vadd.f32 %v3144_v38, %v3055_v33  ;;  %3232 = vmatmul.bf16.gmra.mxu2 %v9565_v6  ;;  %3410 = vmatmul.bf16.gmra.mxu0 %v9567_v53  ;;  %v6877_v33 = vld [vmem:[%s9052_s26 + $0x148] sm:$0xf]  ;;  %v6879_v38 = vld [vmem:[%s9052_s26 + $0x170] sm:$0xf0] }
  0xe7   : > { %3321 = vmatmul.bf16.gmra.mxu3 %v9571_v62  ;;  %v8342_v53 = vld [vmem:[%s9052_s26 + $0x154] sm:$0xf]  ;;  %v9593_v58 = vor.u32 %v8346_v48, %v6877_v33  ;;  %v9599_v56 = vor.u32 %v8341_v47, %v6879_v38  ;;  %v8641_v33 = vld [vmem:[%s12415_s1 + $0x5a8] sm:$0xf0]  ;;  %v8225_v48 = vld [vmem:[%s12415_s1 + $0x6d8] sm:$0xf] }
  0xe8   : > { %3499 = vmatmul.bf16.gmra.mxu1 %v9573_v37  ;;  %v9595_v37 = vor.u32 %v8347_v17, %v6885_v50  ;;  %v8680_v17 = vld [vmem:[%s12415_s1 + $0x6e0] sm:$0xf0] }
  0xe9   : > { %v3095_v12 = vpop.f32.mrf.mxu2  ;;  %12761 = vst [vmem:[#allocation50_spill] sm:$0xff] %v9593_v58  ;;  %v7079_v62 = vld [vmem:[%s9052_s26 + $0x300] sm:$0xf0] }
  0xea   : > { %v3184_v44 = vpop.f32.mrf.mxu3  ;;  %12762 = vst [vmem:[#allocation51_spill] sm:$0xff] %v9595_v37 }
  0xeb   : > { %v9581_v7 = vadd.f32 %v3184_v44, %v3095_v12  ;;  %v3057_v45 = vpop.f32.mrf.mxu0  ;;  %12763 = vst [vmem:[#allocation52_spill] sm:$0xff] %v9599_v56 }
  0xed   : > { %v3146_v39 = vpop.f32.mrf.mxu1 }
  0xee   : > { %v9583_v46 = vadd.f32 %v3146_v39, %v3057_v45  ;;  %v9601_v45 = vor.u32 %v8342_v53, %v6887_v60  ;;  %v8069_v53 = vld [vmem:[%s12415_s1 + $0x5a0] sm:$0xf] }
  0xef   : > { %v8070_v50 = vor.u32 %v8641_v33, %v8069_v53  ;;  %v8165_v33 = vld [vmem:[%s12415_s1 + $0x660] sm:$0xf] }
  0xf0   : > { %12764 = vst [vmem:[#allocation53_spill] sm:$0xff] %v9601_v45 }
  0xf1   : > { %v3097_v26 = vpop.f32.mrf.mxu2  ;;  %3657 = vmatpush.bf16.msra.mxu3 %v8070_v50  ;;  %v8352_v50 = vld [vmem:[%s9052_s26 + $0x1a4] sm:$0xf] }
  0xf2   : > { %v3186_v24 = vpop.f32.mrf.mxu3 }
  0xf3   : > { %v9597_v12 = vadd.f32 %v3186_v24, %v3097_v26  ;;  %v3060_v44 = vpop.f32.mrf.mxu0  ;;  %v7973_v24 = vld [vmem:[%s12415_s1 + $0x4e0] sm:$0xf]  ;;  %v8617_v26 = vld [vmem:[%s12415_s1 + $0x4e8] sm:$0xf0] }
  0xf4   : > { %v7974_v60 = vor.u32 %v8617_v26, %v7973_v24 }
  0xf5   : > { %v3149_v39 = vpop.f32.mrf.mxu1 }
  0xf6   : > { %v9603_v30 = vadd.f32 %v3149_v39, %v3060_v44  ;;  %3237 = vmatmul.bf16.gmra.mxu2 %v9593_v58  ;;  %3415 = vmatmul.bf16.gmra.mxu0 %v9595_v37  ;;  %v8226_v44 = vor.u32 %v8680_v17, %v8225_v48  ;;  %v8356_v48 = vld [vmem:[%s9052_s26 + $0x1bc] sm:$0xf0]  ;;  %v8357_v37 = vld [vmem:[%s9052_s26 + $0x1c4] sm:$0xf0] }
  0xf7   : > { %3326 = vmatmul.bf16.gmra.mxu3 %v9599_v56  ;;  %3568 = vmatpush.bf16.msra.mxu2 %v7974_v60  ;;  %v8665_v60 = vld [vmem:[%s12415_s1 + $0x668] sm:$0xf0] }
  0xf8   : > { %3504 = vmatmul.bf16.gmra.mxu1 %v9601_v45  ;;  %v6917_v45 = vld [vmem:[%s9052_s26 + $0x198] sm:$0xf]  ;;  %v8166_v17 = vor.u32 %v8665_v60, %v8165_v33  ;;  %v9653_v33 = vor.u32 %v8352_v50, %v6927_v2  ;;  %v8361_v50 = vld [vmem:[%s9052_s26 + $0x1ec] sm:$0xf] }
  0xf9   : > { %v3100_v47 = vpop.f32.mrf.mxu2  ;;  %3838 = vmatpush.bf16.msra.mxu1 %v8226_v44 }
  0xfa   : > { %v3189_v38 = vpop.f32.mrf.mxu3  ;;  %3746 = vmatpush.bf16.msra.mxu0 %v8166_v17  ;;  %12768 = vst [vmem:[#allocation57_spill] sm:$0xff] %v9653_v33 }
  0xfb   : > { %v9627_v39 = vadd.f32 %v3189_v38, %v3100_v47  ;;  %v3062_v24 = vpop.f32.mrf.mxu0  ;;  %v8351_v47 = vld [vmem:[%s9052_s26 + $0x19c] sm:$0xf]  ;;  %v6925_v38 = vld [vmem:[%s9052_s26 + $0x1a0] sm:$0xf] }
  0xfc   : > { %v9647_v0 = vor.u32 %v8357_v37, %v6925_v38  ;;  %v9651_v8 = vor.u32 %v8351_v47, %v6919_v28  ;;  %v8366_v38 = vld [vmem:[%s9052_s26 + $0x20c] sm:$0xf0] }
  0xfd   : > { %v3151_v26 = vpop.f32.mrf.mxu1 }
  0xfe   : > { %v9629_v53 = vadd.f32 %v3151_v26, %v3062_v24  ;;  %v9645_v26 = vor.u32 %v8356_v48, %v6917_v45  ;;  %12766 = vst [vmem:[#allocation55_spill] sm:$0xff] %v9647_v0 }
  0xff   : > { %12767 = vst [vmem:[#allocation56_spill] sm:$0xff] %v9651_v8 }
 0x100   : > { %12765 = vst [vmem:[#allocation54_spill] sm:$0xff] %v9645_v26 }
 0x101   : > { %v3102_v44 = vpop.f32.mrf.mxu2 }
 0x102   : > { %v3191_v24 = vpop.f32.mrf.mxu3 }
 0x103   : > { %v9649_v42 = vadd.f32 %v3191_v24, %v3102_v44  ;;  %v3065_v40 = vpop.f32.mrf.mxu0  ;;  %v6965_v44 = vld [vmem:[%s9052_s26 + $0x1f0] sm:$0xf]  ;;  %v8367_v24 = vld [vmem:[%s9052_s26 + $0x214] sm:$0xf0] }
 0x105   : > { %v3154_v60 = vpop.f32.mrf.mxu1 }
 0x106   : > { %v9655_v17 = vadd.f32 %v3154_v60, %v3065_v40  ;;  %3242 = vmatmul.bf16.gmra.mxu2 %v9645_v26  ;;  %3420 = vmatmul.bf16.gmra.mxu0 %v9647_v0  ;;  %v6957_v40 = vld [vmem:[%s9052_s26 + $0x1e8] sm:$0xf]  ;;  %v6959_v60 = vld [vmem:[%s9052_s26 + $0x210] sm:$0xf0] }
 0x107   : > { %3331 = vmatmul.bf16.gmra.mxu3 %v9651_v8  ;;  %v8362_v0 = vld [vmem:[%s9052_s26 + $0x1f4] sm:$0xf]  ;;  %v9673_v63 = vor.u32 %v8366_v38, %v6957_v40  ;;  %v9679_v61 = vor.u32 %v8361_v50, %v6959_v60 }
 0x108   : > { %3509 = vmatmul.bf16.gmra.mxu1 %v9653_v33  ;;  %v9675_v33 = vor.u32 %v8367_v24, %v6965_v44  ;;  %v8638_v40 = vld [vmem:[%s12415_s1 + $0x590] sm:$0xf0] }
 0x109   : > { %v3105_v28 = vpop.f32.mrf.mxu2  ;;  %12769 = vst [vmem:[#allocation58_spill] sm:$0xff] %v9673_v63 }
 0x10a   : > { %v3194_v37 = vpop.f32.mrf.mxu3  ;;  %12770 = vst [vmem:[#allocation59_spill] sm:$0xff] %v9675_v33 }
 0x10b   : > { %v9661_v2 = vadd.f32 %v3194_v37, %v3105_v28  ;;  %v3067_v45 = vpop.f32.mrf.mxu0  ;;  %12771 = vst [vmem:[#allocation60_spill] sm:$0xff] %v9679_v61 }
 0x10d   : > { %v3156_v48 = vpop.f32.mrf.mxu1 }
 0x10e   : > { %v9663_v47 = vadd.f32 %v3156_v48, %v3067_v45  ;;  %v9681_v45 = vor.u32 %v8362_v0, %v6967_v3  ;;  %v8614_v3 = vld [vmem:[%s12415_s1 + $0x4d0] sm:$0xf0] }
 0x110   : > { %12772 = vst [vmem:[#allocation61_spill] sm:$0xff] %v9681_v45 }
 0x111   : > { %v3107_v36 = vpop.f32.mrf.mxu2 }
 0x112   : > { %v3196_v34 = vpop.f32.mrf.mxu3 }
 0x113   : > { %v9677_v28 = vadd.f32 %v3196_v34, %v3107_v36  ;;  %v3070_v37 = vpop.f32.mrf.mxu0  ;;  %v7961_v34 = vld [vmem:[%s12415_s1 + $0x4c8] sm:$0xf] }
 0x114   : > { %v7962_v0 = vor.u32 %v8614_v3, %v7961_v34  ;;  %v8057_v36 = vld [vmem:[%s12415_s1 + $0x588] sm:$0xf]  ;;  %v6997_v34 = vld [vmem:[%s9052_s26 + $0x238] sm:$0xf]  ;;  %v8376_v3 = vld [vmem:[%s9052_s26 + $0x25c] sm:$0xf0] }
 0x115   : > { %v3159_v48 = vpop.f32.mrf.mxu1  ;;  %v8058_v50 = vor.u32 %v8638_v40, %v8057_v36  ;;  %v8662_v36 = vld [vmem:[%s12415_s1 + $0x650] sm:$0xf0]  ;;  %v8371_v40 = vld [vmem:[%s9052_s26 + $0x23c] sm:$0xf] }
 0x116   : > { %v9683_v8 = vadd.f32 %v3159_v48, %v3070_v37  ;;  %3247 = vmatmul.bf16.gmra.mxu2 %v9673_v63  ;;  %3425 = vmatmul.bf16.gmra.mxu0 %v9675_v33  ;;  %v8377_v33 = vld [vmem:[%s9052_s26 + $0x264] sm:$0xf0] }
 0x117   : > { %3336 = vmatmul.bf16.gmra.mxu3 %v9679_v61  ;;  %3569 = vmatpush.bf16.msra.mxu2 %v7962_v0  ;;  %v7005_v0 = vld [vmem:[%s9052_s26 + $0x240] sm:$0xf]  ;;  %v8372_v61 = vld [vmem:[%s9052_s26 + $0x244] sm:$0xf] }
 0x118   : > { %3514 = vmatmul.bf16.gmra.mxu1 %v9681_v45  ;;  %3658 = vmatpush.bf16.msra.mxu3 %v8058_v50  ;;  %v8153_v45 = vld [vmem:[%s12415_s1 + $0x648] sm:$0xf]  ;;  %v7007_v50 = vld [vmem:[%s9052_s26 + $0x268] sm:$0xf0]  ;;  %v9721_v27 = vor.u32 %v8377_v33, %v7005_v0  ;;  %v8386_v0 = vld [vmem:[%s9052_s26 + $0x2ac] sm:$0xf0] }
 0x119   : > { %v3110_v38 = vpop.f32.mrf.mxu2  ;;  %v9727_v59 = vor.u32 %v8372_v61, %v7007_v50  ;;  %v8387_v50 = vld [vmem:[%s9052_s26 + $0x2b4] sm:$0xf0] }
 0x11a   : > { %v3199_v44 = vpop.f32.mrf.mxu3  ;;  %12774 = vst [vmem:[#allocation63_spill] sm:$0xff] %v9721_v27 }
 0x11b   : > { %v9701_v24 = vadd.f32 %v3199_v44, %v3110_v38  ;;  %v3072_v60 = vpop.f32.mrf.mxu0  ;;  %v8154_v38 = vor.u32 %v8662_v36, %v8153_v45  ;;  %v6999_v44 = vld [vmem:[%s9052_s26 + $0x260] sm:$0xf0]  ;;  %12776 = vst [vmem:[#allocation65_spill] sm:$0xff] %v9727_v59 }
 0x11c   : > { %v9725_v56 = vor.u32 %v8371_v40, %v6999_v44  ;;  %v7045_v44 = vld [vmem:[%s9052_s26 + $0x290] sm:$0xf] }
 0x11d   : > { %v3161_v37 = vpop.f32.mrf.mxu1  ;;  %3747 = vmatpush.bf16.msra.mxu0 %v8154_v38  ;;  %v8381_v38 = vld [vmem:[%s9052_s26 + $0x28c] sm:$0xf] }
 0x11e   : > { %v9703_v48 = vadd.f32 %v3161_v37, %v3072_v60  ;;  %v9719_v37 = vor.u32 %v8376_v3, %v6997_v34  ;;  %12775 = vst [vmem:[#allocation64_spill] sm:$0xff] %v9725_v56 }
 0x120   : > { %12773 = vst [vmem:[#allocation62_spill] sm:$0xff] %v9719_v37 }
 0x121   : > { %v3112_v63 = vpop.f32.mrf.mxu2 }
 0x122   : > { %v3201_v60 = vpop.f32.mrf.mxu3 }
 0x123   : > { %v9723_v26 = vadd.f32 %v3201_v60, %v3112_v63  ;;  %v3075_v25 = vpop.f32.mrf.mxu0  ;;  %v7039_v60 = vld [vmem:[%s9052_s26 + $0x2b0] sm:$0xf0] }
 0x124   : > { %v9753_v57 = vor.u32 %v8381_v38, %v7039_v60 }
 0x125   : > { %v3164_v45 = vpop.f32.mrf.mxu1 }
 0x126   : > { %v9729_v36 = vadd.f32 %v3164_v45, %v3075_v25  ;;  %3252 = vmatmul.bf16.gmra.mxu2 %v9719_v37  ;;  %3430 = vmatmul.bf16.gmra.mxu0 %v9721_v27  ;;  %v7037_v25 = vld [vmem:[%s9052_s26 + $0x288] sm:$0xf]  ;;  %v8382_v45 = vld [vmem:[%s9052_s26 + $0x294] sm:$0xf]  ;;  %v7047_v27 = vld [vmem:[%s9052_s26 + $0x2b8] sm:$0xf0] }
 0x127   : > { %3341 = vmatmul.bf16.gmra.mxu3 %v9725_v56  ;;  %v9747_v58 = vor.u32 %v8386_v0, %v7037_v25  ;;  %12779 = vst [vmem:[#allocation68_spill] sm:$0xff] %v9753_v57  ;;  %v8045_v25 = vld [vmem:[%s12415_s1 + $0x570] sm:$0xf]  ;;  %v8635_v0 = vld [vmem:[%s12415_s1 + $0x578] sm:$0xf0] }
 0x128   : > { %3519 = vmatmul.bf16.gmra.mxu1 %v9727_v59  ;;  %v9749_v59 = vor.u32 %v8387_v50, %v7045_v44  ;;  %v8046_v44 = vor.u32 %v8635_v0, %v8045_v25  ;;  %v8391_v25 = vld [vmem:[%s9052_s26 + $0x2dc] sm:$0xf]  ;;  %v7085_v0 = vld [vmem:[%s9052_s26 + $0x2e0] sm:$0xf] }
 0x129   : > { %v3115_v63 = vpop.f32.mrf.mxu2  ;;  %12777 = vst [vmem:[#allocation66_spill] sm:$0xff] %v9747_v58  ;;  %v9795_v5 = vor.u32 %v8391_v25, %v7079_v62  ;;  %v7117_v25 = vld [vmem:[%s9052_s26 + $0x328] sm:$0xf] }
 0x12a   : > { %v3204_v33 = vpop.f32.mrf.mxu3  ;;  %12778 = vst [vmem:[#allocation67_spill] sm:$0xff] %v9749_v59  ;;  %3659 = vmatpush.bf16.msra.mxu3 %v8046_v44  ;;  %v7087_v44 = vld [vmem:[%s9052_s26 + $0x308] sm:$0xf0] }
 0x12b   : > { %v9735_v61 = vadd.f32 %v3204_v33, %v3115_v63  ;;  %v3077_v34 = vpop.f32.mrf.mxu0  ;;  %12783 = vst [vmem:[#allocation72_spill] sm:$0xff] %v9795_v5  ;;  %v9797_v51 = vor.u32 %v8392_v31, %v7087_v44  ;;  %v8401_v44 = vld [vmem:[%s9052_s26 + $0x32c] sm:$0xf] }
 0x12d   : > { %v3166_v3 = vpop.f32.mrf.mxu1  ;;  %12784 = vst [vmem:[#allocation73_spill] sm:$0xff] %v9797_v51 }
 0x12e   : > { %v9737_v40 = vadd.f32 %v3166_v3, %v3077_v34  ;;  %v9755_v34 = vor.u32 %v8382_v45, %v7047_v27  ;;  %v8611_v27 = vld [vmem:[%s12415_s1 + $0x4b8] sm:$0xf0] }
 0x130   : > { %12780 = vst [vmem:[#allocation69_spill] sm:$0xff] %v9755_v34 }
 0x131   : > { %v3117_v37 = vpop.f32.mrf.mxu2 }
 0x132   : > { %v3206_v56 = vpop.f32.mrf.mxu3 }
 0x133   : > { %v9751_v63 = vadd.f32 %v3206_v56, %v3117_v37  ;;  %v3396_v33 = vpop.f32.mrf.mxu0  ;;  %v7949_v56 = vld [vmem:[%s12415_s1 + $0x4b0] sm:$0xf] }
 0x134   : > { %v7950_v37 = vor.u32 %v8611_v27, %v7949_v56 }
 0x135   : > { %v3485_v3 = vpop.f32.mrf.mxu1 }
 0x136   : > { %3257 = vmatmul.bf16.gmra.mxu2 %v9747_v58  ;;  %3435 = vmatmul.bf16.gmra.mxu0 %v9749_v59  ;;  %v8141_v58 = vld [vmem:[%s12415_s1 + $0x630] sm:$0xf] }
 0x137   : > { %3346 = vmatmul.bf16.gmra.mxu3 %v9753_v57  ;;  %3570 = vmatpush.bf16.msra.mxu2 %v7950_v37  ;;  %v8396_v57 = vld [vmem:[%s9052_s26 + $0x2fc] sm:$0xf0] }
 0x138   : > { %3524 = vmatmul.bf16.gmra.mxu1 %v9755_v34  ;;  %v7077_v34 = vld [vmem:[%s9052_s26 + $0x2d8] sm:$0xf] }
 0x139   : > { %v3218_v38 = vpop.f32.mrf.mxu2  ;;  %v9791_v6 = vor.u32 %v8396_v57, %v7077_v34 }
 0x13a   : > { %v3219_v50 = vadd.f32 %v3218_v38, %v9455_v10  ;;  %v3307_v60 = vpop.f32.mrf.mxu3  ;;  %v8659_v10 = vld [vmem:[%s12415_s1 + $0x638] sm:$0xf0]  ;;  %v8397_v38 = vld [vmem:[%s9052_s26 + $0x304] sm:$0xf0] }
 0x13b   : > { %v3398_v45 = vpop.f32.mrf.mxu0  ;;  %v8142_v37 = vor.u32 %v8659_v10, %v8141_v58  ;;  %12781 = vst [vmem:[#allocation70_spill] sm:$0xff] %v9791_v6  ;;  %v9793_v29 = vor.u32 %v8397_v38, %v7085_v0  ;;  %v8406_v38 = vld [vmem:[%s9052_s26 + $0x34c] sm:$0xf0] }
 0x13c   : > { %v3308_v56 = vadd.f32 %v3307_v60, %v3219_v50 }
 0x13d   : > { %v3487_v27 = vpop.f32.mrf.mxu1  ;;  %3748 = vmatpush.bf16.msra.mxu0 %v8142_v37  ;;  %12782 = vst [vmem:[#allocation71_spill] sm:$0xff] %v9793_v29  ;;  %v8213_v37 = vld [vmem:[%s12415_s1 + $0x6c0] sm:$0xf] }
 0x13e   : > { %v3397_v59 = vadd.f32 %v3396_v33, %v3308_v56 }
 0x140   : > { %v9788_v50 = vadd.f32 %v3485_v3, %v3397_v59 }
 0x141   : > { %v3220_v60 = vpop.f32.mrf.mxu2 }
 0x142   : > { %v3221_v33 = vadd.f32 %v3220_v60, %v9475_v22  ;;  %v3309_v56 = vpop.f32.mrf.mxu3  ;;  %v7125_v60 = vld [vmem:[%s9052_s26 + $0x330] sm:$0xf] }
 0x143   : > { %v3401_v18 = vpop.f32.mrf.mxu0 }
 0x144   : > { %v3310_v58 = vadd.f32 %v3309_v56, %v3221_v33  ;;  %v8407_v33 = vld [vmem:[%s9052_s26 + $0x354] sm:$0xf0]  ;;  %v7119_v56 = vld [vmem:[%s9052_s26 + $0x350] sm:$0xf0] }
 0x145   : > { %v3490_v10 = vpop.f32.mrf.mxu1 }
 0x146   : > { %v3399_v59 = vadd.f32 %v3398_v45, %v3310_v58  ;;  %3262 = vmatmul.bf16.gmra.mxu2 %v9791_v6  ;;  %3440 = vmatmul.bf16.gmra.mxu0 %v9793_v29  ;;  %v8402_v58 = vld [vmem:[%s9052_s26 + $0x334] sm:$0xf] }
 0x147   : > { %3351 = vmatmul.bf16.gmra.mxu3 %v9795_v5  ;;  %v9827_v5 = vor.u32 %v8401_v44, %v7119_v56 }
 0x148   : > { %3529 = vmatmul.bf16.gmra.mxu1 %v9797_v51  ;;  %v9803_v57 = vadd.f32 %v3487_v27, %v3399_v59  ;;  %v8677_v27 = vld [vmem:[%s12415_s1 + $0x6c8] sm:$0xf0]  ;;  %v7127_v59 = vld [vmem:[%s9052_s26 + $0x358] sm:$0xf0]  ;;  %v9825_v51 = vor.u32 %v8407_v33, %v7125_v60 }
 0x149   : > { %v3223_v31 = vpop.f32.mrf.mxu2  ;;  %12787 = vst [vmem:[#allocation76_spill] sm:$0xff] %v9827_v5  ;;  %v9829_v6 = vor.u32 %v8402_v58, %v7127_v59 }
 0x14a   : > { %v3224_v62 = vadd.f32 %v3223_v31, %v9501_v16  ;;  %v3312_v22 = vpop.f32.mrf.mxu3  ;;  %v8214_v16 = vor.u32 %v8677_v27, %v8213_v37  ;;  %12786 = vst [vmem:[#allocation75_spill] sm:$0xff] %v9825_v51 }
 0x14b   : > { %v3403_v34 = vpop.f32.mrf.mxu0  ;;  %12788 = vst [vmem:[#allocation77_spill] sm:$0xff] %v9829_v6 }
 0x14c   : > { %v3313_v3 = vadd.f32 %v3312_v22, %v3224_v62  ;;  %3839 = vmatpush.bf16.msra.mxu1 %v8214_v16 }
 0x14d   : > { %v3492_v45 = vpop.f32.mrf.mxu1 }
 0x14e   : > { %v3402_v0 = vadd.f32 %v3401_v18, %v3313_v3  ;;  %v9823_v3 = vor.u32 %v8406_v38, %v7117_v25 }
 0x150   : > { %v9820_v31 = vadd.f32 %v3490_v10, %v3402_v0  ;;  %12785 = vst [vmem:[#allocation74_spill] sm:$0xff] %v9823_v3  ;;  %v8608_v10 = vld [vmem:[%s12415_s1 + $0x4a0] sm:$0xf0] }
 0x151   : > { %v3225_v62 = vpop.f32.mrf.mxu2  ;;  %v8632_v0 = vld [vmem:[%s12415_s1 + $0x560] sm:$0xf0] }
 0x152   : > { %v3226_v18 = vadd.f32 %v3225_v62, %v9509_v32  ;;  %v3314_v22 = vpop.f32.mrf.mxu3  ;;  %v7937_v32 = vld [vmem:[%s12415_s1 + $0x498] sm:$0xf] }
 0x153   : > { %v3406_v29 = vpop.f32.mrf.mxu0  ;;  %v7938_v25 = vor.u32 %v8608_v10, %v7937_v32  ;;  %v7157_v62 = vld [vmem:[%s9052_s26 + $0x378] sm:$0xf]  ;;  %v8417_v32 = vld [vmem:[%s9052_s26 + $0x3a4] sm:$0xf0] }
 0x154   : > { %v3315_v37 = vadd.f32 %v3314_v22, %v3226_v18  ;;  %v8416_v22 = vld [vmem:[%s9052_s26 + $0x39c] sm:$0xf0] }
 0x155   : > { %v3495_v27 = vpop.f32.mrf.mxu1  ;;  %3571 = vmatpush.bf16.msra.mxu2 %v7938_v25  ;;  %v7159_v25 = vld [vmem:[%s9052_s26 + $0x3a0] sm:$0xf0] }
 0x156   : > { %v3404_v1 = vadd.f32 %v3403_v34, %v3315_v37  ;;  %3267 = vmatmul.bf16.gmra.mxu2 %v9823_v3  ;;  %3445 = vmatmul.bf16.gmra.mxu0 %v9825_v51  ;;  %v8033_v34 = vld [vmem:[%s12415_s1 + $0x558] sm:$0xf]  ;;  %v7165_v37 = vld [vmem:[%s9052_s26 + $0x380] sm:$0xf] }
 0x157   : > { %3356 = vmatmul.bf16.gmra.mxu3 %v9827_v5  ;;  %v8034_v60 = vor.u32 %v8632_v0, %v8033_v34  ;;  %v8412_v34 = vld [vmem:[%s9052_s26 + $0x384] sm:$0xf]  ;;  %v7167_v0 = vld [vmem:[%s9052_s26 + $0x3a8] sm:$0xf0] }
 0x158   : > { %3534 = vmatmul.bf16.gmra.mxu1 %v9829_v6  ;;  %v9847_v38 = vadd.f32 %v3492_v45, %v3404_v1  ;;  %v8129_v1 = vld [vmem:[%s12415_s1 + $0x618] sm:$0xf]  ;;  %v8411_v45 = vld [vmem:[%s9052_s26 + $0x37c] sm:$0xf]  ;;  %v9873_v5 = vor.u32 %v8412_v34, %v7167_v0  ;;  %v8421_v34 = vld [vmem:[%s9052_s26 + $0x3cc] sm:$0xf] }
 0x159   : > { %v3228_v44 = vpop.f32.mrf.mxu2  ;;  %3660 = vmatpush.bf16.msra.mxu3 %v8034_v60  ;;  %v9871_v51 = vor.u32 %v8411_v45, %v7159_v25  ;;  %v8426_v25 = vld [vmem:[%s9052_s26 + $0x3ec] sm:$0xf0] }
 0x15a   : > { %v3229_v33 = vadd.f32 %v3228_v44, %v9529_v14  ;;  %v3317_v16 = vpop.f32.mrf.mxu3  ;;  %v8656_v14 = vld [vmem:[%s12415_s1 + $0x620] sm:$0xf0]  ;;  %12792 = vst [vmem:[#allocation81_spill] sm:$0xff] %v9873_v5  ;;  %v7205_v0 = vld [vmem:[%s9052_s26 + $0x3d0] sm:$0xf] }
 0x15b   : > { %v3408_v56 = vpop.f32.mrf.mxu0  ;;  %v8130_v10 = vor.u32 %v8656_v14, %v8129_v1  ;;  %12791 = vst [vmem:[#allocation80_spill] sm:$0xff] %v9871_v51 }
 0x15c   : > { %v3318_v58 = vadd.f32 %v3317_v16, %v3229_v33  ;;  %v9867_v16 = vor.u32 %v8416_v22, %v7157_v62 }
 0x15d   : > { %v3497_v59 = vpop.f32.mrf.mxu1  ;;  %3749 = vmatpush.bf16.msra.mxu0 %v8130_v10  ;;  %v7197_v10 = vld [vmem:[%s9052_s26 + $0x3c8] sm:$0xf] }
 0x15e   : > { %v3407_v18 = vadd.f32 %v3406_v29, %v3318_v58  ;;  %12789 = vst [vmem:[#allocation78_spill] sm:$0xff] %v9867_v16  ;;  %v9869_v58 = vor.u32 %v8417_v32, %v7165_v37 }
 0x160   : > { %v9864_v44 = vadd.f32 %v3495_v27, %v3407_v18  ;;  %12790 = vst [vmem:[#allocation79_spill] sm:$0xff] %v9869_v58 }
 0x161   : > { %v3230_v60 = vpop.f32.mrf.mxu2 }
 0x162   : > { %v3231_v29 = vadd.f32 %v3230_v60, %v9549_v23  ;;  %v3319_v33 = vpop.f32.mrf.mxu3  ;;  %v8427_v60 = vld [vmem:[%s9052_s26 + $0x3f4] sm:$0xf0] }
 0x163   : > { %v3411_v6 = vpop.f32.mrf.mxu0 }
 0x164   : > { %v3320_v1 = vadd.f32 %v3319_v33, %v3231_v29  ;;  %v7199_v29 = vld [vmem:[%s9052_s26 + $0x3f0] sm:$0xf0] }
 0x165   : > { %v3500_v14 = vpop.f32.mrf.mxu1  ;;  %v8422_v33 = vld [vmem:[%s9052_s26 + $0x3d4] sm:$0xf] }
 0x166   : > { %v3409_v27 = vadd.f32 %v3408_v56, %v3320_v1  ;;  %3272 = vmatmul.bf16.gmra.mxu2 %v9867_v16  ;;  %3450 = vmatmul.bf16.gmra.mxu0 %v9869_v58  ;;  %v7207_v1 = vld [vmem:[%s9052_s26 + $0x3f8] sm:$0xf0] }
 0x167   : > { %3361 = vmatmul.bf16.gmra.mxu3 %v9871_v51 }
 0x168   : > { %3539 = vmatmul.bf16.gmra.mxu1 %v9873_v5  ;;  %v9879_v23 = vadd.f32 %v3497_v59, %v3409_v27 }
 0x169   : > { %v3233_v62 = vpop.f32.mrf.mxu2 }
 0x16a   : > { %v3234_v18 = vadd.f32 %v3233_v62, %v9575_v21  ;;  %v3322_v22 = vpop.f32.mrf.mxu3  ;;  %v9893_v21 = vor.u32 %v8426_v25, %v7197_v10  ;;  %v9895_v62 = vor.u32 %v8427_v60, %v7205_v0 }
 0x16b   : > { %v3413_v56 = vpop.f32.mrf.mxu0 }
 0x16c   : > { %v3323_v45 = vadd.f32 %v3322_v22, %v3234_v18  ;;  %12793 = vst [vmem:[#allocation82_spill] sm:$0xff] %v9893_v21  ;;  %v9899_v22 = vor.u32 %v8422_v33, %v7207_v1 }
 0x16d   : > { %v3502_v37 = vpop.f32.mrf.mxu1  ;;  %12794 = vst [vmem:[#allocation83_spill] sm:$0xff] %v9895_v62 }
 0x16e   : > { %v3412_v32 = vadd.f32 %v3411_v6, %v3323_v45  ;;  %v9897_v6 = vor.u32 %v8421_v34, %v7199_v29  ;;  %12796 = vst [vmem:[#allocation85_spill] sm:$0xff] %v9899_v22 }
 0x170   : > { %v9890_v5 = vadd.f32 %v3500_v14, %v3412_v32  ;;  %12795 = vst [vmem:[#allocation84_spill] sm:$0xff] %v9897_v6  ;;  %v8605_v14 = vld [vmem:[%s12415_s1 + $0x488] sm:$0xf0] }
 0x171   : > { %v3235_v59 = vpop.f32.mrf.mxu2  ;;  %v8629_v32 = vld [vmem:[%s12415_s1 + $0x548] sm:$0xf0] }
 0x172   : > { %v3236_v27 = vadd.f32 %v3235_v59, %v9583_v46  ;;  %v3324_v58 = vpop.f32.mrf.mxu3  ;;  %v7925_v46 = vld [vmem:[%s12415_s1 + $0x480] sm:$0xf]  ;;  %v7237_v59 = vld [vmem:[%s9052_s26 + $0x418] sm:$0xf] }
 0x173   : > { %v3416_v18 = vpop.f32.mrf.mxu0 }
 0x174   : > { %v3325_v45 = vadd.f32 %v3324_v58, %v3236_v27  ;;  %v7926_v58 = vor.u32 %v8605_v14, %v7925_v46  ;;  %v7245_v46 = vld [vmem:[%s9052_s26 + $0x420] sm:$0xf]  ;;  %v8437_v14 = vld [vmem:[%s9052_s26 + $0x444] sm:$0xf0] }
 0x175   : > { %v3505_v51 = vpop.f32.mrf.mxu1 }
 0x176   : > { %v3414_v16 = vadd.f32 %v3413_v56, %v3325_v45  ;;  %3277 = vmatmul.bf16.gmra.mxu2 %v9893_v21  ;;  %3455 = vmatmul.bf16.gmra.mxu0 %v9895_v62  ;;  %v8021_v56 = vld [vmem:[%s12415_s1 + $0x540] sm:$0xf] }
 0x177   : > { %3366 = vmatmul.bf16.gmra.mxu3 %v9897_v6  ;;  %v8022_v34 = vor.u32 %v8629_v32, %v8021_v56  ;;  %3572 = vmatpush.bf16.msra.mxu2 %v7926_v58  ;;  %v8436_v45 = vld [vmem:[%s9052_s26 + $0x43c] sm:$0xf0]  ;;  %v7239_v56 = vld [vmem:[%s9052_s26 + $0x440] sm:$0xf0] }
 0x178   : > { %3544 = vmatmul.bf16.gmra.mxu1 %v9899_v22  ;;  %v9917_v10 = vadd.f32 %v3502_v37, %v3414_v16  ;;  %v8117_v16 = vld [vmem:[%s12415_s1 + $0x600] sm:$0xf]  ;;  %v8431_v37 = vld [vmem:[%s9052_s26 + $0x41c] sm:$0xf]  ;;  %v8432_v32 = vld [vmem:[%s9052_s26 + $0x424] sm:$0xf]  ;;  %v9939_v22 = vor.u32 %v8437_v14, %v7245_v46 }
 0x179   : > { %v3238_v25 = vpop.f32.mrf.mxu2  ;;  %3661 = vmatpush.bf16.msra.mxu3 %v8022_v34  ;;  %v9941_v6 = vor.u32 %v8431_v37, %v7239_v56  ;;  %v8446_v56 = vld [vmem:[%s9052_s26 + $0x48c] sm:$0xf0] }
 0x17a   : > { %v3239_v0 = vadd.f32 %v3238_v25, %v9603_v30  ;;  %v3327_v60 = vpop.f32.mrf.mxu3  ;;  %v8653_v30 = vld [vmem:[%s12415_s1 + $0x608] sm:$0xf0]  ;;  %12798 = vst [vmem:[#allocation87_spill] sm:$0xff] %v9939_v22 }
 0x17b   : > { %v3418_v29 = vpop.f32.mrf.mxu0  ;;  %v8118_v58 = vor.u32 %v8653_v30, %v8117_v16  ;;  %v7247_v25 = vld [vmem:[%s9052_s26 + $0x448] sm:$0xf0]  ;;  %12799 = vst [vmem:[#allocation88_spill] sm:$0xff] %v9941_v6 }
 0x17c   : > { %v3328_v33 = vadd.f32 %v3327_v60, %v3239_v0  ;;  %v9943_v21 = vor.u32 %v8432_v32, %v7247_v25  ;;  %v8441_v32 = vld [vmem:[%s9052_s26 + $0x46c] sm:$0xf]  ;;  %v7285_v25 = vld [vmem:[%s9052_s26 + $0x470] sm:$0xf] }
 0x17d   : > { %v3507_v1 = vpop.f32.mrf.mxu1  ;;  %3750 = vmatpush.bf16.msra.mxu0 %v8118_v58  ;;  %v7277_v58 = vld [vmem:[%s9052_s26 + $0x468] sm:$0xf] }
 0x17e   : > { %v3417_v27 = vadd.f32 %v3416_v18, %v3328_v33  ;;  %v9937_v33 = vor.u32 %v8436_v45, %v7237_v59  ;;  %12800 = vst [vmem:[#allocation89_spill] sm:$0xff] %v9943_v21 }
 0x180   : > { %v9934_v34 = vadd.f32 %v3505_v51, %v3417_v27  ;;  %12797 = vst [vmem:[#allocation86_spill] sm:$0xff] %v9937_v33 }
 0x181   : > { %v3240_v0 = vpop.f32.mrf.mxu2 }
 0x182   : > { %v3241_v18 = vadd.f32 %v3240_v0, %v9629_v53  ;;  %v3329_v60 = vpop.f32.mrf.mxu3  ;;  %v8447_v0 = vld [vmem:[%s9052_s26 + $0x494] sm:$0xf0] }
 0x183   : > { %v3421_v62 = vpop.f32.mrf.mxu0 }
 0x184   : > { %v3330_v16 = vadd.f32 %v3329_v60, %v3241_v18  ;;  %v7279_v18 = vld [vmem:[%s9052_s26 + $0x490] sm:$0xf0] }
 0x185   : > { %v3510_v30 = vpop.f32.mrf.mxu1  ;;  %v8442_v60 = vld [vmem:[%s9052_s26 + $0x474] sm:$0xf] }
 0x186   : > { %v3419_v51 = vadd.f32 %v3418_v29, %v3330_v16  ;;  %3282 = vmatmul.bf16.gmra.mxu2 %v9937_v33  ;;  %3460 = vmatmul.bf16.gmra.mxu0 %v9939_v22  ;;  %v7287_v16 = vld [vmem:[%s9052_s26 + $0x498] sm:$0xf0] }
 0x187   : > { %3371 = vmatmul.bf16.gmra.mxu3 %v9941_v6 }
 0x188   : > { %3549 = vmatmul.bf16.gmra.mxu1 %v9943_v21  ;;  %v9949_v53 = vadd.f32 %v3507_v1, %v3419_v51 }
 0x189   : > { %v3243_v59 = vpop.f32.mrf.mxu2 }
 0x18a   : > { %v3244_v27 = vadd.f32 %v3243_v59, %v9655_v17  ;;  %v3332_v45 = vpop.f32.mrf.mxu3  ;;  %v9963_v17 = vor.u32 %v8446_v56, %v7277_v58  ;;  %v9965_v59 = vor.u32 %v8447_v0, %v7285_v25 }
 0x18b   : > { %v3423_v29 = vpop.f32.mrf.mxu0 }
 0x18c   : > { %v3333_v37 = vadd.f32 %v3332_v45, %v3244_v27  ;;  %12801 = vst [vmem:[#allocation90_spill] sm:$0xff] %v9963_v17  ;;  %v9969_v45 = vor.u32 %v8442_v60, %v7287_v16 }
 0x18d   : > { %v3512_v46 = vpop.f32.mrf.mxu1  ;;  %12802 = vst [vmem:[#allocation91_spill] sm:$0xff] %v9965_v59 }
 0x18e   : > { %v3422_v14 = vadd.f32 %v3421_v62, %v3333_v37  ;;  %v9967_v62 = vor.u32 %v8441_v32, %v7279_v18  ;;  %12804 = vst [vmem:[#allocation93_spill] sm:$0xff] %v9969_v45 }
 0x190   : > { %v9960_v21 = vadd.f32 %v3510_v30, %v3422_v14  ;;  %12803 = vst [vmem:[#allocation92_spill] sm:$0xff] %v9967_v62  ;;  %v7435_v30 = vld [vmem:[%s12415_s1 + $0xb4] sm:$0xf0] }
 0x191   : > { %v3245_v1 = vpop.f32.mrf.mxu2  ;;  %v7531_v14 = vld [vmem:[%s12415_s1 + $0x174] sm:$0xf0] }
 0x192   : > { %v3246_v51 = vadd.f32 %v3245_v1, %v9663_v47  ;;  %v3334_v22 = vpop.f32.mrf.mxu3  ;;  %v8481_v47 = vld [vmem:[%s12415_s1 + $0xac] sm:$0xf]  ;;  %v7317_v1 = vld [vmem:[%s9052_s26 + $0x4b8] sm:$0xf] }
 0x193   : > { %v3426_v27 = vpop.f32.mrf.mxu0 }
 0x194   : > { %v3335_v37 = vadd.f32 %v3334_v22, %v3246_v51  ;;  %v7438_v22 = vor.u32 %v8481_v47, %v7435_v30  ;;  %v7325_v47 = vld [vmem:[%s9052_s26 + $0x4c0] sm:$0xf]  ;;  %v8457_v30 = vld [vmem:[%s9052_s26 + $0x4e4] sm:$0xf0] }
 0x195   : > { %v3515_v6 = vpop.f32.mrf.mxu1 }
 0x196   : > { %v3424_v33 = vadd.f32 %v3423_v29, %v3335_v37  ;;  %3287 = vmatmul.bf16.gmra.mxu2 %v9963_v17  ;;  %3465 = vmatmul.bf16.gmra.mxu0 %v9965_v59  ;;  %v8505_v29 = vld [vmem:[%s12415_s1 + $0x16c] sm:$0xf]  ;;  %v8456_v37 = vld [vmem:[%s9052_s26 + $0x4dc] sm:$0xf0] }
 0x197   : > { %3376 = vmatmul.bf16.gmra.mxu3 %v9967_v62  ;;  %v7534_v32 = vor.u32 %v8505_v29, %v7531_v14  ;;  %3921 = vmatpush.bf16.msrb.mxu2 %v7438_v22  ;;  %v7319_v29 = vld [vmem:[%s9052_s26 + $0x4e0] sm:$0xf0] }
 0x198   : > { %3554 = vmatmul.bf16.gmra.mxu1 %v9969_v45  ;;  %v9987_v58 = vadd.f32 %v3512_v46, %v3424_v33  ;;  %v8529_v33 = vld [vmem:[%s12415_s1 + $0x22c] sm:$0xf]  ;;  %v8451_v46 = vld [vmem:[%s9052_s26 + $0x4bc] sm:$0xf]  ;;  %v8452_v14 = vld [vmem:[%s9052_s26 + $0x4c4] sm:$0xf]  ;;  %v10009_v45 = vor.u32 %v8457_v30, %v7325_v47 }
 0x199   : > { %v3248_v56 = vpop.f32.mrf.mxu2  ;;  %4010 = vmatpush.bf16.msrb.mxu3 %v7534_v32  ;;  %v10011_v62 = vor.u32 %v8451_v46, %v7319_v29 }
 0x19a   : > { %v3249_v25 = vadd.f32 %v3248_v56, %v9683_v8  ;;  %v3337_v0 = vpop.f32.mrf.mxu3  ;;  %v7627_v8 = vld [vmem:[%s12415_s1 + $0x234] sm:$0xf0]  ;;  %v7327_v56 = vld [vmem:[%s9052_s26 + $0x4e8] sm:$0xf0]  ;;  %12806 = vst [vmem:[#allocation95_spill] sm:$0xff] %v10009_v45 }
 0x19b   : > { %v3428_v18 = vpop.f32.mrf.mxu0  ;;  %v7630_v22 = vor.u32 %v8529_v33, %v7627_v8  ;;  %12807 = vst [vmem:[#allocation96_spill] sm:$0xff] %v10011_v62  ;;  %v10013_v17 = vor.u32 %v8452_v14, %v7327_v56  ;;  %v6733_v14 = vld [vmem:[%s9052_s26 + $0x18] sm:$0xf]  ;;  %v8308_v56 = vld [vmem:[%s9052_s26 + $0x3c] sm:$0xf0] }
 0x19c   : > { %v3338_v60 = vadd.f32 %v3337_v0, %v3249_v25 }
 0x19d   : > { %v3517_v16 = vpop.f32.mrf.mxu1  ;;  %4099 = vmatpush.bf16.msrb.mxu0 %v7630_v22  ;;  %12808 = vst [vmem:[#allocation97_spill] sm:$0xff] %v10013_v17 }
 0x19e   : > { %v3427_v51 = vadd.f32 %v3426_v27, %v3338_v60  ;;  %v10007_v60 = vor.u32 %v8456_v37, %v7317_v1 }
 0x1a0   : > { %v10004_v32 = vadd.f32 %v3515_v6, %v3427_v51  ;;  %12805 = vst [vmem:[#allocation94_spill] sm:$0xff] %v10007_v60  ;;  %v7723_v6 = vld [vmem:[%s12415_s1 + $0x2f4] sm:$0xf0] }
 0x1a1   : > { %v3250_v25 = vpop.f32.mrf.mxu2 }
 0x1a2   : > { %v3251_v27 = vadd.f32 %v3250_v25, %v9703_v48  ;;  %v3339_v0 = vpop.f32.mrf.mxu3  ;;  %v8553_v48 = vld [vmem:[%s12415_s1 + $0x2ec] sm:$0xf]  ;;  %v8303_v25 = vld [vmem:[%s9052_s26 + $0x1c] sm:$0xf] }
 0x1a3   : > { %v3431_v59 = vpop.f32.mrf.mxu0 }
 0x1a4   : > { %v3340_v33 = vadd.f32 %v3339_v0, %v3251_v27  ;;  %v6741_v27 = vld [vmem:[%s9052_s26 + $0x20] sm:$0xf]  ;;  %v8309_v0 = vld [vmem:[%s9052_s26 + $0x44] sm:$0xf0] }
 0x1a5   : > { %v3520_v8 = vpop.f32.mrf.mxu1 }
 0x1a6   : > { %v3429_v3 = vadd.f32 %v3428_v18, %v3340_v33  ;;  %3292 = vmatmul.bf16.gmra.mxu2 %v10007_v60  ;;  %3470 = vmatmul.bf16.gmra.mxu0 %v10009_v45  ;;  %v7726_v18 = vor.u32 %v8553_v48, %v7723_v6  ;;  %v6735_v33 = vld [vmem:[%s9052_s26 + $0x40] sm:$0xf0]  ;;  %v6743_v6 = vld [vmem:[%s9052_s26 + $0x48] sm:$0xf0] }
 0x1a7   : > { %3381 = vmatmul.bf16.gmra.mxu3 %v10011_v62  ;;  %v8304_v48 = vld [vmem:[%s9052_s26 + $0x24] sm:$0xf] }
 0x1a8   : > { %3559 = vmatmul.bf16.gmra.mxu1 %v10013_v17  ;;  %v10025_v1 = vadd.f32 %v3517_v16, %v3429_v3 }
 0x1a9   : > { %v3253_v51 = vpop.f32.mrf.mxu2  ;;  %4188 = vmatpush.bf16.msrb.mxu1 %v7726_v18 }
 0x1aa   : > { %v3254_v37 = vadd.f32 %v3253_v51, %v9729_v36  ;;  %v3342_v46 = vpop.f32.mrf.mxu3  ;;  %v10039_v36 = vor.u32 %v8308_v56, %v6733_v14  ;;  %v10041_v51 = vor.u32 %v8309_v0, %v6741_v27 }
 0x1ab   : > { %v3433_v47 = vpop.f32.mrf.mxu0 }
 0x1ac   : > { %v3343_v30 = vadd.f32 %v3342_v46, %v3254_v37  ;;  %12809 = vst [vmem:[#allocation98_spill] sm:$0xff] %v10039_v36  ;;  %v10045_v46 = vor.u32 %v8304_v48, %v6743_v6 }
 0x1ad   : > { %v3522_v22 = vpop.f32.mrf.mxu1  ;;  %12810 = vst [vmem:[#allocation99_spill] sm:$0xff] %v10041_v51 }
 0x1ae   : > { %v3432_v29 = vadd.f32 %v3431_v59, %v3343_v30  ;;  %v10043_v59 = vor.u32 %v8303_v25, %v6735_v33  ;;  %12812 = vst [vmem:[#allocation101_spill] sm:$0xff] %v10045_v46 }
 0x1b0   : > { %v10036_v3 = vadd.f32 %v3520_v8, %v3432_v29  ;;  %12811 = vst [vmem:[#allocation100_spill] sm:$0xff] %v10043_v59  ;;  %v7519_v29 = vld [vmem:[%s12415_s1 + $0x15c] sm:$0xf0] }
 0x1b1   : > { %v3255_v16 = vpop.f32.mrf.mxu2 }
 0x1b2   : > { %v3256_v18 = vadd.f32 %v3255_v16, %v9737_v40  ;;  %v3344_v17 = vpop.f32.mrf.mxu3  ;;  %v8478_v40 = vld [vmem:[%s12415_s1 + $0x94] sm:$0xf]  ;;  %v6773_v16 = vld [vmem:[%s9052_s26 + $0x68] sm:$0xf] }
 0x1b3   : > { %v3436_v37 = vpop.f32.mrf.mxu0 }
 0x1b4   : > { %v3345_v30 = vadd.f32 %v3344_v17, %v3256_v18  ;;  %v7423_v17 = vld [vmem:[%s12415_s1 + $0x9c] sm:$0xf0] }
 0x1b5   : > { %v3525_v45 = vpop.f32.mrf.mxu1  ;;  %v7426_v8 = vor.u32 %v8478_v40, %v7423_v17  ;;  %v6781_v40 = vld [vmem:[%s9052_s26 + $0x70] sm:$0xf]  ;;  %v8319_v17 = vld [vmem:[%s9052_s26 + $0x94] sm:$0xf0] }
 0x1b6   : > { %v3434_v62 = vadd.f32 %v3433_v47, %v3345_v30  ;;  %3573 = vmatmul.bf16.vlgmr.msra.gmra.mxu2 %v10039_v36  ;;  %3751 = vmatmul.bf16.vlgmr.msra.gmra.mxu0 %v10041_v51  ;;  %v8502_v47 = vld [vmem:[%s12415_s1 + $0x154] sm:$0xf]  ;;  %v8318_v30 = vld [vmem:[%s9052_s26 + $0x8c] sm:$0xf0] }
 0x1b7   : > { %3662 = vmatmul.bf16.vlgmr.msra.gmra.mxu3 %v10043_v59  ;;  %v7522_v25 = vor.u32 %v8502_v47, %v7519_v29  ;;  %3922 = vmatpush.bf16.msrb.mxu2 %v7426_v8  ;;  %v6775_v47 = vld [vmem:[%s9052_s26 + $0x90] sm:$0xf0] }
 0x1b8   : > { %8247 = vmatmul.msk.bf16.vlgmr.msra.gmra.mxu1 %vm2982_vm0, %v10045_v46  ;;  %v10064_v14 = vadd.f32 %v3522_v22, %v3434_v62  ;;  %v8526_v62 = vld [vmem:[%s12415_s1 + $0x214] sm:$0xf]  ;;  %v8313_v22 = vld [vmem:[%s9052_s26 + $0x6c] sm:$0xf]  ;;  %v10086_v46 = vor.u32 %v8319_v17, %v6781_v40 }
 0x1b9   : > { %v3258_v56 = vpop.f32.mrf.mxu2  ;;  %4011 = vmatpush.bf16.msrb.mxu3 %v7522_v25  ;;  %v8314_v29 = vld [vmem:[%s9052_s26 + $0x74] sm:$0xf]  ;;  %v10088_v59 = vor.u32 %v8313_v22, %v6775_v47 }
 0x1ba   : > { %v3259_v27 = vadd.f32 %v3258_v56, %v9473_v19  ;;  %v3347_v0 = vpop.f32.mrf.mxu3  ;;  %v7615_v19 = vld [vmem:[%s12415_s1 + $0x21c] sm:$0xf0]  ;;  %v6783_v56 = vld [vmem:[%s9052_s26 + $0x98] sm:$0xf0]  ;;  %12814 = vst [vmem:[#allocation103_spill] sm:$0xff] %v10086_v46 }
 0x1bb   : > { %v3438_v33 = vpop.f32.mrf.mxu0  ;;  %v7618_v8 = vor.u32 %v8526_v62, %v7615_v19  ;;  %12815 = vst [vmem:[#allocation104_spill] sm:$0xff] %v10088_v59  ;;  %v10090_v36 = vor.u32 %v8314_v29, %v6783_v56  ;;  %v6813_v29 = vld [vmem:[%s9052_s26 + $0xb8] sm:$0xf]  ;;  %v8328_v56 = vld [vmem:[%s9052_s26 + $0xdc] sm:$0xf0] }
 0x1bc   : > { %v3348_v48 = vadd.f32 %v3347_v0, %v3259_v27 }
 0x1bd   : > { %v3527_v6 = vpop.f32.mrf.mxu1  ;;  %4100 = vmatpush.bf16.msrb.mxu0 %v7618_v8  ;;  %12816 = vst [vmem:[#allocation105_spill] sm:$0xff] %v10090_v36 }
 0x1be   : > { %v3437_v18 = vadd.f32 %v3436_v37, %v3348_v48  ;;  %v10084_v48 = vor.u32 %v8318_v30, %v6773_v16 }
 0x1c0   : > { %v10081_v25 = vadd.f32 %v3525_v45, %v3437_v18  ;;  %12813 = vst [vmem:[#allocation102_spill] sm:$0xff] %v10084_v48  ;;  %v7711_v45 = vld [vmem:[%s12415_s1 + $0x2dc] sm:$0xf0] }
 0x1c1   : > { %v3260_v27 = vpop.f32.mrf.mxu2 }
 0x1c2   : > { %v3261_v37 = vadd.f32 %v3260_v27, %v9495_v11  ;;  %v3349_v0 = vpop.f32.mrf.mxu3  ;;  %v8550_v11 = vld [vmem:[%s12415_s1 + $0x2d4] sm:$0xf]  ;;  %v8323_v27 = vld [vmem:[%s9052_s26 + $0xbc] sm:$0xf] }
 0x1c3   : > { %v3441_v51 = vpop.f32.mrf.mxu0 }
 0x1c4   : > { %v3350_v62 = vadd.f32 %v3349_v0, %v3261_v37  ;;  %v6821_v37 = vld [vmem:[%s9052_s26 + $0xc0] sm:$0xf]  ;;  %v8329_v0 = vld [vmem:[%s9052_s26 + $0xe4] sm:$0xf0] }
 0x1c5   : > { %v3530_v19 = vpop.f32.mrf.mxu1 }
 0x1c6   : > { %v3439_v60 = vadd.f32 %v3438_v33, %v3350_v62  ;;  %3578 = vmatmul.bf16.gmra.mxu2 %v10084_v48  ;;  %3756 = vmatmul.bf16.gmra.mxu0 %v10086_v46  ;;  %v7714_v33 = vor.u32 %v8550_v11, %v7711_v45  ;;  %v6815_v62 = vld [vmem:[%s9052_s26 + $0xe0] sm:$0xf0]  ;;  %v6823_v45 = vld [vmem:[%s9052_s26 + $0xe8] sm:$0xf0] }
 0x1c7   : > { %3667 = vmatmul.bf16.gmra.mxu3 %v10088_v59  ;;  %v8324_v11 = vld [vmem:[%s9052_s26 + $0xc4] sm:$0xf] }
 0x1c8   : > { %8248 = vmatmul.msk.bf16.gmra.mxu1 %vm2982_vm0, %v10090_v36  ;;  %v10103_v16 = vadd.f32 %v3527_v6, %v3439_v60 }
 0x1c9   : > { %v3263_v18 = vpop.f32.mrf.mxu2  ;;  %4189 = vmatpush.bf16.msrb.mxu1 %v7714_v33 }
 0x1ca   : > { %v3264_v30 = vadd.f32 %v3263_v18, %v9507_v20  ;;  %v3352_v22 = vpop.f32.mrf.mxu3  ;;  %v10117_v20 = vor.u32 %v8328_v56, %v6813_v29  ;;  %v10119_v18 = vor.u32 %v8329_v0, %v6821_v37 }
 0x1cb   : > { %v3443_v40 = vpop.f32.mrf.mxu0 }
 0x1cc   : > { %v3353_v17 = vadd.f32 %v3352_v22, %v3264_v30  ;;  %12817 = vst [vmem:[#allocation106_spill] sm:$0xff] %v10117_v20  ;;  %v10123_v22 = vor.u32 %v8324_v11, %v6823_v45 }
 0x1cd   : > { %v3532_v8 = vpop.f32.mrf.mxu1  ;;  %12818 = vst [vmem:[#allocation107_spill] sm:$0xff] %v10119_v18 }
 0x1ce   : > { %v3442_v47 = vadd.f32 %v3441_v51, %v3353_v17  ;;  %v10121_v51 = vor.u32 %v8323_v27, %v6815_v62  ;;  %12820 = vst [vmem:[#allocation109_spill] sm:$0xff] %v10123_v22 }
 0x1d0   : > { %v10114_v60 = vadd.f32 %v3530_v19, %v3442_v47  ;;  %12819 = vst [vmem:[#allocation108_spill] sm:$0xff] %v10121_v51  ;;  %v7507_v47 = vld [vmem:[%s12415_s1 + $0x144] sm:$0xf0] }
 0x1d1   : > { %v3265_v6 = vpop.f32.mrf.mxu2 }
 0x1d2   : > { %v3266_v33 = vadd.f32 %v3265_v6, %v9523_v15  ;;  %v3354_v36 = vpop.f32.mrf.mxu3  ;;  %v8475_v15 = vld [vmem:[%s12415_s1 + $0x7c] sm:$0xf]  ;;  %v6853_v6 = vld [vmem:[%s9052_s26 + $0x108] sm:$0xf] }
 0x1d3   : > { %v3446_v30 = vpop.f32.mrf.mxu0 }
 0x1d4   : > { %v3355_v17 = vadd.f32 %v3354_v36, %v3266_v33  ;;  %v7411_v36 = vld [vmem:[%s12415_s1 + $0x84] sm:$0xf0] }
 0x1d5   : > { %v3535_v46 = vpop.f32.mrf.mxu1  ;;  %v7414_v19 = vor.u32 %v8475_v15, %v7411_v36  ;;  %v6861_v15 = vld [vmem:[%s9052_s26 + $0x110] sm:$0xf]  ;;  %v8339_v36 = vld [vmem:[%s9052_s26 + $0x134] sm:$0xf0] }
 0x1d6   : > { %v3444_v59 = vadd.f32 %v3443_v40, %v3355_v17  ;;  %3583 = vmatmul.bf16.gmra.mxu2 %v10117_v20  ;;  %3761 = vmatmul.bf16.gmra.mxu0 %v10119_v18  ;;  %v8499_v40 = vld [vmem:[%s12415_s1 + $0x13c] sm:$0xf]  ;;  %v8338_v17 = vld [vmem:[%s9052_s26 + $0x12c] sm:$0xf0] }
 0x1d7   : > { %3672 = vmatmul.bf16.gmra.mxu3 %v10121_v51  ;;  %v7510_v27 = vor.u32 %v8499_v40, %v7507_v47  ;;  %3923 = vmatpush.bf16.msrb.mxu2 %v7414_v19  ;;  %v6855_v40 = vld [vmem:[%s9052_s26 + $0x130] sm:$0xf0] }
 0x1d8   : > { %8249 = vmatmul.msk.bf16.gmra.mxu1 %vm2982_vm0, %v10123_v22  ;;  %v10142_v29 = vadd.f32 %v3532_v8, %v3444_v59  ;;  %v8523_v59 = vld [vmem:[%s12415_s1 + $0x1fc] sm:$0xf]  ;;  %v8333_v8 = vld [vmem:[%s9052_s26 + $0x10c] sm:$0xf]  ;;  %v8334_v47 = vld [vmem:[%s9052_s26 + $0x114] sm:$0xf]  ;;  %v10164_v22 = vor.u32 %v8339_v36, %v6861_v15 }
 0x1d9   : > { %v3268_v56 = vpop.f32.mrf.mxu2  ;;  %4012 = vmatpush.bf16.msrb.mxu3 %v7510_v27  ;;  %v10166_v51 = vor.u32 %v8333_v8, %v6855_v40 }
 0x1da   : > { %v3269_v37 = vadd.f32 %v3268_v56, %v9547_v49  ;;  %v3357_v0 = vpop.f32.mrf.mxu3  ;;  %v7603_v49 = vld [vmem:[%s12415_s1 + $0x204] sm:$0xf0]  ;;  %v6863_v56 = vld [vmem:[%s9052_s26 + $0x138] sm:$0xf0]  ;;  %12822 = vst [vmem:[#allocation111_spill] sm:$0xff] %v10164_v22 }
 0x1db   : > { %v3448_v62 = vpop.f32.mrf.mxu0  ;;  %v7606_v19 = vor.u32 %v8523_v59, %v7603_v49  ;;  %12823 = vst [vmem:[#allocation112_spill] sm:$0xff] %v10166_v51  ;;  %v10168_v20 = vor.u32 %v8334_v47, %v6863_v56  ;;  %v6893_v47 = vld [vmem:[%s9052_s26 + $0x158] sm:$0xf]  ;;  %v8348_v56 = vld [vmem:[%s9052_s26 + $0x17c] sm:$0xf0] }
 0x1dc   : > { %v3358_v11 = vadd.f32 %v3357_v0, %v3269_v37 }
 0x1dd   : > { %v3537_v45 = vpop.f32.mrf.mxu1  ;;  %4101 = vmatpush.bf16.msrb.mxu0 %v7606_v19  ;;  %12824 = vst [vmem:[#allocation113_spill] sm:$0xff] %v10168_v20 }
 0x1de   : > { %v3447_v33 = vadd.f32 %v3446_v30, %v3358_v11  ;;  %v10162_v11 = vor.u32 %v8338_v17, %v6853_v6 }
 0x1e0   : > { %v10159_v27 = vadd.f32 %v3535_v46, %v3447_v33  ;;  %12821 = vst [vmem:[#allocation110_spill] sm:$0xff] %v10162_v11  ;;  %v7699_v46 = vld [vmem:[%s12415_s1 + $0x2c4] sm:$0xf0] }
 0x1e1   : > { %v3270_v37 = vpop.f32.mrf.mxu2 }
 0x1e2   : > { %v3271_v30 = vadd.f32 %v3270_v37, %v9569_v35  ;;  %v3359_v0 = vpop.f32.mrf.mxu3  ;;  %v8547_v35 = vld [vmem:[%s12415_s1 + $0x2bc] sm:$0xf] }
 0x1e3   : > { %v3451_v18 = vpop.f32.mrf.mxu0  ;;  %v8343_v37 = vld [vmem:[%s9052_s26 + $0x15c] sm:$0xf] }
 0x1e4   : > { %v3360_v59 = vadd.f32 %v3359_v0, %v3271_v30  ;;  %v6901_v30 = vld [vmem:[%s9052_s26 + $0x160] sm:$0xf]  ;;  %v8349_v0 = vld [vmem:[%s9052_s26 + $0x184] sm:$0xf0] }
 0x1e5   : > { %v3540_v49 = vpop.f32.mrf.mxu1 }
 0x1e6   : > { %v3449_v48 = vadd.f32 %v3448_v62, %v3360_v59  ;;  %3588 = vmatmul.bf16.gmra.mxu2 %v10162_v11  ;;  %3766 = vmatmul.bf16.gmra.mxu0 %v10164_v22  ;;  %v7702_v62 = vor.u32 %v8547_v35, %v7699_v46  ;;  %v6895_v59 = vld [vmem:[%s9052_s26 + $0x180] sm:$0xf0]  ;;  %v6903_v46 = vld [vmem:[%s9052_s26 + $0x188] sm:$0xf0] }
 0x1e7   : > { %3677 = vmatmul.bf16.gmra.mxu3 %v10166_v51  ;;  %v8344_v35 = vld [vmem:[%s9052_s26 + $0x164] sm:$0xf] }
 0x1e8   : > { %8250 = vmatmul.msk.bf16.gmra.mxu1 %vm2982_vm0, %v10168_v20  ;;  %v10181_v6 = vadd.f32 %v3537_v45, %v3449_v48 }
 0x1e9   : > { %v3273_v33 = vpop.f32.mrf.mxu2  ;;  %4190 = vmatpush.bf16.msrb.mxu1 %v7702_v62 }
 0x1ea   : > { %v3274_v17 = vadd.f32 %v3273_v33, %v9581_v7  ;;  %v3362_v8 = vpop.f32.mrf.mxu3  ;;  %v10195_v7 = vor.u32 %v8348_v56, %v6893_v47  ;;  %v10197_v33 = vor.u32 %v8349_v0, %v6901_v30 }
 0x1eb   : > { %v3453_v15 = vpop.f32.mrf.mxu0 }
 0x1ec   : > { %v3363_v36 = vadd.f32 %v3362_v8, %v3274_v17  ;;  %12825 = vst [vmem:[#allocation114_spill] sm:$0xff] %v10195_v7  ;;  %v10201_v8 = vor.u32 %v8344_v35, %v6903_v46 }
 0x1ed   : > { %v3542_v19 = vpop.f32.mrf.mxu1  ;;  %12826 = vst [vmem:[#allocation115_spill] sm:$0xff] %v10197_v33 }
 0x1ee   : > { %v3452_v40 = vadd.f32 %v3451_v18, %v3363_v36  ;;  %v10199_v18 = vor.u32 %v8343_v37, %v6895_v59  ;;  %12828 = vst [vmem:[#allocation117_spill] sm:$0xff] %v10201_v8 }
 0x1f0   : > { %v10192_v48 = vadd.f32 %v3540_v49, %v3452_v40  ;;  %12827 = vst [vmem:[#allocation116_spill] sm:$0xff] %v10199_v18  ;;  %v7495_v40 = vld [vmem:[%s12415_s1 + $0x12c] sm:$0xf0] }
 0x1f1   : > { %v3275_v45 = vpop.f32.mrf.mxu2 }
 0x1f2   : > { %v3276_v62 = vadd.f32 %v3275_v45, %v9597_v12  ;;  %v3364_v20 = vpop.f32.mrf.mxu3  ;;  %v8472_v12 = vld [vmem:[%s12415_s1 + $0x64] sm:$0xf]  ;;  %v6933_v45 = vld [vmem:[%s9052_s26 + $0x1a8] sm:$0xf] }
 0x1f3   : > { %v3456_v17 = vpop.f32.mrf.mxu0 }
 0x1f4   : > { %v3365_v36 = vadd.f32 %v3364_v20, %v3276_v62  ;;  %v7399_v20 = vld [vmem:[%s12415_s1 + $0x6c] sm:$0xf0] }
 0x1f5   : > { %v3545_v22 = vpop.f32.mrf.mxu1  ;;  %v7402_v49 = vor.u32 %v8472_v12, %v7399_v20  ;;  %v6941_v12 = vld [vmem:[%s9052_s26 + $0x1b0] sm:$0xf]  ;;  %v8359_v20 = vld [vmem:[%s9052_s26 + $0x1d4] sm:$0xf0] }
 0x1f6   : > { %v3454_v51 = vadd.f32 %v3453_v15, %v3365_v36  ;;  %3593 = vmatmul.bf16.gmra.mxu2 %v10195_v7  ;;  %3771 = vmatmul.bf16.gmra.mxu0 %v10197_v33  ;;  %v8496_v15 = vld [vmem:[%s12415_s1 + $0x124] sm:$0xf]  ;;  %v8358_v36 = vld [vmem:[%s9052_s26 + $0x1cc] sm:$0xf0] }
 0x1f7   : > { %3682 = vmatmul.bf16.gmra.mxu3 %v10199_v18  ;;  %v7498_v37 = vor.u32 %v8496_v15, %v7495_v40  ;;  %3924 = vmatpush.bf16.msrb.mxu2 %v7402_v49  ;;  %v6935_v15 = vld [vmem:[%s9052_s26 + $0x1d0] sm:$0xf0] }
 0x1f8   : > { %8251 = vmatmul.msk.bf16.gmra.mxu1 %vm2982_vm0, %v10201_v8  ;;  %v10220_v47 = vadd.f32 %v3542_v19, %v3454_v51  ;;  %v8520_v51 = vld [vmem:[%s12415_s1 + $0x1e4] sm:$0xf]  ;;  %v8353_v19 = vld [vmem:[%s9052_s26 + $0x1ac] sm:$0xf]  ;;  %v8354_v40 = vld [vmem:[%s9052_s26 + $0x1b4] sm:$0xf]  ;;  %v10242_v8 = vor.u32 %v8359_v20, %v6941_v12 }
 0x1f9   : > { %v3278_v56 = vpop.f32.mrf.mxu2  ;;  %4013 = vmatpush.bf16.msrb.mxu3 %v7498_v37  ;;  %v10244_v18 = vor.u32 %v8353_v19, %v6935_v15 }
 0x1fa   : > { %v3279_v30 = vadd.f32 %v3278_v56, %v9627_v39  ;;  %v3367_v0 = vpop.f32.mrf.mxu3  ;;  %v7591_v39 = vld [vmem:[%s12415_s1 + $0x1ec] sm:$0xf0]  ;;  %v6943_v56 = vld [vmem:[%s9052_s26 + $0x1d8] sm:$0xf0]  ;;  %12830 = vst [vmem:[#allocation119_spill] sm:$0xff] %v10242_v8 }
 0x1fb   : > { %v3458_v59 = vpop.f32.mrf.mxu0  ;;  %v7594_v49 = vor.u32 %v8520_v51, %v7591_v39  ;;  %12831 = vst [vmem:[#allocation120_spill] sm:$0xff] %v10244_v18  ;;  %v10246_v7 = vor.u32 %v8354_v40, %v6943_v56  ;;  %v6973_v40 = vld [vmem:[%s9052_s26 + $0x1f8] sm:$0xf]  ;;  %v8368_v56 = vld [vmem:[%s9052_s26 + $0x21c] sm:$0xf0] }
 0x1fc   : > { %v3368_v35 = vadd.f32 %v3367_v0, %v3279_v30 }
 0x1fd   : > { %v3547_v46 = vpop.f32.mrf.mxu1  ;;  %4102 = vmatpush.bf16.msrb.mxu0 %v7594_v49  ;;  %12832 = vst [vmem:[#allocation121_spill] sm:$0xff] %v10246_v7 }
 0x1fe   : > { %v3457_v62 = vadd.f32 %v3456_v17, %v3368_v35  ;;  %v10240_v35 = vor.u32 %v8358_v36, %v6933_v45 }
 0x200   : > { %v10237_v37 = vadd.f32 %v3545_v22, %v3457_v62  ;;  %12829 = vst [vmem:[#allocation118_spill] sm:$0xff] %v10240_v35  ;;  %v7687_v22 = vld [vmem:[%s12415_s1 + $0x2ac] sm:$0xf0] }
 0x201   : > { %v3280_v30 = vpop.f32.mrf.mxu2 }
 0x202   : > { %v3281_v17 = vadd.f32 %v3280_v30, %v9649_v42  ;;  %v3369_v0 = vpop.f32.mrf.mxu3  ;;  %v8544_v42 = vld [vmem:[%s12415_s1 + $0x2a4] sm:$0xf]  ;;  %v8363_v30 = vld [vmem:[%s9052_s26 + $0x1fc] sm:$0xf] }
 0x203   : > { %v3461_v33 = vpop.f32.mrf.mxu0 }
 0x204   : > { %v3370_v51 = vadd.f32 %v3369_v0, %v3281_v17  ;;  %v6981_v17 = vld [vmem:[%s9052_s26 + $0x200] sm:$0xf]  ;;  %v8369_v0 = vld [vmem:[%s9052_s26 + $0x224] sm:$0xf0] }
 0x205   : > { %v3550_v39 = vpop.f32.mrf.mxu1 }
 0x206   : > { %v3459_v11 = vadd.f32 %v3458_v59, %v3370_v51  ;;  %3598 = vmatmul.bf16.gmra.mxu2 %v10240_v35  ;;  %3776 = vmatmul.bf16.gmra.mxu0 %v10242_v8  ;;  %v7690_v59 = vor.u32 %v8544_v42, %v7687_v22  ;;  %v6975_v51 = vld [vmem:[%s9052_s26 + $0x220] sm:$0xf0]  ;;  %v6983_v22 = vld [vmem:[%s9052_s26 + $0x228] sm:$0xf0] }
 0x207   : > { %3687 = vmatmul.bf16.gmra.mxu3 %v10244_v18  ;;  %v8364_v42 = vld [vmem:[%s9052_s26 + $0x204] sm:$0xf] }
 0x208   : > { %8252 = vmatmul.msk.bf16.gmra.mxu1 %vm2982_vm0, %v10246_v7  ;;  %v10259_v45 = vadd.f32 %v3547_v46, %v3459_v11 }
 0x209   : > { %v3283_v62 = vpop.f32.mrf.mxu2  ;;  %4191 = vmatpush.bf16.msrb.mxu1 %v7690_v59 }
 0x20a   : > { %v3284_v36 = vadd.f32 %v3283_v62, %v9661_v2  ;;  %v3372_v19 = vpop.f32.mrf.mxu3  ;;  %v10273_v2 = vor.u32 %v8368_v56, %v6973_v40  ;;  %v10275_v62 = vor.u32 %v8369_v0, %v6981_v17 }
 0x20b   : > { %v3463_v12 = vpop.f32.mrf.mxu0 }
 0x20c   : > { %v3373_v20 = vadd.f32 %v3372_v19, %v3284_v36  ;;  %12833 = vst [vmem:[#allocation122_spill] sm:$0xff] %v10273_v2  ;;  %v10279_v19 = vor.u32 %v8364_v42, %v6983_v22 }
 0x20d   : > { %v3552_v49 = vpop.f32.mrf.mxu1  ;;  %12834 = vst [vmem:[#allocation123_spill] sm:$0xff] %v10275_v62 }
 0x20e   : > { %v3462_v15 = vadd.f32 %v3461_v33, %v3373_v20  ;;  %v10277_v33 = vor.u32 %v8363_v30, %v6975_v51  ;;  %12836 = vst [vmem:[#allocation125_spill] sm:$0xff] %v10279_v19 }
 0x210   : > { %v10270_v11 = vadd.f32 %v3550_v39, %v3462_v15  ;;  %12835 = vst [vmem:[#allocation124_spill] sm:$0xff] %v10277_v33  ;;  %v7483_v15 = vld [vmem:[%s12415_s1 + $0x114] sm:$0xf0] }
 0x211   : > { %v3285_v46 = vpop.f32.mrf.mxu2 }
 0x212   : > { %v3286_v59 = vadd.f32 %v3285_v46, %v9677_v28  ;;  %v3374_v7 = vpop.f32.mrf.mxu3  ;;  %v8469_v28 = vld [vmem:[%s12415_s1 + $0x4c] sm:$0xf] }
 0x213   : > { %v3466_v36 = vpop.f32.mrf.mxu0 }
 0x214   : > { %v3375_v20 = vadd.f32 %v3374_v7, %v3286_v59  ;;  %v7387_v7 = vld [vmem:[%s12415_s1 + $0x54] sm:$0xf0]  ;;  %v7013_v59 = vld [vmem:[%s9052_s26 + $0x248] sm:$0xf] }
 0x215   : > { %v3555_v8 = vpop.f32.mrf.mxu1  ;;  %v7390_v39 = vor.u32 %v8469_v28, %v7387_v7  ;;  %v8373_v28 = vld [vmem:[%s9052_s26 + $0x24c] sm:$0xf]  ;;  %v7021_v7 = vld [vmem:[%s9052_s26 + $0x250] sm:$0xf] }
 0x216   : > { %v3464_v18 = vadd.f32 %v3463_v12, %v3375_v20  ;;  %3603 = vmatmul.bf16.gmra.mxu2 %v10273_v2  ;;  %3781 = vmatmul.bf16.gmra.mxu0 %v10275_v62  ;;  %v8493_v12 = vld [vmem:[%s12415_s1 + $0x10c] sm:$0xf]  ;;  %v8378_v20 = vld [vmem:[%s9052_s26 + $0x26c] sm:$0xf0]  ;;  %v7023_v62 = vld [vmem:[%s9052_s26 + $0x278] sm:$0xf0] }
 0x217   : > { %3692 = vmatmul.bf16.gmra.mxu3 %v10277_v33  ;;  %v7486_v30 = vor.u32 %v8493_v12, %v7483_v15  ;;  %3925 = vmatpush.bf16.msrb.mxu2 %v7390_v39  ;;  %v10312_v39 = vor.u32 %v8378_v20, %v7013_v59 }
 0x218   : > { %8253 = vmatmul.msk.bf16.gmra.mxu1 %vm2982_vm0, %v10279_v19  ;;  %v10298_v40 = vadd.f32 %v3552_v49, %v3464_v18  ;;  %v8379_v18 = vld [vmem:[%s9052_s26 + $0x274] sm:$0xf0]  ;;  %v7015_v49 = vld [vmem:[%s9052_s26 + $0x270] sm:$0xf0] }
 0x219   : > { %v3288_v56 = vpop.f32.mrf.mxu2  ;;  %4014 = vmatpush.bf16.msrb.mxu3 %v7486_v30  ;;  %v8374_v19 = vld [vmem:[%s9052_s26 + $0x254] sm:$0xf]  ;;  %12837 = vst [vmem:[#allocation126_spill] sm:$0xff] %v10312_v39  ;;  %v7579_v30 = vld [vmem:[%s12415_s1 + $0x1d4] sm:$0xf0] }
 0x21a   : > { %v3289_v17 = vadd.f32 %v3288_v56, %v9701_v24  ;;  %v3377_v0 = vpop.f32.mrf.mxu3  ;;  %v10314_v56 = vor.u32 %v8379_v18, %v7021_v7  ;;  %v7675_v7 = vld [vmem:[%s12415_s1 + $0x294] sm:$0xf0] }
 0x21b   : > { %v3468_v51 = vpop.f32.mrf.mxu0 }
 0x21c   : > { %v3378_v42 = vadd.f32 %v3377_v0, %v3289_v17  ;;  %12838 = vst [vmem:[#allocation127_spill] sm:$0xff] %v10314_v56  ;;  %v10322_v0 = vor.u32 %v8373_v28, %v7015_v49  ;;  %v8541_v28 = vld [vmem:[%s12415_s1 + $0x28c] sm:$0xf] }
 0x21d   : > { %v3557_v22 = vpop.f32.mrf.mxu1  ;;  %v7678_v49 = vor.u32 %v8541_v28, %v7675_v7 }
 0x21e   : > { %v3467_v46 = vadd.f32 %v3466_v36, %v3378_v42  ;;  %v8517_v36 = vld [vmem:[%s12415_s1 + $0x1cc] sm:$0xf]  ;;  %12839 = vst [vmem:[#allocation128_spill] sm:$0xff] %v10322_v0 }
 0x21f   : > { %v7582_v42 = vor.u32 %v8517_v36, %v7579_v30  ;;  %4192 = vmatpush.bf16.msrb.mxu1 %v7678_v49  ;;  %v8388_v36 = vld [vmem:[%s9052_s26 + $0x2bc] sm:$0xf0] }
 0x220   : > { %v10309_v33 = vadd.f32 %v3555_v8, %v3467_v46  ;;  %v10324_v8 = vor.u32 %v8374_v19, %v7023_v62  ;;  %v7061_v30 = vld [vmem:[%s9052_s26 + $0x2a0] sm:$0xf] }
 0x221   : > { %v3290_v12 = vpop.f32.mrf.mxu2  ;;  %4103 = vmatpush.bf16.msrb.mxu0 %v7582_v42  ;;  %v8389_v42 = vld [vmem:[%s9052_s26 + $0x2c4] sm:$0xf0] }
 0x222   : > { %v3291_v24 = vadd.f32 %v3290_v12, %v9723_v26  ;;  %v3379_v15 = vpop.f32.mrf.mxu3  ;;  %12840 = vst [vmem:[#allocation129_spill] sm:$0xff] %v10324_v8 }
 0x223   : > { %v3471_v17 = vpop.f32.mrf.mxu0 }
 0x224   : > { %v3380_v26 = vadd.f32 %v3379_v15, %v3291_v24  ;;  %v7053_v15 = vld [vmem:[%s9052_s26 + $0x298] sm:$0xf] }
 0x225   : > { %v3560_v46 = vpop.f32.mrf.mxu1  ;;  %v10351_v28 = vor.u32 %v8388_v36, %v7053_v15  ;;  %v7471_v15 = vld [vmem:[%s12415_s1 + $0xfc] sm:$0xf0] }
 0x226   : > { %v3469_v59 = vadd.f32 %v3468_v51, %v3380_v26  ;;  %3608 = vmatmul.bf16.gmra.mxu2 %v10312_v39  ;;  %3786 = vmatmul.bf16.gmra.mxu0 %v10314_v56  ;;  %v7055_v26 = vld [vmem:[%s9052_s26 + $0x2c0] sm:$0xf0] }
 0x227   : > { %3697 = vmatmul.bf16.gmra.mxu3 %v10322_v0  ;;  %12841 = vst [vmem:[#allocation130_spill] sm:$0xff] %v10351_v28 }
 0x228   : > { %8254 = vmatmul.msk.bf16.gmra.mxu1 %vm2982_vm0, %v10324_v8  ;;  %v10331_v62 = vadd.f32 %v3557_v22, %v3469_v59  ;;  %v8384_v59 = vld [vmem:[%s9052_s26 + $0x2a4] sm:$0xf] }
 0x229   : > { %v3293_v19 = vpop.f32.mrf.mxu2 }
 0x22a   : > { %v3294_v51 = vadd.f32 %v3293_v19, %v9735_v61  ;;  %v3382_v20 = vpop.f32.mrf.mxu3  ;;  %v8383_v61 = vld [vmem:[%s9052_s26 + $0x29c] sm:$0xf]  ;;  %v7063_v19 = vld [vmem:[%s9052_s26 + $0x2c8] sm:$0xf0] }
 0x22b   : > { %v3473_v18 = vpop.f32.mrf.mxu0  ;;  %v10357_v7 = vor.u32 %v8384_v59, %v7063_v19  ;;  %v7093_v19 = vld [vmem:[%s9052_s26 + $0x2e8] sm:$0xf] }
 0x22c   : > { %v3383_v22 = vadd.f32 %v3382_v20, %v3294_v51  ;;  %v10353_v51 = vor.u32 %v8389_v42, %v7061_v30  ;;  %v10355_v20 = vor.u32 %v8383_v61, %v7055_v26  ;;  %v6096_v42 = vld [vmem:[%s10380_s12] sm:$0xff] }
 0x22d   : > { %v3562_v12 = vpop.f32.mrf.mxu1  ;;  %12844 = vst [vmem:[#allocation133_spill] sm:$0xff] %v10357_v7 }
 0x22e   : > { %v3472_v24 = vadd.f32 %v3471_v17, %v3383_v22  ;;  %12842 = vst [vmem:[#allocation131_spill] sm:$0xff] %v10353_v51 }
 0x22f   : > { %12843 = vst [vmem:[#allocation132_spill] sm:$0xff] %v10355_v20 }
 0x230   : > { %v10348_v8 = vadd.f32 %v3560_v46, %v3472_v24 }
 0x231   : > { %v3295_v56 = vpop.f32.mrf.mxu2 }
 0x232   : > { %v3296_v0 = vadd.f32 %v3295_v56, %v9751_v63  ;;  %v3384_v39 = vpop.f32.mrf.mxu3 }
 0x233   : > { %v3752_v17 = vpop.f32.mrf.mxu0 }
 0x234   : > { %v3385_v49 = vadd.f32 %v3384_v39, %v3296_v0  ;;  %v8466_v39 = vld [vmem:[%s12415_s1 + $0x34] sm:$0xf]  ;;  %v7375_v0 = vld [vmem:[%s12415_s1 + $0x3c] sm:$0xf0] }
 0x235   : > { %v3841_v22 = vpop.f32.mrf.mxu1 }
 0x236   : > { %v3474_v2 = vadd.f32 %v3473_v18, %v3385_v49  ;;  %3613 = vmatmul.bf16.gmra.mxu2 %v10351_v28  ;;  %3791 = vmatmul.bf16.gmra.mxu0 %v10353_v51  ;;  %v8490_v18 = vld [vmem:[%s12415_s1 + $0xf4] sm:$0xf]  ;;  %v8398_v49 = vld [vmem:[%s9052_s26 + $0x30c] sm:$0xf0] }
 0x237   : > { %3702 = vmatmul.bf16.gmra.mxu3 %v10355_v20  ;;  %v7474_v30 = vor.u32 %v8490_v18, %v7471_v15  ;;  %v7095_v51 = vld [vmem:[%s9052_s26 + $0x310] sm:$0xf0]  ;;  %v6160_v20 = vunpack.c.l.bf16 %v6096_v42 }
 0x238   : > { %8255 = vmatmul.msk.bf16.gmra.mxu1 %vm2982_vm0, %v10357_v7  ;;  %v10365_v63 = vadd.f32 %v3562_v12, %v3474_v2  ;;  %v7378_v12 = vor.u32 %v8466_v39, %v7375_v0  ;;  %v7101_v39 = vld [vmem:[%s9052_s26 + $0x2f0] sm:$0xf]  ;;  %v8399_v0 = vld [vmem:[%s9052_s26 + $0x314] sm:$0xf0] }
 0x239   : > { %v3574_v56 = vpop.f32.mrf.mxu2  ;;  %4015 = vmatpush.bf16.msrb.mxu3 %v7474_v30  ;;  %v10404_v15 = vor.u32 %v8399_v0, %v7101_v39 }
 0x23a   : > { %v3575_v46 = vadd.f32 %v3574_v56, %v9788_v50  ;;  %v3663_v24 = vpop.f32.mrf.mxu3  ;;  %v5992_v50 = vld [vmem:[%s12416_s2] sm:$0x7]  ;;  %3926 = vmatpush.bf16.msrb.mxu2 %v7378_v12  ;;  %v8393_v56 = vld [vmem:[%s9052_s26 + $0x2ec] sm:$0xf]  ;;  %v10402_v12 = vor.u32 %v8398_v49, %v7093_v19 }
 0x23b   : > { %v3754_v2 = vpop.f32.mrf.mxu0  ;;  %v10389_v59 = vperm.slane %v5992_v50, 0  ;;  %12846 = vst [vmem:[#allocation135_spill] sm:$0xff] %v10404_v15  ;;  %v6098_v49 = vld [vmem:[%s10380_s12 + $0xc] sm:$0xff] }
 0x23c   : > { %v3664_v36 = vadd.f32 %v3663_v24, %v3575_v46  ;;  %v8394_v46 = vld [vmem:[%s9052_s26 + $0x2f4] sm:$0xf]  ;;  %v7103_v24 = vld [vmem:[%s9052_s26 + $0x318] sm:$0xf0]  ;;  %12845 = vst [vmem:[#allocation134_spill] sm:$0xff] %v10402_v12  ;;  %v6163_v0 = vunpack.c.l.bf16 %v6098_v49 }
 0x23d   : > { %v3843_v61 = vpop.f32.mrf.mxu1  ;;  %v10416_v42 = vor.u32 %v8394_v46, %v7103_v24  ;;  %v8408_v49 = vld [vmem:[%s9052_s26 + $0x35c] sm:$0xf0] }
 0x23e   : > { %v3753_v26 = vadd.f32 %v3752_v17, %v3664_v36  ;;  %v8514_v36 = vld [vmem:[%s12415_s1 + $0x1b4] sm:$0xf] }
 0x23f   : > { %12848 = vst [vmem:[#allocation137_spill] sm:$0xff] %v10416_v42 }
 0x240   : > { %v3842_v7 = vadd.f32 %v3841_v22, %v3753_v26  ;;  %v7567_v22 = vld [vmem:[%s12415_s1 + $0x1bc] sm:$0xf0] }
 0x241   : > { %v3576_v28 = vpop.f32.mrf.mxu2 }
 0x242   : > { %v6000_v18 = vadd.f32 %v10389_v59, %v3842_v7  ;;  %v3577_v17 = vadd.f32 %v3576_v28, %v9803_v57  ;;  %v3665_v50 = vpop.f32.mrf.mxu3  ;;  %v10414_v7 = vor.u32 %v8393_v56, %v7095_v51  ;;  %v7570_v57 = vor.u32 %v8514_v36, %v7567_v22 }
 0x243   : > { %v3757_v30 = vpop.f32.mrf.mxu0 }
 0x244   : > { %12847 = vst [vmem:[#allocation136_spill] sm:$0xff] %v10414_v7  ;;  %v3666_v28 = vadd.f32 %v3665_v50, %v3577_v17  ;;  %v6256_v19 = vadd.f32 %v6160_v20, %v6000_v18  ;;  %4104 = vmatpush.bf16.msrb.mxu0 %v7570_v57  ;;  %v7663_v18 = vld [vmem:[%s12415_s1 + $0x27c] sm:$0xf0]  ;;  %v7133_v57 = vld [vmem:[%s9052_s26 + $0x338] sm:$0xf] }
 0x245   : > { %v3846_v26 = vpop.f32.mrf.mxu1 }
 0x246   : > { %v3755_v39 = vadd.f32 %v3754_v2, %v3666_v28  ;;  %3618 = vmatmul.bf16.gmra.mxu2 %v10402_v12  ;;  %3796 = vmatmul.bf16.gmra.mxu0 %v10404_v15  ;;  %v6352_v51 = vmax.f32 %v6256_v19, 0.0  ;;  %v6100_v28 = vld [vmem:[%s10380_s12 + $0x18] sm:$0xff]  ;;  %v7143_v12 = vld [vmem:[%s9052_s26 + $0x368] sm:$0xf0] }
 0x247   : > { %3707 = vmatmul.bf16.gmra.mxu3 %v10414_v7  ;;  %v8404_v7 = vld [vmem:[%s9052_s26 + $0x344] sm:$0xf] }
 0x248   : > { %8256 = vmatmul.msk.bf16.gmra.mxu1 %vm2982_vm0, %v10416_v42  ;;  %v3844_v56 = vadd.f32 %v3843_v61, %v3755_v39  ;;  %6448 = vst [vmem:[%s10424_s29] sm:$0xff] %v6352_v51  ;;  %v8538_v61 = vld [vmem:[%s12415_s1 + $0x274] sm:$0xf]  ;;  %v8403_v39 = vld [vmem:[%s9052_s26 + $0x33c] sm:$0xf]  ;;  %v8409_v42 = vld [vmem:[%s9052_s26 + $0x364] sm:$0xf0] }
 0x249   : > { %v3579_v46 = vpop.f32.mrf.mxu2  ;;  %v7666_v50 = vor.u32 %v8538_v61, %v7663_v18  ;;  %v6166_v61 = vunpack.c.l.bf16 %v6100_v28  ;;  %v10447_v18 = vor.u32 %v8408_v49, %v7133_v57  ;;  %v6102_v28 = vld [vmem:[%s10380_s12 + $0x24] sm:$0xff]  ;;  %v8463_v49 = vld [vmem:[%s12415_s1 + $0x1c] sm:$0xf] }
 0x24a   : > { %v6003_v20 = vadd.f32 %v10389_v59, %v3844_v56  ;;  %v3580_v2 = vadd.f32 %v3579_v46, %v9820_v31  ;;  %v3668_v24 = vpop.f32.mrf.mxu3  ;;  %v7135_v56 = vld [vmem:[%s9052_s26 + $0x360] sm:$0xf0]  ;;  %v7141_v46 = vld [vmem:[%s9052_s26 + $0x340] sm:$0xf] }
 0x24b   : > { %v3759_v17 = vpop.f32.mrf.mxu0  ;;  %4193 = vmatpush.bf16.msrb.mxu1 %v7666_v50  ;;  %12849 = vst [vmem:[#allocation138_spill] sm:$0xff] %v10447_v18 }
 0x24c   : > { %v3669_v36 = vadd.f32 %v3668_v24, %v3580_v2  ;;  %v6259_v31 = vadd.f32 %v6163_v0, %v6003_v20 }
 0x24d   : > { %v3848_v22 = vpop.f32.mrf.mxu1 }
 0x24e   : > { %v3758_v19 = vadd.f32 %v3757_v30, %v3669_v36  ;;  %v6355_v51 = vmax.f32 %v6259_v31, 0.0  ;;  %v10449_v30 = vor.u32 %v8409_v42, %v7141_v46  ;;  %v10451_v36 = vor.u32 %v8403_v39, %v7135_v56 }
 0x24f   : > { %v6169_v42 = vunpack.c.l.bf16 %v6102_v28  ;;  %v8413_v28 = vld [vmem:[%s9052_s26 + $0x38c] sm:$0xf] }
 0x250   : > { %v3847_v15 = vadd.f32 %v3846_v26, %v3758_v19  ;;  %6451 = vst [vmem:[%s10424_s29 + $0x18] sm:$0xff] %v6355_v51  ;;  %v10453_v26 = vor.u32 %v8404_v7, %v7143_v12 }
 0x251   : > { %v3581_v2 = vpop.f32.mrf.mxu2  ;;  %12850 = vst [vmem:[#allocation139_spill] sm:$0xff] %v10449_v30 }
 0x252   : > { %v6006_v24 = vadd.f32 %v10389_v59, %v3847_v15  ;;  %v3582_v0 = vadd.f32 %v3581_v2, %v9847_v38  ;;  %v3670_v20 = vpop.f32.mrf.mxu3  ;;  %12851 = vst [vmem:[#allocation140_spill] sm:$0xff] %v10451_v36 }
 0x253   : > { %v3762_v50 = vpop.f32.mrf.mxu0  ;;  %12852 = vst [vmem:[#allocation141_spill] sm:$0xff] %v10453_v26 }
 0x254   : > { %v3671_v31 = vadd.f32 %v3670_v20, %v3582_v0  ;;  %v6262_v51 = vadd.f32 %v6166_v61, %v6006_v24  ;;  %v7173_v0 = vld [vmem:[%s9052_s26 + $0x388] sm:$0xf]  ;;  %v6104_v20 = vld [vmem:[%s10380_s12 + $0x30] sm:$0xff] }
 0x255   : > { %v3851_v19 = vpop.f32.mrf.mxu1 }
 0x256   : > { %v3760_v35 = vadd.f32 %v3759_v17, %v3671_v31  ;;  %3623 = vmatmul.bf16.gmra.mxu2 %v10447_v18  ;;  %3801 = vmatmul.bf16.gmra.mxu0 %v10449_v30  ;;  %v6358_v38 = vmax.f32 %v6262_v51, 0.0  ;;  %v8418_v51 = vld [vmem:[%s9052_s26 + $0x3ac] sm:$0xf0] }
 0x257   : > { %3712 = vmatmul.bf16.gmra.mxu3 %v10451_v36 }
 0x258   : > { %8257 = vmatmul.msk.bf16.gmra.mxu1 %vm2982_vm0, %v10453_v26  ;;  %v3849_v15 = vadd.f32 %v3848_v22, %v3760_v35  ;;  %6454 = vst [vmem:[%s10424_s29 + $0x30] sm:$0xff] %v6358_v38  ;;  %v7363_v35 = vld [vmem:[%s12415_s1 + $0x24] sm:$0xf0]  ;;  %v8487_v22 = vld [vmem:[%s12415_s1 + $0xdc] sm:$0xf] }
 0x259   : > { %v3584_v12 = vpop.f32.mrf.mxu2  ;;  %v7366_v56 = vor.u32 %v8463_v49, %v7363_v35  ;;  %v8419_v49 = vld [vmem:[%s9052_s26 + $0x3b4] sm:$0xf0]  ;;  %v8414_v26 = vld [vmem:[%s9052_s26 + $0x394] sm:$0xf] }
 0x25a   : > { %v6009_v7 = vadd.f32 %v10389_v59, %v3849_v15  ;;  %v3585_v17 = vadd.f32 %v3584_v12, %v9864_v44  ;;  %v3673_v57 = vpop.f32.mrf.mxu3  ;;  %v7459_v44 = vld [vmem:[%s12415_s1 + $0xe4] sm:$0xf0]  ;;  %v7175_v15 = vld [vmem:[%s9052_s26 + $0x3b0] sm:$0xf0]  ;;  %v7181_v12 = vld [vmem:[%s9052_s26 + $0x390] sm:$0xf] }
 0x25b   : > { %v3764_v39 = vpop.f32.mrf.mxu0  ;;  %v7462_v2 = vor.u32 %v8487_v22, %v7459_v44  ;;  %3927 = vmatpush.bf16.msrb.mxu2 %v7366_v56  ;;  %v10490_v56 = vor.u32 %v8419_v49, %v7181_v12  ;;  %v8511_v44 = vld [vmem:[%s12415_s1 + $0x19c] sm:$0xf] }
 0x25c   : > { %v3674_v46 = vadd.f32 %v3673_v57, %v3585_v17  ;;  %v6265_v24 = vadd.f32 %v6169_v42, %v6009_v7  ;;  %v7183_v17 = vld [vmem:[%s9052_s26 + $0x3b8] sm:$0xf0]  ;;  %v6172_v57 = vunpack.c.l.bf16 %v6104_v20 }
 0x25d   : > { %v3853_v61 = vpop.f32.mrf.mxu1  ;;  %4016 = vmatpush.bf16.msrb.mxu3 %v7462_v2  ;;  %12854 = vst [vmem:[#allocation143_spill] sm:$0xff] %v10490_v56  ;;  %v10498_v2 = vor.u32 %v8413_v28, %v7175_v15 }
 0x25e   : > { %v3763_v31 = vadd.f32 %v3762_v50, %v3674_v46  ;;  %v6361_v38 = vmax.f32 %v6265_v24, 0.0  ;;  %v10488_v50 = vor.u32 %v8418_v51, %v7173_v0  ;;  %v10500_v24 = vor.u32 %v8414_v26, %v7183_v17 }
 0x25f   : > { %12855 = vst [vmem:[#allocation144_spill] sm:$0xff] %v10498_v2 }
 0x260   : > { %v3852_v35 = vadd.f32 %v3851_v19, %v3763_v31  ;;  %6457 = vst [vmem:[%s10424_s29 + $0x48] sm:$0xff] %v6361_v38  ;;  %v7555_v19 = vld [vmem:[%s12415_s1 + $0x1a4] sm:$0xf0]  ;;  %v6106_v31 = vld [vmem:[%s10380_s12 + $0x3c] sm:$0xff] }
 0x261   : > { %v3586_v30 = vpop.f32.mrf.mxu2  ;;  %12853 = vst [vmem:[#allocation142_spill] sm:$0xff] %v10488_v50  ;;  %v6175_v38 = vunpack.c.l.bf16 %v6106_v31  ;;  %v7215_v31 = vld [vmem:[%s9052_s26 + $0x400] sm:$0xf0] }
 0x262   : > { %v6012_v42 = vadd.f32 %v10389_v59, %v3852_v35  ;;  %v3587_v7 = vadd.f32 %v3586_v30, %v9879_v23  ;;  %v3675_v22 = vpop.f32.mrf.mxu3  ;;  %12856 = vst [vmem:[#allocation145_spill] sm:$0xff] %v10500_v24  ;;  %v7558_v23 = vor.u32 %v8511_v44, %v7555_v19  ;;  %v8535_v35 = vld [vmem:[%s12415_s1 + $0x25c] sm:$0xf]  ;;  %v6108_v44 = vld [vmem:[%s10380_s12 + $0x48] sm:$0xff] }
 0x263   : > { %v3767_v46 = vpop.f32.mrf.mxu0 }
 0x264   : > { %v3676_v30 = vadd.f32 %v3675_v22, %v3587_v7  ;;  %v6268_v20 = vadd.f32 %v6172_v57, %v6012_v42  ;;  %4105 = vmatpush.bf16.msrb.mxu0 %v7558_v23  ;;  %v7213_v22 = vld [vmem:[%s9052_s26 + $0x3d8] sm:$0xf]  ;;  %v8428_v23 = vld [vmem:[%s9052_s26 + $0x3fc] sm:$0xf0] }
 0x265   : > { %v3856_v0 = vpop.f32.mrf.mxu1 }
 0x266   : > { %v3765_v51 = vadd.f32 %v3764_v39, %v3676_v30  ;;  %3628 = vmatmul.bf16.gmra.mxu2 %v10488_v50  ;;  %3806 = vmatmul.bf16.gmra.mxu0 %v10490_v56  ;;  %v6364_v26 = vmax.f32 %v6268_v20, 0.0  ;;  %v8423_v30 = vld [vmem:[%s9052_s26 + $0x3dc] sm:$0xf] }
 0x267   : > { %3717 = vmatmul.bf16.gmra.mxu3 %v10498_v2 }
 0x268   : > { %8258 = vmatmul.msk.bf16.gmra.mxu1 %vm2982_vm0, %v10500_v24  ;;  %v3854_v28 = vadd.f32 %v3853_v61, %v3765_v51  ;;  %6460 = vst [vmem:[%s10424_s29 + $0x60] sm:$0xff] %v6364_v26  ;;  %v7651_v61 = vld [vmem:[%s12415_s1 + $0x264] sm:$0xf0]  ;;  %v7221_v51 = vld [vmem:[%s9052_s26 + $0x3e0] sm:$0xf] }
 0x269   : > { %v3589_v15 = vpop.f32.mrf.mxu2  ;;  %v7654_v57 = vor.u32 %v8535_v35, %v7651_v61  ;;  %v8429_v26 = vld [vmem:[%s9052_s26 + $0x404] sm:$0xf0]  ;;  %v7223_v24 = vld [vmem:[%s9052_s26 + $0x408] sm:$0xf0]  ;;  %v6178_v35 = vunpack.c.l.bf16 %v6108_v44  ;;  %v10529_v61 = vor.u32 %v8428_v23, %v7213_v22  ;;  %v6110_v44 = vld [vmem:[%s10380_s12 + $0x54] sm:$0xff] }
 0x26a   : > { %v6015_v39 = vadd.f32 %v10389_v59, %v3854_v28  ;;  %v3590_v12 = vadd.f32 %v3589_v15, %v9890_v5  ;;  %v3678_v49 = vpop.f32.mrf.mxu3  ;;  %v8424_v15 = vld [vmem:[%s9052_s26 + $0x3e4] sm:$0xf]  ;;  %v6181_v23 = vunpack.c.l.bf16 %v6110_v44  ;;  %v8433_v44 = vld [vmem:[%s9052_s26 + $0x42c] sm:$0xf] }
 0x26b   : > { %v3769_v17 = vpop.f32.mrf.mxu0  ;;  %4194 = vmatpush.bf16.msrb.mxu1 %v7654_v57  ;;  %12857 = vst [vmem:[#allocation146_spill] sm:$0xff] %v10529_v61 }
 0x26c   : > { %v3679_v42 = vadd.f32 %v3678_v49, %v3590_v12  ;;  %v6271_v5 = vadd.f32 %v6175_v38, %v6015_v39 }
 0x26d   : > { %v3858_v7 = vpop.f32.mrf.mxu1 }
 0x26e   : > { %v3768_v19 = vadd.f32 %v3767_v46, %v3679_v42  ;;  %v6367_v20 = vmax.f32 %v6271_v5, 0.0  ;;  %v10531_v46 = vor.u32 %v8429_v26, %v7221_v51  ;;  %v10533_v42 = vor.u32 %v8423_v30, %v7215_v31  ;;  %v8460_v51 = vld [vmem:[%s12415_s1 + $0x4] sm:$0xf] }
 0x270   : > { %v3857_v28 = vadd.f32 %v3856_v0, %v3768_v19  ;;  %6463 = vst [vmem:[%s10424_s29 + $0x78] sm:$0xff] %v6367_v20  ;;  %v10535_v0 = vor.u32 %v8424_v15, %v7223_v24 }
 0x271   : > { %v3591_v12 = vpop.f32.mrf.mxu2  ;;  %12858 = vst [vmem:[#allocation147_spill] sm:$0xff] %v10531_v46 }
 0x272   : > { %v6018_v49 = vadd.f32 %v10389_v59, %v3857_v28  ;;  %v3592_v38 = vadd.f32 %v3591_v12, %v9917_v10  ;;  %v3680_v39 = vpop.f32.mrf.mxu3  ;;  %12859 = vst [vmem:[#allocation148_spill] sm:$0xff] %v10533_v42 }
 0x273   : > { %v3772_v57 = vpop.f32.mrf.mxu0  ;;  %12860 = vst [vmem:[#allocation149_spill] sm:$0xff] %v10535_v0 }
 0x274   : > { %v3681_v5 = vadd.f32 %v3680_v39, %v3592_v38  ;;  %v6274_v20 = vadd.f32 %v6178_v35, %v6018_v49  ;;  %v7253_v38 = vld [vmem:[%s9052_s26 + $0x428] sm:$0xf]  ;;  %v6112_v39 = vld [vmem:[%s10380_s12 + $0x60] sm:$0xff] }
 0x275   : > { %v3861_v19 = vpop.f32.mrf.mxu1 }
 0x276   : > { %v3770_v56 = vadd.f32 %v3769_v17, %v3681_v5  ;;  %3633 = vmatmul.bf16.gmra.mxu2 %v10529_v61  ;;  %3811 = vmatmul.bf16.gmra.mxu0 %v10531_v46  ;;  %v6370_v10 = vmax.f32 %v6274_v20, 0.0  ;;  %v8438_v20 = vld [vmem:[%s9052_s26 + $0x44c] sm:$0xf0] }
 0x277   : > { %3722 = vmatmul.bf16.gmra.mxu3 %v10533_v42 }
 0x278   : > { %8259 = vmatmul.msk.bf16.gmra.mxu1 %vm2982_vm0, %v10535_v0  ;;  %v3859_v22 = vadd.f32 %v3858_v7, %v3770_v56  ;;  %6466 = vst [vmem:[%s10424_s29 + $0x90] sm:$0xff] %v6370_v10  ;;  %v7351_v56 = vld [vmem:[%s12415_s1 + $0xc] sm:$0xf0]  ;;  %v8484_v7 = vld [vmem:[%s12415_s1 + $0xc4] sm:$0xf] }
 0x279   : > { %v3594_v24 = vpop.f32.mrf.mxu2  ;;  %v7354_v28 = vor.u32 %v8460_v51, %v7351_v56  ;;  %v8439_v51 = vld [vmem:[%s9052_s26 + $0x454] sm:$0xf0]  ;;  %v8434_v0 = vld [vmem:[%s9052_s26 + $0x434] sm:$0xf] }
 0x27a   : > { %v6021_v30 = vadd.f32 %v10389_v59, %v3859_v22  ;;  %v3595_v17 = vadd.f32 %v3594_v24, %v9934_v34  ;;  %v3683_v31 = vpop.f32.mrf.mxu3  ;;  %v7447_v34 = vld [vmem:[%s12415_s1 + $0xcc] sm:$0xf0]  ;;  %v7255_v22 = vld [vmem:[%s9052_s26 + $0x450] sm:$0xf0] }
 0x27b   : > { %v3774_v26 = vpop.f32.mrf.mxu0  ;;  %v7450_v12 = vor.u32 %v8484_v7, %v7447_v34  ;;  %3928 = vmatpush.bf16.msrb.mxu2 %v7354_v28  ;;  %v7261_v24 = vld [vmem:[%s9052_s26 + $0x430] sm:$0xf]  ;;  %v8508_v34 = vld [vmem:[%s12415_s1 + $0x184] sm:$0xf] }
 0x27c   : > { %v3684_v15 = vadd.f32 %v3683_v31, %v3595_v17  ;;  %v6277_v49 = vadd.f32 %v6181_v23, %v6021_v30  ;;  %v7263_v17 = vld [vmem:[%s9052_s26 + $0x458] sm:$0xf0]  ;;  %v6184_v31 = vunpack.c.l.bf16 %v6112_v39  ;;  %v10572_v28 = vor.u32 %v8439_v51, %v7261_v24 }
 0x27d   : > { %v3863_v35 = vpop.f32.mrf.mxu1  ;;  %4017 = vmatpush.bf16.msrb.mxu3 %v7450_v12  ;;  %v10580_v12 = vor.u32 %v8433_v44, %v7255_v22 }
 0x27e   : > { %v3773_v5 = vadd.f32 %v3772_v57, %v3684_v15  ;;  %v6373_v10 = vmax.f32 %v6277_v49, 0.0  ;;  %v10570_v57 = vor.u32 %v8438_v20, %v7253_v38  ;;  %12862 = vst [vmem:[#allocation151_spill] sm:$0xff] %v10572_v28  ;;  %v10582_v49 = vor.u32 %v8434_v0, %v7263_v17 }
 0x27f   : > { %12863 = vst [vmem:[#allocation152_spill] sm:$0xff] %v10580_v12 }
 0x280   : > { %v3862_v56 = vadd.f32 %v3861_v19, %v3773_v5  ;;  %6469 = vst [vmem:[%s10424_s29 + $0xa8] sm:$0xff] %v6373_v10  ;;  %v7543_v19 = vld [vmem:[%s12415_s1 + $0x18c] sm:$0xf0] }
 0x281   : > { %v3596_v46 = vpop.f32.mrf.mxu2  ;;  %12861 = vst [vmem:[#allocation150_spill] sm:$0xff] %v10570_v57  ;;  %v6114_v5 = vld [vmem:[%s10380_s12 + $0x6c] sm:$0xff] }
 0x282   : > { %v6024_v23 = vadd.f32 %v10389_v59, %v3862_v56  ;;  %v3597_v30 = vadd.f32 %v3596_v46, %v9949_v53  ;;  %v3685_v7 = vpop.f32.mrf.mxu3  ;;  %12864 = vst [vmem:[#allocation153_spill] sm:$0xff] %v10582_v49  ;;  %v7546_v53 = vor.u32 %v8508_v34, %v7543_v19  ;;  %v6187_v10 = vunpack.c.l.bf16 %v6114_v5  ;;  %v8532_v56 = vld [vmem:[%s12415_s1 + $0x244] sm:$0xf]  ;;  %v6116_v34 = vld [vmem:[%s10380_s12 + $0x78] sm:$0xff] }
 0x283   : > { %v3777_v15 = vpop.f32.mrf.mxu0  ;;  %v7295_v5 = vld [vmem:[%s9052_s26 + $0x4a0] sm:$0xf0] }
 0x284   : > { %v3686_v46 = vadd.f32 %v3685_v7, %v3597_v30  ;;  %v6280_v39 = vadd.f32 %v6184_v31, %v6024_v23  ;;  %4106 = vmatpush.bf16.msrb.mxu0 %v7546_v53  ;;  %v7293_v7 = vld [vmem:[%s9052_s26 + $0x478] sm:$0xf]  ;;  %v8448_v53 = vld [vmem:[%s9052_s26 + $0x49c] sm:$0xf0] }
 0x285   : > { %v3866_v38 = vpop.f32.mrf.mxu1 }
 0x286   : > { %v3775_v20 = vadd.f32 %v3774_v26, %v3686_v46  ;;  %3638 = vmatmul.bf16.gmra.mxu2 %v10570_v57  ;;  %3816 = vmatmul.bf16.gmra.mxu0 %v10572_v28  ;;  %v6376_v0 = vmax.f32 %v6280_v39, 0.0  ;;  %v8443_v46 = vld [vmem:[%s9052_s26 + $0x47c] sm:$0xf] }
 0x287   : > { %3727 = vmatmul.bf16.gmra.mxu3 %v10580_v12 }
 0x288   : > { %8260 = vmatmul.msk.bf16.gmra.mxu1 %vm2982_vm0, %v10582_v49  ;;  %v3864_v44 = vadd.f32 %v3863_v35, %v3775_v20  ;;  %6472 = vst [vmem:[%s10424_s29 + $0xc0] sm:$0xff] %v6376_v0  ;;  %v7639_v35 = vld [vmem:[%s12415_s1 + $0x24c] sm:$0xf0]  ;;  %v7301_v20 = vld [vmem:[%s9052_s26 + $0x480] sm:$0xf] }
 0x289   : > { %v3599_v22 = vpop.f32.mrf.mxu2  ;;  %v7642_v31 = vor.u32 %v8532_v56, %v7639_v35  ;;  %v8449_v0 = vld [vmem:[%s9052_s26 + $0x4a4] sm:$0xf0]  ;;  %v7303_v49 = vld [vmem:[%s9052_s26 + $0x4a8] sm:$0xf0]  ;;  %v6190_v56 = vunpack.c.l.bf16 %v6116_v34  ;;  %v10611_v35 = vor.u32 %v8448_v53, %v7293_v7 }
 0x28a   : > { %v6027_v26 = vadd.f32 %v10389_v59, %v3864_v44  ;;  %v3600_v24 = vadd.f32 %v3599_v22, %v9960_v21  ;;  %v3688_v51 = vpop.f32.mrf.mxu3  ;;  %v8444_v22 = vld [vmem:[%s9052_s26 + $0x484] sm:$0xf] }
 0x28b   : > { %v3779_v17 = vpop.f32.mrf.mxu0  ;;  %4195 = vmatpush.bf16.msrb.mxu1 %v7642_v31  ;;  %12865 = vst [vmem:[#allocation154_spill] sm:$0xff] %v10611_v35  ;;  %v6118_v34 = vld [vmem:[%s10380_s12 + $0x84] sm:$0xff] }
 0x28c   : > { %v3689_v23 = vadd.f32 %v3688_v51, %v3600_v24  ;;  %v6283_v21 = vadd.f32 %v6187_v10, %v6027_v26 }
 0x28d   : > { %v3868_v30 = vpop.f32.mrf.mxu1 }
 0x28e   : > { %v3778_v19 = vadd.f32 %v3777_v15, %v3689_v23  ;;  %v6379_v39 = vmax.f32 %v6283_v21, 0.0  ;;  %v10613_v15 = vor.u32 %v8449_v0, %v7301_v20  ;;  %v10615_v23 = vor.u32 %v8443_v46, %v7295_v5  ;;  %v8577_v20 = vld [vmem:[%s12415_s1 + $0x3ac] sm:$0xf] }
 0x290   : > { %v3867_v44 = vadd.f32 %v3866_v38, %v3778_v19  ;;  %6475 = vst [vmem:[%s10424_s29 + $0xd8] sm:$0xff] %v6379_v39  ;;  %v10617_v38 = vor.u32 %v8444_v22, %v7303_v49  ;;  %v6193_v49 = vunpack.c.l.bf16 %v6118_v34  ;;  %v8453_v34 = vld [vmem:[%s9052_s26 + $0x4cc] sm:$0xf] }
 0x291   : > { %v3601_v24 = vpop.f32.mrf.mxu2  ;;  %12866 = vst [vmem:[#allocation155_spill] sm:$0xff] %v10613_v15 }
 0x292   : > { %v6030_v51 = vadd.f32 %v10389_v59, %v3867_v44  ;;  %v3602_v10 = vadd.f32 %v3601_v24, %v9987_v58  ;;  %v3690_v26 = vpop.f32.mrf.mxu3  ;;  %12867 = vst [vmem:[#allocation156_spill] sm:$0xff] %v10615_v23 }
 0x293   : > { %v3782_v31 = vpop.f32.mrf.mxu0  ;;  %12868 = vst [vmem:[#allocation157_spill] sm:$0xff] %v10617_v38 }
 0x294   : > { %v3691_v21 = vadd.f32 %v3690_v26, %v3602_v10  ;;  %v6286_v39 = vadd.f32 %v6190_v56, %v6030_v51  ;;  %v7333_v10 = vld [vmem:[%s9052_s26 + $0x4c8] sm:$0xf]  ;;  %v6120_v26 = vld [vmem:[%s10380_s12 + $0x90] sm:$0xff] }
 0x295   : > { %v3871_v19 = vpop.f32.mrf.mxu1 }
 0x296   : > { %v3780_v28 = vadd.f32 %v3779_v17, %v3691_v21  ;;  %3643 = vmatmul.bf16.gmra.mxu2 %v10611_v35  ;;  %3821 = vmatmul.bf16.gmra.mxu0 %v10613_v15  ;;  %v6382_v58 = vmax.f32 %v6286_v39, 0.0  ;;  %v8458_v39 = vld [vmem:[%s9052_s26 + $0x4ec] sm:$0xf0] }
 0x297   : > { %3732 = vmatmul.bf16.gmra.mxu3 %v10615_v23 }
 0x298   : > { %8261 = vmatmul.msk.bf16.gmra.mxu1 %vm2982_vm0, %v10617_v38  ;;  %v3869_v7 = vadd.f32 %v3868_v30, %v3780_v28  ;;  %6478 = vst [vmem:[%s10424_s29 + $0xf0] sm:$0xff] %v6382_v58  ;;  %v7819_v28 = vld [vmem:[%s12415_s1 + $0x3b4] sm:$0xf0]  ;;  %v8601_v30 = vld [vmem:[%s12415_s1 + $0x46c] sm:$0xf] }
 0x299   : > { %v3604_v53 = vpop.f32.mrf.mxu2  ;;  %v7822_v44 = vor.u32 %v8577_v20, %v7819_v28  ;;  %v8459_v20 = vld [vmem:[%s9052_s26 + $0x4f4] sm:$0xf0]  ;;  %v8454_v38 = vld [vmem:[%s9052_s26 + $0x4d4] sm:$0xf] }
 0x29a   : > { %v6033_v46 = vadd.f32 %v10389_v59, %v3869_v7  ;;  %v3605_v17 = vadd.f32 %v3604_v53, %v10004_v32  ;;  %v3693_v5 = vpop.f32.mrf.mxu3  ;;  %v7915_v32 = vld [vmem:[%s12415_s1 + $0x474] sm:$0xf0]  ;;  %v7335_v7 = vld [vmem:[%s9052_s26 + $0x4f0] sm:$0xf0]  ;;  %v7341_v53 = vld [vmem:[%s9052_s26 + $0x4d0] sm:$0xf] }
 0x29b   : > { %v3784_v0 = vpop.f32.mrf.mxu0  ;;  %v7918_v24 = vor.u32 %v8601_v30, %v7915_v32  ;;  %4277 = vmatpush.bf16.msra.mxu2 %v7822_v44  ;;  %v10654_v44 = vor.u32 %v8459_v20, %v7341_v53  ;;  %v8625_v32 = vld [vmem:[%s12415_s1 + $0x52c] sm:$0xf] }
 0x29c   : > { %v3694_v22 = vadd.f32 %v3693_v5, %v3605_v17  ;;  %v6289_v51 = vadd.f32 %v6193_v49, %v6033_v46  ;;  %v7343_v17 = vld [vmem:[%s9052_s26 + $0x4f8] sm:$0xf0]  ;;  %v6196_v5 = vunpack.c.l.bf16 %v6120_v26  ;;  %s6562_s26 = sshll.u32 %s6559_s9, 4  ;;  %s6563_s26 = int_to_ptr.hbm [resolvable:$true] %s6562_s26 }
 0x29d   : > { %v3873_v56 = vpop.f32.mrf.mxu1  ;;  %4366 = vmatpush.bf16.msra.mxu3 %v7918_v24  ;;  %12870 = vst [vmem:[#allocation159_spill] sm:$0xff] %v10654_v44  ;;  %v10662_v24 = vor.u32 %v8453_v34, %v7335_v7  ;;  %s8810_s10 = sshra.s32 %s6563_s26, 4  ;;  %s8811_s10 = int_to_ptr.hbm [resolvable:$true] %s8810_s10 }
 0x29e   : > { %v3783_v21 = vadd.f32 %v3782_v31, %v3694_v22  ;;  %v6385_v58 = vmax.f32 %v6289_v51, 0.0  ;;  %v10652_v31 = vor.u32 %v8458_v39, %v7333_v10  ;;  %v10664_v51 = vor.u32 %v8454_v38, %v7343_v17  ;;  %v8107_v17 = vld [vmem:[%s12415_s1 + $0x5f4] sm:$0xf0]  ;;  %s8812_s5 = scalar_lea.hbm %s8811_s10, 768  ;;  %p8817_p1 = scmp.lt.s32.totalorder %s8811_s10, %s12418_s4 }
 0x29f   : > { %12871 = vst [vmem:[#allocation160_spill] sm:$0xff] %v10662_v24  ;;  %p8813_p12 = scmp.ne.s32.totalorder %s8811_s10, %s8812_s5  ;;  %p8818_p2 = scmp.lt.s32.totalorder %s8816_s14, %s8812_s5 }
 0x2a0   : > { %v3872_v28 = vadd.f32 %v3871_v19, %v3783_v21  ;;  %6481 = vst [vmem:[%s10424_s29 + $0x108] sm:$0xff] %v6385_v58  ;;  %v8011_v19 = vld [vmem:[%s12415_s1 + $0x534] sm:$0xf0]  ;;  %v6122_v21 = vld [vmem:[%s10380_s12 + $0x9c] sm:$0xff] }
 0x2a1   : > { %v3606_v15 = vpop.f32.mrf.mxu2  ;;  %12869 = vst [vmem:[#allocation158_spill] sm:$0xff] %v10652_v31  ;;  %v6199_v34 = vunpack.c.l.bf16 %v6122_v21  ;;  %p8814_p13 = pnand %p8813_p12, %p8943_p4  ;;  %p8819_p3 = por %p8818_p2, %p8817_p1 }
 0x2a2   : > { %v6036_v49 = vadd.f32 %v10389_v59, %v3872_v28  ;;  %v3607_v46 = vadd.f32 %v3606_v15, %v10025_v1  ;;  %v3695_v30 = vpop.f32.mrf.mxu3  ;;  %12872 = vst [vmem:[#allocation161_spill] sm:$0xff] %v10664_v51  ;;  %v8014_v1 = vor.u32 %v8625_v32, %v8011_v19  ;;  %v8649_v28 = vld [vmem:[%s12415_s1 + $0x5ec] sm:$0xf] }
 0x2a3   : > { %v3787_v22 = vpop.f32.mrf.mxu0  ;;  %v6124_v32 = vld [vmem:[%s10380_s12 + $0xa8] sm:$0xff]  ;;  %p8815_p0 = pneg %p8814_p13 }
 0x2a4   : > { %v3696_v15 = vadd.f32 %v3695_v30, %v3607_v46  ;;  %v6292_v26 = vadd.f32 %v6196_v5, %v6036_v49  ;;  %4455 = vmatpush.bf16.msra.mxu0 %v8014_v1  ;;  %v8110_v49 = vor.u32 %v8649_v28, %v8107_v17 }
 0x2a5   : > { %v3876_v10 = vpop.f32.mrf.mxu1  ;;  %p8820_p5 = pnand %p8819_p3, %p8815_p0 }
 0x2a6   : > { %v3785_v39 = vadd.f32 %v3784_v0, %v3696_v15  ;;  %3648 = vmatmul.bf16.gmra.mxu2 %v10652_v31  ;;  %3826 = vmatmul.bf16.gmra.mxu0 %v10654_v44  ;;  %v6388_v58 = vmax.f32 %v6292_v26, 0.0  ;;  %v6202_v15 = vunpack.c.l.bf16 %v6124_v32 }
 0x2a7   : > { %3737 = vmatmul.bf16.gmra.mxu3 %v10662_v24  ;;  %4544 = vmatpush.bf16.msra.mxu1 %v8110_v49 }
 0x2a8   : > { %8262 = vmatmul.msk.bf16.gmra.mxu1 %vm2982_vm0, %v10664_v51  ;;  %v3874_v38 = vadd.f32 %v3873_v56, %v3785_v39  ;;  %6484 = vst [vmem:[%s10424_s29 + $0x120] sm:$0xff] %v6388_v58  ;;  %v8604_v51 = vld [vmem:[%s12415_s1 + $0x484] sm:$0xf] }
 0x2a9   : > { %v3609_v7 = vpop.f32.mrf.mxu2 }
 0x2aa   : > { %v6039_v53 = vadd.f32 %v10389_v59, %v3874_v38  ;;  %v3610_v0 = vadd.f32 %v3609_v7, %v10036_v3  ;;  %v3698_v20 = vpop.f32.mrf.mxu3 }
 0x2ab   : > { %v3789_v5 = vpop.f32.mrf.mxu0 }
 0x2ac   : > { %v3699_v56 = vadd.f32 %v3698_v20, %v3610_v0  ;;  %v6295_v30 = vadd.f32 %v6199_v34, %v6039_v53  ;;  %v6126_v34 = vld [vmem:[%s10380_s12 + $0xb4] sm:$0xff] }
 0x2ad   : > { %v3878_v46 = vpop.f32.mrf.mxu1  ;;  %v6205_v28 = vunpack.c.l.bf16 %v6126_v34 }
 0x2ae   : > { %v3788_v19 = vadd.f32 %v3787_v22, %v3699_v56  ;;  %v6391_v1 = vmax.f32 %v6295_v30, 0.0  ;;  %v7807_v30 = vld [vmem:[%s12415_s1 + $0x39c] sm:$0xf0] }
 0x2b0   : > { %v3877_v3 = vadd.f32 %v3876_v10, %v3788_v19  ;;  %6487 = vst [vmem:[%s10424_s29 + $0x138] sm:$0xff] %v6391_v1 }
 0x2b1   : > { %v3611_v26 = vpop.f32.mrf.mxu2 }
 0x2b2   : > { %v6042_v21 = vadd.f32 %v10389_v59, %v3877_v3  ;;  %v3612_v39 = vadd.f32 %v3611_v26, %v10064_v14  ;;  %v3700_v58 = vpop.f32.mrf.mxu3 }
 0x2b3   : > { %v3792_v38 = vpop.f32.mrf.mxu0 }
 0x2b4   : > { %v3701_v7 = vadd.f32 %v3700_v58, %v3612_v39  ;;  %v6298_v20 = vadd.f32 %v6202_v15, %v6042_v21  ;;  %v6128_v21 = vld [vmem:[%s10380_s12 + $0xc0] sm:$0xff] }
 0x2b5   : > { %v3881_v0 = vpop.f32.mrf.mxu1 }
 0x2b6   : > { %v3790_v53 = vadd.f32 %v3789_v5, %v3701_v7  ;;  %3929 = vmatmul.bf16.vlgmr.msrb.gmra.mxu2 %v9100_v4  ;;  %4107 = vmatmul.bf16.vlgmr.msrb.gmra.mxu0 %v9447_v52  ;;  %v6394_v22 = vmax.f32 %v6298_v20, 0.0  ;;  %v8574_v5 = vld [vmem:[%s12415_s1 + $0x394] sm:$0xf]  ;;  %v6208_v20 = vunpack.c.l.bf16 %v6128_v21  ;;  %v8095_v21 = vld [vmem:[%s12415_s1 + $0x5dc] sm:$0xf0] }
 0x2b7   : > { %4018 = vmatmul.bf16.vlgmr.msrb.gmra.mxu3 %v9113_v9  ;;  %v7810_v19 = vor.u32 %v8574_v5, %v7807_v30  ;;  %v6130_v5 = vld [vmem:[%s10380_s12 + $0xcc] sm:$0xff]  ;;  %v12913_v52 = vld [vmem:[#allocation18_spill] sm:$0xff] }
 0x2b8   : > { %4196 = vmatmul.bf16.vlgmr.msrb.gmra.mxu1 %v9451_v55  ;;  %v3879_v10 = vadd.f32 %v3878_v46, %v3790_v53  ;;  %6490 = vst [vmem:[%s10424_s29 + $0x150] sm:$0xff] %v6394_v22  ;;  %v8598_v46 = vld [vmem:[%s12415_s1 + $0x454] sm:$0xf] }
 0x2b9   : > { %v3614_v14 = vpop.f32.mrf.mxu2  ;;  %4278 = vmatpush.bf16.msra.mxu2 %v7810_v19  ;;  %v6211_v19 = vunpack.c.l.bf16 %v6130_v5 }
 0x2ba   : > { %v6045_v17 = vadd.f32 %v10389_v59, %v3879_v10  ;;  %v3615_v49 = vadd.f32 %v3614_v14, %v10081_v25  ;;  %v3703_v56 = vpop.f32.mrf.mxu3  ;;  %v7903_v25 = vld [vmem:[%s12415_s1 + $0x45c] sm:$0xf0]  ;;  %v8622_v14 = vld [vmem:[%s12415_s1 + $0x514] sm:$0xf] }
 0x2bb   : > { %v3794_v32 = vpop.f32.mrf.mxu0  ;;  %v7906_v15 = vor.u32 %v8598_v46, %v7903_v25 }
 0x2bc   : > { %v3704_v1 = vadd.f32 %v3703_v56, %v3615_v49  ;;  %v6301_v26 = vadd.f32 %v6205_v28, %v6045_v17 }
 0x2bd   : > { %v3883_v3 = vpop.f32.mrf.mxu1  ;;  %4367 = vmatpush.bf16.msra.mxu3 %v7906_v15 }
 0x2be   : > { %v3793_v39 = vadd.f32 %v3792_v38, %v3704_v1  ;;  %v6397_v58 = vmax.f32 %v6301_v26, 0.0  ;;  %v7999_v38 = vld [vmem:[%s12415_s1 + $0x51c] sm:$0xf0]  ;;  %v8646_v26 = vld [vmem:[%s12415_s1 + $0x5d4] sm:$0xf] }
 0x2bf   : > { %v8002_v17 = vor.u32 %v8622_v14, %v7999_v38 }
 0x2c0   : > { %v3882_v7 = vadd.f32 %v3881_v0, %v3793_v39  ;;  %6493 = vst [vmem:[%s10424_s29 + $0x168] sm:$0xff] %v6397_v58  ;;  %v8098_v58 = vor.u32 %v8646_v26, %v8095_v21 }
 0x2c1   : > { %v3616_v34 = vpop.f32.mrf.mxu2  ;;  %4456 = vmatpush.bf16.msra.mxu0 %v8002_v17 }
 0x2c2   : > { %v6048_v53 = vadd.f32 %v10389_v59, %v3882_v7  ;;  %v3617_v22 = vadd.f32 %v3616_v34, %v10103_v16  ;;  %v3705_v10 = vpop.f32.mrf.mxu3  ;;  %4545 = vmatpush.bf16.msra.mxu1 %v8098_v58  ;;  %v6132_v34 = vld [vmem:[%s10380_s12 + $0xd8] sm:$0xff] }
 0x2c3   : > { %v3797_v28 = vpop.f32.mrf.mxu0 }
 0x2c4   : > { %v3706_v0 = vadd.f32 %v3705_v10, %v3617_v22  ;;  %v6304_v56 = vadd.f32 %v6208_v20, %v6048_v53  ;;  %v6214_v10 = vunpack.c.l.bf16 %v6132_v34 }
 0x2c5   : > { %v3886_v49 = vpop.f32.mrf.mxu1 }
 0x2c6   : > { %v3795_v30 = vadd.f32 %v3794_v32, %v3706_v0  ;;  %3934 = vmatmul.bf16.gmra.mxu2 %v9165_v41  ;;  %4112 = vmatmul.bf16.gmra.mxu0 %v9491_v54  ;;  %v6400_v16 = vmax.f32 %v6304_v56, 0.0 }
 0x2c7   : > { %4023 = vmatmul.bf16.gmra.mxu3 %v9169_v43 }
 0x2c8   : > { %4201 = vmatmul.bf16.gmra.mxu1 %v9497_v13  ;;  %v3884_v46 = vadd.f32 %v3883_v3, %v3795_v30  ;;  %6496 = vst [vmem:[%s10424_s29 + $0x180] sm:$0xff] %v6400_v16 }
 0x2c9   : > { %v3619_v25 = vpop.f32.mrf.mxu2 }
 0x2ca   : > { %v6051_v1 = vadd.f32 %v10389_v59, %v3884_v46  ;;  %v3620_v15 = vadd.f32 %v3619_v25, %v10114_v60  ;;  %v3708_v32 = vpop.f32.mrf.mxu3  ;;  %v6134_v46 = vld [vmem:[%s10380_s12 + $0xe4] sm:$0xff] }
 0x2cb   : > { %v3799_v39 = vpop.f32.mrf.mxu0  ;;  %v12873_v25 = vld [vmem:[#allocation11_spill] sm:$0xff]  ;;  %v6217_v26 = vunpack.c.l.bf16 %v6134_v46 }
 0x2cc   : > { %v3709_v3 = vadd.f32 %v3708_v32, %v3620_v15  ;;  %v6307_v20 = vadd.f32 %v6211_v19, %v6051_v1  ;;  %v12875_v1 = vld [vmem:[#allocation13_spill] sm:$0xff]  ;;  %v12876_v15 = vld [vmem:[#allocation44_spill] sm:$0xff] }
 0x2cd   : > { %v3888_v7 = vpop.f32.mrf.mxu1 }
 0x2ce   : > { %v3798_v53 = vadd.f32 %v3797_v28, %v3709_v3  ;;  %v6403_v22 = vmax.f32 %v6307_v20, 0.0  ;;  %v12874_v28 = vld [vmem:[#allocation42_spill] sm:$0xff]  ;;  %v7795_v20 = vld [vmem:[%s12415_s1 + $0x384] sm:$0xf0] }
 0x2d0   : > { %v3887_v60 = vadd.f32 %v3886_v49, %v3798_v53  ;;  %6499 = vst [vmem:[%s10424_s29 + $0x198] sm:$0xff] %v6403_v22 }
 0x2d1   : > { %v3621_v14 = vpop.f32.mrf.mxu2 }
 0x2d2   : > { %v6054_v38 = vadd.f32 %v10389_v59, %v3887_v60  ;;  %v3622_v17 = vadd.f32 %v3621_v14, %v10142_v29  ;;  %v3710_v0 = vpop.f32.mrf.mxu3 }
 0x2d3   : > { %v3802_v56 = vpop.f32.mrf.mxu0 }
 0x2d4   : > { %v3711_v5 = vadd.f32 %v3710_v0, %v3622_v17  ;;  %v6310_v16 = vadd.f32 %v6214_v10, %v6054_v38  ;;  %v6136_v38 = vld [vmem:[%s10380_s12 + $0xf0] sm:$0xff] }
 0x2d5   : > { %v3891_v30 = vpop.f32.mrf.mxu1 }
 0x2d6   : > { %v3800_v19 = vadd.f32 %v3799_v39, %v3711_v5  ;;  %3939 = vmatmul.bf16.gmra.mxu2 %v12873_v25  ;;  %4117 = vmatmul.bf16.gmra.mxu0 %v12874_v28  ;;  %v6406_v49 = vmax.f32 %v6310_v16, 0.0  ;;  %v8571_v39 = vld [vmem:[%s12415_s1 + $0x37c] sm:$0xf]  ;;  %v6220_v16 = vunpack.c.l.bf16 %v6136_v38 }
 0x2d7   : > { %4028 = vmatmul.bf16.gmra.mxu3 %v12875_v1  ;;  %v7798_v53 = vor.u32 %v8571_v39, %v7795_v20  ;;  %v6138_v39 = vld [vmem:[%s10380_s12 + $0xfc] sm:$0xff] }
 0x2d8   : > { %4206 = vmatmul.bf16.gmra.mxu1 %v12876_v15  ;;  %v3889_v32 = vadd.f32 %v3888_v7, %v3800_v19  ;;  %6502 = vst [vmem:[%s10424_s29 + $0x1b0] sm:$0xff] %v6406_v49  ;;  %v8595_v7 = vld [vmem:[%s12415_s1 + $0x43c] sm:$0xf] }
 0x2d9   : > { %v3624_v29 = vpop.f32.mrf.mxu2  ;;  %4279 = vmatpush.bf16.msra.mxu2 %v7798_v53 }
 0x2da   : > { %v6057_v21 = vadd.f32 %v10389_v59, %v3889_v32  ;;  %v3625_v58 = vadd.f32 %v3624_v29, %v10159_v27  ;;  %v3713_v3 = vpop.f32.mrf.mxu3  ;;  %v7891_v27 = vld [vmem:[%s12415_s1 + $0x444] sm:$0xf0]  ;;  %v8619_v29 = vld [vmem:[%s12415_s1 + $0x4fc] sm:$0xf] }
 0x2db   : > { %v3804_v34 = vpop.f32.mrf.mxu0  ;;  %v7894_v10 = vor.u32 %v8595_v7, %v7891_v27  ;;  %v12877_v7 = vld [vmem:[#allocation15_spill] sm:$0xff]  ;;  %v12879_v27 = vld [vmem:[#allocation17_spill] sm:$0xff] }
 0x2dc   : > { %v3714_v22 = vadd.f32 %v3713_v3, %v3625_v58  ;;  %v6313_v14 = vadd.f32 %v6217_v26, %v6057_v21 }
 0x2dd   : > { %v3893_v60 = vpop.f32.mrf.mxu1  ;;  %4368 = vmatpush.bf16.msra.mxu3 %v7894_v10 }
 0x2de   : > { %v3803_v17 = vadd.f32 %v3802_v56, %v3714_v22  ;;  %v6409_v0 = vmax.f32 %v6313_v14, 0.0  ;;  %v7987_v56 = vld [vmem:[%s12415_s1 + $0x504] sm:$0xf0]  ;;  %v12880_v22 = vld [vmem:[#allocation48_spill] sm:$0xff]  ;;  %v6223_v14 = vunpack.c.l.bf16 %v6138_v39 }
 0x2df   : > { %v7990_v21 = vor.u32 %v8619_v29, %v7987_v56  ;;  %v6140_v29 = vld [vmem:[%s10380_s12 + $0x108] sm:$0xff] }
 0x2e0   : > { %v3892_v5 = vadd.f32 %v3891_v30, %v3803_v17  ;;  %6505 = vst [vmem:[%s10424_s29 + $0x1c8] sm:$0xff] %v6409_v0 }
 0x2e1   : > { %v3626_v46 = vpop.f32.mrf.mxu2  ;;  %4457 = vmatpush.bf16.msra.mxu0 %v7990_v21 }
 0x2e2   : > { %v6060_v19 = vadd.f32 %v10389_v59, %v3892_v5  ;;  %v3627_v49 = vadd.f32 %v3626_v46, %v10181_v6  ;;  %v3715_v32 = vpop.f32.mrf.mxu3  ;;  %v12878_v6 = vld [vmem:[#allocation46_spill] sm:$0xff]  ;;  %v8643_v5 = vld [vmem:[%s12415_s1 + $0x5bc] sm:$0xf] }
 0x2e3   : > { %v3807_v26 = vpop.f32.mrf.mxu0 }
 0x2e4   : > { %v3716_v30 = vadd.f32 %v3715_v32, %v3627_v49  ;;  %v6316_v3 = vadd.f32 %v6220_v16, %v6060_v19  ;;  %v8083_v16 = vld [vmem:[%s12415_s1 + $0x5c4] sm:$0xf0] }
 0x2e5   : > { %v3896_v58 = vpop.f32.mrf.mxu1  ;;  %v8086_v19 = vor.u32 %v8643_v5, %v8083_v16  ;;  %v12881_v5 = vld [vmem:[#allocation19_spill] sm:$0xff]  ;;  %v12883_v16 = vld [vmem:[#allocation21_spill] sm:$0xff] }
 0x2e6   : > { %v3805_v20 = vadd.f32 %v3804_v34, %v3716_v30  ;;  %3944 = vmatmul.bf16.gmra.mxu2 %v12877_v7  ;;  %4122 = vmatmul.bf16.gmra.mxu0 %v12878_v6  ;;  %v6412_v53 = vmax.f32 %v6316_v3, 0.0  ;;  %v6226_v30 = vunpack.c.l.bf16 %v6140_v29 }
 0x2e7   : > { %4033 = vmatmul.bf16.gmra.mxu3 %v12879_v27  ;;  %4546 = vmatpush.bf16.msra.mxu1 %v8086_v19  ;;  %v12884_v19 = vld [vmem:[#allocation52_spill] sm:$0xff]  ;;  %v12968_v27 = vld [vmem:[#allocation67_spill] sm:$0xff] }
 0x2e8   : > { %4211 = vmatmul.bf16.gmra.mxu1 %v12880_v22  ;;  %v3894_v10 = vadd.f32 %v3893_v60, %v3805_v20  ;;  %6508 = vst [vmem:[%s10424_s29 + $0x1e0] sm:$0xff] %v6412_v53  ;;  %v8607_v22 = vld [vmem:[%s12415_s1 + $0x49c] sm:$0xf] }
 0x2e9   : > { %v3629_v38 = vpop.f32.mrf.mxu2 }
 0x2ea   : > { %v6063_v17 = vadd.f32 %v10389_v59, %v3894_v10  ;;  %v3630_v0 = vadd.f32 %v3629_v38, %v10192_v48  ;;  %v3718_v34 = vpop.f32.mrf.mxu3 }
 0x2eb   : > { %v3809_v46 = vpop.f32.mrf.mxu0 }
 0x2ec   : > { %v3719_v60 = vadd.f32 %v3718_v34, %v3630_v0  ;;  %v6319_v32 = vadd.f32 %v6223_v14, %v6063_v17  ;;  %v6142_v14 = vld [vmem:[%s10380_s12 + $0x114] sm:$0xff] }
 0x2ed   : > { %v3898_v49 = vpop.f32.mrf.mxu1 }
 0x2ee   : > { %v3808_v56 = vadd.f32 %v3807_v26, %v3719_v60  ;;  %v6415_v21 = vmax.f32 %v6319_v32, 0.0  ;;  %v12882_v26 = vld [vmem:[#allocation50_spill] sm:$0xff]  ;;  %v6229_v32 = vunpack.c.l.bf16 %v6142_v14 }
 0x2f0   : > { %v3897_v48 = vadd.f32 %v3896_v58, %v3808_v56  ;;  %6511 = vst [vmem:[%s10424_s29 + $0x1f8] sm:$0xff] %v6415_v21 }
 0x2f1   : > { %v3631_v3 = vpop.f32.mrf.mxu2 }
 0x2f2   : > { %v6066_v39 = vadd.f32 %v10389_v59, %v3897_v48  ;;  %v3632_v20 = vadd.f32 %v3631_v3, %v10220_v47  ;;  %v3720_v53 = vpop.f32.mrf.mxu3  ;;  %v7783_v48 = vld [vmem:[%s12415_s1 + $0x36c] sm:$0xf0] }
 0x2f3   : > { %v3812_v10 = vpop.f32.mrf.mxu0 }
 0x2f4   : > { %v3721_v38 = vadd.f32 %v3720_v53, %v3632_v20  ;;  %v6322_v34 = vadd.f32 %v6226_v30, %v6066_v39 }
 0x2f5   : > { %v3901_v0 = vpop.f32.mrf.mxu1 }
 0x2f6   : > { %v3810_v17 = vadd.f32 %v3809_v46, %v3721_v38  ;;  %3949 = vmatmul.bf16.gmra.mxu2 %v12881_v5  ;;  %4127 = vmatmul.bf16.gmra.mxu0 %v12882_v26  ;;  %v6418_v58 = vmax.f32 %v6322_v34, 0.0  ;;  %v8568_v46 = vld [vmem:[%s12415_s1 + $0x364] sm:$0xf] }
 0x2f7   : > { %4038 = vmatmul.bf16.gmra.mxu3 %v12883_v16  ;;  %v7786_v3 = vor.u32 %v8568_v46, %v7783_v48  ;;  %v6144_v34 = vld [vmem:[%s10380_s12 + $0x120] sm:$0xff] }
 0x2f8   : > { %4216 = vmatmul.bf16.gmra.mxu1 %v12884_v19  ;;  %v3899_v60 = vadd.f32 %v3898_v49, %v3810_v17  ;;  %6514 = vst [vmem:[%s10424_s29 + $0x210] sm:$0xff] %v6418_v58  ;;  %v8592_v49 = vld [vmem:[%s12415_s1 + $0x424] sm:$0xf] }
 0x2f9   : > { %v3634_v47 = vpop.f32.mrf.mxu2  ;;  %4280 = vmatpush.bf16.msra.mxu2 %v7786_v3  ;;  %v6146_v3 = vld [vmem:[%s10380_s12 + $0x12c] sm:$0xff]  ;;  %v12905_v26 = vld [vmem:[#allocation10_spill] sm:$0xff] }
 0x2fa   : > { %v6069_v29 = vadd.f32 %v10389_v59, %v3899_v60  ;;  %v3635_v56 = vadd.f32 %v3634_v47, %v10237_v37  ;;  %v3723_v21 = vpop.f32.mrf.mxu3  ;;  %v7879_v37 = vld [vmem:[%s12415_s1 + $0x42c] sm:$0xf0]  ;;  %v6232_v60 = vunpack.c.l.bf16 %v6144_v34 }
 0x2fb   : > { %v3814_v30 = vpop.f32.mrf.mxu0  ;;  %v7882_v53 = vor.u32 %v8592_v49, %v7879_v37  ;;  %v12888_v34 = vld [vmem:[#allocation56_spill] sm:$0xff] }
 0x2fc   : > { %v3724_v39 = vadd.f32 %v3723_v21, %v3635_v56  ;;  %v6325_v38 = vadd.f32 %v6229_v32, %v6069_v29  ;;  %v8616_v56 = vld [vmem:[%s12415_s1 + $0x4e4] sm:$0xf] }
 0x2fd   : > { %v3903_v20 = vpop.f32.mrf.mxu1  ;;  %4369 = vmatpush.bf16.msra.mxu3 %v7882_v53 }
 0x2fe   : > { %v3813_v14 = vadd.f32 %v3812_v10, %v3724_v39  ;;  %v6421_v17 = vmax.f32 %v6325_v38, 0.0  ;;  %v7975_v10 = vld [vmem:[%s12415_s1 + $0x4ec] sm:$0xf0]  ;;  %v12885_v39 = vld [vmem:[#allocation23_spill] sm:$0xff]  ;;  %v12887_v38 = vld [vmem:[#allocation25_spill] sm:$0xff] }
 0x2ff   : > { %v7978_v29 = vor.u32 %v8616_v56, %v7975_v10 }
 0x300   : > { %v3902_v58 = vadd.f32 %v3901_v0, %v3813_v14  ;;  %6517 = vst [vmem:[%s10424_s29 + $0x228] sm:$0xff] %v6421_v17  ;;  %v6235_v17 = vunpack.c.l.bf16 %v6146_v3 }
 0x301   : > { %v3636_v47 = vpop.f32.mrf.mxu2  ;;  %4458 = vmatpush.bf16.msra.mxu0 %v7978_v29 }
 0x302   : > { %v6072_v46 = vadd.f32 %v10389_v59, %v3902_v58  ;;  %v3637_v48 = vadd.f32 %v3636_v47, %v10259_v45  ;;  %v3725_v19 = vpop.f32.mrf.mxu3  ;;  %v12886_v45 = vld [vmem:[#allocation54_spill] sm:$0xff] }
 0x303   : > { %v3817_v32 = vpop.f32.mrf.mxu0  ;;  %v8640_v47 = vld [vmem:[%s12415_s1 + $0x5a4] sm:$0xf] }
 0x304   : > { %v3726_v0 = vadd.f32 %v3725_v19, %v3637_v48  ;;  %v6328_v49 = vadd.f32 %v6232_v60, %v6072_v46  ;;  %v8071_v46 = vld [vmem:[%s12415_s1 + $0x5ac] sm:$0xf0] }
 0x305   : > { %v3906_v21 = vpop.f32.mrf.mxu1  ;;  %v8074_v56 = vor.u32 %v8640_v47, %v8071_v46  ;;  %v12889_v46 = vld [vmem:[#allocation27_spill] sm:$0xff] }
 0x306   : > { %v3815_v37 = vadd.f32 %v3814_v30, %v3726_v0  ;;  %3954 = vmatmul.bf16.gmra.mxu2 %v12885_v39  ;;  %4132 = vmatmul.bf16.gmra.mxu0 %v12886_v45  ;;  %v6424_v53 = vmax.f32 %v6328_v49, 0.0  ;;  %v6148_v0 = vld [vmem:[%s10380_s12 + $0x138] sm:$0xff] }
 0x307   : > { %4043 = vmatmul.bf16.gmra.mxu3 %v12887_v38  ;;  %4547 = vmatpush.bf16.msra.mxu1 %v8074_v56  ;;  %v12891_v56 = vld [vmem:[#allocation29_spill] sm:$0xff] }
 0x308   : > { %4221 = vmatmul.bf16.gmra.mxu1 %v12888_v34  ;;  %v3904_v14 = vadd.f32 %v3903_v20, %v3815_v37  ;;  %6520 = vst [vmem:[%s10424_s29 + $0x240] sm:$0xff] %v6424_v53  ;;  %v6238_v37 = vunpack.c.l.bf16 %v6148_v0 }
 0x309   : > { %v3639_v58 = vpop.f32.mrf.mxu2 }
 0x30a   : > { %v6075_v19 = vadd.f32 %v10389_v59, %v3904_v14  ;;  %v3640_v60 = vadd.f32 %v3639_v58, %v10270_v11  ;;  %v3728_v30 = vpop.f32.mrf.mxu3 }
 0x30b   : > { %v3819_v48 = vpop.f32.mrf.mxu0 }
 0x30c   : > { %v3729_v20 = vadd.f32 %v3728_v30, %v3640_v60  ;;  %v6331_v29 = vadd.f32 %v6235_v17, %v6075_v19  ;;  %v6150_v17 = vld [vmem:[%s10380_s12 + $0x144] sm:$0xff] }
 0x30d   : > { %v3908_v10 = vpop.f32.mrf.mxu1  ;;  %v6241_v0 = vunpack.c.l.bf16 %v6150_v17  ;;  %v8613_v17 = vld [vmem:[%s12415_s1 + $0x4cc] sm:$0xf] }
 0x30e   : > { %v3818_v49 = vadd.f32 %v3817_v32, %v3729_v20  ;;  %v6427_v3 = vmax.f32 %v6331_v29, 0.0  ;;  %v12890_v32 = vld [vmem:[#allocation58_spill] sm:$0xff]  ;;  %v12892_v20 = vld [vmem:[#allocation60_spill] sm:$0xff] }
 0x310   : > { %v3907_v11 = vadd.f32 %v3906_v21, %v3818_v49  ;;  %6523 = vst [vmem:[%s10424_s29 + $0x258] sm:$0xff] %v6427_v3 }
 0x311   : > { %v3641_v53 = vpop.f32.mrf.mxu2 }
 0x312   : > { %v6078_v14 = vadd.f32 %v10389_v59, %v3907_v11  ;;  %v3642_v58 = vadd.f32 %v3641_v53, %v10298_v40  ;;  %v3730_v34 = vpop.f32.mrf.mxu3  ;;  %v7771_v11 = vld [vmem:[%s12415_s1 + $0x354] sm:$0xf0] }
 0x313   : > { %v3822_v45 = vpop.f32.mrf.mxu0 }
 0x314   : > { %v3731_v47 = vadd.f32 %v3730_v34, %v3642_v58  ;;  %v6334_v30 = vadd.f32 %v6238_v37, %v6078_v14 }
 0x315   : > { %v3911_v60 = vpop.f32.mrf.mxu1 }
 0x316   : > { %v3820_v19 = vadd.f32 %v3819_v48, %v3731_v47  ;;  %3959 = vmatmul.bf16.gmra.mxu2 %v12889_v46  ;;  %4137 = vmatmul.bf16.gmra.mxu0 %v12890_v32  ;;  %v6430_v21 = vmax.f32 %v6334_v30, 0.0  ;;  %v8565_v48 = vld [vmem:[%s12415_s1 + $0x34c] sm:$0xf]  ;;  %v12949_v46 = vld [vmem:[#allocation116_spill] sm:$0xff] }
 0x317   : > { %4048 = vmatmul.bf16.gmra.mxu3 %v12891_v56  ;;  %v7774_v53 = vor.u32 %v8565_v48, %v7771_v11 }
 0x318   : > { %4226 = vmatmul.bf16.gmra.mxu1 %v12892_v20  ;;  %v3909_v29 = vadd.f32 %v3908_v10, %v3820_v19  ;;  %6526 = vst [vmem:[%s10424_s29 + $0x270] sm:$0xff] %v6430_v21  ;;  %v8589_v10 = vld [vmem:[%s12415_s1 + $0x40c] sm:$0xf]  ;;  %v7963_v19 = vld [vmem:[%s12415_s1 + $0x4d4] sm:$0xf0]  ;;  %v6152_v21 = vld [vmem:[%s10380_s12 + $0x150] sm:$0xff] }
 0x319   : > { %v3644_v40 = vpop.f32.mrf.mxu2  ;;  %4281 = vmatpush.bf16.msra.mxu2 %v7774_v53 }
 0x31a   : > { %v6081_v49 = vadd.f32 %v10389_v59, %v3909_v29  ;;  %v3645_v34 = vadd.f32 %v3644_v40, %v10309_v33  ;;  %v3733_v3 = vpop.f32.mrf.mxu3  ;;  %v7867_v33 = vld [vmem:[%s12415_s1 + $0x414] sm:$0xf0]  ;;  %v7966_v40 = vor.u32 %v8613_v17, %v7963_v19  ;;  %v12894_v17 = vld [vmem:[#allocation62_spill] sm:$0xff] }
 0x31b   : > { %v3824_v37 = vpop.f32.mrf.mxu0  ;;  %v7870_v47 = vor.u32 %v8589_v10, %v7867_v33 }
 0x31c   : > { %v3734_v14 = vadd.f32 %v3733_v3, %v3645_v34  ;;  %v6337_v30 = vadd.f32 %v6241_v0, %v6081_v49  ;;  %4459 = vmatpush.bf16.msra.mxu0 %v7966_v40  ;;  %v6244_v34 = vunpack.c.l.bf16 %v6152_v21  ;;  %v12895_v21 = vld [vmem:[#allocation33_spill] sm:$0xff] }
 0x31d   : > { %v3913_v58 = vpop.f32.mrf.mxu1  ;;  %4370 = vmatpush.bf16.msra.mxu3 %v7870_v47 }
 0x31e   : > { %v3823_v29 = vadd.f32 %v3822_v45, %v3734_v14  ;;  %v6433_v48 = vmax.f32 %v6337_v30, 0.0  ;;  %v8637_v45 = vld [vmem:[%s12415_s1 + $0x58c] sm:$0xf]  ;;  %v6154_v14 = vld [vmem:[%s10380_s12 + $0x15c] sm:$0xff] }
 0x31f   : > { %v12893_v30 = vld [vmem:[#allocation31_spill] sm:$0xff] }
 0x320   : > { %v3912_v11 = vadd.f32 %v3911_v60, %v3823_v29  ;;  %6529 = vst [vmem:[%s10424_s29 + $0x288] sm:$0xff] %v6433_v48  ;;  %v8059_v60 = vld [vmem:[%s12415_s1 + $0x594] sm:$0xf0]  ;;  %v12896_v29 = vld [vmem:[#allocation64_spill] sm:$0xff]  ;;  %v6247_v48 = vunpack.c.l.bf16 %v6154_v14 }
 0x321   : > { %v3646_v0 = vpop.f32.mrf.mxu2 }
 0x322   : > { %v6084_v49 = vadd.f32 %v10389_v59, %v3912_v11  ;;  %v3647_v3 = vadd.f32 %v3646_v0, %v10331_v62  ;;  %v3735_v10 = vpop.f32.mrf.mxu3  ;;  %v8062_v62 = vor.u32 %v8637_v45, %v8059_v60 }
 0x323   : > { %v3827_v53 = vpop.f32.mrf.mxu0 }
 0x324   : > { %v3736_v33 = vadd.f32 %v3735_v10, %v3647_v3  ;;  %v6340_v32 = vadd.f32 %v6244_v34, %v6084_v49  ;;  %4548 = vmatpush.bf16.msra.mxu1 %v8062_v62 }
 0x325   : > { %v3916_v20 = vpop.f32.mrf.mxu1 }
 0x326   : > { %v3825_v47 = vadd.f32 %v3824_v37, %v3736_v33  ;;  %3964 = vmatmul.bf16.gmra.mxu2 %v12893_v30  ;;  %4142 = vmatmul.bf16.gmra.mxu0 %v12894_v17  ;;  %v6436_v19 = vmax.f32 %v6340_v32, 0.0  ;;  %v6156_v33 = vld [vmem:[%s10380_s12 + $0x168] sm:$0xff] }
 0x327   : > { %4053 = vmatmul.bf16.gmra.mxu3 %v12895_v21 }
 0x328   : > { %4231 = vmatmul.bf16.gmra.mxu1 %v12896_v29  ;;  %v3914_v40 = vadd.f32 %v3913_v58, %v3825_v47  ;;  %6532 = vst [vmem:[%s10424_s29 + $0x2a0] sm:$0xff] %v6436_v19  ;;  %v6250_v58 = vunpack.c.l.bf16 %v6156_v33 }
 0x329   : > { %v3649_v11 = vpop.f32.mrf.mxu2 }
 0x32a   : > { %v6087_v34 = vadd.f32 %v10389_v59, %v3914_v40  ;;  %v3650_v37 = vadd.f32 %v3649_v11, %v10348_v8  ;;  %v3738_v0 = vpop.f32.mrf.mxu3 }
 0x32b   : > { %v3829_v49 = vpop.f32.mrf.mxu0 }
 0x32c   : > { %v3739_v3 = vadd.f32 %v3738_v0, %v3650_v37  ;;  %v6343_v32 = vadd.f32 %v6247_v48, %v6087_v34  ;;  %v6158_v0 = vld [vmem:[%s10380_s12 + $0x174] sm:$0xff]  ;;  %v12897_v48 = vld [vmem:[#allocation6_spill] sm:$0xff]  ;;  %v12899_v34 = vld [vmem:[#allocation7_spill] sm:$0xff] }
 0x32d   : > { %v3918_v10 = vpop.f32.mrf.mxu1 }
 0x32e   : > { %v3828_v45 = vadd.f32 %v3827_v53, %v3739_v3  ;;  %v6439_v60 = vmax.f32 %v6343_v32, 0.0  ;;  %v12898_v53 = vld [vmem:[#allocation66_spill] sm:$0xff]  ;;  %v12900_v3 = vld [vmem:[#allocation68_spill] sm:$0xff] }
 0x330   : > { %v3917_v29 = vadd.f32 %v3916_v20, %v3828_v45  ;;  %6535 = vst [vmem:[%s10424_s29 + $0x2b8] sm:$0xff] %v6439_v60  ;;  %v7855_v45 = vld [vmem:[%s12415_s1 + $0x3fc] sm:$0xf0]  ;;  %v6253_v60 = vunpack.c.l.bf16 %v6158_v0 }
 0x331   : > { %v3651_v47 = vpop.f32.mrf.mxu2  ;;  %v7951_v0 = vld [vmem:[%s12415_s1 + $0x4bc] sm:$0xf0] }
 0x332   : > { %v6090_v14 = vadd.f32 %v10389_v59, %v3917_v29  ;;  %v3652_v62 = vadd.f32 %v3651_v47, %v10365_v63  ;;  %v3740_v19 = vpop.f32.mrf.mxu3  ;;  %v8562_v63 = vld [vmem:[%s12415_s1 + $0x334] sm:$0xf]  ;;  %v7759_v29 = vld [vmem:[%s12415_s1 + $0x33c] sm:$0xf0] }
 0x333   : > { %v4108_v40 = vpop.f32.mrf.mxu0  ;;  %v7762_v33 = vor.u32 %v8562_v63, %v7759_v29 }
 0x334   : > { %v3741_v8 = vadd.f32 %v3740_v19, %v3652_v62  ;;  %v6346_v37 = vadd.f32 %v6250_v58, %v6090_v14 }
 0x335   : > { %v4197_v11 = vpop.f32.mrf.mxu1  ;;  %4282 = vmatpush.bf16.msra.mxu2 %v7762_v33 }
 0x336   : > { %v3830_v17 = vadd.f32 %v3829_v49, %v3741_v8  ;;  %3969 = vmatmul.bf16.gmra.mxu2 %v12897_v48  ;;  %4147 = vmatmul.bf16.gmra.mxu0 %v12898_v53  ;;  %v6442_v20 = vmax.f32 %v6346_v37, 0.0  ;;  %v8586_v49 = vld [vmem:[%s12415_s1 + $0x3f4] sm:$0xf] }
 0x337   : > { %4058 = vmatmul.bf16.gmra.mxu3 %v12899_v34  ;;  %v7858_v47 = vor.u32 %v8586_v49, %v7855_v45 }
 0x338   : > { %4236 = vmatmul.bf16.gmra.mxu1 %v12900_v3  ;;  %v3919_v32 = vadd.f32 %v3918_v10, %v3830_v17  ;;  %6538 = vst [vmem:[%s10424_s29 + $0x2d0] sm:$0xff] %v6442_v20  ;;  %v8610_v10 = vld [vmem:[%s12415_s1 + $0x4b4] sm:$0xf] }
 0x339   : > { %v3930_v58 = vpop.f32.mrf.mxu2  ;;  %4371 = vmatpush.bf16.msra.mxu3 %v7858_v47  ;;  %v7954_v20 = vor.u32 %v8610_v10, %v7951_v0  ;;  %v12901_v47 = vld [vmem:[#allocation8_spill] sm:$0xff] }
 0x33a   : > { %v6093_v14 = vadd.f32 %v10389_v59, %v3919_v32  ;;  %v4019_v62 = vpop.f32.mrf.mxu3 }
 0x33b   : > { %v4020_v19 = vadd.f32 %v4019_v62, %v3930_v58  ;;  %v4110_v8 = vpop.f32.mrf.mxu0  ;;  %4460 = vmatpush.bf16.msra.mxu0 %v7954_v20  ;;  %v8047_v58 = vld [vmem:[%s12415_s1 + $0x57c] sm:$0xf0]  ;;  %v12904_v62 = vld [vmem:[#allocation72_spill] sm:$0xff] }
 0x33c   : > { %v6349_v3 = vadd.f32 %v6253_v60, %v6093_v14  ;;  %v8634_v60 = vld [vmem:[%s12415_s1 + $0x574] sm:$0xf]  ;;  %v12903_v14 = vld [vmem:[#allocation9_spill] sm:$0xff] }
 0x33d   : > { %v4199_v37 = vpop.f32.mrf.mxu1  ;;  %v4109_v17 = vadd.f32 %v4108_v40, %v4020_v19 }
 0x33e   : > { %v6445_v63 = vmax.f32 %v6349_v3, 0.0  ;;  %v8050_v3 = vor.u32 %v8634_v60, %v8047_v58 }
 0x33f   : > { %v10902_v29 = vadd.f32 %v4197_v11, %v4109_v17  ;;  %v12902_v11 = vld [vmem:[#allocation70_spill] sm:$0xff] }
 0x340   : > { %6541 = vst [vmem:[%s10424_s29 + $0x2e8] sm:$0xff] %v6445_v63  ;;  %4549 = vmatpush.bf16.msra.mxu1 %v8050_v3 }
 0x341   : > { %v3932_v59 = vpop.f32.mrf.mxu2 }
 0x342   : > { %v4021_v49 = vpop.f32.mrf.mxu3 }
 0x343   : > { %v4022_v32 = vadd.f32 %v4021_v49, %v3932_v59  ;;  %v4113_v33 = vpop.f32.mrf.mxu0 }
 0x345   : > { %v4202_v45 = vpop.f32.mrf.mxu1  ;;  %v4111_v40 = vadd.f32 %v4110_v8, %v4022_v32 }
 0x346   : > { %3974 = vmatmul.bf16.gmra.mxu2 %v12901_v47  ;;  %4152 = vmatmul.bf16.gmra.mxu0 %v12902_v11 }
 0x347   : > { %4063 = vmatmul.bf16.gmra.mxu3 %v12903_v14  ;;  %v10915_v19 = vadd.f32 %v4199_v37, %v4111_v40  ;;  %v12907_v37 = vld [vmem:[#allocation12_spill] sm:$0xff] }
 0x348   : > { %4241 = vmatmul.bf16.gmra.mxu1 %v12904_v62  ;;  %v12906_v62 = vld [vmem:[#allocation74_spill] sm:$0xff]  ;;  %v12908_v40 = vld [vmem:[#allocation76_spill] sm:$0xff] }
 0x349   : > { %v3935_v8 = vpop.f32.mrf.mxu2 }
 0x34a   : > { %v4024_v17 = vpop.f32.mrf.mxu3 }
 0x34b   : > { %v4025_v10 = vadd.f32 %v4024_v17, %v3935_v8  ;;  %v4115_v0 = vpop.f32.mrf.mxu0  ;;  %v7843_v17 = vld [vmem:[%s12415_s1 + $0x3e4] sm:$0xf0] }
 0x34d   : > { %v4204_v20 = vpop.f32.mrf.mxu1  ;;  %v4114_v63 = vadd.f32 %v4113_v33, %v4025_v10  ;;  %v8559_v33 = vld [vmem:[%s12415_s1 + $0x31c] sm:$0xf] }
 0x34f   : > { %v10917_v59 = vadd.f32 %v4202_v45, %v4114_v63  ;;  %v7747_v45 = vld [vmem:[%s12415_s1 + $0x324] sm:$0xf0] }
 0x350   : > { %v7750_v8 = vor.u32 %v8559_v33, %v7747_v45 }
 0x351   : > { %v3937_v49 = vpop.f32.mrf.mxu2 }
 0x352   : > { %v4026_v32 = vpop.f32.mrf.mxu3  ;;  %4283 = vmatpush.bf16.msra.mxu2 %v7750_v8 }
 0x353   : > { %v4027_v53 = vadd.f32 %v4026_v32, %v3937_v49  ;;  %v4118_v11 = vpop.f32.mrf.mxu0 }
 0x355   : > { %v4207_v60 = vpop.f32.mrf.mxu1  ;;  %v4116_v58 = vadd.f32 %v4115_v0, %v4027_v53  ;;  %v8583_v53 = vld [vmem:[%s12415_s1 + $0x3dc] sm:$0xf] }
 0x356   : > { %3979 = vmatmul.bf16.gmra.mxu2 %v12905_v26  ;;  %4157 = vmatmul.bf16.gmra.mxu0 %v12906_v62  ;;  %v7846_v0 = vor.u32 %v8583_v53, %v7843_v17 }
 0x357   : > { %4068 = vmatmul.bf16.gmra.mxu3 %v12907_v37  ;;  %v10932_v3 = vadd.f32 %v4204_v20, %v4116_v58  ;;  %v7939_v20 = vld [vmem:[%s12415_s1 + $0x4a4] sm:$0xf0] }
 0x358   : > { %4246 = vmatmul.bf16.gmra.mxu1 %v12908_v40  ;;  %4372 = vmatpush.bf16.msra.mxu3 %v7846_v0  ;;  %v7942_v58 = vor.u32 %v8607_v22, %v7939_v20  ;;  %v12910_v22 = vld [vmem:[#allocation78_spill] sm:$0xff]  ;;  %v12912_v20 = vld [vmem:[#allocation80_spill] sm:$0xff] }
 0x359   : > { %v3940_v10 = vpop.f32.mrf.mxu2 }
 0x35a   : > { %v4029_v63 = vpop.f32.mrf.mxu3  ;;  %4461 = vmatpush.bf16.msra.mxu0 %v7942_v58 }
 0x35b   : > { %v4030_v49 = vadd.f32 %v4029_v63, %v3940_v10  ;;  %v4120_v32 = vpop.f32.mrf.mxu0  ;;  %v8035_v63 = vld [vmem:[%s12415_s1 + $0x564] sm:$0xf0] }
 0x35d   : > { %v4209_v40 = vpop.f32.mrf.mxu1  ;;  %v4119_v62 = vadd.f32 %v4118_v11, %v4030_v49  ;;  %v8631_v11 = vld [vmem:[%s12415_s1 + $0x55c] sm:$0xf]  ;;  %v12909_v49 = vld [vmem:[#allocation14_spill] sm:$0xff] }
 0x35f   : > { %v10943_v33 = vadd.f32 %v4207_v60, %v4119_v62  ;;  %v8038_v62 = vor.u32 %v8631_v11, %v8035_v63  ;;  %v12911_v60 = vld [vmem:[#allocation16_spill] sm:$0xff] }
 0x361   : > { %v3942_v45 = vpop.f32.mrf.mxu2  ;;  %4550 = vmatpush.bf16.msra.mxu1 %v8038_v62 }
 0x362   : > { %v4031_v53 = vpop.f32.mrf.mxu3 }
 0x363   : > { %v4032_v8 = vadd.f32 %v4031_v53, %v3942_v45  ;;  %v4123_v17 = vpop.f32.mrf.mxu0 }
 0x365   : > { %v4212_v10 = vpop.f32.mrf.mxu1  ;;  %v4121_v0 = vadd.f32 %v4120_v32, %v4032_v8 }
 0x366   : > { %3984 = vmatmul.bf16.gmra.mxu2 %v12909_v49  ;;  %4162 = vmatmul.bf16.gmra.mxu0 %v12910_v22 }
 0x367   : > { %4073 = vmatmul.bf16.gmra.mxu3 %v12911_v60  ;;  %v10955_v58 = vadd.f32 %v4209_v40, %v4121_v0  ;;  %v12915_v40 = vld [vmem:[#allocation20_spill] sm:$0xff] }
 0x368   : > { %4251 = vmatmul.bf16.gmra.mxu1 %v12912_v20  ;;  %v12914_v20 = vld [vmem:[#allocation82_spill] sm:$0xff]  ;;  %v12916_v0 = vld [vmem:[#allocation84_spill] sm:$0xff] }
 0x369   : > { %v3945_v32 = vpop.f32.mrf.mxu2 }
 0x36a   : > { %v4034_v45 = vpop.f32.mrf.mxu3 }
 0x36b   : > { %v4035_v53 = vadd.f32 %v4034_v45, %v3945_v32  ;;  %v4125_v8 = vpop.f32.mrf.mxu0 }
 0x36d   : > { %v4214_v6 = vpop.f32.mrf.mxu1  ;;  %v4124_v15 = vadd.f32 %v4123_v17, %v4035_v53  ;;  %v8556_v17 = vld [vmem:[%s12415_s1 + $0x304] sm:$0xf] }
 0x36f   : > { %v10957_v28 = vadd.f32 %v4212_v10, %v4124_v15  ;;  %v7735_v15 = vld [vmem:[%s12415_s1 + $0x30c] sm:$0xf0] }
 0x370   : > { %v7831_v10 = vld [vmem:[%s12415_s1 + $0x3cc] sm:$0xf0] }
 0x371   : > { %v3947_v13 = vpop.f32.mrf.mxu2 }
 0x372   : > { %v4036_v54 = vpop.f32.mrf.mxu3 }
 0x373   : > { %v4037_v55 = vadd.f32 %v4036_v54, %v3947_v13  ;;  %v4128_v22 = vpop.f32.mrf.mxu0  ;;  %v7738_v13 = vor.u32 %v8556_v17, %v7735_v15 }
 0x375   : > { %v4217_v11 = vpop.f32.mrf.mxu1  ;;  %v4126_v63 = vadd.f32 %v4125_v8, %v4037_v55  ;;  %v8580_v55 = vld [vmem:[%s12415_s1 + $0x3c4] sm:$0xf]  ;;  %4284 = vmatpush.bf16.msra.mxu2 %v7738_v13 }
 0x376   : > { %3989 = vmatmul.bf16.gmra.mxu2 %v12913_v52  ;;  %4167 = vmatmul.bf16.gmra.mxu0 %v12914_v20  ;;  %v7834_v32 = vor.u32 %v8580_v55, %v7831_v10 }
 0x377   : > { %4078 = vmatmul.bf16.gmra.mxu3 %v12915_v40  ;;  %v10972_v54 = vadd.f32 %v4214_v6, %v4126_v63  ;;  %v7927_v6 = vld [vmem:[%s12415_s1 + $0x48c] sm:$0xf0] }
 0x378   : > { %4256 = vmatmul.bf16.gmra.mxu1 %v12916_v0  ;;  %4373 = vmatpush.bf16.msra.mxu3 %v7834_v32  ;;  %v7930_v63 = vor.u32 %v8604_v51, %v7927_v6  ;;  %v12918_v51 = vld [vmem:[#allocation86_spill] sm:$0xff]  ;;  %v12920_v6 = vld [vmem:[#allocation88_spill] sm:$0xff] }
 0x379   : > { %v3950_v62 = vpop.f32.mrf.mxu2 }
 0x37a   : > { %v4039_v45 = vpop.f32.mrf.mxu3  ;;  %4462 = vmatpush.bf16.msra.mxu0 %v7930_v63 }
 0x37b   : > { %v4040_v53 = vadd.f32 %v4039_v45, %v3950_v62  ;;  %v4130_v8 = vpop.f32.mrf.mxu0  ;;  %v8023_v45 = vld [vmem:[%s12415_s1 + $0x54c] sm:$0xf0] }
 0x37d   : > { %v4219_v0 = vpop.f32.mrf.mxu1  ;;  %v4129_v20 = vadd.f32 %v4128_v22, %v4040_v53  ;;  %v8628_v22 = vld [vmem:[%s12415_s1 + $0x544] sm:$0xf] }
 0x37e   : > { %v12917_v53 = vld [vmem:[#allocation22_spill] sm:$0xff] }
 0x37f   : > { %v10983_v17 = vadd.f32 %v4217_v11, %v4129_v20  ;;  %v8026_v20 = vor.u32 %v8628_v22, %v8023_v45  ;;  %v12919_v11 = vld [vmem:[#allocation24_spill] sm:$0xff] }
 0x381   : > { %v3952_v15 = vpop.f32.mrf.mxu2  ;;  %4551 = vmatpush.bf16.msra.mxu1 %v8026_v20 }
 0x382   : > { %v4041_v55 = vpop.f32.mrf.mxu3 }
 0x383   : > { %v4042_v13 = vadd.f32 %v4041_v55, %v3952_v15  ;;  %v4133_v10 = vpop.f32.mrf.mxu0 }
 0x385   : > { %v4222_v62 = vpop.f32.mrf.mxu1  ;;  %v4131_v32 = vadd.f32 %v4130_v8, %v4042_v13 }
 0x386   : > { %3994 = vmatmul.bf16.gmra.mxu2 %v12917_v53  ;;  %4172 = vmatmul.bf16.gmra.mxu0 %v12918_v51 }
 0x387   : > { %4083 = vmatmul.bf16.gmra.mxu3 %v12919_v11  ;;  %v10995_v63 = vadd.f32 %v4219_v0, %v4131_v32  ;;  %v12921_v11 = vld [vmem:[#allocation26_spill] sm:$0xff]  ;;  %v12923_v0 = vld [vmem:[#allocation28_spill] sm:$0xff] }
 0x388   : > { %4261 = vmatmul.bf16.gmra.mxu1 %v12920_v6  ;;  %v12922_v6 = vld [vmem:[#allocation90_spill] sm:$0xff]  ;;  %v12924_v32 = vld [vmem:[#allocation92_spill] sm:$0xff] }
 0x389   : > { %v3955_v8 = vpop.f32.mrf.mxu2 }
 0x38a   : > { %v4044_v15 = vpop.f32.mrf.mxu3 }
 0x38b   : > { %v4045_v55 = vadd.f32 %v4044_v15, %v3955_v8  ;;  %v4135_v13 = vpop.f32.mrf.mxu0 }
 0x38d   : > { %v4224_v44 = vpop.f32.mrf.mxu1  ;;  %v4134_v40 = vadd.f32 %v4133_v10, %v4045_v55  ;;  %v8673_v10 = vld [vmem:[%s12415_s1 + $0x6ac] sm:$0xf] }
 0x38f   : > { %v10997_v52 = vadd.f32 %v4222_v62, %v4134_v40  ;;  %v8203_v40 = vld [vmem:[%s12415_s1 + $0x6b4] sm:$0xf0] }
 0x390   : > { %v8206_v62 = vor.u32 %v8673_v10, %v8203_v40 }
 0x391   : > { %v3957_v60 = vpop.f32.mrf.mxu2 }
 0x392   : > { %v4046_v53 = vpop.f32.mrf.mxu3  ;;  %4633 = vmatpush.bf16.msrb.mxu2 %v8206_v62 }
 0x393   : > { %v4047_v49 = vadd.f32 %v4046_v53, %v3957_v60  ;;  %v4138_v51 = vpop.f32.mrf.mxu0  ;;  %v8239_v53 = vld [vmem:[%s12415_s1 + $0x6fc] sm:$0xf0] }
 0x395   : > { %v4227_v22 = vpop.f32.mrf.mxu1  ;;  %v4136_v45 = vadd.f32 %v4135_v13, %v4047_v49  ;;  %v8682_v49 = vld [vmem:[%s12415_s1 + $0x6f4] sm:$0xf] }
 0x396   : > { %3999 = vmatmul.bf16.gmra.mxu2 %v12921_v11  ;;  %4177 = vmatmul.bf16.gmra.mxu0 %v12922_v6  ;;  %v8242_v8 = vor.u32 %v8682_v49, %v8239_v53 }
 0x397   : > { %4088 = vmatmul.bf16.gmra.mxu3 %v12923_v0  ;;  %v11012_v60 = vadd.f32 %v4224_v44, %v4136_v45  ;;  %v7441_v0 = vld [vmem:[%s12415_s1 + $0xb0] sm:$0xf]  ;;  %v8483_v44 = vld [vmem:[%s12415_s1 + $0xb8] sm:$0xf0] }
 0x398   : > { %4266 = vmatmul.bf16.gmra.mxu1 %v12924_v32  ;;  %4727 = vmatpush.bf16.msrb.mxu3 %v8242_v8  ;;  %v7442_v45 = vor.u32 %v8483_v44, %v7441_v0  ;;  %v12926_v0 = vld [vmem:[#allocation94_spill] sm:$0xff]  ;;  %v12928_v44 = vld [vmem:[#allocation96_spill] sm:$0xff] }
 0x399   : > { %v3960_v20 = vpop.f32.mrf.mxu2 }
 0x39a   : > { %v4049_v15 = vpop.f32.mrf.mxu3  ;;  %4811 = vmatpush.bf16.msrb.mxu0 %v7442_v45 }
 0x39b   : > { %v4050_v55 = vadd.f32 %v4049_v15, %v3960_v20  ;;  %v4140_v13 = vpop.f32.mrf.mxu0  ;;  %v8507_v15 = vld [vmem:[%s12415_s1 + $0x178] sm:$0xf0] }
 0x39d   : > { %v4229_v32 = vpop.f32.mrf.mxu1  ;;  %v4139_v6 = vadd.f32 %v4138_v51, %v4050_v55  ;;  %v7537_v51 = vld [vmem:[%s12415_s1 + $0x170] sm:$0xf]  ;;  %v12925_v55 = vld [vmem:[#allocation30_spill] sm:$0xff] }
 0x39f   : > { %v11023_v10 = vadd.f32 %v4227_v22, %v4139_v6  ;;  %v7538_v6 = vor.u32 %v8507_v15, %v7537_v51  ;;  %v12927_v22 = vld [vmem:[#allocation32_spill] sm:$0xff] }
 0x3a1   : > { %v3962_v40 = vpop.f32.mrf.mxu2  ;;  %4900 = vmatpush.bf16.msrb.mxu1 %v7538_v6 }
 0x3a2   : > { %v4051_v49 = vpop.f32.mrf.mxu3 }
 0x3a3   : > { %v4052_v62 = vadd.f32 %v4051_v49, %v3962_v40  ;;  %v4143_v53 = vpop.f32.mrf.mxu0 }
 0x3a5   : > { %v4232_v20 = vpop.f32.mrf.mxu1  ;;  %v4141_v8 = vadd.f32 %v4140_v13, %v4052_v62 }
 0x3a6   : > { %4004 = vmatmul.bf16.gmra.mxu2 %v12925_v55  ;;  %4182 = vmatmul.bf16.gmra.mxu0 %v12926_v0 }
 0x3a7   : > { %4093 = vmatmul.bf16.gmra.mxu3 %v12927_v22  ;;  %v11035_v45 = vadd.f32 %v4229_v32, %v4141_v8  ;;  %v12929_v22 = vld [vmem:[#allocation35_spill] sm:$0xff]  ;;  %v12931_v32 = vld [vmem:[#allocation37_spill] sm:$0xff]  ;;  %v12932_v8 = vld [vmem:[#allocation100_spill] sm:$0xff] }
 0x3a8   : > { %4271 = vmatmul.bf16.gmra.mxu1 %v12928_v44  ;;  %v12930_v44 = vld [vmem:[#allocation98_spill] sm:$0xff] }
 0x3a9   : > { %v3965_v13 = vpop.f32.mrf.mxu2 }
 0x3aa   : > { %v4054_v40 = vpop.f32.mrf.mxu3 }
 0x3ab   : > { %v4055_v49 = vadd.f32 %v4054_v40, %v3965_v13  ;;  %v4145_v62 = vpop.f32.mrf.mxu0 }
 0x3ad   : > { %v4234_v11 = vpop.f32.mrf.mxu1  ;;  %v4144_v37 = vadd.f32 %v4143_v53, %v4055_v49  ;;  %v8670_v53 = vld [vmem:[%s12415_s1 + $0x694] sm:$0xf] }
 0x3af   : > { %v11037_v26 = vadd.f32 %v4232_v20, %v4144_v37  ;;  %v8191_v37 = vld [vmem:[%s12415_s1 + $0x69c] sm:$0xf0] }
 0x3b0   : > { %v8194_v20 = vor.u32 %v8670_v53, %v8191_v37 }
 0x3b1   : > { %v3967_v14 = vpop.f32.mrf.mxu2 }
 0x3b2   : > { %v4056_v55 = vpop.f32.mrf.mxu3  ;;  %4634 = vmatpush.bf16.msrb.mxu2 %v8194_v20 }
 0x3b3   : > { %v4057_v47 = vadd.f32 %v4056_v55, %v3967_v14  ;;  %v4148_v0 = vpop.f32.mrf.mxu0 }
 0x3b5   : > { %v4237_v51 = vpop.f32.mrf.mxu1  ;;  %v4146_v15 = vadd.f32 %v4145_v62, %v4057_v47  ;;  %v7429_v62 = vld [vmem:[%s12415_s1 + $0x98] sm:$0xf] }
 0x3b6   : > { %4285 = vmatmul.bf16.vlgmr.msra.gmra.mxu2 %v12929_v22  ;;  %4463 = vmatmul.bf16.vlgmr.msra.gmra.mxu0 %v12930_v44 }
 0x3b7   : > { %4374 = vmatmul.bf16.vlgmr.msra.gmra.mxu3 %v12931_v32  ;;  %v11049_v14 = vadd.f32 %v4234_v11, %v4146_v15 }
 0x3b8   : > { %4552 = vmatmul.bf16.vlgmr.msra.gmra.mxu1 %v12932_v8  ;;  %v8480_v8 = vld [vmem:[%s12415_s1 + $0xa0] sm:$0xf0] }
 0x3b9   : > { %v3970_v47 = vpop.f32.mrf.mxu2  ;;  %v7430_v44 = vor.u32 %v8480_v8, %v7429_v62  ;;  %v12934_v8 = vld [vmem:[#allocation102_spill] sm:$0xff] }
 0x3ba   : > { %v4059_v55 = vpop.f32.mrf.mxu3 }
 0x3bb   : > { %v4060_v6 = vadd.f32 %v4059_v55, %v3970_v47  ;;  %v4150_v13 = vpop.f32.mrf.mxu0  ;;  %4812 = vmatpush.bf16.msrb.mxu0 %v7430_v44  ;;  %v8504_v55 = vld [vmem:[%s12415_s1 + $0x160] sm:$0xf0]  ;;  %v12935_v44 = vld [vmem:[#allocation41_spill] sm:$0xff] }
 0x3bd   : > { %v4239_v40 = vpop.f32.mrf.mxu1  ;;  %v4149_v49 = vadd.f32 %v4148_v0, %v4060_v6  ;;  %v7525_v0 = vld [vmem:[%s12415_s1 + $0x158] sm:$0xf]  ;;  %v12933_v6 = vld [vmem:[#allocation39_spill] sm:$0xff] }
 0x3bf   : > { %v11057_v32 = vadd.f32 %v4237_v51, %v4149_v49  ;;  %v7526_v51 = vor.u32 %v8504_v55, %v7525_v0  ;;  %v12936_v49 = vld [vmem:[#allocation104_spill] sm:$0xff] }
 0x3c1   : > { %v3972_v11 = vpop.f32.mrf.mxu2  ;;  %4901 = vmatpush.bf16.msrb.mxu1 %v7526_v51 }
 0x3c2   : > { %v4061_v15 = vpop.f32.mrf.mxu3 }
 0x3c3   : > { %v4062_v53 = vadd.f32 %v4061_v15, %v3972_v11  ;;  %v4153_v37 = vpop.f32.mrf.mxu0 }
 0x3c5   : > { %v4242_v20 = vpop.f32.mrf.mxu1  ;;  %v4151_v47 = vadd.f32 %v4150_v13, %v4062_v53 }
 0x3c6   : > { %4290 = vmatmul.bf16.gmra.mxu2 %v12933_v6  ;;  %4468 = vmatmul.bf16.gmra.mxu0 %v12934_v8 }
 0x3c7   : > { %4379 = vmatmul.bf16.gmra.mxu3 %v12935_v44  ;;  %v11069_v62 = vadd.f32 %v4239_v40, %v4151_v47  ;;  %v12937_v44 = vld [vmem:[#allocation43_spill] sm:$0xff]  ;;  %v12939_v40 = vld [vmem:[#allocation45_spill] sm:$0xff]  ;;  %v12940_v47 = vld [vmem:[#allocation108_spill] sm:$0xff] }
 0x3c8   : > { %4557 = vmatmul.bf16.gmra.mxu1 %v12936_v49  ;;  %v12938_v49 = vld [vmem:[#allocation106_spill] sm:$0xff] }
 0x3c9   : > { %v3975_v13 = vpop.f32.mrf.mxu2 }
 0x3ca   : > { %v4064_v11 = vpop.f32.mrf.mxu3 }
 0x3cb   : > { %v4065_v15 = vadd.f32 %v4064_v11, %v3975_v13  ;;  %v4155_v53 = vpop.f32.mrf.mxu0 }
 0x3cd   : > { %v4244_v22 = vpop.f32.mrf.mxu1  ;;  %v4154_v34 = vadd.f32 %v4153_v37, %v4065_v15  ;;  %v8667_v37 = vld [vmem:[%s12415_s1 + $0x67c] sm:$0xf] }
 0x3cf   : > { %v11071_v48 = vadd.f32 %v4242_v20, %v4154_v34  ;;  %v8179_v34 = vld [vmem:[%s12415_s1 + $0x684] sm:$0xf0] }
 0x3d0   : > { %v8182_v20 = vor.u32 %v8667_v37, %v8179_v34 }
 0x3d1   : > { %v3977_v21 = vpop.f32.mrf.mxu2 }
 0x3d2   : > { %v4066_v6 = vpop.f32.mrf.mxu3  ;;  %4635 = vmatpush.bf16.msrb.mxu2 %v8182_v20 }
 0x3d3   : > { %v4067_v30 = vadd.f32 %v4066_v6, %v3977_v21  ;;  %v4158_v8 = vpop.f32.mrf.mxu0 }
 0x3d5   : > { %v4247_v0 = vpop.f32.mrf.mxu1  ;;  %v4156_v55 = vadd.f32 %v4155_v53, %v4067_v30  ;;  %v7417_v53 = vld [vmem:[%s12415_s1 + $0x80] sm:$0xf] }
 0x3d6   : > { %4295 = vmatmul.bf16.gmra.mxu2 %v12937_v44  ;;  %4473 = vmatmul.bf16.gmra.mxu0 %v12938_v49 }
 0x3d7   : > { %4384 = vmatmul.bf16.gmra.mxu3 %v12939_v40  ;;  %v11083_v21 = vadd.f32 %v4244_v22, %v4156_v55 }
 0x3d8   : > { %4562 = vmatmul.bf16.gmra.mxu1 %v12940_v47  ;;  %v8477_v47 = vld [vmem:[%s12415_s1 + $0x88] sm:$0xf0] }
 0x3d9   : > { %v3980_v30 = vpop.f32.mrf.mxu2  ;;  %v7418_v49 = vor.u32 %v8477_v47, %v7417_v53  ;;  %v12942_v47 = vld [vmem:[#allocation110_spill] sm:$0xff] }
 0x3da   : > { %v4069_v6 = vpop.f32.mrf.mxu3 }
 0x3db   : > { %v4070_v51 = vadd.f32 %v4069_v6, %v3980_v30  ;;  %v4160_v13 = vpop.f32.mrf.mxu0  ;;  %4813 = vmatpush.bf16.msrb.mxu0 %v7418_v49  ;;  %v8501_v6 = vld [vmem:[%s12415_s1 + $0x148] sm:$0xf0]  ;;  %v12943_v49 = vld [vmem:[#allocation49_spill] sm:$0xff] }
 0x3dd   : > { %v4249_v11 = vpop.f32.mrf.mxu1  ;;  %v4159_v15 = vadd.f32 %v4158_v8, %v4070_v51  ;;  %v7513_v8 = vld [vmem:[%s12415_s1 + $0x140] sm:$0xf]  ;;  %v12941_v51 = vld [vmem:[#allocation47_spill] sm:$0xff] }
 0x3df   : > { %v11091_v40 = vadd.f32 %v4247_v0, %v4159_v15  ;;  %v7514_v0 = vor.u32 %v8501_v6, %v7513_v8  ;;  %v12944_v15 = vld [vmem:[#allocation112_spill] sm:$0xff]  ;;  %v8227_v8 = vld [vmem:[%s12415_s1 + $0x6e4] sm:$0xf0] }
 0x3e1   : > { %v3982_v22 = vpop.f32.mrf.mxu2  ;;  %4902 = vmatpush.bf16.msrb.mxu1 %v7514_v0 }
 0x3e2   : > { %v4071_v55 = vpop.f32.mrf.mxu3 }
 0x3e3   : > { %v4072_v37 = vadd.f32 %v4071_v55, %v3982_v22  ;;  %v4163_v34 = vpop.f32.mrf.mxu0 }
 0x3e5   : > { %v4252_v20 = vpop.f32.mrf.mxu1  ;;  %v4161_v30 = vadd.f32 %v4160_v13, %v4072_v37 }
 0x3e6   : > { %4300 = vmatmul.bf16.gmra.mxu2 %v12941_v51  ;;  %4478 = vmatmul.bf16.gmra.mxu0 %v12942_v47  ;;  %v8679_v51 = vld [vmem:[%s12415_s1 + $0x6dc] sm:$0xf] }
 0x3e7   : > { %4389 = vmatmul.bf16.gmra.mxu3 %v12943_v49  ;;  %v11103_v53 = vadd.f32 %v4249_v11, %v4161_v30  ;;  %v8230_v6 = vor.u32 %v8679_v51, %v8227_v8  ;;  %v12946_v49 = vld [vmem:[#allocation51_spill] sm:$0xff] }
 0x3e8   : > { %4567 = vmatmul.bf16.gmra.mxu1 %v12944_v15 }
 0x3e9   : > { %v3985_v13 = vpop.f32.mrf.mxu2  ;;  %4728 = vmatpush.bf16.msrb.mxu3 %v8230_v6 }
 0x3ea   : > { %v4074_v22 = vpop.f32.mrf.mxu3 }
 0x3eb   : > { %v4075_v55 = vadd.f32 %v4074_v22, %v3985_v13  ;;  %v4165_v37 = vpop.f32.mrf.mxu0 }
 0x3ed   : > { %v4254_v44 = vpop.f32.mrf.mxu1  ;;  %v4164_v56 = vadd.f32 %v4163_v34, %v4075_v55  ;;  %v12947_v34 = vld [vmem:[#allocation114_spill] sm:$0xff]  ;;  %v12948_v55 = vld [vmem:[#allocation53_spill] sm:$0xff] }
 0x3ef   : > { %v11111_v47 = vadd.f32 %v4252_v20, %v4164_v56  ;;  %v8664_v56 = vld [vmem:[%s12415_s1 + $0x664] sm:$0xf]  ;;  %v8167_v20 = vld [vmem:[%s12415_s1 + $0x66c] sm:$0xf0] }
 0x3f0   : > { %v8170_v8 = vor.u32 %v8664_v56, %v8167_v20 }
 0x3f1   : > { %12945 = vst [vmem:[#allocation11_spill] sm:$0xff] %v11111_v47  ;;  %v3987_v11 = vpop.f32.mrf.mxu2 }
 0x3f2   : > { %v4076_v30 = vpop.f32.mrf.mxu3  ;;  %4636 = vmatpush.bf16.msrb.mxu2 %v8170_v8 }
 0x3f3   : > { %v4077_v0 = vadd.f32 %v4076_v30, %v3987_v11  ;;  %v4168_v15 = vpop.f32.mrf.mxu0 }
 0x3f5   : > { %v4257_v13 = vpop.f32.mrf.mxu1  ;;  %v4166_v22 = vadd.f32 %v4165_v37, %v4077_v0 }
 0x3f6   : > { %4305 = vmatmul.bf16.gmra.mxu2 %v12946_v49  ;;  %4483 = vmatmul.bf16.gmra.mxu0 %v12947_v34 }
 0x3f7   : > { %4394 = vmatmul.bf16.gmra.mxu3 %v12948_v55  ;;  %v11123_v51 = vadd.f32 %v4254_v44, %v4166_v22  ;;  %v8474_v55 = vld [vmem:[%s12415_s1 + $0x70] sm:$0xf0] }
 0x3f8   : > { %4572 = vmatmul.bf16.gmra.mxu1 %v12949_v46  ;;  %v7405_v46 = vld [vmem:[%s12415_s1 + $0x68] sm:$0xf] }
 0x3f9   : > { %12950 = vst [vmem:[#allocation13_spill] sm:$0xff] %v11123_v51  ;;  %v3990_v37 = vpop.f32.mrf.mxu2  ;;  %v7406_v49 = vor.u32 %v8474_v55, %v7405_v46  ;;  %v12953_v46 = vld [vmem:[#allocation118_spill] sm:$0xff] }
 0x3fa   : > { %v4079_v6 = vpop.f32.mrf.mxu3 }
 0x3fb   : > { %v4080_v11 = vadd.f32 %v4079_v6, %v3990_v37  ;;  %v4170_v30 = vpop.f32.mrf.mxu0  ;;  %4814 = vmatpush.bf16.msrb.mxu0 %v7406_v49  ;;  %v8498_v6 = vld [vmem:[%s12415_s1 + $0x130] sm:$0xf0]  ;;  %v12954_v49 = vld [vmem:[#allocation57_spill] sm:$0xff] }
 0x3fd   : > { %v4259_v0 = vpop.f32.mrf.mxu1  ;;  %v4169_v34 = vadd.f32 %v4168_v15, %v4080_v11  ;;  %v7501_v15 = vld [vmem:[%s12415_s1 + $0x128] sm:$0xf] }
 0x3fe   : > { %v12952_v11 = vld [vmem:[#allocation55_spill] sm:$0xff] }
 0x3ff   : > { %v11131_v38 = vadd.f32 %v4257_v13, %v4169_v34  ;;  %v7502_v13 = vor.u32 %v8498_v6, %v7501_v15  ;;  %v12955_v34 = vld [vmem:[#allocation120_spill] sm:$0xff] }
 0x401   : > { %12951 = vst [vmem:[#allocation15_spill] sm:$0xff] %v11131_v38  ;;  %v3992_v44 = vpop.f32.mrf.mxu2  ;;  %4903 = vmatpush.bf16.msrb.mxu1 %v7502_v13 }
 0x402   : > { %v4081_v22 = vpop.f32.mrf.mxu3 }
 0x403   : > { %v4082_v56 = vadd.f32 %v4081_v22, %v3992_v44  ;;  %v4173_v20 = vpop.f32.mrf.mxu0 }
 0x405   : > { %v4262_v8 = vpop.f32.mrf.mxu1  ;;  %v4171_v37 = vadd.f32 %v4170_v30, %v4082_v56 }
 0x406   : > { %4310 = vmatmul.bf16.gmra.mxu2 %v12952_v11  ;;  %4488 = vmatmul.bf16.gmra.mxu0 %v12953_v46 }
 0x407   : > { %4399 = vmatmul.bf16.gmra.mxu3 %v12954_v49  ;;  %v11143_v55 = vadd.f32 %v4259_v0, %v4171_v37  ;;  %v12958_v49 = vld [vmem:[#allocation59_spill] sm:$0xff]  ;;  %v12960_v0 = vld [vmem:[#allocation61_spill] sm:$0xff]  ;;  %v12961_v37 = vld [vmem:[#allocation124_spill] sm:$0xff] }
 0x408   : > { %4577 = vmatmul.bf16.gmra.mxu1 %v12955_v34  ;;  %v12959_v34 = vld [vmem:[#allocation122_spill] sm:$0xff] }
 0x409   : > { %12956 = vst [vmem:[#allocation162_spill] sm:$0xff] %v11143_v55  ;;  %v3995_v30 = vpop.f32.mrf.mxu2 }
 0x40a   : > { %v4084_v44 = vpop.f32.mrf.mxu3 }
 0x40b   : > { %v4085_v22 = vadd.f32 %v4084_v44, %v3995_v30  ;;  %v4175_v56 = vpop.f32.mrf.mxu0 }
 0x40d   : > { %v4264_v39 = vpop.f32.mrf.mxu1  ;;  %v4174_v38 = vadd.f32 %v4173_v20, %v4085_v22  ;;  %v8661_v20 = vld [vmem:[%s12415_s1 + $0x64c] sm:$0xf] }
 0x40f   : > { %v11145_v16 = vadd.f32 %v4262_v8, %v4174_v38  ;;  %v8155_v38 = vld [vmem:[%s12415_s1 + $0x654] sm:$0xf0] }
 0x410   : > { %v8158_v8 = vor.u32 %v8661_v20, %v8155_v38 }
 0x411   : > { %12957 = vst [vmem:[#allocation163_spill] sm:$0xff] %v11145_v16  ;;  %v3997_v5 = vpop.f32.mrf.mxu2 }
 0x412   : > { %v4086_v11 = vpop.f32.mrf.mxu3  ;;  %4637 = vmatpush.bf16.msrb.mxu2 %v8158_v8 }
 0x413   : > { %v4087_v51 = vadd.f32 %v4086_v11, %v3997_v5  ;;  %v4178_v46 = vpop.f32.mrf.mxu0 }
 0x415   : > { %v4267_v15 = vpop.f32.mrf.mxu1  ;;  %v4176_v6 = vadd.f32 %v4175_v56, %v4087_v51  ;;  %v7393_v56 = vld [vmem:[%s12415_s1 + $0x50] sm:$0xf] }
 0x416   : > { %4315 = vmatmul.bf16.gmra.mxu2 %v12958_v49  ;;  %4493 = vmatmul.bf16.gmra.mxu0 %v12959_v34 }
 0x417   : > { %4404 = vmatmul.bf16.gmra.mxu3 %v12960_v0  ;;  %v11157_v5 = vadd.f32 %v4264_v39, %v4176_v6 }
 0x418   : > { %4582 = vmatmul.bf16.gmra.mxu1 %v12961_v37  ;;  %v8471_v37 = vld [vmem:[%s12415_s1 + $0x58] sm:$0xf0] }
 0x419   : > { %12962 = vst [vmem:[#allocation164_spill] sm:$0xff] %v11157_v5  ;;  %v4000_v51 = vpop.f32.mrf.mxu2  ;;  %v7394_v34 = vor.u32 %v8471_v37, %v7393_v56  ;;  %v12966_v37 = vld [vmem:[#allocation65_spill] sm:$0xff] }
 0x41a   : > { %v4089_v11 = vpop.f32.mrf.mxu3 }
 0x41b   : > { %v4090_v13 = vadd.f32 %v4089_v11, %v4000_v51  ;;  %v4180_v30 = vpop.f32.mrf.mxu0  ;;  %4815 = vmatpush.bf16.msrb.mxu0 %v7394_v34  ;;  %v12964_v11 = vld [vmem:[#allocation63_spill] sm:$0xff]  ;;  %v12967_v34 = vld [vmem:[#allocation128_spill] sm:$0xff] }
 0x41d   : > { %v4269_v44 = vpop.f32.mrf.mxu1  ;;  %v4179_v22 = vadd.f32 %v4178_v46, %v4090_v13  ;;  %v12965_v46 = vld [vmem:[#allocation126_spill] sm:$0xff]  ;;  %v7489_v13 = vld [vmem:[%s12415_s1 + $0x110] sm:$0xf] }
 0x41f   : > { %v11165_v0 = vadd.f32 %v4267_v15, %v4179_v22  ;;  %v8495_v15 = vld [vmem:[%s12415_s1 + $0x118] sm:$0xf0] }
 0x420   : > { %v7490_v22 = vor.u32 %v8495_v15, %v7489_v13  ;;  %v12969_v13 = vld [vmem:[#allocation130_spill] sm:$0xff] }
 0x421   : > { %12963 = vst [vmem:[#allocation165_spill] sm:$0xff] %v11165_v0  ;;  %v4002_v39 = vpop.f32.mrf.mxu2 }
 0x422   : > { %v4091_v6 = vpop.f32.mrf.mxu3  ;;  %4904 = vmatpush.bf16.msrb.mxu1 %v7490_v22 }
 0x423   : > { %v4092_v20 = vadd.f32 %v4091_v6, %v4002_v39  ;;  %v4183_v38 = vpop.f32.mrf.mxu0 }
 0x425   : > { %v4272_v8 = vpop.f32.mrf.mxu1  ;;  %v4181_v51 = vadd.f32 %v4180_v30, %v4092_v20 }
 0x426   : > { %4320 = vmatmul.bf16.gmra.mxu2 %v12964_v11  ;;  %4498 = vmatmul.bf16.gmra.mxu0 %v12965_v46 }
 0x427   : > { %4409 = vmatmul.bf16.gmra.mxu3 %v12966_v37  ;;  %v11177_v56 = vadd.f32 %v4269_v44, %v4181_v51  ;;  %v12970_v44 = vld [vmem:[#allocation69_spill] sm:$0xff]  ;;  %v12971_v51 = vld [vmem:[#allocation132_spill] sm:$0xff] }
 0x428   : > { %4587 = vmatmul.bf16.gmra.mxu1 %v12967_v34 }
 0x429   : > { %v4005_v30 = vpop.f32.mrf.mxu2 }
 0x42a   : > { %v4094_v39 = vpop.f32.mrf.mxu3 }
 0x42b   : > { %v4095_v6 = vadd.f32 %v4094_v39, %v4005_v30  ;;  %v4185_v20 = vpop.f32.mrf.mxu0 }
 0x42d   : > { %v4274_v46 = vpop.f32.mrf.mxu1  ;;  %v4184_v11 = vadd.f32 %v4183_v38, %v4095_v6  ;;  %v8658_v38 = vld [vmem:[%s12415_s1 + $0x634] sm:$0xf] }
 0x42f   : > { %v11179_v49 = vadd.f32 %v4272_v8, %v4184_v11  ;;  %v8143_v8 = vld [vmem:[%s12415_s1 + $0x63c] sm:$0xf0] }
 0x431   : > { %v4007_v0 = vpop.f32.mrf.mxu2 }
 0x432   : > { %v4096_v5 = vpop.f32.mrf.mxu3 }
 0x433   : > { %v4097_v16 = vadd.f32 %v4096_v5, %v4007_v0  ;;  %v4464_v55 = vpop.f32.mrf.mxu0  ;;  %v8146_v5 = vor.u32 %v8658_v38, %v8143_v8 }
 0x435   : > { %v4553_v47 = vpop.f32.mrf.mxu1  ;;  %v4186_v37 = vadd.f32 %v4185_v20, %v4097_v16  ;;  %4638 = vmatpush.bf16.msrb.mxu2 %v8146_v5  ;;  %v7381_v20 = vld [vmem:[%s12415_s1 + $0x38] sm:$0xf] }
 0x436   : > { %4325 = vmatmul.bf16.gmra.mxu2 %v12968_v27  ;;  %4503 = vmatmul.bf16.gmra.mxu0 %v12969_v13  ;;  %v7477_v13 = vld [vmem:[%s12415_s1 + $0xf8] sm:$0xf] }
 0x437   : > { %4414 = vmatmul.bf16.gmra.mxu3 %v12970_v44  ;;  %v11191_v0 = vadd.f32 %v4274_v46, %v4186_v37 }
 0x438   : > { %4592 = vmatmul.bf16.gmra.mxu1 %v12971_v51  ;;  %v8468_v51 = vld [vmem:[%s12415_s1 + $0x40] sm:$0xf0] }
 0x439   : > { %v4286_v16 = vpop.f32.mrf.mxu2  ;;  %v7382_v46 = vor.u32 %v8468_v51, %v7381_v20  ;;  %v12974_v51 = vld [vmem:[#allocation73_spill] sm:$0xff]  ;;  %v8215_v20 = vld [vmem:[%s12415_s1 + $0x6cc] sm:$0xf0] }
 0x43a   : > { %v4287_v11 = vadd.f32 %v4286_v16, %v10902_v29  ;;  %v4375_v15 = vpop.f32.mrf.mxu3 }
 0x43b   : > { %v4466_v22 = vpop.f32.mrf.mxu0  ;;  %4816 = vmatpush.bf16.msrb.mxu0 %v7382_v46 }
 0x43c   : > { %v4376_v30 = vadd.f32 %v4375_v15, %v4287_v11  ;;  %v12972_v15 = vld [vmem:[#allocation71_spill] sm:$0xff] }
 0x43d   : > { %v4555_v39 = vpop.f32.mrf.mxu1 }
 0x43e   : > { %v4465_v6 = vadd.f32 %v4464_v55, %v4376_v30  ;;  %v12973_v30 = vld [vmem:[#allocation134_spill] sm:$0xff] }
 0x440   : > { %v11200_v37 = vadd.f32 %v4553_v47, %v4465_v6  ;;  %v8492_v47 = vld [vmem:[%s12415_s1 + $0x100] sm:$0xf0]  ;;  %v12975_v6 = vld [vmem:[#allocation136_spill] sm:$0xff] }
 0x441   : > { %v4288_v38 = vpop.f32.mrf.mxu2 }
 0x442   : > { %v4289_v29 = vadd.f32 %v4288_v38, %v10915_v19  ;;  %v4377_v8 = vpop.f32.mrf.mxu3  ;;  %v8676_v19 = vld [vmem:[%s12415_s1 + $0x6c4] sm:$0xf] }
 0x443   : > { %v4469_v5 = vpop.f32.mrf.mxu0  ;;  %v8218_v46 = vor.u32 %v8676_v19, %v8215_v20  ;;  %v12976_v20 = vld [vmem:[#allocation75_spill] sm:$0xff] }
 0x444   : > { %v4378_v16 = vadd.f32 %v4377_v8, %v4289_v29 }
 0x445   : > { %v4558_v11 = vpop.f32.mrf.mxu1  ;;  %4729 = vmatpush.bf16.msrb.mxu3 %v8218_v46 }
 0x446   : > { %v4467_v55 = vadd.f32 %v4466_v22, %v4378_v16  ;;  %4330 = vmatmul.bf16.gmra.mxu2 %v12972_v15  ;;  %4508 = vmatmul.bf16.gmra.mxu0 %v12973_v30  ;;  %v7478_v22 = vor.u32 %v8492_v47, %v7477_v13 }
 0x447   : > { %4419 = vmatmul.bf16.gmra.mxu3 %v12974_v51 }
 0x448   : > { %4597 = vmatmul.bf16.gmra.mxu1 %v12975_v6  ;;  %v11219_v38 = vadd.f32 %v4555_v39, %v4467_v55 }
 0x449   : > { %v4291_v29 = vpop.f32.mrf.mxu2  ;;  %4905 = vmatpush.bf16.msrb.mxu1 %v7478_v22 }
 0x44a   : > { %v4292_v8 = vadd.f32 %v4291_v29, %v10917_v59  ;;  %v4380_v16 = vpop.f32.mrf.mxu3  ;;  %v12977_v59 = vld [vmem:[#allocation77_spill] sm:$0xff] }
 0x44b   : > { %v4471_v30 = vpop.f32.mrf.mxu0 }
 0x44c   : > { %v4381_v34 = vadd.f32 %v4380_v16, %v4292_v8  ;;  %v7369_v16 = vld [vmem:[%s12415_s1 + $0x20] sm:$0xf] }
 0x44d   : > { %v4560_v15 = vpop.f32.mrf.mxu1 }
 0x44e   : > { %v4470_v51 = vadd.f32 %v4469_v5, %v4381_v34  ;;  %v8655_v34 = vld [vmem:[%s12415_s1 + $0x61c] sm:$0xf] }
 0x450   : > { %v11222_v44 = vadd.f32 %v4558_v11, %v4470_v51 }
 0x451   : > { %v4293_v13 = vpop.f32.mrf.mxu2 }
 0x452   : > { %v4294_v47 = vadd.f32 %v4293_v13, %v10932_v3  ;;  %v4382_v6 = vpop.f32.mrf.mxu3  ;;  %v8131_v3 = vld [vmem:[%s12415_s1 + $0x624] sm:$0xf0]  ;;  %v8465_v13 = vld [vmem:[%s12415_s1 + $0x28] sm:$0xf0] }
 0x453   : > { %v4474_v27 = vpop.f32.mrf.mxu0  ;;  %v8134_v5 = vor.u32 %v8655_v34, %v8131_v3 }
 0x454   : > { %v4383_v19 = vadd.f32 %v4382_v6, %v4294_v47  ;;  %v7370_v47 = vor.u32 %v8465_v13, %v7369_v16 }
 0x455   : > { %v4563_v39 = vpop.f32.mrf.mxu1  ;;  %4639 = vmatpush.bf16.msrb.mxu2 %v8134_v5 }
 0x456   : > { %v4472_v55 = vadd.f32 %v4471_v30, %v4383_v19  ;;  %4335 = vmatmul.bf16.gmra.mxu2 %v12976_v20  ;;  %4513 = vmatmul.bf16.gmra.mxu0 %v10447_v18 }
 0x457   : > { %4424 = vmatmul.bf16.gmra.mxu3 %v12977_v59  ;;  %4817 = vmatpush.bf16.msrb.mxu0 %v7370_v47 }
 0x458   : > { %4602 = vmatmul.bf16.gmra.mxu1 %v10451_v36  ;;  %v11235_v11 = vadd.f32 %v4560_v15, %v4472_v55 }
 0x459   : > { %v4296_v30 = vpop.f32.mrf.mxu2 }
 0x45a   : > { %v4297_v51 = vadd.f32 %v4296_v30, %v10943_v33  ;;  %v4385_v6 = vpop.f32.mrf.mxu3  ;;  %v12978_v30 = vld [vmem:[#allocation79_spill] sm:$0xff] }
 0x45b   : > { %v4476_v22 = vpop.f32.mrf.mxu0 }
 0x45c   : > { %v4386_v46 = vadd.f32 %v4385_v6, %v4297_v51  ;;  %v7465_v51 = vld [vmem:[%s12415_s1 + $0xe0] sm:$0xf]  ;;  %v12979_v6 = vld [vmem:[#allocation81_spill] sm:$0xff] }
 0x45d   : > { %v4565_v29 = vpop.f32.mrf.mxu1 }
 0x45e   : > { %v4475_v8 = vadd.f32 %v4474_v27, %v4386_v46 }
 0x460   : > { %v11244_v15 = vadd.f32 %v4563_v39, %v4475_v8  ;;  %v8489_v39 = vld [vmem:[%s12415_s1 + $0xe8] sm:$0xf0] }
 0x461   : > { %v4298_v19 = vpop.f32.mrf.mxu2 }
 0x462   : > { %v4299_v33 = vadd.f32 %v4298_v19, %v10955_v58  ;;  %v4387_v55 = vpop.f32.mrf.mxu3  ;;  %v7466_v58 = vor.u32 %v8489_v39, %v7465_v51 }
 0x463   : > { %v4479_v34 = vpop.f32.mrf.mxu0 }
 0x464   : > { %v4388_v3 = vadd.f32 %v4387_v55, %v4299_v33  ;;  %4906 = vmatpush.bf16.msrb.mxu1 %v7466_v58 }
 0x465   : > { %v4568_v5 = vpop.f32.mrf.mxu1 }
 0x466   : > { %v4477_v27 = vadd.f32 %v4476_v22, %v4388_v3  ;;  %4340 = vmatmul.bf16.gmra.mxu2 %v12978_v30  ;;  %4518 = vmatmul.bf16.gmra.mxu0 %v10488_v50 }
 0x467   : > { %4429 = vmatmul.bf16.gmra.mxu3 %v12979_v6 }
 0x468   : > { %4607 = vmatmul.bf16.gmra.mxu1 %v10498_v2  ;;  %v11257_v46 = vadd.f32 %v4565_v29, %v4477_v27  ;;  %v12980_v27 = vld [vmem:[#allocation83_spill] sm:$0xff] }
 0x469   : > { %v4301_v22 = vpop.f32.mrf.mxu2 }
 0x46a   : > { %v4302_v8 = vadd.f32 %v4301_v22, %v10957_v28  ;;  %v4390_v16 = vpop.f32.mrf.mxu3  ;;  %v12981_v28 = vld [vmem:[#allocation85_spill] sm:$0xff] }
 0x46b   : > { %v4481_v13 = vpop.f32.mrf.mxu0 }
 0x46c   : > { %v4391_v47 = vadd.f32 %v4390_v16, %v4302_v8 }
 0x46d   : > { %v4570_v19 = vpop.f32.mrf.mxu1 }
 0x46e   : > { %v4480_v33 = vadd.f32 %v4479_v34, %v4391_v47  ;;  %v8652_v34 = vld [vmem:[%s12415_s1 + $0x604] sm:$0xf]  ;;  %v8462_v47 = vld [vmem:[%s12415_s1 + $0x10] sm:$0xf0] }
 0x470   : > { %v11260_v55 = vadd.f32 %v4568_v5, %v4480_v33 }
 0x471   : > { %v4303_v3 = vpop.f32.mrf.mxu2 }
 0x472   : > { %v4304_v50 = vadd.f32 %v4303_v3, %v10972_v54  ;;  %v4392_v36 = vpop.f32.mrf.mxu3  ;;  %v8119_v54 = vld [vmem:[%s12415_s1 + $0x60c] sm:$0xf0] }
 0x473   : > { %v4484_v18 = vpop.f32.mrf.mxu0  ;;  %v8122_v5 = vor.u32 %v8652_v34, %v8119_v54 }
 0x474   : > { %v4393_v2 = vadd.f32 %v4392_v36, %v4304_v50 }
 0x475   : > { %v4573_v51 = vpop.f32.mrf.mxu1  ;;  %4640 = vmatpush.bf16.msrb.mxu2 %v8122_v5 }
 0x476   : > { %v4482_v29 = vadd.f32 %v4481_v13, %v4393_v2  ;;  %4345 = vmatmul.bf16.gmra.mxu2 %v12980_v27  ;;  %4523 = vmatmul.bf16.gmra.mxu0 %v10529_v61  ;;  %v7357_v13 = vld [vmem:[%s12415_s1 + $0x8] sm:$0xf] }
 0x477   : > { %4434 = vmatmul.bf16.gmra.mxu3 %v12981_v28  ;;  %v7358_v33 = vor.u32 %v8462_v47, %v7357_v13 }
 0x478   : > { %4612 = vmatmul.bf16.gmra.mxu1 %v10533_v42  ;;  %v11273_v36 = vadd.f32 %v4570_v19, %v4482_v29 }
 0x479   : > { %v4306_v50 = vpop.f32.mrf.mxu2  ;;  %4818 = vmatpush.bf16.msrb.mxu0 %v7358_v33 }
 0x47a   : > { %v4307_v2 = vadd.f32 %v4306_v50, %v10983_v17  ;;  %v4395_v39 = vpop.f32.mrf.mxu3  ;;  %v12982_v50 = vld [vmem:[#allocation87_spill] sm:$0xff] }
 0x47b   : > { %v4486_v58 = vpop.f32.mrf.mxu0 }
 0x47c   : > { %v4396_v22 = vadd.f32 %v4395_v39, %v4307_v2  ;;  %v7453_v2 = vld [vmem:[%s12415_s1 + $0xc8] sm:$0xf]  ;;  %v12983_v39 = vld [vmem:[#allocation89_spill] sm:$0xff] }
 0x47d   : > { %v4575_v8 = vpop.f32.mrf.mxu1 }
 0x47e   : > { %v4485_v16 = vadd.f32 %v4484_v18, %v4396_v22 }
 0x480   : > { %v11282_v19 = vadd.f32 %v4573_v51, %v4485_v16  ;;  %v8486_v51 = vld [vmem:[%s12415_s1 + $0xd0] sm:$0xf0] }
 0x481   : > { %v4308_v3 = vpop.f32.mrf.mxu2 }
 0x482   : > { %v4309_v17 = vadd.f32 %v4308_v3, %v10995_v63  ;;  %v4397_v29 = vpop.f32.mrf.mxu3  ;;  %v7454_v63 = vor.u32 %v8486_v51, %v7453_v2 }
 0x483   : > { %v4489_v34 = vpop.f32.mrf.mxu0 }
 0x484   : > { %v4398_v54 = vadd.f32 %v4397_v29, %v4309_v17  ;;  %4907 = vmatpush.bf16.msrb.mxu1 %v7454_v63 }
 0x485   : > { %v4578_v5 = vpop.f32.mrf.mxu1 }
 0x486   : > { %v4487_v18 = vadd.f32 %v4486_v58, %v4398_v54  ;;  %4350 = vmatmul.bf16.gmra.mxu2 %v12982_v50  ;;  %4528 = vmatmul.bf16.gmra.mxu0 %v10570_v57 }
 0x487   : > { %4439 = vmatmul.bf16.gmra.mxu3 %v12983_v39 }
 0x488   : > { %4617 = vmatmul.bf16.gmra.mxu1 %v10580_v12  ;;  %v11295_v22 = vadd.f32 %v4575_v8, %v4487_v18  ;;  %v12984_v18 = vld [vmem:[#allocation91_spill] sm:$0xff] }
 0x489   : > { %v4311_v58 = vpop.f32.mrf.mxu2 }
 0x48a   : > { %v4312_v16 = vadd.f32 %v4311_v58, %v10997_v52  ;;  %v4400_v13 = vpop.f32.mrf.mxu3  ;;  %v12985_v52 = vld [vmem:[#allocation93_spill] sm:$0xff] }
 0x48b   : > { %v4491_v47 = vpop.f32.mrf.mxu0 }
 0x48c   : > { %v4401_v33 = vadd.f32 %v4400_v13, %v4312_v16 }
 0x48d   : > { %v4580_v3 = vpop.f32.mrf.mxu1 }
 0x48e   : > { %v4490_v17 = vadd.f32 %v4489_v34, %v4401_v33  ;;  %v7633_v34 = vld [vmem:[%s12415_s1 + $0x230] sm:$0xf] }
 0x490   : > { %v11298_v29 = vadd.f32 %v4578_v5, %v4490_v17 }
 0x491   : > { %v4313_v54 = vpop.f32.mrf.mxu2 }
 0x492   : > { %v4314_v57 = vadd.f32 %v4313_v54, %v11012_v60  ;;  %v4402_v42 = vpop.f32.mrf.mxu3  ;;  %v8531_v60 = vld [vmem:[%s12415_s1 + $0x238] sm:$0xf0]  ;;  %v7825_v54 = vld [vmem:[%s12415_s1 + $0x3b0] sm:$0xf] }
 0x493   : > { %v4494_v61 = vpop.f32.mrf.mxu0 }
 0x494   : > { %v4403_v12 = vadd.f32 %v4402_v42, %v4314_v57  ;;  %v7729_v42 = vld [vmem:[%s12415_s1 + $0x2f0] sm:$0xf]  ;;  %v7634_v57 = vor.u32 %v8531_v60, %v7633_v34 }
 0x495   : > { %v4583_v2 = vpop.f32.mrf.mxu1 }
 0x496   : > { %v4492_v8 = vadd.f32 %v4491_v47, %v4403_v12  ;;  %4355 = vmatmul.bf16.gmra.mxu2 %v12984_v18  ;;  %4533 = vmatmul.bf16.gmra.mxu0 %v10611_v35  ;;  %v8555_v12 = vld [vmem:[%s12415_s1 + $0x2f8] sm:$0xf0] }
 0x497   : > { %4444 = vmatmul.bf16.gmra.mxu3 %v12985_v52  ;;  %v7730_v63 = vor.u32 %v8555_v12, %v7729_v42  ;;  %4989 = vmatpush.bf16.msra.mxu2 %v7634_v57 }
 0x498   : > { %4622 = vmatmul.bf16.gmra.mxu1 %v10615_v23  ;;  %v11317_v5 = vadd.f32 %v4580_v3, %v4492_v8  ;;  %v8579_v3 = vld [vmem:[%s12415_s1 + $0x3b8] sm:$0xf0] }
 0x499   : > { %v4316_v51 = vpop.f32.mrf.mxu2  ;;  %5078 = vmatpush.bf16.msra.mxu3 %v7730_v63  ;;  %v7826_v8 = vor.u32 %v8579_v3, %v7825_v54  ;;  %v12986_v63 = vld [vmem:[#allocation95_spill] sm:$0xff] }
 0x49a   : > { %v4317_v58 = vadd.f32 %v4316_v51, %v11023_v10  ;;  %v4405_v16 = vpop.f32.mrf.mxu3 }
 0x49b   : > { %v4496_v13 = vpop.f32.mrf.mxu0  ;;  %5167 = vmatpush.bf16.msra.mxu0 %v7826_v8 }
 0x49c   : > { %v4406_v47 = vadd.f32 %v4405_v16, %v4317_v58  ;;  %v7921_v58 = vld [vmem:[%s12415_s1 + $0x470] sm:$0xf]  ;;  %v12987_v16 = vld [vmem:[#allocation97_spill] sm:$0xff] }
 0x49d   : > { %v4585_v33 = vpop.f32.mrf.mxu1 }
 0x49e   : > { %v4495_v17 = vadd.f32 %v4494_v61, %v4406_v47 }
 0x4a0   : > { %v11326_v34 = vadd.f32 %v4583_v2, %v4495_v17  ;;  %v8603_v2 = vld [vmem:[%s12415_s1 + $0x478] sm:$0xf0] }
 0x4a1   : > { %v4318_v60 = vpop.f32.mrf.mxu2 }
 0x4a2   : > { %v4319_v10 = vadd.f32 %v4318_v60, %v11035_v45  ;;  %v4407_v42 = vpop.f32.mrf.mxu3  ;;  %v7922_v45 = vor.u32 %v8603_v2, %v7921_v58 }
 0x4a3   : > { %v4499_v57 = vpop.f32.mrf.mxu0 }
 0x4a4   : > { %v4408_v12 = vadd.f32 %v4407_v42, %v4319_v10  ;;  %5256 = vmatpush.bf16.msra.mxu1 %v7922_v45 }
 0x4a5   : > { %v4588_v51 = vpop.f32.mrf.mxu1 }
 0x4a6   : > { %v4497_v61 = vadd.f32 %v4496_v13, %v4408_v12  ;;  %4360 = vmatmul.bf16.gmra.mxu2 %v12986_v63  ;;  %4538 = vmatmul.bf16.gmra.mxu0 %v10652_v31 }
 0x4a7   : > { %4449 = vmatmul.bf16.gmra.mxu3 %v12987_v16 }
 0x4a8   : > { %4627 = vmatmul.bf16.gmra.mxu1 %v10662_v24  ;;  %v11339_v47 = vadd.f32 %v4585_v33, %v4497_v61  ;;  %v12988_v61 = vld [vmem:[#allocation99_spill] sm:$0xff] }
 0x4a9   : > { %v4321_v13 = vpop.f32.mrf.mxu2 }
 0x4aa   : > { %v4322_v17 = vadd.f32 %v4321_v13, %v11037_v26  ;;  %v4410_v54 = vpop.f32.mrf.mxu3  ;;  %v12989_v26 = vld [vmem:[#allocation101_spill] sm:$0xff] }
 0x4ab   : > { %v4501_v3 = vpop.f32.mrf.mxu0 }
 0x4ac   : > { %v4411_v8 = vadd.f32 %v4410_v54, %v4322_v17 }
 0x4ad   : > { %v4590_v60 = vpop.f32.mrf.mxu1 }
 0x4ae   : > { %v4500_v10 = vadd.f32 %v4499_v57, %v4411_v8  ;;  %v7621_v57 = vld [vmem:[%s12415_s1 + $0x218] sm:$0xf] }
 0x4af   : > { %v7813_v8 = vld [vmem:[%s12415_s1 + $0x398] sm:$0xf] }
 0x4b0   : > { %v11342_v42 = vadd.f32 %v4588_v51, %v4500_v10 }
 0x4b1   : > { %v4323_v12 = vpop.f32.mrf.mxu2 }
 0x4b2   : > { %v4324_v31 = vadd.f32 %v4323_v12, %v11049_v14  ;;  %v4412_v23 = vpop.f32.mrf.mxu3  ;;  %v8528_v14 = vld [vmem:[%s12415_s1 + $0x220] sm:$0xf0] }
 0x4b3   : > { %v4504_v35 = vpop.f32.mrf.mxu0 }
 0x4b4   : > { %v4413_v24 = vadd.f32 %v4412_v23, %v4324_v31  ;;  %v7717_v23 = vld [vmem:[%s12415_s1 + $0x2d8] sm:$0xf]  ;;  %v7622_v31 = vor.u32 %v8528_v14, %v7621_v57 }
 0x4b5   : > { %v4593_v58 = vpop.f32.mrf.mxu1 }
 0x4b6   : > { %v4502_v33 = vadd.f32 %v4501_v3, %v4413_v24  ;;  %4641 = vmatmul.bf16.vlgmr.msrb.gmra.mxu2 %v12988_v61  ;;  %4819 = vmatmul.bf16.vlgmr.msrb.gmra.mxu0 %v9100_v4  ;;  %v8552_v4 = vld [vmem:[%s12415_s1 + $0x2e0] sm:$0xf0] }
 0x4b7   : > { %8263 = vmatmul.msk.bf16.vlgmr.msrb.gmra.mxu3 %vm2982_vm0, %v12989_v26  ;;  %v7718_v51 = vor.u32 %v8552_v4, %v7717_v23  ;;  %4990 = vmatpush.bf16.msra.mxu2 %v7622_v31  ;;  %v12990_v4 = vld [vmem:[#allocation103_spill] sm:$0xff] }
 0x4b8   : > { %4908 = vmatmul.bf16.vlgmr.msrb.gmra.mxu1 %v9113_v9  ;;  %v11362_v24 = vadd.f32 %v4590_v60, %v4502_v33  ;;  %v8576_v60 = vld [vmem:[%s12415_s1 + $0x3a0] sm:$0xf0] }
 0x4b9   : > { %v4326_v9 = vpop.f32.mrf.mxu2  ;;  %5079 = vmatpush.bf16.msra.mxu3 %v7718_v51  ;;  %v7814_v10 = vor.u32 %v8576_v60, %v7813_v8  ;;  %v12991_v51 = vld [vmem:[#allocation105_spill] sm:$0xff] }
 0x4ba   : > { %v4327_v2 = vadd.f32 %v4326_v9, %v11057_v32  ;;  %v4415_v45 = vpop.f32.mrf.mxu3  ;;  %v7909_v9 = vld [vmem:[%s12415_s1 + $0x458] sm:$0xf] }
 0x4bb   : > { %v4506_v13 = vpop.f32.mrf.mxu0  ;;  %5168 = vmatpush.bf16.msra.mxu0 %v7814_v10 }
 0x4bc   : > { %v4416_v17 = vadd.f32 %v4415_v45, %v4327_v2 }
 0x4bd   : > { %v4595_v54 = vpop.f32.mrf.mxu1 }
 0x4be   : > { %v4505_v3 = vadd.f32 %v4504_v35, %v4416_v17 }
 0x4c0   : > { %v11371_v12 = vadd.f32 %v4593_v58, %v4505_v3  ;;  %v8600_v58 = vld [vmem:[%s12415_s1 + $0x460] sm:$0xf0] }
 0x4c1   : > { %v4328_v33 = vpop.f32.mrf.mxu2 }
 0x4c2   : > { %v4329_v32 = vadd.f32 %v4328_v33, %v11069_v62  ;;  %v4417_v57 = vpop.f32.mrf.mxu3  ;;  %v7910_v62 = vor.u32 %v8600_v58, %v7909_v9 }
 0x4c3   : > { %v4509_v14 = vpop.f32.mrf.mxu0 }
 0x4c4   : > { %v4418_v23 = vadd.f32 %v4417_v57, %v4329_v32  ;;  %5257 = vmatpush.bf16.msra.mxu1 %v7910_v62 }
 0x4c5   : > { %v4598_v31 = vpop.f32.mrf.mxu1 }
 0x4c6   : > { %v4507_v35 = vadd.f32 %v4506_v13, %v4418_v23  ;;  %4646 = vmatmul.bf16.gmra.mxu2 %v12990_v4  ;;  %4824 = vmatmul.bf16.gmra.mxu0 %v9165_v41 }
 0x4c7   : > { %8264 = vmatmul.msk.bf16.gmra.mxu3 %vm2982_vm0, %v12991_v51  ;;  %v13010_v51 = vld [vmem:[#allocation164_spill] sm:$0xff] }
 0x4c8   : > { %4913 = vmatmul.bf16.gmra.mxu1 %v9169_v43  ;;  %v11385_v2 = vadd.f32 %v4595_v54, %v4507_v35  ;;  %v12992_v35 = vld [vmem:[#allocation107_spill] sm:$0xff] }
 0x4c9   : > { %v4331_v45 = vpop.f32.mrf.mxu2 }
 0x4ca   : > { %v4332_v41 = vadd.f32 %v4331_v45, %v11071_v48  ;;  %v4420_v13 = vpop.f32.mrf.mxu3  ;;  %v12993_v48 = vld [vmem:[#allocation109_spill] sm:$0xff] }
 0x4cb   : > { %v4511_v17 = vpop.f32.mrf.mxu0 }
 0x4cc   : > { %v4421_v3 = vadd.f32 %v4420_v13, %v4332_v41 }
 0x4cd   : > { %v4600_v8 = vpop.f32.mrf.mxu1 }
 0x4ce   : > { %v4510_v60 = vadd.f32 %v4509_v14, %v4421_v3  ;;  %v7609_v14 = vld [vmem:[%s12415_s1 + $0x200] sm:$0xf] }
 0x4d0   : > { %v11388_v10 = vadd.f32 %v4598_v31, %v4510_v60  ;;  %v7705_v31 = vld [vmem:[%s12415_s1 + $0x2c0] sm:$0xf] }
 0x4d1   : > { %v4333_v33 = vpop.f32.mrf.mxu2 }
 0x4d2   : > { %v4334_v32 = vadd.f32 %v4333_v33, %v11083_v21  ;;  %v4422_v57 = vpop.f32.mrf.mxu3  ;;  %v8525_v21 = vld [vmem:[%s12415_s1 + $0x208] sm:$0xf0] }
 0x4d3   : > { %v4514_v23 = vpop.f32.mrf.mxu0  ;;  %v7610_v58 = vor.u32 %v8525_v21, %v7609_v14 }
 0x4d4   : > { %v4423_v43 = vadd.f32 %v4422_v57, %v4334_v32  ;;  %v7801_v32 = vld [vmem:[%s12415_s1 + $0x380] sm:$0xf] }
 0x4d5   : > { %v4603_v9 = vpop.f32.mrf.mxu1  ;;  %4991 = vmatpush.bf16.msra.mxu2 %v7610_v58 }
 0x4d6   : > { %v4512_v54 = vadd.f32 %v4511_v17, %v4423_v43  ;;  %4651 = vmatmul.bf16.gmra.mxu2 %v12992_v35  ;;  %4829 = vmatmul.bf16.gmra.mxu0 %v12873_v25  ;;  %v8549_v25 = vld [vmem:[%s12415_s1 + $0x2c8] sm:$0xf0] }
 0x4d7   : > { %8265 = vmatmul.msk.bf16.gmra.mxu3 %vm2982_vm0, %v12993_v48  ;;  %v7706_v45 = vor.u32 %v8549_v25, %v7705_v31  ;;  %v12994_v25 = vld [vmem:[#allocation111_spill] sm:$0xff] }
 0x4d8   : > { %4918 = vmatmul.bf16.gmra.mxu1 %v12875_v1  ;;  %v11408_v62 = vadd.f32 %v4600_v8, %v4512_v54  ;;  %v8573_v8 = vld [vmem:[%s12415_s1 + $0x388] sm:$0xf0] }
 0x4d9   : > { %v4336_v1 = vpop.f32.mrf.mxu2  ;;  %5080 = vmatpush.bf16.msra.mxu3 %v7706_v45  ;;  %v7802_v57 = vor.u32 %v8573_v8, %v7801_v32  ;;  %v12995_v45 = vld [vmem:[#allocation113_spill] sm:$0xff] }
 0x4da   : > { %v4337_v41 = vadd.f32 %v4336_v1, %v11091_v40  ;;  %v4425_v13 = vpop.f32.mrf.mxu3  ;;  %v7897_v1 = vld [vmem:[%s12415_s1 + $0x440] sm:$0xf] }
 0x4db   : > { %v4516_v17 = vpop.f32.mrf.mxu0  ;;  %5169 = vmatpush.bf16.msra.mxu0 %v7802_v57 }
 0x4dc   : > { %v4426_v3 = vadd.f32 %v4425_v13, %v4337_v41 }
 0x4dd   : > { %v4605_v60 = vpop.f32.mrf.mxu1 }
 0x4de   : > { %v4515_v33 = vadd.f32 %v4514_v23, %v4426_v3  ;;  %v12997_v3 = vld [vmem:[#allocation11_spill] sm:$0xff] }
 0x4e0   : > { %v11417_v43 = vadd.f32 %v4603_v9, %v4515_v33  ;;  %v8597_v9 = vld [vmem:[%s12415_s1 + $0x448] sm:$0xf0] }
 0x4e1   : > { %v4338_v54 = vpop.f32.mrf.mxu2  ;;  %v7898_v41 = vor.u32 %v8597_v9, %v7897_v1  ;;  %v13000_v9 = vld [vmem:[#allocation19_spill] sm:$0xff] }
 0x4e2   : > { %v4339_v40 = vadd.f32 %v4338_v54, %v11103_v53  ;;  %v4427_v14 = vpop.f32.mrf.mxu3  ;;  %v12996_v53 = vld [vmem:[#allocation17_spill] sm:$0xff] }
 0x4e3   : > { %v4519_v21 = vpop.f32.mrf.mxu0  ;;  %5258 = vmatpush.bf16.msra.mxu1 %v7898_v41  ;;  %v13001_v41 = vld [vmem:[#allocation117_spill] sm:$0xff] }
 0x4e4   : > { %v4428_v31 = vadd.f32 %v4427_v14, %v4339_v40 }
 0x4e5   : > { %v4608_v58 = vpop.f32.mrf.mxu1 }
 0x4e6   : > { %v4517_v23 = vadd.f32 %v4516_v17, %v4428_v31  ;;  %4656 = vmatmul.bf16.gmra.mxu2 %v12994_v25  ;;  %4834 = vmatmul.bf16.gmra.mxu0 %v12877_v7  ;;  %v12998_v31 = vld [vmem:[#allocation13_spill] sm:$0xff] }
 0x4e7   : > { %8266 = vmatmul.msk.bf16.gmra.mxu3 %vm2982_vm0, %v12995_v45 }
 0x4e8   : > { %4923 = vmatmul.bf16.gmra.mxu1 %v12996_v53  ;;  %v11431_v13 = vadd.f32 %v4605_v60, %v4517_v23  ;;  %v12999_v23 = vld [vmem:[#allocation115_spill] sm:$0xff] }
 0x4e9   : > { %v4341_v17 = vpop.f32.mrf.mxu2 }
 0x4ea   : > { %v4342_v7 = vadd.f32 %v4341_v17, %v12997_v3  ;;  %v4430_v33 = vpop.f32.mrf.mxu3  ;;  %v13002_v17 = vld [vmem:[#allocation21_spill] sm:$0xff]  ;;  %v8546_v3 = vld [vmem:[%s12415_s1 + $0x2b0] sm:$0xf0] }
 0x4eb   : > { %v4521_v32 = vpop.f32.mrf.mxu0 }
 0x4ec   : > { %v4431_v8 = vadd.f32 %v4430_v33, %v4342_v7 }
 0x4ed   : > { %v4610_v57 = vpop.f32.mrf.mxu1 }
 0x4ee   : > { %v4520_v54 = vadd.f32 %v4519_v21, %v4431_v8  ;;  %v7597_v21 = vld [vmem:[%s12415_s1 + $0x1e8] sm:$0xf] }
 0x4ef   : > { %v13003_v8 = vld [vmem:[#allocation15_spill] sm:$0xff] }
 0x4f0   : > { %v11434_v40 = vadd.f32 %v4608_v58, %v4520_v54  ;;  %v8522_v58 = vld [vmem:[%s12415_s1 + $0x1f0] sm:$0xf0] }
 0x4f1   : > { %v4343_v14 = vpop.f32.mrf.mxu2 }
 0x4f2   : > { %v4344_v25 = vadd.f32 %v4343_v14, %v12998_v31  ;;  %v4432_v45 = vpop.f32.mrf.mxu3 }
 0x4f3   : > { %v4524_v48 = vpop.f32.mrf.mxu0 }
 0x4f4   : > { %v4433_v53 = vadd.f32 %v4432_v45, %v4344_v25  ;;  %v7693_v25 = vld [vmem:[%s12415_s1 + $0x2a8] sm:$0xf]  ;;  %v7598_v45 = vor.u32 %v8522_v58, %v7597_v21 }
 0x4f5   : > { %v4613_v1 = vpop.f32.mrf.mxu1  ;;  %v7789_v21 = vld [vmem:[%s12415_s1 + $0x368] sm:$0xf] }
 0x4f6   : > { %v4522_v60 = vadd.f32 %v4521_v32, %v4433_v53  ;;  %4661 = vmatmul.bf16.gmra.mxu2 %v12999_v23  ;;  %4839 = vmatmul.bf16.gmra.mxu0 %v13000_v9  ;;  %v7694_v32 = vor.u32 %v8546_v3, %v7693_v25  ;;  %v13004_v3 = vld [vmem:[#allocation162_spill] sm:$0xff] }
 0x4f7   : > { %8267 = vmatmul.msk.bf16.gmra.mxu3 %vm2982_vm0, %v13001_v41  ;;  %4992 = vmatpush.bf16.msra.mxu2 %v7598_v45  ;;  %v7885_v41 = vld [vmem:[%s12415_s1 + $0x428] sm:$0xf] }
 0x4f8   : > { %4928 = vmatmul.bf16.gmra.mxu1 %v13002_v17  ;;  %v11454_v7 = vadd.f32 %v4610_v57, %v4522_v60  ;;  %5081 = vmatpush.bf16.msra.mxu3 %v7694_v32  ;;  %v8570_v57 = vld [vmem:[%s12415_s1 + $0x370] sm:$0xf0] }
 0x4f9   : > { %v4346_v33 = vpop.f32.mrf.mxu2  ;;  %v7790_v60 = vor.u32 %v8570_v57, %v7789_v21  ;;  %v13008_v21 = vld [vmem:[#allocation25_spill] sm:$0xff] }
 0x4fa   : > { %v4347_v54 = vadd.f32 %v4346_v33, %v13003_v8  ;;  %v4435_v14 = vpop.f32.mrf.mxu3 }
 0x4fb   : > { %v4526_v31 = vpop.f32.mrf.mxu0  ;;  %5170 = vmatpush.bf16.msra.mxu0 %v7790_v60 }
 0x4fc   : > { %v4436_v53 = vadd.f32 %v4435_v14, %v4347_v54  ;;  %v13005_v14 = vld [vmem:[#allocation119_spill] sm:$0xff] }
 0x4fd   : > { %v4615_v9 = vpop.f32.mrf.mxu1 }
 0x4fe   : > { %v4525_v17 = vadd.f32 %v4524_v48, %v4436_v53  ;;  %v13006_v53 = vld [vmem:[#allocation23_spill] sm:$0xff] }
 0x500   : > { %v11463_v58 = vadd.f32 %v4613_v1, %v4525_v17  ;;  %v8594_v1 = vld [vmem:[%s12415_s1 + $0x430] sm:$0xf0]  ;;  %v13007_v17 = vld [vmem:[#allocation121_spill] sm:$0xff] }
 0x501   : > { %v4348_v25 = vpop.f32.mrf.mxu2  ;;  %v7886_v57 = vor.u32 %v8594_v1, %v7885_v41  ;;  %v13012_v1 = vld [vmem:[#allocation27_spill] sm:$0xff] }
 0x502   : > { %v4349_v45 = vadd.f32 %v4348_v25, %v13004_v3  ;;  %v4437_v33 = vpop.f32.mrf.mxu3  ;;  %v13009_v25 = vld [vmem:[#allocation163_spill] sm:$0xff] }
 0x503   : > { %v4529_v32 = vpop.f32.mrf.mxu0  ;;  %5259 = vmatpush.bf16.msra.mxu1 %v7886_v57  ;;  %v13013_v57 = vld [vmem:[#allocation125_spill] sm:$0xff] }
 0x504   : > { %v4438_v8 = vadd.f32 %v4437_v33, %v4349_v45 }
 0x505   : > { %v4618_v54 = vpop.f32.mrf.mxu1 }
 0x506   : > { %v4527_v48 = vadd.f32 %v4526_v31, %v4438_v8  ;;  %4666 = vmatmul.bf16.gmra.mxu2 %v13005_v14  ;;  %4844 = vmatmul.bf16.gmra.mxu0 %v13006_v53 }
 0x507   : > { %8268 = vmatmul.msk.bf16.gmra.mxu3 %vm2982_vm0, %v13007_v17 }
 0x508   : > { %4933 = vmatmul.bf16.gmra.mxu1 %v13008_v21  ;;  %v11477_v60 = vadd.f32 %v4615_v9, %v4527_v48  ;;  %v13011_v48 = vld [vmem:[#allocation123_spill] sm:$0xff] }
 0x509   : > { %v4351_v31 = vpop.f32.mrf.mxu2 }
 0x50a   : > { %v4352_v3 = vadd.f32 %v4351_v31, %v13009_v25  ;;  %v4440_v45 = vpop.f32.mrf.mxu3  ;;  %v13014_v31 = vld [vmem:[#allocation29_spill] sm:$0xff] }
 0x50b   : > { %v4531_v33 = vpop.f32.mrf.mxu0 }
 0x50c   : > { %v4441_v8 = vadd.f32 %v4440_v45, %v4352_v3  ;;  %v13015_v3 = vld [vmem:[#allocation165_spill] sm:$0xff] }
 0x50d   : > { %v4620_v53 = vpop.f32.mrf.mxu1 }
 0x50e   : > { %v4530_v14 = vadd.f32 %v4529_v32, %v4441_v8  ;;  %v7585_v32 = vld [vmem:[%s12415_s1 + $0x1d0] sm:$0xf] }
 0x510   : > { %v11480_v23 = vadd.f32 %v4618_v54, %v4530_v14  ;;  %v8543_v54 = vld [vmem:[%s12415_s1 + $0x298] sm:$0xf0] }
 0x511   : > { %v4353_v35 = vpop.f32.mrf.mxu2 }
 0x512   : > { %v4354_v4 = vadd.f32 %v4353_v35, %v13010_v51  ;;  %v4442_v17 = vpop.f32.mrf.mxu3  ;;  %v8519_v51 = vld [vmem:[%s12415_s1 + $0x1d8] sm:$0xf0] }
 0x513   : > { %v4534_v26 = vpop.f32.mrf.mxu0  ;;  %v7586_v35 = vor.u32 %v8519_v51, %v7585_v32 }
 0x514   : > { %v4443_v21 = vadd.f32 %v4442_v17, %v4354_v4  ;;  %v7681_v4 = vld [vmem:[%s12415_s1 + $0x290] sm:$0xf] }
 0x515   : > { %v4623_v41 = vpop.f32.mrf.mxu1  ;;  %v7682_v25 = vor.u32 %v8543_v54, %v7681_v4  ;;  %4993 = vmatpush.bf16.msra.mxu2 %v7586_v35  ;;  %v7777_v4 = vld [vmem:[%s12415_s1 + $0x350] sm:$0xf]  ;;  %v8567_v35 = vld [vmem:[%s12415_s1 + $0x358] sm:$0xf0] }
 0x516   : > { %v4532_v9 = vadd.f32 %v4531_v33, %v4443_v21  ;;  %4671 = vmatmul.bf16.gmra.mxu2 %v13011_v48  ;;  %4849 = vmatmul.bf16.gmra.mxu0 %v13012_v1  ;;  %v7778_v54 = vor.u32 %v8567_v35, %v7777_v4 }
 0x517   : > { %8269 = vmatmul.msk.bf16.gmra.mxu3 %vm2982_vm0, %v13013_v57 }
 0x518   : > { %4938 = vmatmul.bf16.gmra.mxu1 %v13014_v31  ;;  %v11500_v14 = vadd.f32 %v4620_v53, %v4532_v9  ;;  %5082 = vmatpush.bf16.msra.mxu3 %v7682_v25  ;;  %v13018_v25 = vld [vmem:[#allocation129_spill] sm:$0xff] }
 0x519   : > { %v4356_v17 = vpop.f32.mrf.mxu2  ;;  %5171 = vmatpush.bf16.msra.mxu0 %v7778_v54 }
 0x51a   : > { %v4357_v45 = vadd.f32 %v4356_v17, %v13015_v3  ;;  %v4445_v33 = vpop.f32.mrf.mxu3 }
 0x51b   : > { %v4536_v8 = vpop.f32.mrf.mxu0 }
 0x51c   : > { %v4446_v21 = vadd.f32 %v4445_v33, %v4357_v45 }
 0x51d   : > { %v4625_v1 = vpop.f32.mrf.mxu1 }
 0x51e   : > { %v4535_v31 = vadd.f32 %v4534_v26, %v4446_v21  ;;  %v13016_v26 = vld [vmem:[#allocation127_spill] sm:$0xff] }
 0x520   : > { %v11503_v57 = vadd.f32 %v4623_v41, %v4535_v31  ;;  %v13017_v41 = vld [vmem:[#allocation31_spill] sm:$0xff] }
 0x521   : > { %v4358_v32 = vpop.f32.mrf.mxu2 }
 0x522   : > { %v4359_v51 = vadd.f32 %v4358_v32, %v11177_v56  ;;  %v4447_v48 = vpop.f32.mrf.mxu3  ;;  %v13019_v56 = vld [vmem:[#allocation33_spill] sm:$0xff] }
 0x523   : > { %v4539_v61 = vpop.f32.mrf.mxu0 }
 0x524   : > { %v4448_v53 = vadd.f32 %v4447_v48, %v4359_v51  ;;  %v8591_v51 = vld [vmem:[%s12415_s1 + $0x418] sm:$0xf0] }
 0x525   : > { %v4628_v9 = vpop.f32.mrf.mxu1 }
 0x526   : > { %v4537_v17 = vadd.f32 %v4536_v8, %v4448_v53  ;;  %4676 = vmatmul.bf16.gmra.mxu2 %v13016_v26  ;;  %4854 = vmatmul.bf16.gmra.mxu0 %v13017_v41  ;;  %v7873_v8 = vld [vmem:[%s12415_s1 + $0x410] sm:$0xf]  ;;  %v7765_v26 = vld [vmem:[%s12415_s1 + $0x338] sm:$0xf] }
 0x527   : > { %8270 = vmatmul.msk.bf16.gmra.mxu3 %vm2982_vm0, %v13018_v25  ;;  %v7874_v53 = vor.u32 %v8591_v51, %v7873_v8  ;;  %v13021_v25 = vld [vmem:[#allocation6_spill] sm:$0xff]  ;;  %v13022_v8 = vld [vmem:[#allocation133_spill] sm:$0xff] }
 0x528   : > { %4943 = vmatmul.bf16.gmra.mxu1 %v13019_v56  ;;  %v11517_v48 = vadd.f32 %v4625_v1, %v4537_v17 }
 0x529   : > { %v4361_v3 = vpop.f32.mrf.mxu2  ;;  %5260 = vmatpush.bf16.msra.mxu1 %v7874_v53  ;;  %v8762_v53 = vld [vmem:[%s12416_s2] sm:$0x7] }
 0x52a   : > { %v4362_v45 = vadd.f32 %v4361_v3, %v11179_v49  ;;  %v4450_v33 = vpop.f32.mrf.mxu3 }
 0x52b   : > { %v4541_v21 = vpop.f32.mrf.mxu0 }
 0x52c   : > { %v4451_v31 = vadd.f32 %v4450_v33, %v4362_v45  ;;  %v13020_v33 = vld [vmem:[#allocation131_spill] sm:$0xff] }
 0x52d   : > { %v4630_v32 = vpop.f32.mrf.mxu1 }
 0x52e   : > { %v4540_v4 = vadd.f32 %v4539_v61, %v4451_v31  ;;  %v13023_v61 = vld [vmem:[#allocation7_spill] sm:$0xff] }
 0x530   : > { %v11526_v1 = vadd.f32 %v4628_v9, %v4540_v4 }
 0x531   : > { %v4363_v35 = vpop.f32.mrf.mxu2 }
 0x532   : > { %v4364_v49 = vadd.f32 %v4363_v35, %v11191_v0  ;;  %v4452_v54 = vpop.f32.mrf.mxu3 }
 0x533   : > { %v4820_v17 = vpop.f32.mrf.mxu0 }
 0x534   : > { %v4453_v41 = vadd.f32 %v4452_v54, %v4364_v49 }
 0x535   : > { %v4909_v56 = vpop.f32.mrf.mxu1 }
 0x536   : > { %v11529_v3 = vadd.f32 %v4909_v56, %v4820_v17  ;;  %v4542_v45 = vadd.f32 %v4541_v21, %v4453_v41  ;;  %4681 = vmatmul.bf16.gmra.mxu2 %v13020_v33  ;;  %4859 = vmatmul.bf16.gmra.mxu0 %v13021_v25  ;;  %v11542_v21 = vperm.slane %v8762_v53, 1  ;;  %v8763_v25 = vld [vmem:[%s10380_s12] sm:$0xff]  ;;  %v7669_v17 = vld [vmem:[%s12415_s1 + $0x278] sm:$0xf] }
 0x537   : > { %8271 = vmatmul.msk.bf16.gmra.mxu3 %vm2982_vm0, %v13022_v8  ;;  %v6161_v49 = vunpack.c.h.bf16 %v8763_v25 }
 0x538   : > { %4948 = vmatmul.bf16.gmra.mxu1 %v13023_v61  ;;  %v11536_v9 = vadd.f32 %v4630_v32, %v4542_v45  ;;  %v7573_v32 = vld [vmem:[%s12415_s1 + $0x1b8] sm:$0xf]  ;;  %v8540_v45 = vld [vmem:[%s12415_s1 + $0x280] sm:$0xf0] }
 0x539   : > { %v4642_v0 = vpop.f32.mrf.mxu2 }
 0x53a   : > { %v4643_v31 = vadd.f32 %v4642_v0, %v11200_v37  ;;  %v4731_v51 = vpop.f32.mrf.mxu3  ;;  %v8516_v37 = vld [vmem:[%s12415_s1 + $0x1c0] sm:$0xf0]  ;;  %v7670_v0 = vor.u32 %v8540_v45, %v7669_v17  ;;  %v13026_v45 = vld [vmem:[#allocation137_spill] sm:$0xff] }
 0x53b   : > { %v4822_v4 = vpop.f32.mrf.mxu0  ;;  %v7574_v56 = vor.u32 %v8516_v37, %v7573_v32 }
 0x53c   : > { %v4732_v35 = vadd.f32 %v4731_v51, %v4643_v31  ;;  %5083 = vmatpush.bf16.msra.mxu3 %v7670_v0 }
 0x53d   : > { %v4911_v54 = vpop.f32.mrf.mxu1  ;;  %4994 = vmatpush.bf16.msra.mxu2 %v7574_v56  ;;  %v13024_v56 = vld [vmem:[#allocation135_spill] sm:$0xff] }
 0x53e   : > { %v11554_v41 = vadd.f32 %v4911_v54, %v4822_v4  ;;  %v6001_v61 = vadd.f32 %v11542_v21, %v4732_v35  ;;  %v8764_v54 = vld [vmem:[%s10380_s12 + $0xc] sm:$0xff]  ;;  %v8564_v35 = vld [vmem:[%s12415_s1 + $0x340] sm:$0xf0] }
 0x53f   : > { %v6164_v32 = vunpack.c.h.bf16 %v8764_v54 }
 0x540   : > { %v6257_v31 = vadd.f32 %v6161_v49, %v6001_v61  ;;  %v13027_v61 = vld [vmem:[#allocation9_spill] sm:$0xff] }
 0x541   : > { %v4644_v51 = vpop.f32.mrf.mxu2 }
 0x542   : > { %v6353_v53 = vmax.f32 %v6257_v31, 0.0  ;;  %v4645_v25 = vadd.f32 %v4644_v51, %v11219_v38  ;;  %v4733_v8 = vpop.f32.mrf.mxu3  ;;  %v7766_v38 = vor.u32 %v8564_v35, %v7765_v26  ;;  %v7861_v35 = vld [vmem:[%s12415_s1 + $0x3f8] sm:$0xf] }
 0x543   : > { %v4825_v33 = vpop.f32.mrf.mxu0 }
 0x544   : > { %6449 = vst [vmem:[%s10424_s29 + $0x8] sm:$0xff] %v6353_v53  ;;  %v4734_v4 = vadd.f32 %v4733_v8, %v4645_v25  ;;  %v13025_v8 = vld [vmem:[#allocation8_spill] sm:$0xff]  ;;  %5172 = vmatpush.bf16.msra.mxu0 %v7766_v38 }
 0x545   : > { %v4914_v37 = vpop.f32.mrf.mxu1 }
 0x546   : > { %v11569_v49 = vadd.f32 %v4914_v37, %v4825_v33  ;;  %v6004_v17 = vadd.f32 %v11542_v21, %v4734_v4  ;;  %4686 = vmatmul.bf16.gmra.mxu2 %v13024_v56  ;;  %4864 = vmatmul.bf16.gmra.mxu0 %v13025_v8  ;;  %v8765_v4 = vld [vmem:[%s10380_s12 + $0x18] sm:$0xff] }
 0x547   : > { %8272 = vmatmul.msk.bf16.gmra.mxu3 %vm2982_vm0, %v13026_v45  ;;  %v6167_v54 = vunpack.c.h.bf16 %v8765_v4  ;;  %v8766_v4 = vld [vmem:[%s10380_s12 + $0x24] sm:$0xff] }
 0x548   : > { %4953 = vmatmul.bf16.gmra.mxu1 %v13027_v61  ;;  %v6260_v0 = vadd.f32 %v6164_v32, %v6004_v17  ;;  %v8588_v32 = vld [vmem:[%s12415_s1 + $0x400] sm:$0xf0]  ;;  %v6170_v45 = vunpack.c.h.bf16 %v8766_v4 }
 0x549   : > { %v4647_v31 = vpop.f32.mrf.mxu2 }
 0x54a   : > { %v6356_v51 = vmax.f32 %v6260_v0, 0.0  ;;  %v4648_v33 = vadd.f32 %v4647_v31, %v11222_v44  ;;  %v4736_v53 = vpop.f32.mrf.mxu3  ;;  %v7862_v44 = vor.u32 %v8588_v32, %v7861_v35  ;;  %v13030_v35 = vld [vmem:[#allocation141_spill] sm:$0xff] }
 0x54b   : > { %v4827_v25 = vpop.f32.mrf.mxu0 }
 0x54c   : > { %6452 = vst [vmem:[%s10424_s29 + $0x20] sm:$0xff] %v6356_v51  ;;  %v4737_v26 = vadd.f32 %v4736_v53, %v4648_v33  ;;  %5261 = vmatpush.bf16.msra.mxu1 %v7862_v44 }
 0x54d   : > { %v4916_v37 = vpop.f32.mrf.mxu1 }
 0x54e   : > { %v11586_v38 = vadd.f32 %v4916_v37, %v4827_v25  ;;  %v6007_v17 = vadd.f32 %v11542_v21, %v4737_v26  ;;  %v13028_v26 = vld [vmem:[#allocation139_spill] sm:$0xff] }
 0x550   : > { %v6263_v8 = vadd.f32 %v6167_v54, %v6007_v17  ;;  %v13029_v54 = vld [vmem:[#allocation10_spill] sm:$0xff] }
 0x551   : > { %v4649_v61 = vpop.f32.mrf.mxu2 }
 0x552   : > { %v6359_v0 = vmax.f32 %v6263_v8, 0.0  ;;  %v4650_v31 = vadd.f32 %v4649_v61, %v11235_v11  ;;  %v4738_v51 = vpop.f32.mrf.mxu3  ;;  %v13031_v11 = vld [vmem:[#allocation12_spill] sm:$0xff] }
 0x553   : > { %v4830_v33 = vpop.f32.mrf.mxu0 }
 0x554   : > { %6455 = vst [vmem:[%s10424_s29 + $0x38] sm:$0xff] %v6359_v0  ;;  %v4739_v53 = vadd.f32 %v4738_v51, %v4650_v31  ;;  %v8767_v31 = vld [vmem:[%s10380_s12 + $0x30] sm:$0xff] }
 0x555   : > { %v4919_v56 = vpop.f32.mrf.mxu1  ;;  %v6173_v51 = vunpack.c.h.bf16 %v8767_v31 }
 0x556   : > { %v11592_v25 = vadd.f32 %v4919_v56, %v4830_v33  ;;  %v6010_v37 = vadd.f32 %v11542_v21, %v4739_v53  ;;  %4691 = vmatmul.bf16.gmra.mxu2 %v13028_v26  ;;  %4869 = vmatmul.bf16.gmra.mxu0 %v13029_v54  ;;  %v7561_v53 = vld [vmem:[%s12415_s1 + $0x1a0] sm:$0xf]  ;;  %v8537_v54 = vld [vmem:[%s12415_s1 + $0x268] sm:$0xf0] }
 0x557   : > { %8273 = vmatmul.msk.bf16.gmra.mxu3 %vm2982_vm0, %v13030_v35  ;;  %v7753_v26 = vld [vmem:[%s12415_s1 + $0x320] sm:$0xf] }
 0x558   : > { %4958 = vmatmul.bf16.gmra.mxu1 %v13031_v11  ;;  %v6266_v32 = vadd.f32 %v6170_v45, %v6010_v37  ;;  %v8513_v45 = vld [vmem:[%s12415_s1 + $0x1a8] sm:$0xf0]  ;;  %v7657_v37 = vld [vmem:[%s12415_s1 + $0x260] sm:$0xf] }
 0x559   : > { %v4652_v44 = vpop.f32.mrf.mxu2 }
 0x55a   : > { %v6362_v17 = vmax.f32 %v6266_v32, 0.0  ;;  %v4653_v8 = vadd.f32 %v4652_v44, %v11244_v15  ;;  %v4741_v61 = vpop.f32.mrf.mxu3  ;;  %v7562_v15 = vor.u32 %v8513_v45, %v7561_v53  ;;  %v7658_v32 = vor.u32 %v8537_v54, %v7657_v37  ;;  %v8768_v53 = vld [vmem:[%s10380_s12 + $0x3c] sm:$0xff]  ;;  %v13032_v37 = vld [vmem:[#allocation143_spill] sm:$0xff] }
 0x55b   : > { %v4832_v0 = vpop.f32.mrf.mxu0  ;;  %v6176_v45 = vunpack.c.h.bf16 %v8768_v53  ;;  %v13033_v54 = vld [vmem:[#allocation14_spill] sm:$0xff] }
 0x55c   : > { %6458 = vst [vmem:[%s10424_s29 + $0x50] sm:$0xff] %v6362_v17  ;;  %v4742_v56 = vadd.f32 %v4741_v61, %v4653_v8  ;;  %4995 = vmatpush.bf16.msra.mxu2 %v7562_v15  ;;  %5084 = vmatpush.bf16.msra.mxu3 %v7658_v32  ;;  %v13035_v32 = vld [vmem:[#allocation16_spill] sm:$0xff] }
 0x55d   : > { %v4921_v33 = vpop.f32.mrf.mxu1 }
 0x55e   : > { %v11609_v4 = vadd.f32 %v4921_v33, %v4832_v0  ;;  %v6013_v11 = vadd.f32 %v11542_v21, %v4742_v56  ;;  %v8561_v56 = vld [vmem:[%s12415_s1 + $0x328] sm:$0xf0] }
 0x560   : > { %v6269_v44 = vadd.f32 %v6173_v51, %v6013_v11  ;;  %v13034_v11 = vld [vmem:[#allocation145_spill] sm:$0xff] }
 0x561   : > { %v4654_v17 = vpop.f32.mrf.mxu2 }
 0x562   : > { %v6365_v8 = vmax.f32 %v6269_v44, 0.0  ;;  %v4655_v61 = vadd.f32 %v4654_v17, %v11257_v46  ;;  %v4743_v0 = vpop.f32.mrf.mxu3  ;;  %v7754_v46 = vor.u32 %v8561_v56, %v7753_v26  ;;  %v7849_v56 = vld [vmem:[%s12415_s1 + $0x3e0] sm:$0xf] }
 0x563   : > { %v4835_v31 = vpop.f32.mrf.mxu0 }
 0x564   : > { %6461 = vst [vmem:[%s10424_s29 + $0x68] sm:$0xff] %v6365_v8  ;;  %v4744_v33 = vadd.f32 %v4743_v0, %v4655_v61  ;;  %5173 = vmatpush.bf16.msra.mxu0 %v7754_v46 }
 0x565   : > { %v4924_v35 = vpop.f32.mrf.mxu1 }
 0x566   : > { %v11627_v51 = vadd.f32 %v4924_v35, %v4835_v31  ;;  %v6016_v15 = vadd.f32 %v11542_v21, %v4744_v33  ;;  %4696 = vmatmul.bf16.gmra.mxu2 %v13032_v37  ;;  %4874 = vmatmul.bf16.gmra.mxu0 %v13033_v54  ;;  %v8769_v31 = vld [vmem:[%s10380_s12 + $0x48] sm:$0xff] }
 0x567   : > { %8274 = vmatmul.msk.bf16.gmra.mxu3 %vm2982_vm0, %v13034_v11  ;;  %v6179_v33 = vunpack.c.h.bf16 %v8769_v31  ;;  %v8770_v31 = vld [vmem:[%s10380_s12 + $0x54] sm:$0xff] }
 0x568   : > { %4963 = vmatmul.bf16.gmra.mxu1 %v13035_v32  ;;  %v6272_v44 = vadd.f32 %v6176_v45, %v6016_v15  ;;  %v8585_v45 = vld [vmem:[%s12415_s1 + $0x3e8] sm:$0xf0]  ;;  %v6182_v11 = vunpack.c.h.bf16 %v8770_v31 }
 0x569   : > { %v4657_v17 = vpop.f32.mrf.mxu2 }
 0x56a   : > { %v6368_v8 = vmax.f32 %v6272_v44, 0.0  ;;  %v4658_v35 = vadd.f32 %v4657_v17, %v11260_v55  ;;  %v4746_v61 = vpop.f32.mrf.mxu3  ;;  %v7850_v55 = vor.u32 %v8585_v45, %v7849_v56  ;;  %v13038_v56 = vld [vmem:[#allocation149_spill] sm:$0xff] }
 0x56b   : > { %v4837_v0 = vpop.f32.mrf.mxu0 }
 0x56c   : > { %6464 = vst [vmem:[%s10424_s29 + $0x80] sm:$0xff] %v6368_v8  ;;  %v4747_v26 = vadd.f32 %v4746_v61, %v4658_v35  ;;  %5262 = vmatpush.bf16.msra.mxu1 %v7850_v55 }
 0x56d   : > { %v4926_v53 = vpop.f32.mrf.mxu1 }
 0x56e   : > { %v11644_v46 = vadd.f32 %v4926_v53, %v4837_v0  ;;  %v6019_v15 = vadd.f32 %v11542_v21, %v4747_v26  ;;  %v13036_v26 = vld [vmem:[#allocation147_spill] sm:$0xff] }
 0x570   : > { %v6275_v54 = vadd.f32 %v6179_v33, %v6019_v15  ;;  %v13037_v33 = vld [vmem:[#allocation18_spill] sm:$0xff] }
 0x571   : > { %v4659_v32 = vpop.f32.mrf.mxu2 }
 0x572   : > { %v6371_v44 = vmax.f32 %v6275_v54, 0.0  ;;  %v4660_v17 = vadd.f32 %v4659_v32, %v11273_v36  ;;  %v4748_v8 = vpop.f32.mrf.mxu3  ;;  %v13039_v36 = vld [vmem:[#allocation20_spill] sm:$0xff] }
 0x573   : > { %v4840_v35 = vpop.f32.mrf.mxu0 }
 0x574   : > { %6467 = vst [vmem:[%s10424_s29 + $0x98] sm:$0xff] %v6371_v44  ;;  %v4749_v61 = vadd.f32 %v4748_v8, %v4660_v17  ;;  %v8771_v17 = vld [vmem:[%s10380_s12 + $0x60] sm:$0xff] }
 0x575   : > { %v4929_v37 = vpop.f32.mrf.mxu1  ;;  %v6185_v8 = vunpack.c.h.bf16 %v8771_v17 }
 0x576   : > { %v11650_v0 = vadd.f32 %v4929_v37, %v4840_v35  ;;  %v6022_v53 = vadd.f32 %v11542_v21, %v4749_v61  ;;  %4701 = vmatmul.bf16.gmra.mxu2 %v13036_v26  ;;  %4879 = vmatmul.bf16.gmra.mxu0 %v13037_v33  ;;  %v7549_v61 = vld [vmem:[%s12415_s1 + $0x188] sm:$0xf]  ;;  %v8534_v33 = vld [vmem:[%s12415_s1 + $0x250] sm:$0xf0] }
 0x577   : > { %8275 = vmatmul.msk.bf16.gmra.mxu3 %vm2982_vm0, %v13038_v56  ;;  %v7741_v26 = vld [vmem:[%s12415_s1 + $0x308] sm:$0xf] }
 0x578   : > { %4968 = vmatmul.bf16.gmra.mxu1 %v13039_v36  ;;  %v6278_v45 = vadd.f32 %v6182_v11, %v6022_v53  ;;  %v8510_v11 = vld [vmem:[%s12415_s1 + $0x190] sm:$0xf0]  ;;  %v7645_v53 = vld [vmem:[%s12415_s1 + $0x248] sm:$0xf] }
 0x579   : > { %v4662_v55 = vpop.f32.mrf.mxu2 }
 0x57a   : > { %v6374_v15 = vmax.f32 %v6278_v45, 0.0  ;;  %v4663_v54 = vadd.f32 %v4662_v55, %v11282_v19  ;;  %v4751_v32 = vpop.f32.mrf.mxu3  ;;  %v7550_v19 = vor.u32 %v8510_v11, %v7549_v61  ;;  %v7646_v45 = vor.u32 %v8534_v33, %v7645_v53  ;;  %v8772_v61 = vld [vmem:[%s10380_s12 + $0x6c] sm:$0xff]  ;;  %v13041_v33 = vld [vmem:[#allocation22_spill] sm:$0xff] }
 0x57b   : > { %v4842_v44 = vpop.f32.mrf.mxu0  ;;  %v6188_v11 = vunpack.c.h.bf16 %v8772_v61  ;;  %v13040_v53 = vld [vmem:[#allocation151_spill] sm:$0xff] }
 0x57c   : > { %6470 = vst [vmem:[%s10424_s29 + $0xb0] sm:$0xff] %v6374_v15  ;;  %v4752_v37 = vadd.f32 %v4751_v32, %v4663_v54  ;;  %4996 = vmatpush.bf16.msra.mxu2 %v7550_v19  ;;  %5085 = vmatpush.bf16.msra.mxu3 %v7646_v45  ;;  %v13043_v45 = vld [vmem:[#allocation24_spill] sm:$0xff] }
 0x57d   : > { %v4931_v35 = vpop.f32.mrf.mxu1 }
 0x57e   : > { %v11667_v31 = vadd.f32 %v4931_v35, %v4842_v44  ;;  %v6025_v36 = vadd.f32 %v11542_v21, %v4752_v37  ;;  %v8558_v37 = vld [vmem:[%s12415_s1 + $0x310] sm:$0xf0] }
 0x580   : > { %v6281_v55 = vadd.f32 %v6185_v8, %v6025_v36  ;;  %v13042_v36 = vld [vmem:[#allocation153_spill] sm:$0xff] }
 0x581   : > { %v4664_v15 = vpop.f32.mrf.mxu2 }
 0x582   : > { %v6377_v54 = vmax.f32 %v6281_v55, 0.0  ;;  %v4665_v32 = vadd.f32 %v4664_v15, %v11295_v22  ;;  %v4753_v44 = vpop.f32.mrf.mxu3  ;;  %v7742_v22 = vor.u32 %v8558_v37, %v7741_v26  ;;  %v7837_v37 = vld [vmem:[%s12415_s1 + $0x3c8] sm:$0xf] }
 0x583   : > { %v4845_v17 = vpop.f32.mrf.mxu0 }
 0x584   : > { %6473 = vst [vmem:[%s10424_s29 + $0xc8] sm:$0xff] %v6377_v54  ;;  %v4754_v35 = vadd.f32 %v4753_v44, %v4665_v32  ;;  %5174 = vmatpush.bf16.msra.mxu0 %v7742_v22 }
 0x585   : > { %v4934_v56 = vpop.f32.mrf.mxu1 }
 0x586   : > { %v11685_v8 = vadd.f32 %v4934_v56, %v4845_v17  ;;  %v6028_v19 = vadd.f32 %v11542_v21, %v4754_v35  ;;  %4706 = vmatmul.bf16.gmra.mxu2 %v13040_v53  ;;  %4884 = vmatmul.bf16.gmra.mxu0 %v13041_v33  ;;  %v8773_v17 = vld [vmem:[%s10380_s12 + $0x78] sm:$0xff] }
 0x587   : > { %8276 = vmatmul.msk.bf16.gmra.mxu3 %vm2982_vm0, %v13042_v36  ;;  %v6191_v35 = vunpack.c.h.bf16 %v8773_v17  ;;  %v8774_v17 = vld [vmem:[%s10380_s12 + $0x84] sm:$0xff] }
 0x588   : > { %4973 = vmatmul.bf16.gmra.mxu1 %v13043_v45  ;;  %v6284_v55 = vadd.f32 %v6188_v11, %v6028_v19  ;;  %v8582_v11 = vld [vmem:[%s12415_s1 + $0x3d0] sm:$0xf0]  ;;  %v6194_v36 = vunpack.c.h.bf16 %v8774_v17 }
 0x589   : > { %v4667_v15 = vpop.f32.mrf.mxu2 }
 0x58a   : > { %v6380_v54 = vmax.f32 %v6284_v55, 0.0  ;;  %v4668_v56 = vadd.f32 %v4667_v15, %v11298_v29  ;;  %v4756_v32 = vpop.f32.mrf.mxu3  ;;  %v7838_v29 = vor.u32 %v8582_v11, %v7837_v37  ;;  %v13046_v37 = vld [vmem:[#allocation157_spill] sm:$0xff] }
 0x58b   : > { %v4847_v44 = vpop.f32.mrf.mxu0 }
 0x58c   : > { %6476 = vst [vmem:[%s10424_s29 + $0xe0] sm:$0xff] %v6380_v54  ;;  %v4757_v26 = vadd.f32 %v4756_v32, %v4668_v56  ;;  %5263 = vmatpush.bf16.msra.mxu1 %v7838_v29 }
 0x58d   : > { %v4936_v61 = vpop.f32.mrf.mxu1 }
 0x58e   : > { %v11702_v22 = vadd.f32 %v4936_v61, %v4847_v44  ;;  %v6031_v19 = vadd.f32 %v11542_v21, %v4757_v26  ;;  %v13044_v26 = vld [vmem:[#allocation155_spill] sm:$0xff] }
 0x590   : > { %v6287_v33 = vadd.f32 %v6191_v35, %v6031_v19  ;;  %v13045_v35 = vld [vmem:[#allocation26_spill] sm:$0xff] }
 0x591   : > { %v4669_v45 = vpop.f32.mrf.mxu2 }
 0x592   : > { %v6383_v55 = vmax.f32 %v6287_v33, 0.0  ;;  %v4670_v15 = vadd.f32 %v4669_v45, %v11317_v5  ;;  %v4758_v54 = vpop.f32.mrf.mxu3  ;;  %v13047_v5 = vld [vmem:[#allocation28_spill] sm:$0xff] }
 0x593   : > { %v4850_v56 = vpop.f32.mrf.mxu0 }
 0x594   : > { %6479 = vst [vmem:[%s10424_s29 + $0xf8] sm:$0xff] %v6383_v55  ;;  %v4759_v32 = vadd.f32 %v4758_v54, %v4670_v15  ;;  %v8775_v15 = vld [vmem:[%s10380_s12 + $0x90] sm:$0xff] }
 0x595   : > { %v4939_v53 = vpop.f32.mrf.mxu1  ;;  %v6197_v54 = vunpack.c.h.bf16 %v8775_v15 }
 0x596   : > { %v11708_v44 = vadd.f32 %v4939_v53, %v4850_v56  ;;  %v6034_v61 = vadd.f32 %v11542_v21, %v4759_v32  ;;  %4711 = vmatmul.bf16.gmra.mxu2 %v13044_v26  ;;  %4889 = vmatmul.bf16.gmra.mxu0 %v13045_v35  ;;  %v8017_v32 = vld [vmem:[%s12415_s1 + $0x530] sm:$0xf]  ;;  %v8651_v35 = vld [vmem:[%s12415_s1 + $0x5f8] sm:$0xf0] }
 0x597   : > { %8277 = vmatmul.msk.bf16.gmra.mxu3 %vm2982_vm0, %v13046_v37  ;;  %v8209_v26 = vld [vmem:[%s12415_s1 + $0x6b0] sm:$0xf] }
 0x598   : > { %4978 = vmatmul.bf16.gmra.mxu1 %v13047_v5  ;;  %v6290_v11 = vadd.f32 %v6194_v36, %v6034_v61  ;;  %v8627_v36 = vld [vmem:[%s12415_s1 + $0x538] sm:$0xf0]  ;;  %v8113_v61 = vld [vmem:[%s12415_s1 + $0x5f0] sm:$0xf] }
 0x599   : > { %v4672_v29 = vpop.f32.mrf.mxu2 }
 0x59a   : > { %v6386_v19 = vmax.f32 %v6290_v11, 0.0  ;;  %v4673_v33 = vadd.f32 %v4672_v29, %v11326_v34  ;;  %v4761_v45 = vpop.f32.mrf.mxu3  ;;  %v8018_v34 = vor.u32 %v8627_v36, %v8017_v32  ;;  %v8114_v11 = vor.u32 %v8651_v35, %v8113_v61  ;;  %v8776_v32 = vld [vmem:[%s10380_s12 + $0x9c] sm:$0xff]  ;;  %v13048_v61 = vld [vmem:[#allocation159_spill] sm:$0xff] }
 0x59b   : > { %v4852_v55 = vpop.f32.mrf.mxu0  ;;  %v6200_v36 = vunpack.c.h.bf16 %v8776_v32  ;;  %v13049_v35 = vld [vmem:[#allocation30_spill] sm:$0xff] }
 0x59c   : > { %6482 = vst [vmem:[%s10424_s29 + $0x110] sm:$0xff] %v6386_v19  ;;  %v4762_v53 = vadd.f32 %v4761_v45, %v4673_v33  ;;  %5345 = vmatpush.bf16.msrb.mxu2 %v8018_v34  ;;  %5434 = vmatpush.bf16.msrb.mxu3 %v8114_v11  ;;  %v13051_v11 = vld [vmem:[#allocation32_spill] sm:$0xff] }
 0x59d   : > { %v4941_v56 = vpop.f32.mrf.mxu1 }
 0x59e   : > { %v11725_v17 = vadd.f32 %v4941_v56, %v4852_v55  ;;  %v6037_v5 = vadd.f32 %v11542_v21, %v4762_v53  ;;  %v8675_v53 = vld [vmem:[%s12415_s1 + $0x6b8] sm:$0xf0] }
 0x5a0   : > { %v6293_v29 = vadd.f32 %v6197_v54, %v6037_v5  ;;  %v13050_v5 = vld [vmem:[#allocation161_spill] sm:$0xff] }
 0x5a1   : > { %v4674_v19 = vpop.f32.mrf.mxu2 }
 0x5a2   : > { %v6389_v33 = vmax.f32 %v6293_v29, 0.0  ;;  %v4675_v45 = vadd.f32 %v4674_v19, %v11339_v47  ;;  %v4763_v55 = vpop.f32.mrf.mxu3  ;;  %v8210_v47 = vor.u32 %v8675_v53, %v8209_v26  ;;  %v8245_v53 = vld [vmem:[%s12415_s1 + $0x6f8] sm:$0xf] }
 0x5a3   : > { %v4855_v15 = vpop.f32.mrf.mxu0 }
 0x5a4   : > { %6485 = vst [vmem:[%s10424_s29 + $0x128] sm:$0xff] %v6389_v33  ;;  %v4764_v56 = vadd.f32 %v4763_v55, %v4675_v45  ;;  %5523 = vmatpush.bf16.msrb.mxu0 %v8210_v47 }
 0x5a5   : > { %v4944_v37 = vpop.f32.mrf.mxu1 }
 0x5a6   : > { %v11743_v54 = vadd.f32 %v4944_v37, %v4855_v15  ;;  %v6040_v34 = vadd.f32 %v11542_v21, %v4764_v56  ;;  %4716 = vmatmul.bf16.gmra.mxu2 %v13048_v61  ;;  %4894 = vmatmul.bf16.gmra.mxu0 %v13049_v35  ;;  %v8777_v15 = vld [vmem:[%s10380_s12 + $0xa8] sm:$0xff] }
 0x5a7   : > { %8278 = vmatmul.msk.bf16.gmra.mxu3 %vm2982_vm0, %v13050_v5  ;;  %v6203_v56 = vunpack.c.h.bf16 %v8777_v15  ;;  %v8778_v15 = vld [vmem:[%s10380_s12 + $0xb4] sm:$0xff] }
 0x5a8   : > { %4983 = vmatmul.bf16.gmra.mxu1 %v13051_v11  ;;  %v6296_v29 = vadd.f32 %v6200_v36, %v6040_v34  ;;  %v8684_v36 = vld [vmem:[%s12415_s1 + $0x700] sm:$0xf0]  ;;  %v6206_v5 = vunpack.c.h.bf16 %v8778_v15 }
 0x5a9   : > { %v4677_v19 = vpop.f32.mrf.mxu2 }
 0x5aa   : > { %v6392_v33 = vmax.f32 %v6296_v29, 0.0  ;;  %v4678_v37 = vadd.f32 %v4677_v19, %v11342_v42  ;;  %v4766_v45 = vpop.f32.mrf.mxu3  ;;  %v8246_v42 = vor.u32 %v8684_v36, %v8245_v53  ;;  %v13054_v53 = vld [vmem:[#allocation36_spill] sm:$0xff] }
 0x5ab   : > { %v4857_v55 = vpop.f32.mrf.mxu0 }
 0x5ac   : > { %6488 = vst [vmem:[%s10424_s29 + $0x140] sm:$0xff] %v6392_v33  ;;  %v4767_v26 = vadd.f32 %v4766_v45, %v4678_v37  ;;  %5617 = vmatpush.bf16.msrb.mxu1 %v8246_v42 }
 0x5ad   : > { %v4946_v32 = vpop.f32.mrf.mxu1 }
 0x5ae   : > { %v11760_v47 = vadd.f32 %v4946_v32, %v4857_v55  ;;  %v6043_v34 = vadd.f32 %v11542_v21, %v4767_v26  ;;  %v13052_v26 = vld [vmem:[#allocation34_spill] sm:$0xff] }
 0x5b0   : > { %v6299_v35 = vadd.f32 %v6203_v56, %v6043_v34  ;;  %v13053_v56 = vld [vmem:[#allocation35_spill] sm:$0xff] }
 0x5b1   : > { %v4679_v11 = vpop.f32.mrf.mxu2 }
 0x5b2   : > { %v6395_v29 = vmax.f32 %v6299_v35, 0.0  ;;  %v4680_v19 = vadd.f32 %v4679_v11, %v11362_v24  ;;  %v4768_v33 = vpop.f32.mrf.mxu3  ;;  %v13055_v24 = vld [vmem:[#allocation37_spill] sm:$0xff] }
 0x5b3   : > { %v4860_v37 = vpop.f32.mrf.mxu0 }
 0x5b4   : > { %6491 = vst [vmem:[%s10424_s29 + $0x158] sm:$0xff] %v6395_v29  ;;  %v4769_v45 = vadd.f32 %v4768_v33, %v4680_v19  ;;  %v8779_v19 = vld [vmem:[%s10380_s12 + $0xc0] sm:$0xff] }
 0x5b5   : > { %v4949_v61 = vpop.f32.mrf.mxu1  ;;  %v6209_v33 = vunpack.c.h.bf16 %v8779_v19  ;;  %v8780_v19 = vld [vmem:[%s10380_s12 + $0xcc] sm:$0xff] }
 0x5b6   : > { %v11766_v55 = vadd.f32 %v4949_v61, %v4860_v37  ;;  %v6046_v32 = vadd.f32 %v11542_v21, %v4769_v45  ;;  %4997 = vmatmul.bf16.vlgmr.msra.gmra.mxu2 %v13052_v26  ;;  %5175 = vmatmul.bf16.vlgmr.msra.gmra.mxu0 %v13053_v56  ;;  %v8005_v45 = vld [vmem:[%s12415_s1 + $0x518] sm:$0xf]  ;;  %v8648_v26 = vld [vmem:[%s12415_s1 + $0x5e0] sm:$0xf0] }
 0x5b7   : > { %5086 = vmatmul.bf16.vlgmr.msra.gmra.mxu3 %v13054_v53 }
 0x5b8   : > { %5264 = vmatmul.bf16.vlgmr.msra.gmra.mxu1 %v13055_v24  ;;  %v6302_v36 = vadd.f32 %v6206_v5, %v6046_v32  ;;  %v8624_v5 = vld [vmem:[%s12415_s1 + $0x520] sm:$0xf0]  ;;  %v8101_v32 = vld [vmem:[%s12415_s1 + $0x5d8] sm:$0xf] }
 0x5b9   : > { %v4682_v42 = vpop.f32.mrf.mxu2  ;;  %v8102_v53 = vor.u32 %v8648_v26, %v8101_v32  ;;  %v13056_v32 = vld [vmem:[#allocation38_spill] sm:$0xff]  ;;  %v13057_v26 = vld [vmem:[#allocation39_spill] sm:$0xff] }
 0x5ba   : > { %v6398_v34 = vmax.f32 %v6302_v36, 0.0  ;;  %v4683_v35 = vadd.f32 %v4682_v42, %v11371_v12  ;;  %v4771_v11 = vpop.f32.mrf.mxu3  ;;  %v8006_v12 = vor.u32 %v8624_v5, %v8005_v45  ;;  %v8197_v5 = vld [vmem:[%s12415_s1 + $0x698] sm:$0xf] }
 0x5bb   : > { %v4862_v29 = vpop.f32.mrf.mxu0  ;;  %5435 = vmatpush.bf16.msrb.mxu3 %v8102_v53  ;;  %v13059_v53 = vld [vmem:[#allocation41_spill] sm:$0xff] }
 0x5bc   : > { %6494 = vst [vmem:[%s10424_s29 + $0x170] sm:$0xff] %v6398_v34  ;;  %v4772_v61 = vadd.f32 %v4771_v11, %v4683_v35  ;;  %5346 = vmatpush.bf16.msrb.mxu2 %v8006_v12 }
 0x5bd   : > { %v4951_v37 = vpop.f32.mrf.mxu1 }
 0x5be   : > { %v11782_v15 = vadd.f32 %v4951_v37, %v4862_v29  ;;  %v6049_v56 = vadd.f32 %v11542_v21, %v4772_v61  ;;  %v6212_v37 = vunpack.c.h.bf16 %v8780_v19  ;;  %v8672_v61 = vld [vmem:[%s12415_s1 + $0x6a0] sm:$0xf0]  ;;  %v8781_v19 = vld [vmem:[%s10380_s12 + $0xd8] sm:$0xff] }
 0x5c0   : > { %v6305_v24 = vadd.f32 %v6209_v33, %v6049_v56  ;;  %v13058_v56 = vld [vmem:[#allocation40_spill] sm:$0xff] }
 0x5c1   : > { %v4684_v36 = vpop.f32.mrf.mxu2 }
 0x5c2   : > { %v6401_v42 = vmax.f32 %v6305_v24, 0.0  ;;  %v4685_v34 = vadd.f32 %v4684_v36, %v11385_v2  ;;  %v4773_v35 = vpop.f32.mrf.mxu3  ;;  %v8198_v2 = vor.u32 %v8672_v61, %v8197_v5 }
 0x5c3   : > { %v4865_v11 = vpop.f32.mrf.mxu0 }
 0x5c4   : > { %6497 = vst [vmem:[%s10424_s29 + $0x188] sm:$0xff] %v6401_v42  ;;  %v4774_v29 = vadd.f32 %v4773_v35, %v4685_v34  ;;  %5524 = vmatpush.bf16.msrb.mxu0 %v8198_v2 }
 0x5c5   : > { %v4954_v45 = vpop.f32.mrf.mxu1 }
 0x5c6   : > { %v11800_v33 = vadd.f32 %v4954_v45, %v4865_v11  ;;  %v6052_v12 = vadd.f32 %v11542_v21, %v4774_v29  ;;  %5002 = vmatmul.bf16.gmra.mxu2 %v13056_v32  ;;  %5180 = vmatmul.bf16.gmra.mxu0 %v13057_v26  ;;  %v6215_v45 = vunpack.c.h.bf16 %v8781_v19  ;;  %v13062_v19 = vld [vmem:[#allocation44_spill] sm:$0xff] }
 0x5c7   : > { %5091 = vmatmul.bf16.gmra.mxu3 %v13058_v56 }
 0x5c8   : > { %5269 = vmatmul.bf16.gmra.mxu1 %v13059_v53  ;;  %v6308_v24 = vadd.f32 %v6212_v37, %v6052_v12 }
 0x5c9   : > { %v4687_v36 = vpop.f32.mrf.mxu2 }
 0x5ca   : > { %v6404_v42 = vmax.f32 %v6308_v24, 0.0  ;;  %v4688_v34 = vadd.f32 %v4687_v36, %v11388_v10  ;;  %v4776_v35 = vpop.f32.mrf.mxu3  ;;  %v8782_v24 = vld [vmem:[%s10380_s12 + $0xe4] sm:$0xff] }
 0x5cb   : > { %v4867_v11 = vpop.f32.mrf.mxu0  ;;  %v6218_v36 = vunpack.c.h.bf16 %v8782_v24  ;;  %v7993_v24 = vld [vmem:[%s12415_s1 + $0x500] sm:$0xf] }
 0x5cc   : > { %6500 = vst [vmem:[%s10424_s29 + $0x1a0] sm:$0xff] %v6404_v42  ;;  %v4777_v29 = vadd.f32 %v4776_v35, %v4688_v34 }
 0x5cd   : > { %v4956_v5 = vpop.f32.mrf.mxu1 }
 0x5ce   : > { %v11810_v61 = vadd.f32 %v4956_v5, %v4867_v11  ;;  %v6055_v32 = vadd.f32 %v11542_v21, %v4777_v29  ;;  %v13060_v11 = vld [vmem:[#allocation42_spill] sm:$0xff]  ;;  %v13061_v29 = vld [vmem:[#allocation43_spill] sm:$0xff] }
 0x5d0   : > { %v6311_v26 = vadd.f32 %v6215_v45, %v6055_v32 }
 0x5d1   : > { %v4689_v37 = vpop.f32.mrf.mxu2 }
 0x5d2   : > { %v6407_v2 = vmax.f32 %v6311_v26, 0.0  ;;  %v4690_v12 = vadd.f32 %v4689_v37, %v11408_v62  ;;  %v4778_v56 = vpop.f32.mrf.mxu3  ;;  %v13063_v62 = vld [vmem:[#allocation45_spill] sm:$0xff] }
 0x5d3   : > { %v4870_v10 = vpop.f32.mrf.mxu0 }
 0x5d4   : > { %6503 = vst [vmem:[%s10424_s29 + $0x1b8] sm:$0xff] %v6407_v2  ;;  %v4779_v53 = vadd.f32 %v4778_v56, %v4690_v12  ;;  %v8783_v56 = vld [vmem:[%s10380_s12 + $0xf0] sm:$0xff] }
 0x5d5   : > { %v4959_v42 = vpop.f32.mrf.mxu1 }
 0x5d6   : > { %v11816_v34 = vadd.f32 %v4959_v42, %v4870_v10  ;;  %v6058_v35 = vadd.f32 %v11542_v21, %v4779_v53  ;;  %5007 = vmatmul.bf16.gmra.mxu2 %v13060_v11  ;;  %5185 = vmatmul.bf16.gmra.mxu0 %v13061_v29  ;;  %v6221_v10 = vunpack.c.h.bf16 %v8783_v56  ;;  %v8645_v11 = vld [vmem:[%s12415_s1 + $0x5c8] sm:$0xf0]  ;;  %v8784_v56 = vld [vmem:[%s10380_s12 + $0xfc] sm:$0xff] }
 0x5d7   : > { %5096 = vmatmul.bf16.gmra.mxu3 %v13062_v19 }
 0x5d8   : > { %5274 = vmatmul.bf16.gmra.mxu1 %v13063_v62  ;;  %v6314_v45 = vadd.f32 %v6218_v36, %v6058_v35  ;;  %v8621_v36 = vld [vmem:[%s12415_s1 + $0x508] sm:$0xf0]  ;;  %v8089_v35 = vld [vmem:[%s12415_s1 + $0x5c0] sm:$0xf] }
 0x5d9   : > { %v4692_v5 = vpop.f32.mrf.mxu2  ;;  %v8090_v19 = vor.u32 %v8645_v11, %v8089_v35  ;;  %v13064_v35 = vld [vmem:[#allocation46_spill] sm:$0xff]  ;;  %v13065_v11 = vld [vmem:[#allocation47_spill] sm:$0xff] }
 0x5da   : > { %v6410_v32 = vmax.f32 %v6314_v45, 0.0  ;;  %v4693_v26 = vadd.f32 %v4692_v5, %v11417_v43  ;;  %v4781_v37 = vpop.f32.mrf.mxu3  ;;  %v7994_v43 = vor.u32 %v8621_v36, %v7993_v24  ;;  %v8185_v36 = vld [vmem:[%s12415_s1 + $0x680] sm:$0xf] }
 0x5db   : > { %v4872_v2 = vpop.f32.mrf.mxu0  ;;  %5436 = vmatpush.bf16.msrb.mxu3 %v8090_v19  ;;  %v13067_v19 = vld [vmem:[#allocation49_spill] sm:$0xff] }
 0x5dc   : > { %6506 = vst [vmem:[%s10424_s29 + $0x1d0] sm:$0xff] %v6410_v32  ;;  %v4782_v12 = vadd.f32 %v4781_v37, %v4693_v26  ;;  %5347 = vmatpush.bf16.msrb.mxu2 %v7994_v43 }
 0x5dd   : > { %v4961_v53 = vpop.f32.mrf.mxu1 }
 0x5de   : > { %v11832_v42 = vadd.f32 %v4961_v53, %v4872_v2  ;;  %v6061_v29 = vadd.f32 %v11542_v21, %v4782_v12  ;;  %v6224_v53 = vunpack.c.h.bf16 %v8784_v56  ;;  %v8669_v12 = vld [vmem:[%s12415_s1 + $0x688] sm:$0xf0] }
 0x5df   : > { %v8785_v56 = vld [vmem:[%s10380_s12 + $0x108] sm:$0xff] }
 0x5e0   : > { %v6317_v62 = vadd.f32 %v6221_v10, %v6061_v29  ;;  %v13066_v29 = vld [vmem:[#allocation48_spill] sm:$0xff] }
 0x5e1   : > { %v4694_v45 = vpop.f32.mrf.mxu2 }
 0x5e2   : > { %v6413_v5 = vmax.f32 %v6317_v62, 0.0  ;;  %v4695_v32 = vadd.f32 %v4694_v45, %v11431_v13  ;;  %v4783_v26 = vpop.f32.mrf.mxu3  ;;  %v8186_v13 = vor.u32 %v8669_v12, %v8185_v36 }
 0x5e3   : > { %v4875_v37 = vpop.f32.mrf.mxu0 }
 0x5e4   : > { %6509 = vst [vmem:[%s10424_s29 + $0x1e8] sm:$0xff] %v6413_v5  ;;  %v4784_v2 = vadd.f32 %v4783_v26, %v4695_v32  ;;  %5525 = vmatpush.bf16.msrb.mxu0 %v8186_v13 }
 0x5e5   : > { %v4964_v24 = vpop.f32.mrf.mxu1 }
 0x5e6   : > { %v11850_v10 = vadd.f32 %v4964_v24, %v4875_v37  ;;  %v6064_v43 = vadd.f32 %v11542_v21, %v4784_v2  ;;  %5012 = vmatmul.bf16.gmra.mxu2 %v13064_v35  ;;  %5190 = vmatmul.bf16.gmra.mxu0 %v13065_v11  ;;  %v6227_v24 = vunpack.c.h.bf16 %v8785_v56  ;;  %v13070_v56 = vld [vmem:[#allocation52_spill] sm:$0xff] }
 0x5e7   : > { %5101 = vmatmul.bf16.gmra.mxu3 %v13066_v29 }
 0x5e8   : > { %5279 = vmatmul.bf16.gmra.mxu1 %v13067_v19  ;;  %v6320_v62 = vadd.f32 %v6224_v53, %v6064_v43 }
 0x5e9   : > { %v4697_v45 = vpop.f32.mrf.mxu2 }
 0x5ea   : > { %v6416_v5 = vmax.f32 %v6320_v62, 0.0  ;;  %v4698_v32 = vadd.f32 %v4697_v45, %v11434_v40  ;;  %v4786_v26 = vpop.f32.mrf.mxu3  ;;  %v8786_v62 = vld [vmem:[%s10380_s12 + $0x114] sm:$0xff] }
 0x5eb   : > { %v4877_v37 = vpop.f32.mrf.mxu0  ;;  %v6230_v45 = vunpack.c.h.bf16 %v8786_v62  ;;  %v7981_v62 = vld [vmem:[%s12415_s1 + $0x4e8] sm:$0xf] }
 0x5ec   : > { %6512 = vst [vmem:[%s10424_s29 + $0x200] sm:$0xff] %v6416_v5  ;;  %v4787_v2 = vadd.f32 %v4786_v26, %v4698_v32 }
 0x5ed   : > { %v4966_v36 = vpop.f32.mrf.mxu1 }
 0x5ee   : > { %v11860_v12 = vadd.f32 %v4966_v36, %v4877_v37  ;;  %v6067_v35 = vadd.f32 %v11542_v21, %v4787_v2  ;;  %v13068_v37 = vld [vmem:[#allocation50_spill] sm:$0xff]  ;;  %v13069_v2 = vld [vmem:[#allocation51_spill] sm:$0xff] }
 0x5f0   : > { %v6323_v11 = vadd.f32 %v6227_v24, %v6067_v35 }
 0x5f1   : > { %v4699_v53 = vpop.f32.mrf.mxu2 }
 0x5f2   : > { %v6419_v13 = vmax.f32 %v6323_v11, 0.0  ;;  %v4700_v43 = vadd.f32 %v4699_v53, %v11454_v7  ;;  %v4788_v29 = vpop.f32.mrf.mxu3  ;;  %v13071_v7 = vld [vmem:[#allocation53_spill] sm:$0xff] }
 0x5f3   : > { %v4880_v40 = vpop.f32.mrf.mxu0 }
 0x5f4   : > { %6515 = vst [vmem:[%s10424_s29 + $0x218] sm:$0xff] %v6419_v13  ;;  %v4789_v19 = vadd.f32 %v4788_v29, %v4700_v43  ;;  %v8787_v29 = vld [vmem:[%s10380_s12 + $0x120] sm:$0xff] }
 0x5f5   : > { %v4969_v5 = vpop.f32.mrf.mxu1 }
 0x5f6   : > { %v11866_v32 = vadd.f32 %v4969_v5, %v4880_v40  ;;  %v6070_v26 = vadd.f32 %v11542_v21, %v4789_v19  ;;  %5017 = vmatmul.bf16.gmra.mxu2 %v13068_v37  ;;  %5195 = vmatmul.bf16.gmra.mxu0 %v13069_v2  ;;  %v6233_v40 = vunpack.c.h.bf16 %v8787_v29  ;;  %v8618_v5 = vld [vmem:[%s12415_s1 + $0x4f0] sm:$0xf0]  ;;  %v8233_v2 = vld [vmem:[%s12415_s1 + $0x6e0] sm:$0xf] }
 0x5f7   : > { %5106 = vmatmul.bf16.gmra.mxu3 %v13070_v56  ;;  %v8642_v37 = vld [vmem:[%s12415_s1 + $0x5b0] sm:$0xf0] }
 0x5f8   : > { %5284 = vmatmul.bf16.gmra.mxu1 %v13071_v7  ;;  %v6326_v24 = vadd.f32 %v6230_v45, %v6070_v26  ;;  %v7982_v26 = vor.u32 %v8618_v5, %v7981_v62  ;;  %v8788_v5 = vld [vmem:[%s10380_s12 + $0x12c] sm:$0xff] }
 0x5f9   : > { %v4702_v36 = vpop.f32.mrf.mxu2 }
 0x5fa   : > { %v6422_v35 = vmax.f32 %v6326_v24, 0.0  ;;  %v4703_v11 = vadd.f32 %v4702_v36, %v11463_v58  ;;  %v4791_v53 = vpop.f32.mrf.mxu3  ;;  %v8077_v58 = vld [vmem:[%s12415_s1 + $0x5a8] sm:$0xf]  ;;  %v8681_v24 = vld [vmem:[%s12415_s1 + $0x6e8] sm:$0xf0]  ;;  %5348 = vmatpush.bf16.msrb.mxu2 %v7982_v26 }
 0x5fb   : > { %v4882_v13 = vpop.f32.mrf.mxu0  ;;  %v8078_v7 = vor.u32 %v8642_v37, %v8077_v58  ;;  %v8234_v36 = vor.u32 %v8681_v24, %v8233_v2  ;;  %v8173_v37 = vld [vmem:[%s12415_s1 + $0x668] sm:$0xf]  ;;  %v13074_v24 = vld [vmem:[#allocation56_spill] sm:$0xff] }
 0x5fc   : > { %6518 = vst [vmem:[%s10424_s29 + $0x230] sm:$0xff] %v6422_v35  ;;  %v4792_v43 = vadd.f32 %v4791_v53, %v4703_v11 }
 0x5fd   : > { %v4971_v19 = vpop.f32.mrf.mxu1  ;;  %5437 = vmatpush.bf16.msrb.mxu3 %v8078_v7  ;;  %5618 = vmatpush.bf16.msrb.mxu1 %v8234_v36  ;;  %v13073_v7 = vld [vmem:[#allocation55_spill] sm:$0xff]  ;;  %v13075_v36 = vld [vmem:[#allocation57_spill] sm:$0xff] }
 0x5fe   : > { %v11882_v45 = vadd.f32 %v4971_v19, %v4882_v13  ;;  %v6073_v56 = vadd.f32 %v11542_v21, %v4792_v43  ;;  %v6236_v43 = vunpack.c.h.bf16 %v8788_v5  ;;  %v8789_v5 = vld [vmem:[%s10380_s12 + $0x138] sm:$0xff] }
 0x600   : > { %v6329_v35 = vadd.f32 %v6233_v40, %v6073_v56  ;;  %v8666_v40 = vld [vmem:[%s12415_s1 + $0x670] sm:$0xf0]  ;;  %v13072_v56 = vld [vmem:[#allocation54_spill] sm:$0xff] }
 0x601   : > { %v4704_v11 = vpop.f32.mrf.mxu2 }
 0x602   : > { %v6425_v53 = vmax.f32 %v6329_v35, 0.0  ;;  %v4705_v13 = vadd.f32 %v4704_v11, %v11477_v60  ;;  %v4793_v29 = vpop.f32.mrf.mxu3  ;;  %v8174_v60 = vor.u32 %v8666_v40, %v8173_v37 }
 0x603   : > { %v4885_v19 = vpop.f32.mrf.mxu0 }
 0x604   : > { %6521 = vst [vmem:[%s10424_s29 + $0x248] sm:$0xff] %v6425_v53  ;;  %v4794_v62 = vadd.f32 %v4793_v29, %v4705_v13  ;;  %5526 = vmatpush.bf16.msrb.mxu0 %v8174_v60 }
 0x605   : > { %v4974_v58 = vpop.f32.mrf.mxu1 }
 0x606   : > { %v11906_v26 = vadd.f32 %v4974_v58, %v4885_v19  ;;  %v6076_v2 = vadd.f32 %v11542_v21, %v4794_v62  ;;  %5022 = vmatmul.bf16.gmra.mxu2 %v13072_v56  ;;  %5200 = vmatmul.bf16.gmra.mxu0 %v13073_v7  ;;  %v6239_v58 = vunpack.c.h.bf16 %v8789_v5  ;;  %v13078_v5 = vld [vmem:[#allocation60_spill] sm:$0xff] }
 0x607   : > { %5111 = vmatmul.bf16.gmra.mxu3 %v13074_v24 }
 0x608   : > { %5289 = vmatmul.bf16.gmra.mxu1 %v13075_v36  ;;  %v6332_v35 = vadd.f32 %v6236_v43, %v6076_v2 }
 0x609   : > { %v4707_v11 = vpop.f32.mrf.mxu2 }
 0x60a   : > { %v6428_v53 = vmax.f32 %v6332_v35, 0.0  ;;  %v4708_v13 = vadd.f32 %v4707_v11, %v11480_v23  ;;  %v4796_v29 = vpop.f32.mrf.mxu3  ;;  %v8790_v35 = vld [vmem:[%s10380_s12 + $0x144] sm:$0xff] }
 0x60b   : > { %v4887_v19 = vpop.f32.mrf.mxu0  ;;  %v6242_v11 = vunpack.c.h.bf16 %v8790_v35  ;;  %v7969_v35 = vld [vmem:[%s12415_s1 + $0x4d0] sm:$0xf] }
 0x60c   : > { %6524 = vst [vmem:[%s10424_s29 + $0x260] sm:$0xff] %v6428_v53  ;;  %v4797_v62 = vadd.f32 %v4796_v29, %v4708_v13 }
 0x60d   : > { %v4976_v37 = vpop.f32.mrf.mxu1 }
 0x60e   : > { %v11916_v40 = vadd.f32 %v4976_v37, %v4887_v19  ;;  %v6079_v56 = vadd.f32 %v11542_v21, %v4797_v62  ;;  %v13076_v19 = vld [vmem:[#allocation58_spill] sm:$0xff]  ;;  %v13077_v62 = vld [vmem:[#allocation59_spill] sm:$0xff] }
 0x610   : > { %v6335_v7 = vadd.f32 %v6239_v58, %v6079_v56 }
 0x611   : > { %v4709_v43 = vpop.f32.mrf.mxu2 }
 0x612   : > { %v6431_v60 = vmax.f32 %v6335_v7, 0.0  ;;  %v4710_v2 = vadd.f32 %v4709_v43, %v11500_v14  ;;  %v4798_v24 = vpop.f32.mrf.mxu3  ;;  %v13079_v14 = vld [vmem:[#allocation61_spill] sm:$0xff] }
 0x613   : > { %v4890_v23 = vpop.f32.mrf.mxu0 }
 0x614   : > { %6527 = vst [vmem:[%s10424_s29 + $0x278] sm:$0xff] %v6431_v60  ;;  %v4799_v36 = vadd.f32 %v4798_v24, %v4710_v2  ;;  %v8791_v24 = vld [vmem:[%s10380_s12 + $0x150] sm:$0xff] }
 0x615   : > { %v4979_v53 = vpop.f32.mrf.mxu1 }
 0x616   : > { %v11922_v13 = vadd.f32 %v4979_v53, %v4890_v23  ;;  %v6082_v29 = vadd.f32 %v11542_v21, %v4799_v36  ;;  %5027 = vmatmul.bf16.gmra.mxu2 %v13076_v19  ;;  %5205 = vmatmul.bf16.gmra.mxu0 %v13077_v62  ;;  %v6245_v23 = vunpack.c.h.bf16 %v8791_v24  ;;  %v8615_v53 = vld [vmem:[%s12415_s1 + $0x4d8] sm:$0xf0] }
 0x617   : > { %5116 = vmatmul.bf16.gmra.mxu3 %v13078_v5  ;;  %v8639_v19 = vld [vmem:[%s12415_s1 + $0x598] sm:$0xf0] }
 0x618   : > { %5294 = vmatmul.bf16.gmra.mxu1 %v13079_v14  ;;  %v6338_v58 = vadd.f32 %v6242_v11, %v6082_v29  ;;  %v7970_v29 = vor.u32 %v8615_v53, %v7969_v35  ;;  %v8161_v14 = vld [vmem:[%s12415_s1 + $0x650] sm:$0xf]  ;;  %v8792_v35 = vld [vmem:[%s10380_s12 + $0x15c] sm:$0xff] }
 0x619   : > { %v4712_v37 = vpop.f32.mrf.mxu2  ;;  %v6248_v53 = vunpack.c.h.bf16 %v8792_v35 }
 0x61a   : > { %v6434_v56 = vmax.f32 %v6338_v58, 0.0  ;;  %v4713_v7 = vadd.f32 %v4712_v37, %v11503_v57  ;;  %v4801_v43 = vpop.f32.mrf.mxu3  ;;  %v8065_v57 = vld [vmem:[%s12415_s1 + $0x590] sm:$0xf]  ;;  %v8663_v58 = vld [vmem:[%s12415_s1 + $0x658] sm:$0xf0]  ;;  %5349 = vmatpush.bf16.msrb.mxu2 %v7970_v29 }
 0x61b   : > { %v4892_v60 = vpop.f32.mrf.mxu0  ;;  %v8066_v5 = vor.u32 %v8639_v19, %v8065_v57  ;;  %v8162_v37 = vor.u32 %v8663_v58, %v8161_v14 }
 0x61c   : > { %6530 = vst [vmem:[%s10424_s29 + $0x290] sm:$0xff] %v6434_v56  ;;  %v4802_v2 = vadd.f32 %v4801_v43, %v4713_v7 }
 0x61d   : > { %v4981_v36 = vpop.f32.mrf.mxu1  ;;  %5438 = vmatpush.bf16.msrb.mxu3 %v8066_v5  ;;  %5527 = vmatpush.bf16.msrb.mxu0 %v8162_v37  ;;  %v13082_v5 = vld [vmem:[#allocation64_spill] sm:$0xff] }
 0x61e   : > { %v11938_v11 = vadd.f32 %v4981_v36, %v4892_v60  ;;  %v6085_v62 = vadd.f32 %v11542_v21, %v4802_v2 }
 0x620   : > { %v6341_v56 = vadd.f32 %v6245_v23, %v6085_v62  ;;  %v13080_v23 = vld [vmem:[#allocation62_spill] sm:$0xff]  ;;  %v13081_v62 = vld [vmem:[#allocation63_spill] sm:$0xff] }
 0x621   : > { %v4714_v7 = vpop.f32.mrf.mxu2 }
 0x622   : > { %v6437_v43 = vmax.f32 %v6341_v56, 0.0  ;;  %v4715_v60 = vadd.f32 %v4714_v7, %v11517_v48  ;;  %v4803_v2 = vpop.f32.mrf.mxu3  ;;  %v13083_v48 = vld [vmem:[#allocation65_spill] sm:$0xff] }
 0x623   : > { %v4895_v24 = vpop.f32.mrf.mxu0 }
 0x624   : > { %6533 = vst [vmem:[%s10424_s29 + $0x2a8] sm:$0xff] %v6437_v43  ;;  %v4804_v36 = vadd.f32 %v4803_v2, %v4715_v60  ;;  %v8793_v2 = vld [vmem:[%s10380_s12 + $0x168] sm:$0xff] }
 0x625   : > { %v4984_v57 = vpop.f32.mrf.mxu1 }
 0x626   : > { %v11956_v19 = vadd.f32 %v4984_v57, %v4895_v24  ;;  %v6088_v29 = vadd.f32 %v11542_v21, %v4804_v36  ;;  %5032 = vmatmul.bf16.gmra.mxu2 %v13080_v23  ;;  %5210 = vmatmul.bf16.gmra.mxu0 %v13081_v62  ;;  %v6251_v24 = vunpack.c.h.bf16 %v8793_v2  ;;  %v13086_v2 = vld [vmem:[#allocation68_spill] sm:$0xff] }
 0x627   : > { %5121 = vmatmul.bf16.gmra.mxu3 %v13082_v5 }
 0x628   : > { %5299 = vmatmul.bf16.gmra.mxu1 %v13083_v48  ;;  %v6344_v14 = vadd.f32 %v6248_v53, %v6088_v29 }
 0x629   : > { %v4717_v58 = vpop.f32.mrf.mxu2 }
 0x62a   : > { %v6440_v37 = vmax.f32 %v6344_v14, 0.0  ;;  %v4718_v56 = vadd.f32 %v4717_v58, %v11526_v1  ;;  %v4806_v7 = vpop.f32.mrf.mxu3  ;;  %v8794_v14 = vld [vmem:[%s10380_s12 + $0x174] sm:$0xff] }
 0x62b   : > { %v4897_v43 = vpop.f32.mrf.mxu0  ;;  %v6254_v58 = vunpack.c.h.bf16 %v8794_v14 }
 0x62c   : > { %6536 = vst [vmem:[%s10424_s29 + $0x2c0] sm:$0xff] %v6440_v37  ;;  %v4807_v60 = vadd.f32 %v4806_v7, %v4718_v56  ;;  %v13084_v7 = vld [vmem:[#allocation66_spill] sm:$0xff] }
 0x62d   : > { %v4986_v36 = vpop.f32.mrf.mxu1 }
 0x62e   : > { %v11966_v35 = vadd.f32 %v4986_v36, %v4897_v43  ;;  %v6091_v57 = vadd.f32 %v11542_v21, %v4807_v60  ;;  %v13085_v43 = vld [vmem:[#allocation67_spill] sm:$0xff]  ;;  %v13087_v60 = vld [vmem:[#allocation69_spill] sm:$0xff] }
 0x630   : > { %v6347_v23 = vadd.f32 %v6251_v24, %v6091_v57  ;;  %v8612_v24 = vld [vmem:[%s12415_s1 + $0x4c0] sm:$0xf0] }
 0x631   : > { %v4719_v62 = vpop.f32.mrf.mxu2 }
 0x632   : > { %v6443_v53 = vmax.f32 %v6347_v23, 0.0  ;;  %v4720_v29 = vadd.f32 %v4719_v62, %v11536_v9  ;;  %v4808_v5 = vpop.f32.mrf.mxu3  ;;  %v7957_v9 = vld [vmem:[%s12415_s1 + $0x4b8] sm:$0xf]  ;;  %v8636_v23 = vld [vmem:[%s12415_s1 + $0x580] sm:$0xf0] }
 0x633   : > { %v5176_v1 = vpop.f32.mrf.mxu0  ;;  %v7958_v57 = vor.u32 %v8612_v24, %v7957_v9 }
 0x634   : > { %6539 = vst [vmem:[%s10424_s29 + $0x2d8] sm:$0xff] %v6443_v53  ;;  %v4809_v48 = vadd.f32 %v4808_v5, %v4720_v29 }
 0x635   : > { %v5265_v37 = vpop.f32.mrf.mxu1  ;;  %5350 = vmatpush.bf16.msrb.mxu2 %v7958_v57 }
 0x636   : > { %v6094_v56 = vadd.f32 %v11542_v21, %v4809_v48  ;;  %5037 = vmatmul.bf16.gmra.mxu2 %v13084_v7  ;;  %5215 = vmatmul.bf16.gmra.mxu0 %v13085_v43  ;;  %v8053_v21 = vld [vmem:[%s12415_s1 + $0x578] sm:$0xf] }
 0x637   : > { %5126 = vmatmul.bf16.gmra.mxu3 %v13086_v2  ;;  %v8054_v53 = vor.u32 %v8636_v23, %v8053_v21 }
 0x638   : > { %5304 = vmatmul.bf16.gmra.mxu1 %v13087_v60  ;;  %v6350_v36 = vadd.f32 %v6254_v58, %v6094_v56  ;;  %v8149_v58 = vld [vmem:[%s12415_s1 + $0x638] sm:$0xf]  ;;  %v8660_v56 = vld [vmem:[%s12415_s1 + $0x640] sm:$0xf0] }
 0x639   : > { %v4998_v62 = vpop.f32.mrf.mxu2  ;;  %5439 = vmatpush.bf16.msrb.mxu3 %v8054_v53  ;;  %v8150_v60 = vor.u32 %v8660_v56, %v8149_v58  ;;  %v13089_v53 = vld [vmem:[#allocation71_spill] sm:$0xff] }
 0x63a   : > { %v6446_v29 = vmax.f32 %v6350_v36, 0.0  ;;  %v4999_v5 = vadd.f32 %v4998_v62, %v11529_v3  ;;  %v5087_v48 = vpop.f32.mrf.mxu3  ;;  %v13088_v62 = vld [vmem:[#allocation70_spill] sm:$0xff] }
 0x63b   : > { %v5178_v14 = vpop.f32.mrf.mxu0  ;;  %5528 = vmatpush.bf16.msrb.mxu0 %v8150_v60 }
 0x63c   : > { %6542 = vst [vmem:[%s10424_s29 + $0x2f0] sm:$0xff] %v6446_v29  ;;  %v5088_v7 = vadd.f32 %v5087_v48, %v4999_v5  ;;  %v13090_v29 = vld [vmem:[#allocation72_spill] sm:$0xff]  ;;  %v13091_v5 = vld [vmem:[#allocation73_spill] sm:$0xff] }
 0x63d   : > { %v5267_v43 = vpop.f32.mrf.mxu1 }
 0x63e   : > { %v5177_v2 = vadd.f32 %v5176_v1, %v5088_v7 }
 0x640   : > { %v11997_v9 = vadd.f32 %v5265_v37, %v5177_v2 }
 0x641   : > { %v5000_v3 = vpop.f32.mrf.mxu2 }
 0x642   : > { %v5001_v24 = vadd.f32 %v5000_v3, %v11554_v41  ;;  %v5089_v21 = vpop.f32.mrf.mxu3  ;;  %v8678_v3 = vld [vmem:[%s12415_s1 + $0x6d0] sm:$0xf0] }
 0x643   : > { %v5181_v36 = vpop.f32.mrf.mxu0 }
 0x644   : > { %v5090_v57 = vadd.f32 %v5089_v21, %v5001_v24 }
 0x645   : > { %v5270_v23 = vpop.f32.mrf.mxu1 }
 0x646   : > { %v5179_v1 = vadd.f32 %v5178_v14, %v5090_v57  ;;  %5042 = vmatmul.bf16.gmra.mxu2 %v13088_v62  ;;  %5220 = vmatmul.bf16.gmra.mxu0 %v13089_v53  ;;  %v8221_v14 = vld [vmem:[%s12415_s1 + $0x6c8] sm:$0xf] }
 0x647   : > { %5131 = vmatmul.bf16.gmra.mxu3 %v13090_v29  ;;  %v8222_v24 = vor.u32 %v8678_v3, %v8221_v14  ;;  %v13092_v29 = vld [vmem:[#allocation74_spill] sm:$0xff] }
 0x648   : > { %5309 = vmatmul.bf16.gmra.mxu1 %v13091_v5  ;;  %v12004_v48 = vadd.f32 %v5267_v43, %v5179_v1  ;;  %v13093_v5 = vld [vmem:[#allocation76_spill] sm:$0xff] }
 0x649   : > { %v5003_v37 = vpop.f32.mrf.mxu2  ;;  %5619 = vmatpush.bf16.msrb.mxu1 %v8222_v24 }
 0x64a   : > { %v5004_v7 = vadd.f32 %v5003_v37, %v11569_v49  ;;  %v5092_v2 = vpop.f32.mrf.mxu3  ;;  %v8041_v37 = vld [vmem:[%s12415_s1 + $0x560] sm:$0xf] }
 0x64b   : > { %v5183_v41 = vpop.f32.mrf.mxu0 }
 0x64c   : > { %v5093_v58 = vadd.f32 %v5092_v2, %v5004_v7 }
 0x64d   : > { %v5272_v56 = vpop.f32.mrf.mxu1 }
 0x64e   : > { %v5182_v60 = vadd.f32 %v5181_v36, %v5093_v58 }
 0x650   : > { %v12013_v21 = vadd.f32 %v5270_v23, %v5182_v60  ;;  %v7945_v23 = vld [vmem:[%s12415_s1 + $0x4a0] sm:$0xf] }
 0x651   : > { %v5005_v43 = vpop.f32.mrf.mxu2 }
 0x652   : > { %v5006_v49 = vadd.f32 %v5005_v43, %v11586_v38  ;;  %v5094_v57 = vpop.f32.mrf.mxu3  ;;  %v8609_v38 = vld [vmem:[%s12415_s1 + $0x4a8] sm:$0xf0] }
 0x653   : > { %v5186_v1 = vpop.f32.mrf.mxu0  ;;  %v7946_v7 = vor.u32 %v8609_v38, %v7945_v23 }
 0x654   : > { %v5095_v62 = vadd.f32 %v5094_v57, %v5006_v49  ;;  %v8137_v49 = vld [vmem:[%s12415_s1 + $0x620] sm:$0xf] }
 0x655   : > { %v5275_v53 = vpop.f32.mrf.mxu1  ;;  %5351 = vmatpush.bf16.msrb.mxu2 %v7946_v7  ;;  %v13095_v7 = vld [vmem:[#allocation80_spill] sm:$0xff] }
 0x656   : > { %v5184_v36 = vadd.f32 %v5183_v41, %v5095_v62  ;;  %5047 = vmatmul.bf16.gmra.mxu2 %v13092_v29  ;;  %5225 = vmatmul.bf16.gmra.mxu0 %v12976_v20  ;;  %v8633_v20 = vld [vmem:[%s12415_s1 + $0x568] sm:$0xf0] }
 0x657   : > { %5136 = vmatmul.bf16.gmra.mxu3 %v13093_v5  ;;  %v8042_v41 = vor.u32 %v8633_v20, %v8041_v37  ;;  %v13094_v37 = vld [vmem:[#allocation78_spill] sm:$0xff] }
 0x658   : > { %5314 = vmatmul.bf16.gmra.mxu1 %v12977_v59  ;;  %v12032_v2 = vadd.f32 %v5272_v56, %v5184_v36  ;;  %v8657_v56 = vld [vmem:[%s12415_s1 + $0x628] sm:$0xf0] }
 0x659   : > { %v5008_v59 = vpop.f32.mrf.mxu2  ;;  %5440 = vmatpush.bf16.msrb.mxu3 %v8042_v41  ;;  %v8138_v57 = vor.u32 %v8657_v56, %v8137_v49 }
 0x65a   : > { %v5009_v58 = vadd.f32 %v5008_v59, %v11592_v25  ;;  %v5097_v60 = vpop.f32.mrf.mxu3 }
 0x65b   : > { %v5188_v14 = vpop.f32.mrf.mxu0  ;;  %5529 = vmatpush.bf16.msrb.mxu0 %v8138_v57 }
 0x65c   : > { %v5098_v3 = vadd.f32 %v5097_v60, %v5009_v58 }
 0x65d   : > { %v5277_v24 = vpop.f32.mrf.mxu1 }
 0x65e   : > { %v5187_v43 = vadd.f32 %v5186_v1, %v5098_v3 }
 0x660   : > { %v12041_v62 = vadd.f32 %v5275_v53, %v5187_v43 }
 0x661   : > { %v5010_v36 = vpop.f32.mrf.mxu2 }
 0x662   : > { %v5011_v25 = vadd.f32 %v5010_v36, %v11609_v4  ;;  %v5099_v29 = vpop.f32.mrf.mxu3 }
 0x663   : > { %v5191_v5 = vpop.f32.mrf.mxu0 }
 0x664   : > { %v5100_v23 = vadd.f32 %v5099_v29, %v5011_v25  ;;  %v7933_v25 = vld [vmem:[%s12415_s1 + $0x488] sm:$0xf] }
 0x665   : > { %v5280_v38 = vpop.f32.mrf.mxu1  ;;  %v8029_v29 = vld [vmem:[%s12415_s1 + $0x548] sm:$0xf] }
 0x666   : > { %v5189_v1 = vadd.f32 %v5188_v14, %v5100_v23  ;;  %5052 = vmatmul.bf16.gmra.mxu2 %v13094_v37  ;;  %5230 = vmatmul.bf16.gmra.mxu0 %v12978_v30 }
 0x667   : > { %5141 = vmatmul.bf16.gmra.mxu3 %v13095_v7 }
 0x668   : > { %5319 = vmatmul.bf16.gmra.mxu1 %v12979_v6  ;;  %v12048_v20 = vadd.f32 %v5277_v24, %v5189_v1  ;;  %v13096_v24 = vld [vmem:[#allocation82_spill] sm:$0xff] }
 0x669   : > { %v5013_v53 = vpop.f32.mrf.mxu2 }
 0x66a   : > { %v5014_v59 = vadd.f32 %v5013_v53, %v11627_v51  ;;  %v5102_v41 = vpop.f32.mrf.mxu3  ;;  %v13097_v51 = vld [vmem:[#allocation84_spill] sm:$0xff] }
 0x66b   : > { %v5193_v4 = vpop.f32.mrf.mxu0 }
 0x66c   : > { %v5103_v58 = vadd.f32 %v5102_v41, %v5014_v59 }
 0x66d   : > { %v5282_v60 = vpop.f32.mrf.mxu1 }
 0x66e   : > { %v5192_v3 = vadd.f32 %v5191_v5, %v5103_v58  ;;  %v8654_v58 = vld [vmem:[%s12415_s1 + $0x610] sm:$0xf0] }
 0x670   : > { %v12051_v43 = vadd.f32 %v5280_v38, %v5192_v3 }
 0x671   : > { %v5015_v14 = vpop.f32.mrf.mxu2 }
 0x672   : > { %v5016_v49 = vadd.f32 %v5015_v14, %v11644_v46  ;;  %v5104_v30 = vpop.f32.mrf.mxu3  ;;  %v8606_v46 = vld [vmem:[%s12415_s1 + $0x490] sm:$0xf0] }
 0x673   : > { %v5196_v56 = vpop.f32.mrf.mxu0  ;;  %v7934_v5 = vor.u32 %v8606_v46, %v7933_v25 }
 0x674   : > { %v5105_v57 = vadd.f32 %v5104_v30, %v5016_v49 }
 0x675   : > { %v5285_v36 = vpop.f32.mrf.mxu1  ;;  %5352 = vmatpush.bf16.msrb.mxu2 %v7934_v5 }
 0x676   : > { %v5194_v6 = vadd.f32 %v5193_v4, %v5105_v57  ;;  %5057 = vmatmul.bf16.gmra.mxu2 %v13096_v24  ;;  %5235 = vmatmul.bf16.gmra.mxu0 %v12980_v27  ;;  %v8630_v27 = vld [vmem:[%s12415_s1 + $0x550] sm:$0xf0]  ;;  %v8125_v4 = vld [vmem:[%s12415_s1 + $0x608] sm:$0xf]  ;;  %v13098_v24 = vld [vmem:[#allocation86_spill] sm:$0xff] }
 0x677   : > { %5146 = vmatmul.bf16.gmra.mxu3 %v13097_v51  ;;  %v8030_v38 = vor.u32 %v8630_v27, %v8029_v29  ;;  %v13099_v51 = vld [vmem:[#allocation88_spill] sm:$0xff] }
 0x678   : > { %5324 = vmatmul.bf16.gmra.mxu1 %v12981_v28  ;;  %v12070_v23 = vadd.f32 %v5282_v60, %v5194_v6  ;;  %v8126_v60 = vor.u32 %v8654_v58, %v8125_v4 }
 0x679   : > { %v5018_v28 = vpop.f32.mrf.mxu2  ;;  %5441 = vmatpush.bf16.msrb.mxu3 %v8030_v38 }
 0x67a   : > { %v5019_v1 = vadd.f32 %v5018_v28, %v11650_v0  ;;  %v5107_v37 = vpop.f32.mrf.mxu3  ;;  %5530 = vmatpush.bf16.msrb.mxu0 %v8126_v60 }
 0x67b   : > { %v5198_v7 = vpop.f32.mrf.mxu0 }
 0x67c   : > { %v5108_v53 = vadd.f32 %v5107_v37, %v5019_v1 }
 0x67d   : > { %v5287_v59 = vpop.f32.mrf.mxu1 }
 0x67e   : > { %v5197_v41 = vadd.f32 %v5196_v56, %v5108_v53 }
 0x680   : > { %v12079_v3 = vadd.f32 %v5285_v36, %v5197_v41 }
 0x681   : > { %v5020_v14 = vpop.f32.mrf.mxu2 }
 0x682   : > { %v5021_v0 = vadd.f32 %v5020_v14, %v11667_v31  ;;  %v5109_v49 = vpop.f32.mrf.mxu3 }
 0x683   : > { %v5201_v30 = vpop.f32.mrf.mxu0 }
 0x684   : > { %v5110_v57 = vadd.f32 %v5109_v49, %v5021_v0 }
 0x685   : > { %v5290_v6 = vpop.f32.mrf.mxu1 }
 0x686   : > { %v5199_v56 = vadd.f32 %v5198_v7, %v5110_v57  ;;  %5062 = vmatmul.bf16.gmra.mxu2 %v13098_v24  ;;  %5240 = vmatmul.bf16.gmra.mxu0 %v12982_v50 }
 0x687   : > { %5151 = vmatmul.bf16.gmra.mxu3 %v13099_v51 }
 0x688   : > { %5329 = vmatmul.bf16.gmra.mxu1 %v12983_v39  ;;  %v12086_v25 = vadd.f32 %v5287_v59, %v5199_v56  ;;  %v13100_v59 = vld [vmem:[#allocation90_spill] sm:$0xff] }
 0x689   : > { %v5023_v36 = vpop.f32.mrf.mxu2 }
 0x68a   : > { %v5024_v46 = vadd.f32 %v5023_v36, %v11685_v8  ;;  %v5112_v29 = vpop.f32.mrf.mxu3  ;;  %v13101_v8 = vld [vmem:[#allocation92_spill] sm:$0xff] }
 0x68b   : > { %v5203_v31 = vpop.f32.mrf.mxu0 }
 0x68c   : > { %v5113_v5 = vadd.f32 %v5112_v29, %v5024_v46  ;;  %v13102_v46 = vld [vmem:[#allocation94_spill] sm:$0xff] }
 0x68d   : > { %v5292_v27 = vpop.f32.mrf.mxu1 }
 0x68e   : > { %v5202_v28 = vadd.f32 %v5201_v30, %v5113_v5 }
 0x690   : > { %v12089_v38 = vadd.f32 %v5290_v6, %v5202_v28 }
 0x691   : > { %v5025_v1 = vpop.f32.mrf.mxu2 }
 0x692   : > { %v5026_v37 = vadd.f32 %v5025_v1, %v11702_v22  ;;  %v5114_v50 = vpop.f32.mrf.mxu3 }
 0x693   : > { %v5206_v7 = vpop.f32.mrf.mxu0 }
 0x694   : > { %v5115_v53 = vadd.f32 %v5114_v50, %v5026_v37 }
 0x695   : > { %v5295_v41 = vpop.f32.mrf.mxu1 }
 0x696   : > { %v5204_v39 = vadd.f32 %v5203_v31, %v5115_v53  ;;  %5067 = vmatmul.bf16.gmra.mxu2 %v13100_v59  ;;  %5245 = vmatmul.bf16.gmra.mxu0 %v12984_v18 }
 0x697   : > { %5156 = vmatmul.bf16.gmra.mxu3 %v13101_v8  ;;  %v13104_v8 = vld [vmem:[#allocation98_spill] sm:$0xff] }
 0x698   : > { %5334 = vmatmul.bf16.gmra.mxu1 %v12985_v52  ;;  %v12096_v4 = vadd.f32 %v5292_v27, %v5204_v39 }
 0x699   : > { %v5028_v58 = vpop.f32.mrf.mxu2 }
 0x69a   : > { %v5029_v60 = vadd.f32 %v5028_v58, %v11708_v44  ;;  %v5117_v14 = vpop.f32.mrf.mxu3  ;;  %v13103_v44 = vld [vmem:[#allocation96_spill] sm:$0xff]  ;;  %v13105_v58 = vld [vmem:[#allocation99_spill] sm:$0xff] }
 0x69b   : > { %v5208_v22 = vpop.f32.mrf.mxu0 }
 0x69c   : > { %v5118_v0 = vadd.f32 %v5117_v14, %v5029_v60  ;;  %v13107_v60 = vld [vmem:[#allocation101_spill] sm:$0xff] }
 0x69d   : > { %v5297_v49 = vpop.f32.mrf.mxu1 }
 0x69e   : > { %v5207_v30 = vadd.f32 %v5206_v7, %v5118_v0 }
 0x6a0   : > { %v12099_v57 = vadd.f32 %v5295_v41, %v5207_v30 }
 0x6a1   : > { %v5030_v6 = vpop.f32.mrf.mxu2 }
 0x6a2   : > { %v5031_v56 = vadd.f32 %v5030_v6, %v11725_v17  ;;  %v5119_v18 = vpop.f32.mrf.mxu3 }
 0x6a3   : > { %v5211_v24 = vpop.f32.mrf.mxu0 }
 0x6a4   : > { %v5120_v51 = vadd.f32 %v5119_v18, %v5031_v56 }
 0x6a5   : > { %v5300_v36 = vpop.f32.mrf.mxu1 }
 0x6a6   : > { %v5209_v52 = vadd.f32 %v5208_v22, %v5120_v51  ;;  %5072 = vmatmul.bf16.gmra.mxu2 %v13102_v46  ;;  %5250 = vmatmul.bf16.gmra.mxu0 %v12986_v63 }
 0x6a7   : > { %5161 = vmatmul.bf16.gmra.mxu3 %v13103_v44 }
 0x6a8   : > { %5339 = vmatmul.bf16.gmra.mxu1 %v12987_v16  ;;  %v12106_v29 = vadd.f32 %v5297_v49, %v5209_v52 }
 0x6a9   : > { %v5033_v31 = vpop.f32.mrf.mxu2 }
 0x6aa   : > { %v5034_v5 = vadd.f32 %v5033_v31, %v11743_v54  ;;  %v5122_v27 = vpop.f32.mrf.mxu3  ;;  %v13106_v54 = vld [vmem:[#allocation100_spill] sm:$0xff] }
 0x6ab   : > { %v5213_v17 = vpop.f32.mrf.mxu0 }
 0x6ac   : > { %v5123_v28 = vadd.f32 %v5122_v27, %v5034_v5  ;;  %v13108_v5 = vld [vmem:[#allocation102_spill] sm:$0xff]  ;;  %v13109_v27 = vld [vmem:[#allocation103_spill] sm:$0xff] }
 0x6ad   : > { %v5302_v1 = vpop.f32.mrf.mxu1 }
 0x6ae   : > { %v5212_v37 = vadd.f32 %v5211_v24, %v5123_v28 }
 0x6b0   : > { %v12109_v50 = vadd.f32 %v5300_v36, %v5212_v37 }
 0x6b1   : > { %v5035_v7 = vpop.f32.mrf.mxu2 }
 0x6b2   : > { %v5036_v53 = vadd.f32 %v5035_v7, %v11760_v47  ;;  %v5124_v63 = vpop.f32.mrf.mxu3 }
 0x6b3   : > { %v5216_v41 = vpop.f32.mrf.mxu0 }
 0x6b4   : > { %v5125_v39 = vadd.f32 %v5124_v63, %v5036_v53 }
 0x6b5   : > { %v5305_v59 = vpop.f32.mrf.mxu1 }
 0x6b6   : > { %v5214_v16 = vadd.f32 %v5213_v17, %v5125_v39  ;;  %5353 = vmatmul.bf16.vlgmr.msrb.gmra.mxu2 %v13104_v8  ;;  %5531 = vmatmul.bf16.vlgmr.msrb.gmra.mxu0 %v13105_v58  ;;  %v13111_v17 = vld [vmem:[#allocation105_spill] sm:$0xff] }
 0x6b7   : > { %5442 = vmatmul.bf16.vlgmr.msrb.gmra.mxu3 %v13106_v54 }
 0x6b8   : > { %8279 = vmatmul.msk.bf16.vlgmr.msrb.gmra.mxu1 %vm2982_vm0, %v13107_v60  ;;  %v12117_v14 = vadd.f32 %v5302_v1, %v5214_v16 }
 0x6b9   : > { %v5038_v22 = vpop.f32.mrf.mxu2 }
 0x6ba   : > { %v5039_v0 = vadd.f32 %v5038_v22, %v11766_v55  ;;  %v5127_v47 = vpop.f32.mrf.mxu3  ;;  %v13110_v55 = vld [vmem:[#allocation104_spill] sm:$0xff] }
 0x6bb   : > { %v5218_v49 = vpop.f32.mrf.mxu0 }
 0x6bc   : > { %v5128_v30 = vadd.f32 %v5127_v47, %v5039_v0  ;;  %v13112_v0 = vld [vmem:[#allocation106_spill] sm:$0xff]  ;;  %v13113_v47 = vld [vmem:[#allocation107_spill] sm:$0xff] }
 0x6bd   : > { %v5307_v6 = vpop.f32.mrf.mxu1 }
 0x6be   : > { %v5217_v56 = vadd.f32 %v5216_v41, %v5128_v30 }
 0x6c0   : > { %v12120_v18 = vadd.f32 %v5305_v59, %v5217_v56 }
 0x6c1   : > { %v5040_v24 = vpop.f32.mrf.mxu2 }
 0x6c2   : > { %v5041_v51 = vadd.f32 %v5040_v24, %v11782_v15  ;;  %v5129_v36 = vpop.f32.mrf.mxu3 }
 0x6c3   : > { %v5221_v52 = vpop.f32.mrf.mxu0 }
 0x6c4   : > { %v5130_v46 = vadd.f32 %v5129_v36, %v5041_v51 }
 0x6c5   : > { %v5310_v44 = vpop.f32.mrf.mxu1 }
 0x6c6   : > { %v5219_v31 = vadd.f32 %v5218_v49, %v5130_v46  ;;  %5358 = vmatmul.bf16.gmra.mxu2 %v13108_v5  ;;  %5536 = vmatmul.bf16.gmra.mxu0 %v13109_v27  ;;  %v13115_v49 = vld [vmem:[#allocation109_spill] sm:$0xff] }
 0x6c7   : > { %5447 = vmatmul.bf16.gmra.mxu3 %v13110_v55 }
 0x6c8   : > { %8280 = vmatmul.msk.bf16.gmra.mxu1 %vm2982_vm0, %v13111_v17  ;;  %v12128_v28 = vadd.f32 %v5307_v6, %v5219_v31 }
 0x6c9   : > { %v5043_v1 = vpop.f32.mrf.mxu2 }
 0x6ca   : > { %v5044_v37 = vadd.f32 %v5043_v1, %v11800_v33  ;;  %v5132_v15 = vpop.f32.mrf.mxu3  ;;  %v13114_v33 = vld [vmem:[#allocation108_spill] sm:$0xff] }
 0x6cb   : > { %v5223_v7 = vpop.f32.mrf.mxu0 }
 0x6cc   : > { %v5133_v53 = vadd.f32 %v5132_v15, %v5044_v37  ;;  %v13116_v37 = vld [vmem:[#allocation110_spill] sm:$0xff]  ;;  %v13117_v15 = vld [vmem:[#allocation111_spill] sm:$0xff] }
 0x6cd   : > { %v5312_v63 = vpop.f32.mrf.mxu1 }
 0x6ce   : > { %v5222_v41 = vadd.f32 %v5221_v52, %v5133_v53 }
 0x6d0   : > { %v12131_v39 = vadd.f32 %v5310_v44, %v5222_v41 }
 0x6d1   : > { %v5045_v59 = vpop.f32.mrf.mxu2 }
 0x6d2   : > { %v5046_v16 = vadd.f32 %v5045_v59, %v11810_v61  ;;  %v5134_v8 = vpop.f32.mrf.mxu3 }
 0x6d3   : > { %v5226_v58 = vpop.f32.mrf.mxu0 }
 0x6d4   : > { %v5135_v54 = vadd.f32 %v5134_v8, %v5046_v16 }
 0x6d5   : > { %v5315_v60 = vpop.f32.mrf.mxu1 }
 0x6d6   : > { %v5224_v22 = vadd.f32 %v5223_v7, %v5135_v54  ;;  %5363 = vmatmul.bf16.gmra.mxu2 %v13112_v0  ;;  %5541 = vmatmul.bf16.gmra.mxu0 %v13113_v47  ;;  %v13119_v7 = vld [vmem:[#allocation113_spill] sm:$0xff] }
 0x6d7   : > { %5452 = vmatmul.bf16.gmra.mxu3 %v13114_v33 }
 0x6d8   : > { %8281 = vmatmul.msk.bf16.gmra.mxu1 %vm2982_vm0, %v13115_v49  ;;  %v12139_v30 = vadd.f32 %v5312_v63, %v5224_v22 }
 0x6d9   : > { %v5048_v6 = vpop.f32.mrf.mxu2 }
 0x6da   : > { %v5049_v56 = vadd.f32 %v5048_v6, %v11816_v34  ;;  %v5137_v61 = vpop.f32.mrf.mxu3  ;;  %v13118_v34 = vld [vmem:[#allocation112_spill] sm:$0xff] }
 0x6db   : > { %v5228_v24 = vpop.f32.mrf.mxu0 }
 0x6dc   : > { %v5138_v51 = vadd.f32 %v5137_v61, %v5049_v56  ;;  %v13120_v56 = vld [vmem:[#allocation114_spill] sm:$0xff]  ;;  %v13121_v61 = vld [vmem:[#allocation115_spill] sm:$0xff] }
 0x6dd   : > { %v5317_v36 = vpop.f32.mrf.mxu1 }
 0x6de   : > { %v5227_v52 = vadd.f32 %v5226_v58, %v5138_v51 }
 0x6e0   : > { %v12142_v46 = vadd.f32 %v5315_v60, %v5227_v52 }
 0x6e1   : > { %v5050_v44 = vpop.f32.mrf.mxu2 }
 0x6e2   : > { %v5051_v31 = vadd.f32 %v5050_v44, %v11832_v42  ;;  %v5139_v5 = vpop.f32.mrf.mxu3 }
 0x6e3   : > { %v5231_v27 = vpop.f32.mrf.mxu0 }
 0x6e4   : > { %v5140_v55 = vadd.f32 %v5139_v5, %v5051_v31 }
 0x6e5   : > { %v5320_v17 = vpop.f32.mrf.mxu1 }
 0x6e6   : > { %v5229_v1 = vadd.f32 %v5228_v24, %v5140_v55  ;;  %5368 = vmatmul.bf16.gmra.mxu2 %v13116_v37  ;;  %5546 = vmatmul.bf16.gmra.mxu0 %v13117_v15  ;;  %v13123_v24 = vld [vmem:[#allocation117_spill] sm:$0xff] }
 0x6e7   : > { %5457 = vmatmul.bf16.gmra.mxu3 %v13118_v34 }
 0x6e8   : > { %8282 = vmatmul.msk.bf16.gmra.mxu1 %vm2982_vm0, %v13119_v7  ;;  %v12150_v53 = vadd.f32 %v5317_v36, %v5229_v1 }
 0x6e9   : > { %v5053_v63 = vpop.f32.mrf.mxu2 }
 0x6ea   : > { %v5054_v41 = vadd.f32 %v5053_v63, %v11850_v10  ;;  %v5142_v42 = vpop.f32.mrf.mxu3  ;;  %v13122_v10 = vld [vmem:[#allocation116_spill] sm:$0xff] }
 0x6eb   : > { %v5233_v59 = vpop.f32.mrf.mxu0 }
 0x6ec   : > { %v5143_v16 = vadd.f32 %v5142_v42, %v5054_v41  ;;  %v13124_v41 = vld [vmem:[#allocation118_spill] sm:$0xff]  ;;  %v13125_v42 = vld [vmem:[#allocation119_spill] sm:$0xff] }
 0x6ed   : > { %v5322_v8 = vpop.f32.mrf.mxu1 }
 0x6ee   : > { %v5232_v58 = vadd.f32 %v5231_v27, %v5143_v16 }
 0x6f0   : > { %v12153_v54 = vadd.f32 %v5320_v17, %v5232_v58 }
 0x6f1   : > { %v5055_v60 = vpop.f32.mrf.mxu2 }
 0x6f2   : > { %v5056_v22 = vadd.f32 %v5055_v60, %v11860_v12  ;;  %v5144_v0 = vpop.f32.mrf.mxu3 }
 0x6f3   : > { %v5236_v47 = vpop.f32.mrf.mxu0 }
 0x6f4   : > { %v5145_v33 = vadd.f32 %v5144_v0, %v5056_v22 }
 0x6f5   : > { %v5325_v49 = vpop.f32.mrf.mxu1 }
 0x6f6   : > { %v5234_v6 = vadd.f32 %v5233_v59, %v5145_v33  ;;  %5373 = vmatmul.bf16.gmra.mxu2 %v13120_v56  ;;  %5551 = vmatmul.bf16.gmra.mxu0 %v13121_v61  ;;  %v13127_v59 = vld [vmem:[#allocation121_spill] sm:$0xff] }
 0x6f7   : > { %5462 = vmatmul.bf16.gmra.mxu3 %v13122_v10 }
 0x6f8   : > { %8283 = vmatmul.msk.bf16.gmra.mxu1 %vm2982_vm0, %v13123_v24  ;;  %v12161_v51 = vadd.f32 %v5322_v8, %v5234_v6 }
 0x6f9   : > { %v5058_v36 = vpop.f32.mrf.mxu2 }
 0x6fa   : > { %v5059_v52 = vadd.f32 %v5058_v36, %v11866_v32  ;;  %v5147_v12 = vpop.f32.mrf.mxu3  ;;  %v13126_v32 = vld [vmem:[#allocation120_spill] sm:$0xff] }
 0x6fb   : > { %v5238_v44 = vpop.f32.mrf.mxu0 }
 0x6fc   : > { %v5148_v31 = vadd.f32 %v5147_v12, %v5059_v52  ;;  %v13128_v52 = vld [vmem:[#allocation122_spill] sm:$0xff]  ;;  %v13129_v12 = vld [vmem:[#allocation123_spill] sm:$0xff] }
 0x6fd   : > { %v5327_v5 = vpop.f32.mrf.mxu1 }
 0x6fe   : > { %v5237_v27 = vadd.f32 %v5236_v47, %v5148_v31 }
 0x700   : > { %v12164_v55 = vadd.f32 %v5325_v49, %v5237_v27 }
 0x701   : > { %v5060_v17 = vpop.f32.mrf.mxu2 }
 0x702   : > { %v5061_v1 = vadd.f32 %v5060_v17, %v11882_v45  ;;  %v5149_v37 = vpop.f32.mrf.mxu3 }
 0x703   : > { %v5241_v15 = vpop.f32.mrf.mxu0 }
 0x704   : > { %v5150_v34 = vadd.f32 %v5149_v37, %v5061_v1 }
 0x705   : > { %v5330_v7 = vpop.f32.mrf.mxu1 }
 0x706   : > { %v5239_v63 = vadd.f32 %v5238_v44, %v5150_v34  ;;  %5378 = vmatmul.bf16.gmra.mxu2 %v13124_v41  ;;  %5556 = vmatmul.bf16.gmra.mxu0 %v13125_v42  ;;  %v13131_v44 = vld [vmem:[#allocation125_spill] sm:$0xff] }
 0x707   : > { %5467 = vmatmul.bf16.gmra.mxu3 %v13126_v32 }
 0x708   : > { %8284 = vmatmul.msk.bf16.gmra.mxu1 %vm2982_vm0, %v13127_v59  ;;  %v12172_v16 = vadd.f32 %v5327_v5, %v5239_v63 }
 0x709   : > { %v5063_v8 = vpop.f32.mrf.mxu2 }
 0x70a   : > { %v5064_v58 = vadd.f32 %v5063_v8, %v11906_v26  ;;  %v5152_v45 = vpop.f32.mrf.mxu3  ;;  %v13130_v26 = vld [vmem:[#allocation124_spill] sm:$0xff] }
 0x70b   : > { %v5243_v60 = vpop.f32.mrf.mxu0 }
 0x70c   : > { %v5153_v22 = vadd.f32 %v5152_v45, %v5064_v58  ;;  %v13132_v58 = vld [vmem:[#allocation126_spill] sm:$0xff]  ;;  %v13133_v45 = vld [vmem:[#allocation127_spill] sm:$0xff] }
 0x70d   : > { %v5332_v0 = vpop.f32.mrf.mxu1 }
 0x70e   : > { %v5242_v47 = vadd.f32 %v5241_v15, %v5153_v22 }
 0x710   : > { %v12175_v33 = vadd.f32 %v5330_v7, %v5242_v47 }
 0x711   : > { %v5065_v49 = vpop.f32.mrf.mxu2 }
 0x712   : > { %v5066_v6 = vadd.f32 %v5065_v49, %v11916_v40  ;;  %v5154_v56 = vpop.f32.mrf.mxu3 }
 0x713   : > { %v5246_v61 = vpop.f32.mrf.mxu0 }
 0x714   : > { %v5155_v10 = vadd.f32 %v5154_v56, %v5066_v6 }
 0x715   : > { %v5335_v24 = vpop.f32.mrf.mxu1 }
 0x716   : > { %v5244_v36 = vadd.f32 %v5243_v60, %v5155_v10  ;;  %5383 = vmatmul.bf16.gmra.mxu2 %v13128_v52  ;;  %5561 = vmatmul.bf16.gmra.mxu0 %v13129_v12  ;;  %v13135_v60 = vld [vmem:[#allocation129_spill] sm:$0xff] }
 0x717   : > { %5472 = vmatmul.bf16.gmra.mxu3 %v13130_v26 }
 0x718   : > { %8285 = vmatmul.msk.bf16.gmra.mxu1 %vm2982_vm0, %v13131_v44  ;;  %v12183_v31 = vadd.f32 %v5332_v0, %v5244_v36 }
 0x719   : > { %v5068_v5 = vpop.f32.mrf.mxu2 }
 0x71a   : > { %v5069_v27 = vadd.f32 %v5068_v5, %v11922_v13  ;;  %v5157_v40 = vpop.f32.mrf.mxu3  ;;  %v13134_v13 = vld [vmem:[#allocation128_spill] sm:$0xff] }
 0x71b   : > { %v5248_v17 = vpop.f32.mrf.mxu0 }
 0x71c   : > { %v5158_v1 = vadd.f32 %v5157_v40, %v5069_v27  ;;  %v13136_v27 = vld [vmem:[#allocation130_spill] sm:$0xff]  ;;  %v13137_v40 = vld [vmem:[#allocation131_spill] sm:$0xff] }
 0x71d   : > { %v5337_v37 = vpop.f32.mrf.mxu1 }
 0x71e   : > { %v5247_v15 = vadd.f32 %v5246_v61, %v5158_v1 }
 0x720   : > { %v12186_v34 = vadd.f32 %v5335_v24, %v5247_v15 }
 0x721   : > { %v5070_v7 = vpop.f32.mrf.mxu2 }
 0x722   : > { %v5071_v63 = vadd.f32 %v5070_v7, %v11938_v11  ;;  %v5159_v41 = vpop.f32.mrf.mxu3 }
 0x723   : > { %v5251_v42 = vpop.f32.mrf.mxu0 }
 0x724   : > { %v5160_v32 = vadd.f32 %v5159_v41, %v5071_v63 }
 0x725   : > { %v5340_v59 = vpop.f32.mrf.mxu1 }
 0x726   : > { %v5249_v8 = vadd.f32 %v5248_v17, %v5160_v32  ;;  %5388 = vmatmul.bf16.gmra.mxu2 %v13132_v58  ;;  %5566 = vmatmul.bf16.gmra.mxu0 %v13133_v45  ;;  %v13139_v17 = vld [vmem:[#allocation133_spill] sm:$0xff] }
 0x727   : > { %5477 = vmatmul.bf16.gmra.mxu3 %v13134_v13 }
 0x728   : > { %8286 = vmatmul.msk.bf16.gmra.mxu1 %vm2982_vm0, %v13135_v60  ;;  %v12194_v22 = vadd.f32 %v5337_v37, %v5249_v8 }
 0x729   : > { %v5073_v0 = vpop.f32.mrf.mxu2 }
 0x72a   : > { %v5074_v47 = vadd.f32 %v5073_v0, %v11956_v19  ;;  %v5162_v11 = vpop.f32.mrf.mxu3  ;;  %v13138_v19 = vld [vmem:[#allocation132_spill] sm:$0xff] }
 0x72b   : > { %v5253_v49 = vpop.f32.mrf.mxu0 }
 0x72c   : > { %v5163_v6 = vadd.f32 %v5162_v11, %v5074_v47 }
 0x72d   : > { %v5342_v56 = vpop.f32.mrf.mxu1 }
 0x72e   : > { %v5252_v61 = vadd.f32 %v5251_v42, %v5163_v6  ;;  %v6097_v42 = vld [vmem:[%s10380_s12 + $0x8] sm:$0xf] }
 0x72f   : > { %v6162_v45 = vunpack.c.l.bf16 %v6097_v42 }
 0x730   : > { %v12197_v10 = vadd.f32 %v5340_v59, %v5252_v61  ;;  %v8795_v59 = vld [vmem:[%s12416_s2] sm:$0x7] }
 0x731   : > { %v5075_v24 = vpop.f32.mrf.mxu2  ;;  %v12212_v8 = vperm.slane %v8795_v59, 2 }
 0x732   : > { %v5076_v36 = vadd.f32 %v5075_v24, %v11966_v35  ;;  %v5164_v52 = vpop.f32.mrf.mxu3 }
 0x733   : > { %v5532_v12 = vpop.f32.mrf.mxu0 }
 0x734   : > { %v5165_v26 = vadd.f32 %v5164_v52, %v5076_v36  ;;  %v13140_v36 = vld [vmem:[#allocation134_spill] sm:$0xff]  ;;  %v13141_v52 = vld [vmem:[#allocation135_spill] sm:$0xff] }
 0x735   : > { %v5621_v44 = vpop.f32.mrf.mxu1 }
 0x736   : > { %v5254_v5 = vadd.f32 %v5253_v49, %v5165_v26  ;;  %5393 = vmatmul.bf16.gmra.mxu2 %v13136_v27  ;;  %5571 = vmatmul.bf16.gmra.mxu0 %v13137_v40  ;;  %v13143_v26 = vld [vmem:[#allocation137_spill] sm:$0xff] }
 0x737   : > { %5482 = vmatmul.bf16.gmra.mxu3 %v13138_v19 }
 0x738   : > { %8287 = vmatmul.msk.bf16.gmra.mxu1 %vm2982_vm0, %v13139_v17  ;;  %v12205_v1 = vadd.f32 %v5342_v56, %v5254_v5  ;;  %v6099_v56 = vld [vmem:[%s10380_s12 + $0x14] sm:$0xf] }
 0x739   : > { %v5354_v37 = vpop.f32.mrf.mxu2 }
 0x73a   : > { %v5355_v35 = vadd.f32 %v5354_v37, %v11997_v9  ;;  %v5443_v15 = vpop.f32.mrf.mxu3 }
 0x73b   : > { %v5534_v7 = vpop.f32.mrf.mxu0 }
 0x73c   : > { %v5444_v63 = vadd.f32 %v5443_v15, %v5355_v35 }
 0x73d   : > { %v5623_v41 = vpop.f32.mrf.mxu1 }
 0x73e   : > { %v5533_v32 = vadd.f32 %v5532_v12, %v5444_v63  ;;  %v13142_v12 = vld [vmem:[#allocation136_spill] sm:$0xff] }
 0x740   : > { %v5622_v58 = vadd.f32 %v5621_v44, %v5533_v32  ;;  %v6165_v44 = vunpack.c.l.bf16 %v6099_v56 }
 0x741   : > { %v5356_v13 = vpop.f32.mrf.mxu2 }
 0x742   : > { %v6002_v60 = vadd.f32 %v12212_v8, %v5622_v58  ;;  %v5357_v9 = vadd.f32 %v5356_v13, %v12004_v48  ;;  %v5445_v0 = vpop.f32.mrf.mxu3 }
 0x743   : > { %v5537_v47 = vpop.f32.mrf.mxu0 }
 0x744   : > { %v6258_v11 = vadd.f32 %v6162_v45, %v6002_v60  ;;  %v5446_v49 = vadd.f32 %v5445_v0, %v5357_v9 }
 0x745   : > { %v5626_v6 = vpop.f32.mrf.mxu1 }
 0x746   : > { %v6354_v61 = vmax.f32 %v6258_v11, 0.0  ;;  %v5535_v24 = vadd.f32 %v5534_v7, %v5446_v49  ;;  %5398 = vmatmul.bf16.gmra.mxu2 %v13140_v36  ;;  %5576 = vmatmul.bf16.gmra.mxu0 %v13141_v52  ;;  %v6101_v7 = vld [vmem:[%s10380_s12 + $0x20] sm:$0xf]  ;;  %v6103_v11 = vld [vmem:[%s10380_s12 + $0x2c] sm:$0xf] }
 0x747   : > { %5487 = vmatmul.bf16.gmra.mxu3 %v13142_v12  ;;  %v6168_v59 = vunpack.c.l.bf16 %v6101_v7  ;;  %v6171_v36 = vunpack.c.l.bf16 %v6103_v11  ;;  %v13151_v11 = vld [vmem:[#allocation145_spill] sm:$0xff] }
 0x748   : > { %8288 = vmatmul.msk.bf16.gmra.mxu1 %vm2982_vm0, %v13143_v26  ;;  %6450 = vst [vmem:[%s10424_s29 + $0x10] sm:$0xff] %v6354_v61  ;;  %v5624_v48 = vadd.f32 %v5623_v41, %v5535_v24  ;;  %v13144_v61 = vld [vmem:[#allocation138_spill] sm:$0xff]  ;;  %v13147_v24 = vld [vmem:[#allocation141_spill] sm:$0xff] }
 0x749   : > { %v5359_v5 = vpop.f32.mrf.mxu2 }
 0x74a   : > { %v6005_v27 = vadd.f32 %v12212_v8, %v5624_v48  ;;  %v5360_v40 = vadd.f32 %v5359_v5, %v12013_v21  ;;  %v5448_v19 = vpop.f32.mrf.mxu3 }
 0x74b   : > { %v5539_v17 = vpop.f32.mrf.mxu0 }
 0x74c   : > { %v6261_v37 = vadd.f32 %v6165_v44, %v6005_v27  ;;  %v5449_v35 = vadd.f32 %v5448_v19, %v5360_v40  ;;  %v6105_v19 = vld [vmem:[%s10380_s12 + $0x38] sm:$0xf] }
 0x74d   : > { %v5628_v15 = vpop.f32.mrf.mxu1  ;;  %v6174_v7 = vunpack.c.l.bf16 %v6105_v19 }
 0x74e   : > { %v6357_v63 = vmax.f32 %v6261_v37, 0.0  ;;  %v5538_v42 = vadd.f32 %v5537_v47, %v5449_v35  ;;  %v13145_v47 = vld [vmem:[#allocation139_spill] sm:$0xff] }
 0x750   : > { %6453 = vst [vmem:[%s10424_s29 + $0x28] sm:$0xff] %v6357_v63  ;;  %v5627_v32 = vadd.f32 %v5626_v6, %v5538_v42  ;;  %v13146_v6 = vld [vmem:[#allocation140_spill] sm:$0xff] }
 0x751   : > { %v5361_v41 = vpop.f32.mrf.mxu2 }
 0x752   : > { %v6008_v58 = vadd.f32 %v12212_v8, %v5627_v32  ;;  %v5362_v45 = vadd.f32 %v5361_v41, %v12032_v2  ;;  %v5450_v13 = vpop.f32.mrf.mxu3 }
 0x753   : > { %v5542_v21 = vpop.f32.mrf.mxu0 }
 0x754   : > { %v6264_v60 = vadd.f32 %v6168_v59, %v6008_v58  ;;  %v5451_v9 = vadd.f32 %v5450_v13, %v5362_v45  ;;  %v6107_v45 = vld [vmem:[%s10380_s12 + $0x44] sm:$0xf] }
 0x755   : > { %v5631_v0 = vpop.f32.mrf.mxu1 }
 0x756   : > { %v6360_v49 = vmax.f32 %v6264_v60, 0.0  ;;  %v5540_v56 = vadd.f32 %v5539_v17, %v5451_v9  ;;  %5403 = vmatmul.bf16.gmra.mxu2 %v13144_v61  ;;  %5581 = vmatmul.bf16.gmra.mxu0 %v13145_v47  ;;  %v13148_v9 = vld [vmem:[#allocation142_spill] sm:$0xff] }
 0x757   : > { %5492 = vmatmul.bf16.gmra.mxu3 %v13146_v6 }
 0x758   : > { %8289 = vmatmul.msk.bf16.gmra.mxu1 %vm2982_vm0, %v13147_v24  ;;  %6456 = vst [vmem:[%s10424_s29 + $0x40] sm:$0xff] %v6360_v49  ;;  %v5629_v2 = vadd.f32 %v5628_v15, %v5540_v56  ;;  %v6177_v49 = vunpack.c.l.bf16 %v6107_v45 }
 0x759   : > { %v5364_v52 = vpop.f32.mrf.mxu2 }
 0x75a   : > { %v6011_v12 = vadd.f32 %v12212_v8, %v5629_v2  ;;  %v5365_v26 = vadd.f32 %v5364_v52, %v12041_v62  ;;  %v5453_v48 = vpop.f32.mrf.mxu3 }
 0x75b   : > { %v5544_v44 = vpop.f32.mrf.mxu0 }
 0x75c   : > { %v6267_v5 = vadd.f32 %v6171_v36, %v6011_v12  ;;  %v5454_v27 = vadd.f32 %v5453_v48, %v5365_v26  ;;  %v6109_v12 = vld [vmem:[%s10380_s12 + $0x50] sm:$0xf] }
 0x75d   : > { %v5633_v40 = vpop.f32.mrf.mxu1 }
 0x75e   : > { %v6363_v17 = vmax.f32 %v6267_v5, 0.0  ;;  %v5543_v37 = vadd.f32 %v5542_v21, %v5454_v27  ;;  %v13149_v21 = vld [vmem:[#allocation143_spill] sm:$0xff]  ;;  %v6180_v5 = vunpack.c.l.bf16 %v6109_v12 }
 0x760   : > { %6459 = vst [vmem:[%s10424_s29 + $0x58] sm:$0xff] %v6363_v17  ;;  %v5632_v35 = vadd.f32 %v5631_v0, %v5543_v37  ;;  %v13150_v0 = vld [vmem:[#allocation144_spill] sm:$0xff] }
 0x761   : > { %v5366_v15 = vpop.f32.mrf.mxu2 }
 0x762   : > { %v6014_v63 = vadd.f32 %v12212_v8, %v5632_v35  ;;  %v5367_v42 = vadd.f32 %v5366_v15, %v12048_v20  ;;  %v5455_v32 = vpop.f32.mrf.mxu3  ;;  %v6111_v15 = vld [vmem:[%s10380_s12 + $0x5c] sm:$0xf] }
 0x763   : > { %v5547_v62 = vpop.f32.mrf.mxu0 }
 0x764   : > { %v6270_v59 = vadd.f32 %v6174_v7, %v6014_v63  ;;  %v5456_v41 = vadd.f32 %v5455_v32, %v5367_v42  ;;  %v13152_v32 = vld [vmem:[#allocation146_spill] sm:$0xff] }
 0x765   : > { %v5636_v58 = vpop.f32.mrf.mxu1 }
 0x766   : > { %v6366_v13 = vmax.f32 %v6270_v59, 0.0  ;;  %v5545_v60 = vadd.f32 %v5544_v44, %v5456_v41  ;;  %5408 = vmatmul.bf16.gmra.mxu2 %v13148_v9  ;;  %5586 = vmatmul.bf16.gmra.mxu0 %v13149_v21  ;;  %v13154_v59 = vld [vmem:[#allocation148_spill] sm:$0xff]  ;;  %v13155_v41 = vld [vmem:[#allocation149_spill] sm:$0xff] }
 0x767   : > { %5497 = vmatmul.bf16.gmra.mxu3 %v13150_v0 }
 0x768   : > { %8290 = vmatmul.msk.bf16.gmra.mxu1 %vm2982_vm0, %v13151_v11  ;;  %6462 = vst [vmem:[%s10424_s29 + $0x70] sm:$0xff] %v6366_v13  ;;  %v5634_v20 = vadd.f32 %v5633_v40, %v5545_v60 }
 0x769   : > { %v5369_v56 = vpop.f32.mrf.mxu2 }
 0x76a   : > { %v6017_v61 = vadd.f32 %v12212_v8, %v5634_v20  ;;  %v5370_v47 = vadd.f32 %v5369_v56, %v12051_v43  ;;  %v5458_v6 = vpop.f32.mrf.mxu3 }
 0x76b   : > { %v5549_v24 = vpop.f32.mrf.mxu0 }
 0x76c   : > { %v6273_v2 = vadd.f32 %v6177_v49, %v6017_v61  ;;  %v5459_v36 = vadd.f32 %v5458_v6, %v5370_v47  ;;  %v6113_v49 = vld [vmem:[%s10380_s12 + $0x68] sm:$0xf] }
 0x76d   : > { %v5638_v52 = vpop.f32.mrf.mxu1  ;;  %v6186_v6 = vunpack.c.l.bf16 %v6113_v49 }
 0x76e   : > { %v6369_v26 = vmax.f32 %v6273_v2, 0.0  ;;  %v5548_v48 = vadd.f32 %v5547_v62, %v5459_v36  ;;  %v13153_v62 = vld [vmem:[#allocation147_spill] sm:$0xff] }
 0x770   : > { %6465 = vst [vmem:[%s10424_s29 + $0x88] sm:$0xff] %v6369_v26  ;;  %v5637_v44 = vadd.f32 %v5636_v58, %v5548_v48  ;;  %v6183_v58 = vunpack.c.l.bf16 %v6111_v15 }
 0x771   : > { %v5371_v27 = vpop.f32.mrf.mxu2 }
 0x772   : > { %v6020_v40 = vadd.f32 %v12212_v8, %v5637_v44  ;;  %v5372_v19 = vadd.f32 %v5371_v27, %v12070_v23  ;;  %v5460_v17 = vpop.f32.mrf.mxu3  ;;  %v6115_v44 = vld [vmem:[%s10380_s12 + $0x74] sm:$0xf] }
 0x773   : > { %v5552_v43 = vpop.f32.mrf.mxu0 }
 0x774   : > { %v6276_v37 = vadd.f32 %v6180_v5, %v6020_v40  ;;  %v5461_v35 = vadd.f32 %v5460_v17, %v5372_v19  ;;  %v13156_v40 = vld [vmem:[#allocation150_spill] sm:$0xff]  ;;  %v13157_v19 = vld [vmem:[#allocation151_spill] sm:$0xff]  ;;  %v13158_v17 = vld [vmem:[#allocation152_spill] sm:$0xff] }
 0x775   : > { %v5641_v7 = vpop.f32.mrf.mxu1 }
 0x776   : > { %v6372_v63 = vmax.f32 %v6276_v37, 0.0  ;;  %v5550_v42 = vadd.f32 %v5549_v24, %v5461_v35  ;;  %5413 = vmatmul.bf16.gmra.mxu2 %v13152_v32  ;;  %5591 = vmatmul.bf16.gmra.mxu0 %v13153_v62  ;;  %v6189_v37 = vunpack.c.l.bf16 %v6115_v44 }
 0x777   : > { %5502 = vmatmul.bf16.gmra.mxu3 %v13154_v59 }
 0x778   : > { %8291 = vmatmul.msk.bf16.gmra.mxu1 %vm2982_vm0, %v13155_v41  ;;  %6468 = vst [vmem:[%s10424_s29 + $0xa0] sm:$0xff] %v6372_v63  ;;  %v5639_v23 = vadd.f32 %v5638_v52, %v5550_v42  ;;  %v6117_v41 = vld [vmem:[%s10380_s12 + $0x80] sm:$0xf] }
 0x779   : > { %v5374_v45 = vpop.f32.mrf.mxu2 }
 0x77a   : > { %v6023_v13 = vadd.f32 %v12212_v8, %v5639_v23  ;;  %v5375_v60 = vadd.f32 %v5374_v45, %v12079_v3  ;;  %v5463_v9 = vpop.f32.mrf.mxu3 }
 0x77b   : > { %v5554_v21 = vpop.f32.mrf.mxu0 }
 0x77c   : > { %v6279_v0 = vadd.f32 %v6183_v58, %v6023_v13  ;;  %v5464_v11 = vadd.f32 %v5463_v9, %v5375_v60  ;;  %v6192_v13 = vunpack.c.l.bf16 %v6117_v41 }
 0x77d   : > { %v5643_v20 = vpop.f32.mrf.mxu1 }
 0x77e   : > { %v6375_v56 = vmax.f32 %v6279_v0, 0.0  ;;  %v5553_v61 = vadd.f32 %v5552_v43, %v5464_v11  ;;  %v13159_v43 = vld [vmem:[#allocation153_spill] sm:$0xff] }
 0x780   : > { %6471 = vst [vmem:[%s10424_s29 + $0xb8] sm:$0xff] %v6375_v56  ;;  %v5642_v47 = vadd.f32 %v5641_v7, %v5553_v61  ;;  %v6119_v56 = vld [vmem:[%s10380_s12 + $0x8c] sm:$0xf] }
 0x781   : > { %v5376_v24 = vpop.f32.mrf.mxu2 }
 0x782   : > { %v6026_v2 = vadd.f32 %v12212_v8, %v5642_v47  ;;  %v5377_v36 = vadd.f32 %v5376_v24, %v12086_v25  ;;  %v5465_v52 = vpop.f32.mrf.mxu3  ;;  %v13161_v24 = vld [vmem:[#allocation155_spill] sm:$0xff] }
 0x783   : > { %v5557_v3 = vpop.f32.mrf.mxu0 }
 0x784   : > { %v6282_v12 = vadd.f32 %v6186_v6, %v6026_v2  ;;  %v5466_v26 = vadd.f32 %v5465_v52, %v5377_v36  ;;  %v13160_v6 = vld [vmem:[#allocation154_spill] sm:$0xff]  ;;  %v13162_v2 = vld [vmem:[#allocation156_spill] sm:$0xff]  ;;  %v13163_v36 = vld [vmem:[#allocation157_spill] sm:$0xff]  ;;  %v6195_v52 = vunpack.c.l.bf16 %v6119_v56 }
 0x785   : > { %v5646_v48 = vpop.f32.mrf.mxu1 }
 0x786   : > { %v6378_v5 = vmax.f32 %v6282_v12, 0.0  ;;  %v5555_v27 = vadd.f32 %v5554_v21, %v5466_v26  ;;  %5418 = vmatmul.bf16.gmra.mxu2 %v13156_v40  ;;  %5596 = vmatmul.bf16.gmra.mxu0 %v13157_v19  ;;  %v6121_v19 = vld [vmem:[%s10380_s12 + $0x98] sm:$0xf] }
 0x787   : > { %5507 = vmatmul.bf16.gmra.mxu3 %v13158_v17 }
 0x788   : > { %8292 = vmatmul.msk.bf16.gmra.mxu1 %vm2982_vm0, %v13159_v43  ;;  %6474 = vst [vmem:[%s10424_s29 + $0xd0] sm:$0xff] %v6378_v5  ;;  %v5644_v25 = vadd.f32 %v5643_v20, %v5555_v27 }
 0x789   : > { %v5379_v35 = vpop.f32.mrf.mxu2 }
 0x78a   : > { %v6029_v7 = vadd.f32 %v12212_v8, %v5644_v25  ;;  %v5380_v15 = vadd.f32 %v5379_v35, %v12089_v38  ;;  %v5468_v63 = vpop.f32.mrf.mxu3 }
 0x78b   : > { %v5559_v42 = vpop.f32.mrf.mxu0 }
 0x78c   : > { %v6285_v32 = vadd.f32 %v6189_v37, %v6029_v7  ;;  %v5469_v62 = vadd.f32 %v5468_v63, %v5380_v15  ;;  %v6198_v37 = vunpack.c.l.bf16 %v6121_v19 }
 0x78d   : > { %v5648_v59 = vpop.f32.mrf.mxu1 }
 0x78e   : > { %v6381_v23 = vmax.f32 %v6285_v32, 0.0  ;;  %v5558_v58 = vadd.f32 %v5557_v3, %v5469_v62 }
 0x790   : > { %6477 = vst [vmem:[%s10424_s29 + $0xe8] sm:$0xff] %v6381_v23  ;;  %v5647_v45 = vadd.f32 %v5646_v48, %v5558_v58  ;;  %v13164_v58 = vld [vmem:[#allocation158_spill] sm:$0xff] }
 0x791   : > { %v5381_v60 = vpop.f32.mrf.mxu2 }
 0x792   : > { %v6032_v9 = vadd.f32 %v12212_v8, %v5647_v45  ;;  %v5382_v21 = vadd.f32 %v5381_v60, %v12096_v4  ;;  %v5470_v0 = vpop.f32.mrf.mxu3  ;;  %v13165_v45 = vld [vmem:[#allocation159_spill] sm:$0xff]  ;;  %v13167_v60 = vld [vmem:[#allocation161_spill] sm:$0xff] }
 0x793   : > { %v5562_v38 = vpop.f32.mrf.mxu0 }
 0x794   : > { %v6288_v11 = vadd.f32 %v6192_v13, %v6032_v9  ;;  %v5471_v20 = vadd.f32 %v5470_v0, %v5382_v21  ;;  %v13166_v13 = vld [vmem:[#allocation160_spill] sm:$0xff] }
 0x795   : > { %v5651_v49 = vpop.f32.mrf.mxu1 }
 0x796   : > { %v6384_v61 = vmax.f32 %v6288_v11, 0.0  ;;  %v5560_v47 = vadd.f32 %v5559_v42, %v5471_v20  ;;  %5423 = vmatmul.bf16.gmra.mxu2 %v13160_v6  ;;  %5601 = vmatmul.bf16.gmra.mxu0 %v13161_v24 }
 0x797   : > { %5512 = vmatmul.bf16.gmra.mxu3 %v13162_v2 }
 0x798   : > { %8293 = vmatmul.msk.bf16.gmra.mxu1 %vm2982_vm0, %v13163_v36  ;;  %6480 = vst [vmem:[%s10424_s29 + $0x100] sm:$0xff] %v6384_v61  ;;  %v5649_v4 = vadd.f32 %v5648_v59, %v5560_v47  ;;  %v6123_v59 = vld [vmem:[%s10380_s12 + $0xa4] sm:$0xf]  ;;  %v6125_v47 = vld [vmem:[%s10380_s12 + $0xb0] sm:$0xf] }
 0x799   : > { %v5384_v3 = vpop.f32.mrf.mxu2  ;;  %v6201_v9 = vunpack.c.l.bf16 %v6123_v59  ;;  %v6204_v36 = vunpack.c.l.bf16 %v6125_v47 }
 0x79a   : > { %v6035_v12 = vadd.f32 %v12212_v8, %v5649_v4  ;;  %v5385_v26 = vadd.f32 %v5384_v3, %v12099_v57  ;;  %v5473_v48 = vpop.f32.mrf.mxu3 }
 0x79b   : > { %v5564_v44 = vpop.f32.mrf.mxu0 }
 0x79c   : > { %v6291_v5 = vadd.f32 %v6195_v52, %v6035_v12  ;;  %v5474_v27 = vadd.f32 %v5473_v48, %v5385_v26 }
 0x79d   : > { %v5653_v40 = vpop.f32.mrf.mxu1 }
 0x79e   : > { %v6387_v17 = vmax.f32 %v6291_v5, 0.0  ;;  %v5563_v43 = vadd.f32 %v5562_v38, %v5474_v27  ;;  %v6127_v5 = vld [vmem:[%s10380_s12 + $0xbc] sm:$0xf] }
 0x7a0   : > { %6483 = vst [vmem:[%s10424_s29 + $0x118] sm:$0xff] %v6387_v17  ;;  %v5652_v25 = vadd.f32 %v5651_v49, %v5563_v43  ;;  %v6207_v17 = vunpack.c.l.bf16 %v6127_v5 }
 0x7a1   : > { %v5386_v35 = vpop.f32.mrf.mxu2 }
 0x7a2   : > { %v6038_v7 = vadd.f32 %v12212_v8, %v5652_v25  ;;  %v5387_v15 = vadd.f32 %v5386_v35, %v12106_v29  ;;  %v5475_v63 = vpop.f32.mrf.mxu3 }
 0x7a3   : > { %v5567_v57 = vpop.f32.mrf.mxu0 }
 0x7a4   : > { %v6294_v42 = vadd.f32 %v6198_v37, %v6038_v7  ;;  %v5476_v32 = vadd.f32 %v5475_v63, %v5387_v15 }
 0x7a5   : > { %v5656_v62 = vpop.f32.mrf.mxu1 }
 0x7a6   : > { %v6390_v41 = vmax.f32 %v6294_v42, 0.0  ;;  %v5565_v23 = vadd.f32 %v5564_v44, %v5476_v32  ;;  %5428 = vmatmul.bf16.gmra.mxu2 %v13164_v58  ;;  %5606 = vmatmul.bf16.gmra.mxu0 %v13165_v45 }
 0x7a7   : > { %5517 = vmatmul.bf16.gmra.mxu3 %v13166_v13 }
 0x7a8   : > { %8294 = vmatmul.msk.bf16.gmra.mxu1 %vm2982_vm0, %v13167_v60  ;;  %6486 = vst [vmem:[%s10424_s29 + $0x130] sm:$0xff] %v6390_v41  ;;  %v5654_v29 = vadd.f32 %v5653_v40, %v5565_v23 }
 0x7a9   : > { %v5389_v21 = vpop.f32.mrf.mxu2 }
 0x7aa   : > { %v6041_v0 = vadd.f32 %v12212_v8, %v5654_v29  ;;  %v5390_v38 = vadd.f32 %v5389_v21, %v12109_v50  ;;  %v5478_v11 = vpop.f32.mrf.mxu3 }
 0x7ab   : > { %v5569_v20 = vpop.f32.mrf.mxu0 }
 0x7ac   : > { %v6297_v49 = vadd.f32 %v6201_v9, %v6041_v0  ;;  %v5479_v56 = vadd.f32 %v5478_v11, %v5390_v38  ;;  %v6131_v9 = vld [vmem:[%s10380_s12 + $0xd4] sm:$0xf] }
 0x7ad   : > { %v5658_v61 = vpop.f32.mrf.mxu1  ;;  %v6213_v11 = vunpack.c.l.bf16 %v6131_v9  ;;  %v6139_v9 = vld [vmem:[%s10380_s12 + $0x104] sm:$0xf] }
 0x7ae   : > { %v6393_v6 = vmax.f32 %v6297_v49, 0.0  ;;  %v5568_v24 = vadd.f32 %v5567_v57, %v5479_v56  ;;  %v6129_v57 = vld [vmem:[%s10380_s12 + $0xc8] sm:$0xf] }
 0x7af   : > { %v6210_v59 = vunpack.c.l.bf16 %v6129_v57 }
 0x7b0   : > { %6489 = vst [vmem:[%s10424_s29 + $0x148] sm:$0xff] %v6393_v6  ;;  %v5657_v2 = vadd.f32 %v5656_v62, %v5568_v24 }
 0x7b1   : > { %v5391_v4 = vpop.f32.mrf.mxu2 }
 0x7b2   : > { %v6044_v52 = vadd.f32 %v12212_v8, %v5657_v2  ;;  %v5392_v3 = vadd.f32 %v5391_v4, %v12117_v14  ;;  %v5480_v12 = vpop.f32.mrf.mxu3  ;;  %v6133_v2 = vld [vmem:[%s10380_s12 + $0xe0] sm:$0xf] }
 0x7b3   : > { %v5572_v50 = vpop.f32.mrf.mxu0 }
 0x7b4   : > { %v6300_v26 = vadd.f32 %v6204_v36, %v6044_v52  ;;  %v5481_v48 = vadd.f32 %v5480_v12, %v5392_v3  ;;  %v6216_v3 = vunpack.c.l.bf16 %v6133_v2 }
 0x7b5   : > { %v5661_v44 = vpop.f32.mrf.mxu1 }
 0x7b6   : > { %v6396_v27 = vmax.f32 %v6300_v26, 0.0  ;;  %v5570_v40 = vadd.f32 %v5569_v20, %v5481_v48 }
 0x7b8   : > { %6492 = vst [vmem:[%s10424_s29 + $0x160] sm:$0xff] %v6396_v27  ;;  %v5659_v19 = vadd.f32 %v5658_v61, %v5570_v40  ;;  %v6135_v40 = vld [vmem:[%s10380_s12 + $0xec] sm:$0xf] }
 0x7b9   : > { %v5394_v43 = vpop.f32.mrf.mxu2 }
 0x7ba   : > { %v6047_v25 = vadd.f32 %v12212_v8, %v5659_v19  ;;  %v5395_v37 = vadd.f32 %v5394_v43, %v12120_v18  ;;  %v5483_v35 = vpop.f32.mrf.mxu3 }
 0x7bb   : > { %v5574_v14 = vpop.f32.mrf.mxu0 }
 0x7bc   : > { %v6303_v7 = vadd.f32 %v6207_v17, %v6047_v25  ;;  %v5484_v15 = vadd.f32 %v5483_v35, %v5395_v37  ;;  %v6219_v25 = vunpack.c.l.bf16 %v6135_v40 }
 0x7bd   : > { %v5663_v63 = vpop.f32.mrf.mxu1 }
 0x7be   : > { %v6399_v42 = vmax.f32 %v6303_v7, 0.0  ;;  %v5573_v32 = vadd.f32 %v5572_v50, %v5484_v15 }
 0x7c0   : > { %6495 = vst [vmem:[%s10424_s29 + $0x178] sm:$0xff] %v6399_v42  ;;  %v5662_v62 = vadd.f32 %v5661_v44, %v5573_v32  ;;  %v6137_v42 = vld [vmem:[%s10380_s12 + $0xf8] sm:$0xf] }
 0x7c1   : > { %v5396_v41 = vpop.f32.mrf.mxu2 }
 0x7c2   : > { %v6050_v23 = vadd.f32 %v12212_v8, %v5662_v62  ;;  %v5397_v58 = vadd.f32 %v5396_v41, %v12128_v28  ;;  %v5485_v45 = vpop.f32.mrf.mxu3  ;;  %v6222_v41 = vunpack.c.l.bf16 %v6137_v42 }
 0x7c3   : > { %v5577_v18 = vpop.f32.mrf.mxu0 }
 0x7c4   : > { %v6306_v13 = vadd.f32 %v6210_v59, %v6050_v23  ;;  %v5486_v60 = vadd.f32 %v5485_v45, %v5397_v58 }
 0x7c5   : > { %v5666_v29 = vpop.f32.mrf.mxu1 }
 0x7c6   : > { %v6402_v21 = vmax.f32 %v6306_v13, 0.0  ;;  %v5575_v0 = vadd.f32 %v5574_v14, %v5486_v60 }
 0x7c8   : > { %6498 = vst [vmem:[%s10424_s29 + $0x190] sm:$0xff] %v6402_v21  ;;  %v5664_v38 = vadd.f32 %v5663_v63, %v5575_v0 }
 0x7c9   : > { %v5399_v20 = vpop.f32.mrf.mxu2 }
 0x7ca   : > { %v6053_v49 = vadd.f32 %v12212_v8, %v5664_v38  ;;  %v5400_v56 = vadd.f32 %v5399_v20, %v12131_v39  ;;  %v5488_v61 = vpop.f32.mrf.mxu3 }
 0x7cb   : > { %v5579_v28 = vpop.f32.mrf.mxu0 }
 0x7cc   : > { %v6309_v47 = vadd.f32 %v6213_v11, %v6053_v49  ;;  %v5489_v6 = vadd.f32 %v5488_v61, %v5400_v56  ;;  %v6225_v11 = vunpack.c.l.bf16 %v6139_v9 }
 0x7cd   : > { %v5668_v24 = vpop.f32.mrf.mxu1 }
 0x7ce   : > { %v6405_v36 = vmax.f32 %v6309_v47, 0.0  ;;  %v5578_v4 = vadd.f32 %v5577_v18, %v5489_v6 }
 0x7d0   : > { %6501 = vst [vmem:[%s10424_s29 + $0x1a8] sm:$0xff] %v6405_v36  ;;  %v5667_v52 = vadd.f32 %v5666_v29, %v5578_v4 }
 0x7d1   : > { %v5401_v12 = vpop.f32.mrf.mxu2 }
 0x7d2   : > { %v6056_v50 = vadd.f32 %v12212_v8, %v5667_v52  ;;  %v5402_v26 = vadd.f32 %v5401_v12, %v12139_v30  ;;  %v5490_v48 = vpop.f32.mrf.mxu3 }
 0x7d3   : > { %v5582_v39 = vpop.f32.mrf.mxu0 }
 0x7d4   : > { %v6312_v44 = vadd.f32 %v6216_v3, %v6056_v50  ;;  %v5491_v5 = vadd.f32 %v5490_v48, %v5402_v26 }
 0x7d5   : > { %v5671_v27 = vpop.f32.mrf.mxu1 }
 0x7d6   : > { %v6408_v19 = vmax.f32 %v6312_v44, 0.0  ;;  %v5580_v17 = vadd.f32 %v5579_v28, %v5491_v5  ;;  %v6143_v5 = vld [vmem:[%s10380_s12 + $0x11c] sm:$0xf] }
 0x7d8   : > { %6504 = vst [vmem:[%s10424_s29 + $0x1c0] sm:$0xff] %v6408_v19  ;;  %v5669_v43 = vadd.f32 %v5668_v24, %v5580_v17  ;;  %v6141_v24 = vld [vmem:[%s10380_s12 + $0x110] sm:$0xf]  ;;  %v6231_v17 = vunpack.c.l.bf16 %v6143_v5 }
 0x7d9   : > { %v5404_v37 = vpop.f32.mrf.mxu2  ;;  %v6228_v52 = vunpack.c.l.bf16 %v6141_v24 }
 0x7da   : > { %v6059_v35 = vadd.f32 %v12212_v8, %v5669_v43  ;;  %v5405_v14 = vadd.f32 %v5404_v37, %v12142_v46  ;;  %v5493_v7 = vpop.f32.mrf.mxu3 }
 0x7db   : > { %v5584_v30 = vpop.f32.mrf.mxu0 }
 0x7dc   : > { %v6315_v15 = vadd.f32 %v6219_v25, %v6059_v35  ;;  %v5494_v63 = vadd.f32 %v5493_v7, %v5405_v14 }
 0x7dd   : > { %v5673_v57 = vpop.f32.mrf.mxu1 }
 0x7de   : > { %v6411_v32 = vmax.f32 %v6315_v15, 0.0  ;;  %v5583_v62 = vadd.f32 %v5582_v39, %v5494_v63  ;;  %v6145_v15 = vld [vmem:[%s10380_s12 + $0x128] sm:$0xf] }
 0x7e0   : > { %6507 = vst [vmem:[%s10424_s29 + $0x1d8] sm:$0xff] %v6411_v32  ;;  %v5672_v59 = vadd.f32 %v5671_v27, %v5583_v62  ;;  %v6234_v32 = vunpack.c.l.bf16 %v6145_v15 }
 0x7e1   : > { %v5406_v23 = vpop.f32.mrf.mxu2 }
 0x7e2   : > { %v6062_v58 = vadd.f32 %v12212_v8, %v5672_v59  ;;  %v5407_v45 = vadd.f32 %v5406_v23, %v12150_v53  ;;  %v5495_v18 = vpop.f32.mrf.mxu3 }
 0x7e3   : > { %v5587_v46 = vpop.f32.mrf.mxu0 }
 0x7e4   : > { %v6318_v13 = vadd.f32 %v6222_v41, %v6062_v58  ;;  %v5496_v60 = vadd.f32 %v5495_v18, %v5407_v45  ;;  %v6147_v18 = vld [vmem:[%s10380_s12 + $0x134] sm:$0xf] }
 0x7e5   : > { %v5676_v29 = vpop.f32.mrf.mxu1  ;;  %v6237_v9 = vunpack.c.l.bf16 %v6147_v18 }
 0x7e6   : > { %v6414_v21 = vmax.f32 %v6318_v13, 0.0  ;;  %v5585_v0 = vadd.f32 %v5584_v30, %v5496_v60 }
 0x7e8   : > { %6510 = vst [vmem:[%s10424_s29 + $0x1f0] sm:$0xff] %v6414_v21  ;;  %v5674_v38 = vadd.f32 %v5673_v57, %v5585_v0 }
 0x7e9   : > { %v5409_v20 = vpop.f32.mrf.mxu2 }
 0x7ea   : > { %v6065_v49 = vadd.f32 %v12212_v8, %v5674_v38  ;;  %v5410_v56 = vadd.f32 %v5409_v20, %v12153_v54  ;;  %v5498_v61 = vpop.f32.mrf.mxu3 }
 0x7eb   : > { %v5589_v53 = vpop.f32.mrf.mxu0 }
 0x7ec   : > { %v6321_v28 = vadd.f32 %v6225_v11, %v6065_v49  ;;  %v5499_v47 = vadd.f32 %v5498_v61, %v5410_v56  ;;  %v6149_v49 = vld [vmem:[%s10380_s12 + $0x140] sm:$0xf] }
 0x7ed   : > { %v5678_v6 = vpop.f32.mrf.mxu1 }
 0x7ee   : > { %v6417_v2 = vmax.f32 %v6321_v28, 0.0  ;;  %v5588_v36 = vadd.f32 %v5587_v46, %v5499_v47 }
 0x7f0   : > { %6513 = vst [vmem:[%s10424_s29 + $0x208] sm:$0xff] %v6417_v2  ;;  %v5677_v4 = vadd.f32 %v5676_v29, %v5588_v36 }
 0x7f1   : > { %v5411_v3 = vpop.f32.mrf.mxu2 }
 0x7f2   : > { %v6068_v12 = vadd.f32 %v12212_v8, %v5677_v4  ;;  %v5412_v50 = vadd.f32 %v5411_v3, %v12161_v51  ;;  %v5500_v26 = vpop.f32.mrf.mxu3  ;;  %v6151_v3 = vld [vmem:[%s10380_s12 + $0x14c] sm:$0xf] }
 0x7f3   : > { %v5592_v54 = vpop.f32.mrf.mxu0 }
 0x7f4   : > { %v6324_v48 = vadd.f32 %v6228_v52, %v6068_v12  ;;  %v5501_v39 = vadd.f32 %v5500_v26, %v5412_v50 }
 0x7f5   : > { %v5681_v44 = vpop.f32.mrf.mxu1 }
 0x7f6   : > { %v6420_v27 = vmax.f32 %v6324_v48, 0.0  ;;  %v5590_v40 = vadd.f32 %v5589_v53, %v5501_v39  ;;  %v6243_v48 = vunpack.c.l.bf16 %v6151_v3 }
 0x7f8   : > { %6516 = vst [vmem:[%s10424_s29 + $0x220] sm:$0xff] %v6420_v27  ;;  %v5679_v19 = vadd.f32 %v5678_v6, %v5590_v40  ;;  %v6240_v6 = vunpack.c.l.bf16 %v6149_v49 }
 0x7f9   : > { %v5414_v43 = vpop.f32.mrf.mxu2 }
 0x7fa   : > { %v6071_v25 = vadd.f32 %v12212_v8, %v5679_v19  ;;  %v5415_v37 = vadd.f32 %v5414_v43, %v12164_v55  ;;  %v5503_v35 = vpop.f32.mrf.mxu3 }
 0x7fb   : > { %v5594_v51 = vpop.f32.mrf.mxu0 }
 0x7fc   : > { %v6327_v14 = vadd.f32 %v6231_v17, %v6071_v25  ;;  %v5504_v7 = vadd.f32 %v5503_v35, %v5415_v37  ;;  %v6153_v17 = vld [vmem:[%s10380_s12 + $0x158] sm:$0xf] }
 0x7fd   : > { %v5683_v30 = vpop.f32.mrf.mxu1  ;;  %v6246_v35 = vunpack.c.l.bf16 %v6153_v17 }
 0x7fe   : > { %v6423_v63 = vmax.f32 %v6327_v14, 0.0  ;;  %v5593_v57 = vadd.f32 %v5592_v54, %v5504_v7 }
 0x800   : > { %6519 = vst [vmem:[%s10424_s29 + $0x238] sm:$0xff] %v6423_v63  ;;  %v5682_v42 = vadd.f32 %v5681_v44, %v5593_v57 }
 0x801   : > { %v5416_v62 = vpop.f32.mrf.mxu2 }
 0x802   : > { %v6074_v59 = vadd.f32 %v12212_v8, %v5682_v42  ;;  %v5417_v41 = vadd.f32 %v5416_v62, %v12172_v16  ;;  %v5505_v23 = vpop.f32.mrf.mxu3  ;;  %v6155_v42 = vld [vmem:[%s10380_s12 + $0x164] sm:$0xf] }
 0x803   : > { %v5597_v55 = vpop.f32.mrf.mxu0 }
 0x804   : > { %v6330_v58 = vadd.f32 %v6234_v32, %v6074_v59  ;;  %v5506_v45 = vadd.f32 %v5505_v23, %v5417_v41  ;;  %v6249_v41 = vunpack.c.l.bf16 %v6155_v42 }
 0x805   : > { %v5686_v46 = vpop.f32.mrf.mxu1 }
 0x806   : > { %v6426_v13 = vmax.f32 %v6330_v58, 0.0  ;;  %v5595_v60 = vadd.f32 %v5594_v51, %v5506_v45 }
 0x808   : > { %6522 = vst [vmem:[%s10424_s29 + $0x250] sm:$0xff] %v6426_v13  ;;  %v5684_v29 = vadd.f32 %v5683_v30, %v5595_v60  ;;  %v6157_v60 = vld [vmem:[%s10380_s12 + $0x170] sm:$0xf] }
 0x809   : > { %v5419_v21 = vpop.f32.mrf.mxu2 }
 0x80a   : > { %v6077_v0 = vadd.f32 %v12212_v8, %v5684_v29  ;;  %v5420_v38 = vadd.f32 %v5419_v21, %v12175_v33  ;;  %v5508_v11 = vpop.f32.mrf.mxu3 }
 0x80b   : > { %v5599_v56 = vpop.f32.mrf.mxu0 }
 0x80c   : > { %v6333_v16 = vadd.f32 %v6237_v9, %v6077_v0  ;;  %v5509_v20 = vadd.f32 %v5508_v11, %v5420_v38  ;;  %v6252_v0 = vunpack.c.l.bf16 %v6157_v60 }
 0x80d   : > { %v5688_v28 = vpop.f32.mrf.mxu1 }
 0x80e   : > { %v6429_v61 = vmax.f32 %v6333_v16, 0.0  ;;  %v5598_v53 = vadd.f32 %v5597_v55, %v5509_v20 }
 0x810   : > { %6525 = vst [vmem:[%s10424_s29 + $0x268] sm:$0xff] %v6429_v61  ;;  %v5687_v47 = vadd.f32 %v5686_v46, %v5598_v53  ;;  %v6159_v61 = vld [vmem:[%s10380_s12 + $0x17c] sm:$0xf]  ;;  %s6545_s12 = scalar_lea.sflag [#allocation4], %s295_s24 }
 0x811   : > { %v5421_v24 = vpop.f32.mrf.mxu2 }
 0x812   : > { %v6080_v2 = vadd.f32 %v12212_v8, %v5687_v47  ;;  %v5422_v36 = vadd.f32 %v5421_v24, %v12183_v31  ;;  %v5510_v4 = vpop.f32.mrf.mxu3  ;;  %v6255_v24 = vunpack.c.l.bf16 %v6159_v61 }
 0x813   : > { %v5602_v26 = vpop.f32.mrf.mxu0 }
 0x814   : > { %v6336_v33 = vadd.f32 %v6240_v6, %v6080_v2  ;;  %v5511_v52 = vadd.f32 %v5510_v4, %v5422_v36 }
 0x815   : > { %v5691_v39 = vpop.f32.mrf.mxu1 }
 0x816   : > { %v6432_v12 = vmax.f32 %v6336_v33, 0.0  ;;  %v5600_v50 = vadd.f32 %v5599_v56, %v5511_v52 }
 0x818   : > { %6528 = vst [vmem:[%s10424_s29 + $0x280] sm:$0xff] %v6432_v12  ;;  %v5689_v54 = vadd.f32 %v5688_v28, %v5600_v50 }
 0x819   : > { %v5424_v44 = vpop.f32.mrf.mxu2 }
 0x81a   : > { %v6083_v5 = vadd.f32 %v12212_v8, %v5689_v54  ;;  %v5425_v27 = vadd.f32 %v5424_v44, %v12186_v34  ;;  %v5513_v40 = vpop.f32.mrf.mxu3 }
 0x81b   : > { %v5604_v51 = vpop.f32.mrf.mxu0 }
 0x81c   : > { %v6339_v31 = vadd.f32 %v6243_v48, %v6083_v5  ;;  %v5514_v19 = vadd.f32 %v5513_v40, %v5425_v27 }
 0x81d   : > { %v5693_v63 = vpop.f32.mrf.mxu1 }
 0x81e   : > { %v6435_v43 = vmax.f32 %v6339_v31, 0.0  ;;  %v5603_v25 = vadd.f32 %v5602_v26, %v5514_v19 }
 0x820   : > { %6531 = vst [vmem:[%s10424_s29 + $0x298] sm:$0xff] %v6435_v43  ;;  %v5692_v37 = vadd.f32 %v5691_v39, %v5603_v25 }
 0x821   : > { %v5426_v14 = vpop.f32.mrf.mxu2 }
 0x822   : > { %v6086_v7 = vadd.f32 %v12212_v8, %v5692_v37  ;;  %v5427_v30 = vadd.f32 %v5426_v14, %v12194_v22  ;;  %v5515_v15 = vpop.f32.mrf.mxu3 }
 0x823   : > { %v5607_v22 = vpop.f32.mrf.mxu0 }
 0x824   : > { %v6342_v34 = vadd.f32 %v6246_v35, %v6086_v7  ;;  %v5516_v57 = vadd.f32 %v5515_v15, %v5427_v30 }
 0x825   : > { %v5696_v13 = vpop.f32.mrf.mxu1 }
 0x826   : > { %v6438_v32 = vmax.f32 %v6342_v34, 0.0  ;;  %v5605_v62 = vadd.f32 %v5604_v51, %v5516_v57 }
 0x828   : > { %6534 = vst [vmem:[%s10424_s29 + $0x2b0] sm:$0xff] %v6438_v32  ;;  %v5694_v59 = vadd.f32 %v5693_v63, %v5605_v62 }
 0x829   : > { %v5429_v23 = vpop.f32.mrf.mxu2 }
 0x82a   : > { %v6089_v55 = vadd.f32 %v12212_v8, %v5694_v59  ;;  %v5430_v58 = vadd.f32 %v5429_v23, %v12197_v10  ;;  %v5518_v45 = vpop.f32.mrf.mxu3 }
 0x82b   : > { %v5609_v56 = vpop.f32.mrf.mxu0 }
 0x82c   : > { %v6345_v18 = vadd.f32 %v6249_v41, %v6089_v55  ;;  %v5519_v46 = vadd.f32 %v5518_v45, %v5430_v58 }
 0x82d   : > { %v5698_v47 = vpop.f32.mrf.mxu1 }
 0x82e   : > { %v6441_v29 = vmax.f32 %v6345_v18, 0.0  ;;  %v5608_v9 = vadd.f32 %v5607_v22, %v5519_v46 }
 0x830   : > { %6537 = vst [vmem:[%s10424_s29 + $0x2c8] sm:$0xff] %v6441_v29  ;;  %v5697_v21 = vadd.f32 %v5696_v13, %v5608_v9 }
 0x831   : > { %v5431_v38 = vpop.f32.mrf.mxu2 }
 0x832   : > { %v6092_v11 = vadd.f32 %v12212_v8, %v5697_v21  ;;  %v5432_v10 = vadd.f32 %v5431_v38, %v12205_v1  ;;  %v5520_v16 = vpop.f32.mrf.mxu3 }
 0x834   : > { %v6348_v20 = vadd.f32 %v6252_v0, %v6092_v11  ;;  %v5521_v49 = vadd.f32 %v5520_v16, %v5432_v10 }
 0x836   : > { %v6444_v53 = vmax.f32 %v6348_v20, 0.0  ;;  %v5610_v28 = vadd.f32 %v5609_v56, %v5521_v49 }
 0x838   : > { %6540 = vst [vmem:[%s10424_s29 + $0x2e0] sm:$0xff] %v6444_v53  ;;  %v5699_v6 = vadd.f32 %v5698_v47, %v5610_v28 }
 0x83a   : > { %v6095_v1 = vadd.f32 %v12212_v8, %v5699_v6 }
 0x83c   : > { %v6351_v2 = vadd.f32 %v6255_v24, %v6095_v1 }
 0x83e   : > { %v6447_v36 = vmax.f32 %v6351_v2, 0.0 }
 0x840   : > { %6543 = vst [vmem:[%s10424_s29 + $0x2f8] sm:$0xff] %v6447_v36 }
 0x841   : > { %8823 = shalt.err (!%p8820_p5)
}
 0x842   : > { %s8876_s24 = smov 384   ;;  %s8877_s29 = smov 24  }
 0x843   : > { %8705 = dma.vmem_to_hbm [thread:$0]  (%p8943_p4), %s6561_s18, 12288, %s6563_s26, %s6545_s12, %s8876_s24, %s8876_s24, %s8877_s29  }
 0x844 PF: > { %p8711_p6 = scmp.ge.s32.totalorder %s8874_s20, 2  ;;  %s6577_s30 = sand.u32 1, %s8854_s15  }
 0x845   : > { %s6578_s6 = scalar_lea.sflag [#allocation4], %s6577_s30 }
 0x846   : > { %p8708_p7 = pnand %p8711_p6, %p8950_p8 }
 0x848   : > { %p8709_p9 = pneg %p8708_p7 }
 0x84a   : > { %8849 = dma.done.wait (%p8709_p9), %s6578_s6, 12288  }
 0x84b   : > { %8851 = vsyncadd (%p8709_p9), %s6578_s6, 4294955008  ;;  %s17_s20 = sadd.s32 1, %s8874_s20   ;;  %s13168_s15 = smov %s8858_s16 }
 0x84c   : > { %p14_p10 = scmp.ge.s32.totalorder %s17_s20, 6   ;;  %s13169_s16 = smov %s8862_s17 }
 0x84d   : > { %s13170_s17 = smov %s8956_s28  ;;  %s13171_s18 = smov %s8870_s19 }
 0x84e   : > { %s13172_s19 = smov %s13174_s23  ;;  %16 = sbr.rel (!%p14_p10) target bundleno = 4 (0x4), region = 88 }
 0x853   :  { %6584 = vsyncpa [#allocation4], 1 }
 0x854   :  { %6586 = vsyncpa [#allocation4 + $0x1], 1 }

</bundles_post_ra>
